<compile_context>
chip_gen: v7x
topology: tpu7x:2x2x1
jax: 0.10.0
libtpu: 0.0.40
codegen_flags: <defaults>
</compile_context>

<pallas_src>
import numpy as np
import jax
import jax.numpy as jnp
from jax.experimental import pallas as pl
from jax.experimental.pallas import tpu as pltpu


def _round_up(x, m):
    return ((x + m - 1) // m) * m


# ----------------------------------------------------------------------------
# Pallas kernels
# ----------------------------------------------------------------------------
def conv_relu_pool_kernel(p_ref, w_ref, b_ref, o_ref):
    """Fused valid 3x3 conv + bias + ReLU + 3x3/s2 max-pool.

    p_ref: (9, TM, K) bf16 -- for each of the 9 pool-window offsets, the im2col
           patch (K = 9*Cin) of the conv position feeding that offset, for TM
           pooled output locations.
    w_ref: (K, Cout) bf16;  b_ref: (1, Cout) f32;  o_ref: (TM, Cout) f32.

    Max-pool commutes with the (shared) bias add and ReLU, so the kernel takes
    a running max over the 9 matmuls and applies bias+ReLU once at the end.
    """
    w = w_ref[...]
    acc = jnp.dot(p_ref[0], w, preferred_element_type=jnp.float32)
    for win in range(1, 9):
        acc = jnp.maximum(
            acc, jnp.dot(p_ref[win], w, preferred_element_type=jnp.float32))
    o_ref[...] = jnp.maximum(acc + b_ref[...], 0.0).astype(o_ref.dtype)


def classifier_kernel(x_ref, w1_ref, b1_ref, w2_ref, b2_ref, w3_ref, b3_ref,
                      o_ref):
    # Fused classifier: (avgpool-folded) fc1+ReLU, fc2+ReLU, fc3, log_softmax.
    x = x_ref[...]                                               # (TB, K1) f32
    h = jnp.dot(x.astype(w1_ref.dtype), w1_ref[...],
                preferred_element_type=jnp.float32)
    h = jnp.maximum(h + b1_ref[...], 0.0)
    h = jnp.dot(h.astype(w2_ref.dtype), w2_ref[...],
                preferred_element_type=jnp.float32)
    h = jnp.maximum(h + b2_ref[...], 0.0)
    logits = jnp.dot(h.astype(w3_ref.dtype), w3_ref[...],
                     preferred_element_type=jnp.float32)
    logits = logits + b3_ref[...]
    m = jnp.max(logits, axis=-1, keepdims=True)
    s = logits - m
    lse = jnp.log(jnp.sum(jnp.exp(s), axis=-1, keepdims=True))
    o_ref[...] = (s - lse).astype(o_ref.dtype)


# ----------------------------------------------------------------------------
# Pallas wrappers
# ----------------------------------------------------------------------------
def conv_relu_pool(x, w_kc, b, *, tm=256):
    """x: (N, H, W, Cin) f32 NHWC -> (N, Hp, Wp, Cout) f32.
    Equivalent to Conv2d(k=3, s=1, valid) + ReLU + MaxPool2d(k=3, s=2)."""
    N, H, W, C = x.shape
    K, Cout = w_kc.shape
    assert K == 9 * C
    Hc, Wc = H - 2, W - 2
    Hp, Wp = (Hc - 3) // 2 + 1, (Wc - 3) // 2 + 1

    # Pool-window-expanded im2col (built by XLA, consumed once by the kernel):
    # E[pi*3+pj, n*Hp*Wp + r*Wp + c, (ki*3+kj)*C + ch] = x[n, 2r+pi+ki, 2c+pj+kj, ch]
    wins = []
    for pi in range(3):
        for pj in range(3):
            taps = []
            for ki in range(3):
                for kj in range(3):
                    i0, j0 = pi + ki, pj + kj
                    taps.append(x[:, i0:i0 + 2 * Hp - 1:2,
                                  j0:j0 + 2 * Wp - 1:2, :])
            wins.append(jnp.stack(taps, axis=3))          # (N, Hp, Wp, 9, C)
    e = jnp.stack(wins, axis=0).reshape(9, N * Hp * Wp, 9 * C)
    e = e.astype(w_kc.dtype)                              # bf16: half the DMA

    M = N * Hp * Wp
    TM = tm if M >= 2 * tm else _round_up(M, 8)
    Mp = _round_up(M, TM)
    if Mp != M:
        e = jnp.pad(e, ((0, 0), (0, Mp - M), (0, 0)))

    out = pl.pallas_call(
        conv_relu_pool_kernel,
        out_shape=jax.ShapeDtypeStruct((Mp, Cout), jnp.float32),
        grid=(Mp // TM,),
        in_specs=[
            pl.BlockSpec((9, TM, K), lambda i: (0, i, 0)),   # patches stream
            pl.BlockSpec((K, Cout), lambda i: (0, 0)),       # weight resident
            pl.BlockSpec((1, Cout), lambda i: (0, 0)),       # bias resident
        ],
        out_specs=pl.BlockSpec((TM, Cout), lambda i: (i, 0)),
        compiler_params=pltpu.CompilerParams(
            dimension_semantics=("parallel",)),
    )(e, w_kc, b.reshape(1, Cout))
    if Mp != M:
        out = out[:M]
    return out.reshape(N, Hp, Wp, Cout)


def pallas_classifier(x, w1, b1, w2, b2, w3, b3):
    """Fused fc1+ReLU -> fc2+ReLU -> fc3 -> log_softmax, batch-tiled."""
    M, K1 = x.shape
    N1 = w1.shape[1]
    N2 = w2.shape[1]
    NC = w3.shape[1]
    TB = min(128, _round_up(M, 8))
    Mp = _round_up(M, TB)
    if Mp != M:
        x = jnp.pad(x, ((0, Mp - M), (0, 0)))

    # VMEM budget from actual block bytes (2x for double-buffering) plus
    # intermediates + margin; capped well under v7x's 64 MiB per TensorCore.
    blk_bytes = (TB * K1 * 4 + K1 * N1 * 2 + N1 * 4 + N1 * N2 * 2 + N2 * 4
                 + N2 * NC * 2 + NC * 4 + TB * NC * 4)
    vmem_limit = int(min(2 * blk_bytes + TB * (N1 + N2) * 4 + (4 << 20),
                         30 << 20))

    out = pl.pallas_call(
        classifier_kernel,
        out_shape=jax.ShapeDtypeStruct((Mp, NC), jnp.float32),
        grid=(Mp // TB,),
        in_specs=[
            pl.BlockSpec((TB, K1), lambda i: (i, 0)),
            pl.BlockSpec((K1, N1), lambda i: (0, 0)),
            pl.BlockSpec((1, N1), lambda i: (0, 0)),
            pl.BlockSpec((N1, N2), lambda i: (0, 0)),
            pl.BlockSpec((1, N2), lambda i: (0, 0)),
            pl.BlockSpec((N2, NC), lambda i: (0, 0)),
            pl.BlockSpec((1, NC), lambda i: (0, 0)),
        ],
        out_specs=pl.BlockSpec((TB, NC), lambda i: (i, 0)),
        compiler_params=pltpu.CompilerParams(
            dimension_semantics=("parallel",),
            vmem_limit_bytes=vmem_limit),
    )(x, w1, b1.reshape(1, N1), w2, b2.reshape(1, N2), w3, b3.reshape(1, NC))
    return out if Mp == M else out[:M]


# ----------------------------------------------------------------------------
# Parameters (deterministic synthetic init, PyTorch weight shapes) + prep
# ----------------------------------------------------------------------------
def init_params(key, num_classes=10):
    ks = jax.random.split(key, 10)

    def init(k, fan_in, shape):
        return jax.random.normal(k, shape, jnp.float32) / jnp.sqrt(float(fan_in))

    return {
        "conv1_w": init(ks[0], 3 * 3 * 3, (32, 3, 3, 3)),
        "conv1_b": init(ks[1], 3 * 3 * 3, (32,)),
        "conv2_w": init(ks[2], 32 * 3 * 3, (64, 32, 3, 3)),
        "conv2_b": init(ks[3], 32 * 3 * 3, (64,)),
        "fc1_w": init(ks[4], 2304, (1024, 2304)),
        "fc1_b": init(ks[5], 2304, (1024,)),
        "fc2_w": init(ks[6], 1024, (512, 1024)),
        "fc2_b": init(ks[7], 1024, (512,)),
        "fc3_w": init(ks[8], 512, (num_classes, 512)),
        "fc3_b": init(ks[9], 512, (num_classes,)),
    }


def adaptive_pool_matrix(in_size, out_size):
    # PyTorch AdaptiveAvgPool: start=floor(i*In/Out), end=ceil((i+1)*In/Out)
    P = np.zeros((out_size, in_size), dtype=np.float32)
    for i in range(out_size):
        start = (i * in_size) // out_size
        end = -((-(i + 1) * in_size) // out_size)
        P[i, start:end] = 1.0 / (end - start)
    return P


def feature_hw(input_hw):
    H, W = input_hw
    H, W = H - 2, W - 2                              # conv1 (valid 3x3, s1)
    H, W = (H - 3) // 2 + 1, (W - 3) // 2 + 1        # maxpool 3x3 / s2
    H, W = H - 2, W - 2                              # conv2
    H, W = (H - 3) // 2 + 1, (W - 3) // 2 + 1        # maxpool 3x3 / s2
    return H, W


def prepare_params(params, input_hw=(32, 32)):
    """One-time weight prep (outside jit): matmul (K, N) layouts, bf16 MXU
    operands, and the adaptive-avg-pool (6,6) fold into fc1."""
    Hf, Wf = feature_hw(input_hw)
    C2 = 64

    def conv_w(w_oihw):
        w = np.asarray(w_oihw, np.float32)
        co, ci, kh, kw = w.shape
        return jnp.asarray(
            np.transpose(w, (2, 3, 1, 0)).reshape(kh * kw * ci, co),
            jnp.bfloat16)

    # Fold AdaptiveAvgPool2d((6,6)) into fc1 (pool is linear):
    # W1_eff[(h*Wf+w)*C2 + c, o] = sum_p fc1_w[o, c*36+p] * P2[p, h*Wf+w]
    Ph = adaptive_pool_matrix(Hf, 6)
    Pw = adaptive_pool_matrix(Wf, 6)
    P2 = np.kron(Ph, Pw)                                           # (36, Hf*Wf)
    fc1_w = np.asarray(params["fc1_w"], np.float32)                # (1024, C2*36)
    W1 = np.einsum("ocp,pq->ocq", fc1_w.reshape(-1, C2, 36), P2)   # (1024, C2, HW)
    W1_eff = np.transpose(W1, (2, 1, 0)).reshape(Hf * Wf * C2, -1)  # (HW*C2, 1024)

    return {
        "conv1_w": conv_w(params["conv1_w"]),
        "conv1_b": jnp.asarray(params["conv1_b"], jnp.float32),
        "conv2_w": conv_w(params["conv2_w"]),
        "conv2_b": jnp.asarray(params["conv2_b"], jnp.float32),
        "fc1_w": jnp.asarray(W1_eff, jnp.bfloat16),
        "fc1_b": jnp.asarray(params["fc1_b"], jnp.float32),
        "fc2_w": jnp.asarray(np.asarray(params["fc2_w"], np.float32).T,
                             jnp.bfloat16),
        "fc2_b": jnp.asarray(params["fc2_b"], jnp.float32),
        "fc3_w": jnp.asarray(np.asarray(params["fc3_w"], np.float32).T,
                             jnp.bfloat16),
        "fc3_b": jnp.asarray(params["fc3_b"], jnp.float32),
    }


# ----------------------------------------------------------------------------
# Forward pass (inference semantics: dropout == identity)
# ----------------------------------------------------------------------------
def forward(prepped, x_nchw):
    x = jnp.transpose(x_nchw, (0, 2, 3, 1))          # NCHW -> NHWC

    # features: two fused conv+ReLU+maxpool stages (one pallas_call each)
    x = conv_relu_pool(x, prepped["conv1_w"], prepped["conv1_b"])
    x = conv_relu_pool(x, prepped["conv2_w"], prepped["conv2_b"])

    # avgpool(6,6) + torch.flatten are folded into fc1; NHWC flatten matches
    # the folded-weight row ordering.
    x_flat = x.reshape(x.shape[0], -1)

    # fused classifier + log_softmax (single pallas_call)
    return pallas_classifier(
        x_flat,
        prepped["fc1_w"], prepped["fc1_b"],
        prepped["fc2_w"], prepped["fc2_b"],
        prepped["fc3_w"], prepped["fc3_b"])


# ----------------------------------------------------------------------------
# Pure-JAX f32 reference of the PyTorch module (for correctness checking)
# ----------------------------------------------------------------------------
def forward_reference(params, x_nchw):
    x = jnp.transpose(x_nchw, (0, 2, 3, 1)).astype(jnp.float32)

    def conv_relu(x, w, b):
        w_hwio = jnp.transpose(w, (2, 3, 1, 0))
        y = jax.lax.conv_general_dilated(
            x, w_hwio, window_strides=(1, 1), padding="VALID",
            dimension_numbers=("NHWC", "HWIO", "NHWC"))
        return jnp.maximum(y + b, 0.0)

    def maxpool(x):
        return jax.lax.reduce_window(x, -jnp.inf, jax.lax.max,
                                     (1, 3, 3, 1), (1, 2, 2, 1), "VALID")

    x = maxpool(conv_relu(x, params["conv1_w"], params["conv1_b"]))
    x = maxpool(conv_relu(x, params["conv2_w"], params["conv2_b"]))
    Ph = jnp.asarray(adaptive_pool_matrix(x.shape[1], 6))
    Pw = jnp.asarray(adaptive_pool_matrix(x.shape[2], 6))
    x = jnp.einsum("nhwc,ih,jw->nijc", x, Ph, Pw)
    x = jnp.transpose(x, (0, 3, 1, 2)).reshape(x.shape[0], -1)   # NCHW flatten
    h = jnp.maximum(x @ params["fc1_w"].T + params["fc1_b"], 0.0)
    h = jnp.maximum(h @ params["fc2_w"].T + params["fc2_b"], 0.0)
    logits = h @ params["fc3_w"].T + params["fc3_b"]
    return jax.nn.log_softmax(logits, axis=-1)


if __name__ == "__main__":
    key = jax.random.PRNGKey(0)
    k_params, k_x = jax.random.split(key)

    params = init_params(k_params, num_classes=10)
    prepped = prepare_params(params, input_hw=(32, 32))       # once, outside jit
    x = jax.random.normal(k_x, (2, 3, 32, 32), jnp.float32)   # NCHW input

    out = jax.jit(forward)(prepped, x)
    out = jax.block_until_ready(out)

    assert out.shape == (2, 10), out.shape
    assert bool(jnp.all(jnp.isfinite(out)))
    # log_softmax rows should exponentiate-sum to ~1
    assert bool(jnp.allclose(jnp.sum(jnp.exp(out), axis=1), 1.0, atol=1e-3))

    # Compare against the pure-JAX f32 reference (kernels use bf16 MXU operands,
    # so allow a loose tolerance on the log-probabilities).
    ref = jax.block_until_ready(forward_reference(params, x))
    err = float(jnp.max(jnp.abs(out - ref)))
    assert err < 0.25, f"max |out - ref| = {err}"

    print("KERNEL_OK")
</pallas_src>

<mosaic_0001>
module attributes {stable_mosaic.version = 11 : i64} {
  func.func @conv_relu_pool_kernel(%arg0: i32, %arg1: memref<9x392x27xbf16, #tpu.memory_space<vmem>>, %arg2: memref<27x32xbf16, #tpu.memory_space<vmem>>, %arg3: memref<1x32xf32, #tpu.memory_space<vmem>>, %arg4: memref<392x32xf32, #tpu.memory_space<vmem>>) attributes {dimension_semantics = [#tpu.dimension_semantics<parallel>], iteration_bounds = array<i64: 1>, scalar_prefetch = 0 : i64, scratch_operands = 0 : i64, tpu.core_type = #tpu.core_type<tc>, window_params = [{transform_indices = @transform_0, window_bounds = array<i64: 9, 392, 27>}, {pipeline_mode = #tpu.pipeline_mode<synchronous>, transform_indices = @transform_1, window_bounds = array<i64: 27, 32>}, {pipeline_mode = #tpu.pipeline_mode<synchronous>, transform_indices = @transform_2, window_bounds = array<i64: 1, 32>}, {transform_indices = @transform_3, window_bounds = array<i64: 392, 32>}]} {
    %c0 = arith.constant 0 : index
    %c0_0 = arith.constant 0 : index
    %0 = vector.load %arg2[%c0, %c0_0] : memref<27x32xbf16, #tpu.memory_space<vmem>>, vector<27x32xbf16>
    %c0_1 = arith.constant 0 : index
    %c0_2 = arith.constant 0 : index
    %c0_3 = arith.constant 0 : index
    %1 = vector.load %arg1[%c0_1, %c0_2, %c0_3] : memref<9x392x27xbf16, #tpu.memory_space<vmem>>, vector<1x392x27xbf16>
    %2 = vector.shape_cast %1 : vector<1x392x27xbf16> to vector<392x27xbf16>
    %cst = arith.constant dense<0.000000e+00> : vector<392x32xf32>
    %3 = tpu.matmul %2, %0, %cst {dimension_numbers = #tpu.dot_dimension_numbers<[1], [0], [0], [1], [0, 0, 1, 1], [], []>} : vector<392x27xbf16>, vector<27x32xbf16>, vector<392x32xf32> -> vector<392x32xf32>
    %c1 = arith.constant 1 : index
    %c0_4 = arith.constant 0 : index
    %c0_5 = arith.constant 0 : index
    %4 = vector.load %arg1[%c1, %c0_4, %c0_5] : memref<9x392x27xbf16, #tpu.memory_space<vmem>>, vector<1x392x27xbf16>
    %5 = vector.shape_cast %4 : vector<1x392x27xbf16> to vector<392x27xbf16>
    %cst_6 = arith.constant dense<0.000000e+00> : vector<392x32xf32>
    %6 = tpu.matmul %5, %0, %cst_6 {dimension_numbers = #tpu.dot_dimension_numbers<[1], [0], [0], [1], [0, 0, 1, 1], [], []>} : vector<392x27xbf16>, vector<27x32xbf16>, vector<392x32xf32> -> vector<392x32xf32>
    %7 = arith.maximumf %3, %6 : vector<392x32xf32>
    %c2 = arith.constant 2 : index
    %c0_7 = arith.constant 0 : index
    %c0_8 = arith.constant 0 : index
    %8 = vector.load %arg1[%c2, %c0_7, %c0_8] : memref<9x392x27xbf16, #tpu.memory_space<vmem>>, vector<1x392x27xbf16>
    %9 = vector.shape_cast %8 : vector<1x392x27xbf16> to vector<392x27xbf16>
    %cst_9 = arith.constant dense<0.000000e+00> : vector<392x32xf32>
    %10 = tpu.matmul %9, %0, %cst_9 {dimension_numbers = #tpu.dot_dimension_numbers<[1], [0], [0], [1], [0, 0, 1, 1], [], []>} : vector<392x27xbf16>, vector<27x32xbf16>, vector<392x32xf32> -> vector<392x32xf32>
    %11 = arith.maximumf %7, %10 : vector<392x32xf32>
    %c3 = arith.constant 3 : index
    %c0_10 = arith.constant 0 : index
    %c0_11 = arith.constant 0 : index
    %12 = vector.load %arg1[%c3, %c0_10, %c0_11] : memref<9x392x27xbf16, #tpu.memory_space<vmem>>, vector<1x392x27xbf16>
    %13 = vector.shape_cast %12 : vector<1x392x27xbf16> to vector<392x27xbf16>
    %cst_12 = arith.constant dense<0.000000e+00> : vector<392x32xf32>
    %14 = tpu.matmul %13, %0, %cst_12 {dimension_numbers = #tpu.dot_dimension_numbers<[1], [0], [0], [1], [0, 0, 1, 1], [], []>} : vector<392x27xbf16>, vector<27x32xbf16>, vector<392x32xf32> -> vector<392x32xf32>
    %15 = arith.maximumf %11, %14 : vector<392x32xf32>
    %c4 = arith.constant 4 : index
    %c0_13 = arith.constant 0 : index
    %c0_14 = arith.constant 0 : index
    %16 = vector.load %arg1[%c4, %c0_13, %c0_14] : memref<9x392x27xbf16, #tpu.memory_space<vmem>>, vector<1x392x27xbf16>
    %17 = vector.shape_cast %16 : vector<1x392x27xbf16> to vector<392x27xbf16>
    %cst_15 = arith.constant dense<0.000000e+00> : vector<392x32xf32>
    %18 = tpu.matmul %17, %0, %cst_15 {dimension_numbers = #tpu.dot_dimension_numbers<[1], [0], [0], [1], [0, 0, 1, 1], [], []>} : vector<392x27xbf16>, vector<27x32xbf16>, vector<392x32xf32> -> vector<392x32xf32>
    %19 = arith.maximumf %15, %18 : vector<392x32xf32>
    %c5 = arith.constant 5 : index
    %c0_16 = arith.constant 0 : index
    %c0_17 = arith.constant 0 : index
    %20 = vector.load %arg1[%c5, %c0_16, %c0_17] : memref<9x392x27xbf16, #tpu.memory_space<vmem>>, vector<1x392x27xbf16>
    %21 = vector.shape_cast %20 : vector<1x392x27xbf16> to vector<392x27xbf16>
    %cst_18 = arith.constant dense<0.000000e+00> : vector<392x32xf32>
    %22 = tpu.matmul %21, %0, %cst_18 {dimension_numbers = #tpu.dot_dimension_numbers<[1], [0], [0], [1], [0, 0, 1, 1], [], []>} : vector<392x27xbf16>, vector<27x32xbf16>, vector<392x32xf32> -> vector<392x32xf32>
    %23 = arith.maximumf %19, %22 : vector<392x32xf32>
    %c6 = arith.constant 6 : index
    %c0_19 = arith.constant 0 : index
    %c0_20 = arith.constant 0 : index
    %24 = vector.load %arg1[%c6, %c0_19, %c0_20] : memref<9x392x27xbf16, #tpu.memory_space<vmem>>, vector<1x392x27xbf16>
    %25 = vector.shape_cast %24 : vector<1x392x27xbf16> to vector<392x27xbf16>
    %cst_21 = arith.constant dense<0.000000e+00> : vector<392x32xf32>
    %26 = tpu.matmul %25, %0, %cst_21 {dimension_numbers = #tpu.dot_dimension_numbers<[1], [0], [0], [1], [0, 0, 1, 1], [], []>} : vector<392x27xbf16>, vector<27x32xbf16>, vector<392x32xf32> -> vector<392x32xf32>
    %27 = arith.maximumf %23, %26 : vector<392x32xf32>
    %c7 = arith.constant 7 : index
    %c0_22 = arith.constant 0 : index
    %c0_23 = arith.constant 0 : index
    %28 = vector.load %arg1[%c7, %c0_22, %c0_23] : memref<9x392x27xbf16, #tpu.memory_space<vmem>>, vector<1x392x27xbf16>
    %29 = vector.shape_cast %28 : vector<1x392x27xbf16> to vector<392x27xbf16>
    %cst_24 = arith.constant dense<0.000000e+00> : vector<392x32xf32>
    %30 = tpu.matmul %29, %0, %cst_24 {dimension_numbers = #tpu.dot_dimension_numbers<[1], [0], [0], [1], [0, 0, 1, 1], [], []>} : vector<392x27xbf16>, vector<27x32xbf16>, vector<392x32xf32> -> vector<392x32xf32>
    %31 = arith.maximumf %27, %30 : vector<392x32xf32>
    %c8 = arith.constant 8 : index
    %c0_25 = arith.constant 0 : index
    %c0_26 = arith.constant 0 : index
    %32 = vector.load %arg1[%c8, %c0_25, %c0_26] : memref<9x392x27xbf16, #tpu.memory_space<vmem>>, vector<1x392x27xbf16>
    %33 = vector.shape_cast %32 : vector<1x392x27xbf16> to vector<392x27xbf16>
    %cst_27 = arith.constant dense<0.000000e+00> : vector<392x32xf32>
    %34 = tpu.matmul %33, %0, %cst_27 {dimension_numbers = #tpu.dot_dimension_numbers<[1], [0], [0], [1], [0, 0, 1, 1], [], []>} : vector<392x27xbf16>, vector<27x32xbf16>, vector<392x32xf32> -> vector<392x32xf32>
    %35 = arith.maximumf %31, %34 : vector<392x32xf32>
    %c0_28 = arith.constant 0 : index
    %c0_29 = arith.constant 0 : index
    %36 = vector.load %arg3[%c0_28, %c0_29] : memref<1x32xf32, #tpu.memory_space<vmem>>, vector<1x32xf32>
    %37 = vector.broadcast %36 : vector<1x32xf32> to vector<392x32xf32>
    %38 = arith.addf %35, %37 : vector<392x32xf32>
    %cst_30 = arith.constant 0.000000e+00 : f32
    %39 = vector.broadcast %cst_30 : f32 to vector<392x32xf32>
    %40 = arith.maximumf %38, %39 : vector<392x32xf32>
    %c0_31 = arith.constant 0 : index
    %c0_32 = arith.constant 0 : index
    %41 = vector.load %arg4[%c0_31, %c0_32] : memref<392x32xf32, #tpu.memory_space<vmem>>, vector<392x32xf32>
    tpu.vector_store %arg4[%c0_31, %c0_32], %40 {strides = array<i32>} : memref<392x32xf32, #tpu.memory_space<vmem>>, vector<392x32xf32>,
    return
  }
  func.func @transform_0(%arg0: i32) -> (i32, i32, i32) {
    %c0_i32 = arith.constant 0 : i32
    %c0_i32_0 = arith.constant 0 : i32
    %c0_i32_1 = arith.constant 0 : i32
    return %c0_i32, %arg0, %c0_i32_0 : i32, i32, i32
  }
  func.func @transform_1(%arg0: i32) -> (i32, i32) {
    %c0_i32 = arith.constant 0 : i32
    %c0_i32_0 = arith.constant 0 : i32
    %c0_i32_1 = arith.constant 0 : i32
    return %c0_i32, %c0_i32_0 : i32, i32
  }
  func.func @transform_2(%arg0: i32) -> (i32, i32) {
    %c0_i32 = arith.constant 0 : i32
    %c0_i32_0 = arith.constant 0 : i32
    %c0_i32_1 = arith.constant 0 : i32
    return %c0_i32, %c0_i32_0 : i32, i32
  }
  func.func @transform_3(%arg0: i32) -> (i32, i32) {
    %c0_i32 = arith.constant 0 : i32
    %c0_i32_0 = arith.constant 0 : i32
    return %arg0, %c0_i32 : i32, i32
  }
}

module attributes {stable_mosaic.version = 11 : i64} {
  func.func @conv_relu_pool_kernel(%arg0: i32, %arg1: memref<9x56x288xbf16, #tpu.memory_space<vmem>>, %arg2: memref<288x64xbf16, #tpu.memory_space<vmem>>, %arg3: memref<1x64xf32, #tpu.memory_space<vmem>>, %arg4: memref<56x64xf32, #tpu.memory_space<vmem>>) attributes {dimension_semantics = [#tpu.dimension_semantics<parallel>], iteration_bounds = array<i64: 1>, scalar_prefetch = 0 : i64, scratch_operands = 0 : i64, tpu.core_type = #tpu.core_type<tc>, window_params = [{transform_indices = @transform_0, window_bounds = array<i64: 9, 56, 288>}, {pipeline_mode = #tpu.pipeline_mode<synchronous>, transform_indices = @transform_1, window_bounds = array<i64: 288, 64>}, {pipeline_mode = #tpu.pipeline_mode<synchronous>, transform_indices = @transform_2, window_bounds = array<i64: 1, 64>}, {transform_indices = @transform_3, window_bounds = array<i64: 56, 64>}]} {
    %c0 = arith.constant 0 : index
    %c0_0 = arith.constant 0 : index
    %0 = vector.load %arg2[%c0, %c0_0] : memref<288x64xbf16, #tpu.memory_space<vmem>>, vector<288x64xbf16>
    %c0_1 = arith.constant 0 : index
    %c0_2 = arith.constant 0 : index
    %c0_3 = arith.constant 0 : index
    %1 = vector.load %arg1[%c0_1, %c0_2, %c0_3] : memref<9x56x288xbf16, #tpu.memory_space<vmem>>, vector<1x56x288xbf16>
    %2 = vector.shape_cast %1 : vector<1x56x288xbf16> to vector<56x288xbf16>
    %cst = arith.constant dense<0.000000e+00> : vector<56x64xf32>
    %3 = tpu.matmul %2, %0, %cst {dimension_numbers = #tpu.dot_dimension_numbers<[1], [0], [0], [1], [0, 0, 1, 1], [], []>} : vector<56x288xbf16>, vector<288x64xbf16>, vector<56x64xf32> -> vector<56x64xf32>
    %c1 = arith.constant 1 : index
    %c0_4 = arith.constant 0 : index
    %c0_5 = arith.constant 0 : index
    %4 = vector.load %arg1[%c1, %c0_4, %c0_5] : memref<9x56x288xbf16, #tpu.memory_space<vmem>>, vector<1x56x288xbf16>
    %5 = vector.shape_cast %4 : vector<1x56x288xbf16> to vector<56x288xbf16>
    %cst_6 = arith.constant dense<0.000000e+00> : vector<56x64xf32>
    %6 = tpu.matmul %5, %0, %cst_6 {dimension_numbers = #tpu.dot_dimension_numbers<[1], [0], [0], [1], [0, 0, 1, 1], [], []>} : vector<56x288xbf16>, vector<288x64xbf16>, vector<56x64xf32> -> vector<56x64xf32>
    %7 = arith.maximumf %3, %6 : vector<56x64xf32>
    %c2 = arith.constant 2 : index
    %c0_7 = arith.constant 0 : index
    %c0_8 = arith.constant 0 : index
    %8 = vector.load %arg1[%c2, %c0_7, %c0_8] : memref<9x56x288xbf16, #tpu.memory_space<vmem>>, vector<1x56x288xbf16>
    %9 = vector.shape_cast %8 : vector<1x56x288xbf16> to vector<56x288xbf16>
    %cst_9 = arith.constant dense<0.000000e+00> : vector<56x64xf32>
    %10 = tpu.matmul %9, %0, %cst_9 {dimension_numbers = #tpu.dot_dimension_numbers<[1], [0], [0], [1], [0, 0, 1, 1], [], []>} : vector<56x288xbf16>, vector<288x64xbf16>, vector<56x64xf32> -> vector<56x64xf32>
    %11 = arith.maximumf %7, %10 : vector<56x64xf32>
    %c3 = arith.constant 3 : index
    %c0_10 = arith.constant 0 : index
    %c0_11 = arith.constant 0 : index
    %12 = vector.load %arg1[%c3, %c0_10, %c0_11] : memref<9x56x288xbf16, #tpu.memory_space<vmem>>, vector<1x56x288xbf16>
    %13 = vector.shape_cast %12 : vector<1x56x288xbf16> to vector<56x288xbf16>
    %cst_12 = arith.constant dense<0.000000e+00> : vector<56x64xf32>
    %14 = tpu.matmul %13, %0, %cst_12 {dimension_numbers = #tpu.dot_dimension_numbers<[1], [0], [0], [1], [0, 0, 1, 1], [], []>} : vector<56x288xbf16>, vector<288x64xbf16>, vector<56x64xf32> -> vector<56x64xf32>
    %15 = arith.maximumf %11, %14 : vector<56x64xf32>
    %c4 = arith.constant 4 : index
    %c0_13 = arith.constant 0 : index
    %c0_14 = arith.constant 0 : index
    %16 = vector.load %arg1[%c4, %c0_13, %c0_14] : memref<9x56x288xbf16, #tpu.memory_space<vmem>>, vector<1x56x288xbf16>
    %17 = vector.shape_cast %16 : vector<1x56x288xbf16> to vector<56x288xbf16>
    %cst_15 = arith.constant dense<0.000000e+00> : vector<56x64xf32>
    %18 = tpu.matmul %17, %0, %cst_15 {dimension_numbers = #tpu.dot_dimension_numbers<[1], [0], [0], [1], [0, 0, 1, 1], [], []>} : vector<56x288xbf16>, vector<288x64xbf16>, vector<56x64xf32> -> vector<56x64xf32>
    %19 = arith.maximumf %15, %18 : vector<56x64xf32>
    %c5 = arith.constant 5 : index
    %c0_16 = arith.constant 0 : index
    %c0_17 = arith.constant 0 : index
    %20 = vector.load %arg1[%c5, %c0_16, %c0_17] : memref<9x56x288xbf16, #tpu.memory_space<vmem>>, vector<1x56x288xbf16>
    %21 = vector.shape_cast %20 : vector<1x56x288xbf16> to vector<56x288xbf16>
    %cst_18 = arith.constant dense<0.000000e+00> : vector<56x64xf32>
    %22 = tpu.matmul %21, %0, %cst_18 {dimension_numbers = #tpu.dot_dimension_numbers<[1], [0], [0], [1], [0, 0, 1, 1], [], []>} : vector<56x288xbf16>, vector<288x64xbf16>, vector<56x64xf32> -> vector<56x64xf32>
    %23 = arith.maximumf %19, %22 : vector<56x64xf32>
    %c6 = arith.constant 6 : index
    %c0_19 = arith.constant 0 : index
    %c0_20 = arith.constant 0 : index
    %24 = vector.load %arg1[%c6, %c0_19, %c0_20] : memref<9x56x288xbf16, #tpu.memory_space<vmem>>, vector<1x56x288xbf16>
    %25 = vector.shape_cast %24 : vector<1x56x288xbf16> to vector<56x288xbf16>
    %cst_21 = arith.constant dense<0.000000e+00> : vector<56x64xf32>
    %26 = tpu.matmul %25, %0, %cst_21 {dimension_numbers = #tpu.dot_dimension_numbers<[1], [0], [0], [1], [0, 0, 1, 1], [], []>} : vector<56x288xbf16>, vector<288x64xbf16>, vector<56x64xf32> -> vector<56x64xf32>
    %27 = arith.maximumf %23, %26 : vector<56x64xf32>
    %c7 = arith.constant 7 : index
    %c0_22 = arith.constant 0 : index
    %c0_23 = arith.constant 0 : index
    %28 = vector.load %arg1[%c7, %c0_22, %c0_23] : memref<9x56x288xbf16, #tpu.memory_space<vmem>>, vector<1x56x288xbf16>
    %29 = vector.shape_cast %28 : vector<1x56x288xbf16> to vector<56x288xbf16>
    %cst_24 = arith.constant dense<0.000000e+00> : vector<56x64xf32>
    %30 = tpu.matmul %29, %0, %cst_24 {dimension_numbers = #tpu.dot_dimension_numbers<[1], [0], [0], [1], [0, 0, 1, 1], [], []>} : vector<56x288xbf16>, vector<288x64xbf16>, vector<56x64xf32> -> vector<56x64xf32>
    %31 = arith.maximumf %27, %30 : vector<56x64xf32>
    %c8 = arith.constant 8 : index
    %c0_25 = arith.constant 0 : index
    %c0_26 = arith.constant 0 : index
    %32 = vector.load %arg1[%c8, %c0_25, %c0_26] : memref<9x56x288xbf16, #tpu.memory_space<vmem>>, vector<1x56x288xbf16>
    %33 = vector.shape_cast %32 : vector<1x56x288xbf16> to vector<56x288xbf16>
    %cst_27 = arith.constant dense<0.000000e+00> : vector<56x64xf32>
    %34 = tpu.matmul %33, %0, %cst_27 {dimension_numbers = #tpu.dot_dimension_numbers<[1], [0], [0], [1], [0, 0, 1, 1], [], []>} : vector<56x288xbf16>, vector<288x64xbf16>, vector<56x64xf32> -> vector<56x64xf32>
    %35 = arith.maximumf %31, %34 : vector<56x64xf32>
    %c0_28 = arith.constant 0 : index
    %c0_29 = arith.constant 0 : index
    %36 = vector.load %arg3[%c0_28, %c0_29] : memref<1x64xf32, #tpu.memory_space<vmem>>, vector<1x64xf32>
    %37 = vector.broadcast %36 : vector<1x64xf32> to vector<56x64xf32>
    %38 = arith.addf %35, %37 : vector<56x64xf32>
    %cst_30 = arith.constant 0.000000e+00 : f32
    %39 = vector.broadcast %cst_30 : f32 to vector<56x64xf32>
    %40 = arith.maximumf %38, %39 : vector<56x64xf32>
    %c0_31 = arith.constant 0 : index
    %c0_32 = arith.constant 0 : index
    %41 = vector.load %arg4[%c0_31, %c0_32] : memref<56x64xf32, #tpu.memory_space<vmem>>, vector<56x64xf32>
    tpu.vector_store %arg4[%c0_31, %c0_32], %40 {strides = array<i32>} : memref<56x64xf32, #tpu.memory_space<vmem>>, vector<56x64xf32>,
    return
  }
  func.func @transform_0(%arg0: i32) -> (i32, i32, i32) {
    %c0_i32 = arith.constant 0 : i32
    %c0_i32_0 = arith.constant 0 : i32
    %c0_i32_1 = arith.constant 0 : i32
    return %c0_i32, %arg0, %c0_i32_0 : i32, i32, i32
  }
  func.func @transform_1(%arg0: i32) -> (i32, i32) {
    %c0_i32 = arith.constant 0 : i32
    %c0_i32_0 = arith.constant 0 : i32
    %c0_i32_1 = arith.constant 0 : i32
    return %c0_i32, %c0_i32_0 : i32, i32
  }
  func.func @transform_2(%arg0: i32) -> (i32, i32) {
    %c0_i32 = arith.constant 0 : i32
    %c0_i32_0 = arith.constant 0 : i32
    %c0_i32_1 = arith.constant 0 : i32
    return %c0_i32, %c0_i32_0 : i32, i32
  }
  func.func @transform_3(%arg0: i32) -> (i32, i32) {
    %c0_i32 = arith.constant 0 : i32
    %c0_i32_0 = arith.constant 0 : i32
    return %arg0, %c0_i32 : i32, i32
  }
}

module attributes {stable_mosaic.version = 11 : i64} {
  func.func @classifier_kernel(%arg0: i32, %arg1: memref<8x1600xf32, #tpu.memory_space<vmem>>, %arg2: memref<1600x1024xbf16, #tpu.memory_space<vmem>>, %arg3: memref<1x1024xf32, #tpu.memory_space<vmem>>, %arg4: memref<1024x512xbf16, #tpu.memory_space<vmem>>, %arg5: memref<1x512xf32, #tpu.memory_space<vmem>>, %arg6: memref<512x10xbf16, #tpu.memory_space<vmem>>, %arg7: memref<1x10xf32, #tpu.memory_space<vmem>>, %arg8: memref<8x10xf32, #tpu.memory_space<vmem>>) attributes {dimension_semantics = [#tpu.dimension_semantics<parallel>], iteration_bounds = array<i64: 1>, scalar_prefetch = 0 : i64, scratch_operands = 0 : i64, tpu.core_type = #tpu.core_type<tc>, window_params = [{transform_indices = @transform_0, window_bounds = array<i64: 8, 1600>}, {pipeline_mode = #tpu.pipeline_mode<synchronous>, transform_indices = @transform_1, window_bounds = array<i64: 1600, 1024>}, {pipeline_mode = #tpu.pipeline_mode<synchronous>, transform_indices = @transform_2, window_bounds = array<i64: 1, 1024>}, {pipeline_mode = #tpu.pipeline_mode<synchronous>, transform_indices = @transform_3, window_bounds = array<i64: 1024, 512>}, {pipeline_mode = #tpu.pipeline_mode<synchronous>, transform_indices = @transform_4, window_bounds = array<i64: 1, 512>}, {pipeline_mode = #tpu.pipeline_mode<synchronous>, transform_indices = @transform_5, window_bounds = array<i64: 512, 10>}, {pipeline_mode = #tpu.pipeline_mode<synchronous>, transform_indices = @transform_6, window_bounds = array<i64: 1, 10>}, {transform_indices = @transform_7, window_bounds = array<i64: 8, 10>}]} {
    %c0 = arith.constant 0 : index
    %c0_0 = arith.constant 0 : index
    %0 = vector.load %arg1[%c0, %c0_0] : memref<8x1600xf32, #tpu.memory_space<vmem>>, vector<8x1600xf32>
    %1 = arith.truncf %0 : vector<8x1600xf32> to vector<8x1600xbf16>
    %c0_1 = arith.constant 0 : index
    %c0_2 = arith.constant 0 : index
    %2 = vector.load %arg2[%c0_1, %c0_2] : memref<1600x1024xbf16, #tpu.memory_space<vmem>>, vector<1600x1024xbf16>
    %cst = arith.constant dense<0.000000e+00> : vector<8x1024xf32>
    %3 = tpu.matmul %1, %2, %cst {dimension_numbers = #tpu.dot_dimension_numbers<[1], [0], [0], [1], [0, 0, 1, 1], [], []>} : vector<8x1600xbf16>, vector<1600x1024xbf16>, vector<8x1024xf32> -> vector<8x1024xf32>
    %c0_3 = arith.constant 0 : index
    %c0_4 = arith.constant 0 : index
    %4 = vector.load %arg3[%c0_3, %c0_4] : memref<1x1024xf32, #tpu.memory_space<vmem>>, vector<1x1024xf32>
    %5 = vector.broadcast %4 : vector<1x1024xf32> to vector<8x1024xf32>
    %6 = arith.addf %3, %5 : vector<8x1024xf32>
    %cst_5 = arith.constant 0.000000e+00 : f32
    %7 = vector.broadcast %cst_5 : f32 to vector<8x1024xf32>
    %8 = arith.maximumf %6, %7 : vector<8x1024xf32>
    %9 = arith.truncf %8 : vector<8x1024xf32> to vector<8x1024xbf16>
    %c0_6 = arith.constant 0 : index
    %c0_7 = arith.constant 0 : index
    %10 = vector.load %arg4[%c0_6, %c0_7] : memref<1024x512xbf16, #tpu.memory_space<vmem>>, vector<1024x512xbf16>
    %cst_8 = arith.constant dense<0.000000e+00> : vector<8x512xf32>
    %11 = tpu.matmul %9, %10, %cst_8 {dimension_numbers = #tpu.dot_dimension_numbers<[1], [0], [0], [1], [0, 0, 1, 1], [], []>} : vector<8x1024xbf16>, vector<1024x512xbf16>, vector<8x512xf32> -> vector<8x512xf32>
    %c0_9 = arith.constant 0 : index
    %c0_10 = arith.constant 0 : index
    %12 = vector.load %arg5[%c0_9, %c0_10] : memref<1x512xf32, #tpu.memory_space<vmem>>, vector<1x512xf32>
    %13 = vector.broadcast %12 : vector<1x512xf32> to vector<8x512xf32>
    %14 = arith.addf %11, %13 : vector<8x512xf32>
    %cst_11 = arith.constant 0.000000e+00 : f32
    %15 = vector.broadcast %cst_11 : f32 to vector<8x512xf32>
    %16 = arith.maximumf %14, %15 : vector<8x512xf32>
    %17 = arith.truncf %16 : vector<8x512xf32> to vector<8x512xbf16>
    %c0_12 = arith.constant 0 : index
    %c0_13 = arith.constant 0 : index
    %18 = vector.load %arg6[%c0_12, %c0_13] : memref<512x10xbf16, #tpu.memory_space<vmem>>, vector<512x10xbf16>
    %cst_14 = arith.constant dense<0.000000e+00> : vector<8x10xf32>
    %19 = tpu.matmul %17, %18, %cst_14 {dimension_numbers = #tpu.dot_dimension_numbers<[1], [0], [0], [1], [0, 0, 1, 1], [], []>} : vector<8x512xbf16>, vector<512x10xbf16>, vector<8x10xf32> -> vector<8x10xf32>
    %c0_15 = arith.constant 0 : index
    %c0_16 = arith.constant 0 : index
    %20 = vector.load %arg7[%c0_15, %c0_16] : memref<1x10xf32, #tpu.memory_space<vmem>>, vector<1x10xf32>
    %21 = vector.broadcast %20 : vector<1x10xf32> to vector<8x10xf32>
    %22 = arith.addf %19, %21 : vector<8x10xf32>
    %cst_17 = arith.constant dense<0xFF800000> : vector<8xf32>
    %23 = vector.multi_reduction <maximumf>, %22, %cst_17 [1] : vector<8x10xf32> to vector<8xf32>
    %24 = vector.shape_cast %23 : vector<8xf32> to vector<8x1xf32>
    %25 = vector.broadcast %24 : vector<8x1xf32> to vector<8x10xf32>
    %26 = arith.subf %22, %25 : vector<8x10xf32>
    %27 = math.exp %26 : vector<8x10xf32>
    %cst_18 = arith.constant dense<0.000000e+00> : vector<8xf32>
    %28 = vector.multi_reduction <add>, %27, %cst_18 [1] : vector<8x10xf32> to vector<8xf32>
    %29 = vector.shape_cast %28 : vector<8xf32> to vector<8x1xf32>
    %30 = math.log %29 : vector<8x1xf32>
    %31 = vector.broadcast %30 : vector<8x1xf32> to vector<8x10xf32>
    %32 = arith.subf %26, %31 : vector<8x10xf32>
    %c0_19 = arith.constant 0 : index
    %c0_20 = arith.constant 0 : index
    %33 = vector.load %arg8[%c0_19, %c0_20] : memref<8x10xf32, #tpu.memory_space<vmem>>, vector<8x10xf32>
    tpu.vector_store %arg8[%c0_19, %c0_20], %32 {strides = array<i32>} : memref<8x10xf32, #tpu.memory_space<vmem>>, vector<8x10xf32>,
    return
  }
  func.func @transform_0(%arg0: i32) -> (i32, i32) {
    %c0_i32 = arith.constant 0 : i32
    %c0_i32_0 = arith.constant 0 : i32
    return %arg0, %c0_i32 : i32, i32
  }
  func.func @transform_1(%arg0: i32) -> (i32, i32) {
    %c0_i32 = arith.constant 0 : i32
    %c0_i32_0 = arith.constant 0 : i32
    %c0_i32_1 = arith.constant 0 : i32
    return %c0_i32, %c0_i32_0 : i32, i32
  }
  func.func @transform_2(%arg0: i32) -> (i32, i32) {
    %c0_i32 = arith.constant 0 : i32
    %c0_i32_0 = arith.constant 0 : i32
    %c0_i32_1 = arith.constant 0 : i32
    return %c0_i32, %c0_i32_0 : i32, i32
  }
  func.func @transform_3(%arg0: i32) -> (i32, i32) {
    %c0_i32 = arith.constant 0 : i32
    %c0_i32_0 = arith.constant 0 : i32
    %c0_i32_1 = arith.constant 0 : i32
    return %c0_i32, %c0_i32_0 : i32, i32
  }
  func.func @transform_4(%arg0: i32) -> (i32, i32) {
    %c0_i32 = arith.constant 0 : i32
    %c0_i32_0 = arith.constant 0 : i32
    %c0_i32_1 = arith.constant 0 : i32
    return %c0_i32, %c0_i32_0 : i32, i32
  }
  func.func @transform_5(%arg0: i32) -> (i32, i32) {
    %c0_i32 = arith.constant 0 : i32
    %c0_i32_0 = arith.constant 0 : i32
    %c0_i32_1 = arith.constant 0 : i32
    return %c0_i32, %c0_i32_0 : i32, i32
  }
  func.func @transform_6(%arg0: i32) -> (i32, i32) {
    %c0_i32 = arith.constant 0 : i32
    %c0_i32_0 = arith.constant 0 : i32
    %c0_i32_1 = arith.constant 0 : i32
    return %c0_i32, %c0_i32_0 : i32, i32
  }
  func.func @transform_7(%arg0: i32) -> (i32, i32) {
    %c0_i32 = arith.constant 0 : i32
    %c0_i32_0 = arith.constant 0 : i32
    return %arg0, %c0_i32 : i32, i32
  }
}

</mosaic_0001>

<bundles_post_ra>
// kernel: forward.3
= control target key start
LH: loop header
LB: loop body
LE: loop exit
PB: predicated region body
PF: predicated region fallthrough
CT: control target
= control target key end

     0   :  { %vm278_vm0 = vcmask 1044480   ;;  %vm279_vm1 = vcmask 1045504   ;;  %v9437_v0 = vmov 0.0   ;;  %v7168_v2 = vmov 65535   ;;  %s9433_s1 = inlined_call_operand.vmem [shape: bf16[27,32], index: 1, kind: input, shape index: {}]   ;;  %s9434_s0 = inlined_call_operand.vmem [shape: bf16[9,392,27], index: 0, kind: input, shape index: {}]   ;;  %s9435_s2 = inlined_call_operand.vmem [shape: f32[1,32], index: 2, kind: input, shape index: {}]   ;;  %s9436_s3 = inlined_call_operand.vmem [shape: f32[392,32], index: 3, kind: output, shape index: {}]  }
   0x1   :  { %5996 = vmatprep.subr.bf16.mxu0 %v9437_v0  ;;  %6932 = vmatprep.subr.bf16.mxu1 %v9437_v0  ;;  %v7195_v1 = vld [vmem:[%s9433_s1] sm:$0xff]   ;;  %v280_v3 = vsel %vm278_vm0, 4294967295, %v7168_v2  ;;  %v6940_v4 = vld [vmem:[%s9433_s1 + $0x8] sm:$0x3f]   ;;  %vm7169_vm2 = vmmov 0   ;;  %vm202_vm3 = vcmask 220160  }
   0x2   :  { %5997 = vmatpush3.bf16.msra.mxu0 %v7195_v1  ;;  %6934 = vmatpush3.bf16.msra.mxu1 %v7195_v1  ;;  %v281_v5 = vsel %vm279_vm1, %v280_v3, 0  ;;  %v6941_v7 = vld [vmem:[%s9434_s0] sm:$0xff]   ;;  %v6942_v8 = vld [vmem:[%s9434_s0 + $0x68] sm:$0xff]   ;;  %v6944_v10 = vld [vmem:[%s9434_s0 + $0x70] sm:$0xff]   ;;  %vm4854_vm4 = vcmask 261120  }
   0x3   :  { %5998 = vmatprep.subr.bf16.mxu0 %v9437_v0  ;;  %6933 = vmatprep.subr.bf16.mxu1 %v9437_v0  ;;  %v7204_v6 = vand.u32 %v6940_v4, %v281_v5  ;;  %v6943_v9 = vld [vmem:[%s9434_s0 + $0x8] sm:$0xff]   ;;  %v6945_v11 = vld [vmem:[%s9434_s0 + $0x10] sm:$0xff]   ;;  %v6946_v12 = vld [vmem:[%s9434_s0 + $0x78] sm:$0xff]  }
   0x4   :  { %6000 = vmatprep.mubr.msk.bf16.mxu0 %vm7169_vm2, %v9437_v0  ;;  %6052 = vmatprep.mubr.msk.bf16.mxu1 %vm7169_vm2, %v9437_v0  ;;  %v6947_v13 = vld [vmem:[%s9434_s0 + $0x18] sm:$0xff]   ;;  %v6948_v14 = vld [vmem:[%s9434_s0 + $0x80] sm:$0xff]   ;;  %v6950_v16 = vld [vmem:[%s9434_s0 + $0x88] sm:$0xff]  }
   0x5   :  { %v6949_v15 = vld [vmem:[%s9434_s0 + $0x20] sm:$0xff]   ;;  %v6951_v17 = vld [vmem:[%s9434_s0 + $0x28] sm:$0xff]   ;;  %v6952_v18 = vld [vmem:[%s9434_s0 + $0x90] sm:$0xff]  }
   0x6   :  { %5999 = vmatpush3.bf16.msra.mxu0 %v7204_v6  ;;  %6935 = vmatpush3.bf16.msra.mxu1 %v7204_v6  ;;  %v6953_v19 = vld [vmem:[%s9434_s0 + $0x30] sm:$0xff]   ;;  %v6954_v20 = vld [vmem:[%s9434_s0 + $0x98] sm:$0xff]   ;;  %v6956_v22 = vld [vmem:[%s9434_s0 + $0xa0] sm:$0xff]  }
   0x7   :  { %6204 = vmatprep.subr.bf16.mxu0 %v9437_v0  ;;  %6100 = vmatprep.subr.bf16.mxu1 %v9437_v0  ;;  %v6955_v21 = vld [vmem:[%s9434_s0 + $0x38] sm:$0xff]   ;;  %v6957_v23 = vld [vmem:[%s9434_s0 + $0x40] sm:$0xff]   ;;  %v6958_v24 = vld [vmem:[%s9434_s0 + $0xa8] sm:$0xff]  }
   0x8   :  { %v6959_v25 = vld [vmem:[%s9434_s0 + $0x48] sm:$0xff]   ;;  %v6960_v26 = vld [vmem:[%s9434_s0 + $0xb0] sm:$0xff]   ;;  %v6962_v28 = vld [vmem:[%s9434_s0 + $0xb8] sm:$0xff]  }
   0x9   :  { %6001 = vmatmul.mubr.msk.bf16.vlgmr.msra.gmra.mrb[0].mxu0 %vm202_vm3, %v6941_v7  ;;  %6053 = vmatmul.mubr.msk.bf16.vlgmr.msra.gmra.mrb[0].mxu1 %vm202_vm3, %v6942_v8  ;;  %v6961_v27 = vld [vmem:[%s9434_s0 + $0x50] sm:$0xff]   ;;  %v6963_v29 = vld [vmem:[%s9434_s0 + $0x58] sm:$0xff]   ;;  %v6964_v30 = vld [vmem:[%s9434_s0 + $0xc0] ss:$0 sps:$4 sm:$0xff]  }
   0xa   :  { %6205 = vmatpush3.bf16.msra.mxu0 %v7195_v1  ;;  %6004 = vmatprep.mubr.msk.bf16.mxu0 %vm7169_vm2, %v9437_v0  ;;  %v6965_v31 = vld [vmem:[%s9434_s0 + $0x60] sm:$0xff]   ;;  %v6967_v33 = vld [vmem:[%s9434_s0 + $0xcc] sm:$0xff]   ;;  %v6969_v35 = vld [vmem:[%s9434_s0 + $0xd4] sm:$0xff]  }
   0xb   :  { %6056 = vmatprep.mubr.msk.bf16.mxu1 %vm7169_vm2, %v9437_v0  ;;  %6101 = vmatpush3.bf16.msra.mxu1 %v7195_v1  ;;  %v6966_v32 = vld [vmem:[%s9434_s0 + $0xc4] sm:$0xff]   ;;  %v6970_v36 = vld [vmem:[%s9434_s0 + $0x190] sm:$0xff]   ;;  %v6971_v37 = vld [vmem:[%s9434_s0 + $0xdc] sm:$0xff]  }
   0xc   :  { %6206 = vmatprep.subr.bf16.mxu0 %v9437_v0  ;;  %6102 = vmatprep.subr.bf16.mxu1 %v9437_v0  ;;  %v6968_v34 = vld [vmem:[%s9434_s0 + $0x188] sm:$0xff]   ;;  %v6972_v38 = vld [vmem:[%s9434_s0 + $0x198] sm:$0xff]   ;;  %v6974_v40 = vld [vmem:[%s9434_s0 + $0x1a0] sm:$0xff]  }
   0xd   :  { %v6973_v39 = vld [vmem:[%s9434_s0 + $0xe4] sm:$0xff]   ;;  %v6975_v41 = vld [vmem:[%s9434_s0 + $0xec] sm:$0xff]   ;;  %v6977_v43 = vld [vmem:[%s9434_s0 + $0xf4] sm:$0xff]  }
   0xe   :  { %6207 = vmatpush3.bf16.msra.mxu0 %v7204_v6  ;;  %v6976_v42 = vld [vmem:[%s9434_s0 + $0x1a8] sm:$0xff]   ;;  %v6978_v44 = vld [vmem:[%s9434_s0 + $0x1b0] sm:$0xff]   ;;  %v6979_v45 = vld [vmem:[%s9434_s0 + $0xfc] sm:$0xff]  }
   0xf   :  { %6103 = vmatpush3.bf16.msra.mxu1 %v7204_v6  ;;  %6412 = vmatprep.subr.bf16.mxu0 %v9437_v0  ;;  %v6980_v46 = vld [vmem:[%s9434_s0 + $0x1b8] sm:$0xff]   ;;  %v6981_v47 = vld [vmem:[%s9434_s0 + $0x104] sm:$0xff]   ;;  %v6983_v49 = vld [vmem:[%s9434_s0 + $0x10c] sm:$0xff]  }
  0x10   :  { %6308 = vmatprep.subr.bf16.mxu1 %v9437_v0  ;;  %v6982_v48 = vld [vmem:[%s9434_s0 + $0x1c0] sm:$0xff]   ;;  %v6984_v50 = vld [vmem:[%s9434_s0 + $0x1c8] sm:$0xff]   ;;  %v6985_v51 = vld [vmem:[%s9434_s0 + $0x114] sm:$0xff]  }
  0x11   :  { %6005 = vmatmul.mubr.msk.bf16.gmra.mrb[4].mxu0 %vm202_vm3, %v6943_v9  ;;  %6057 = vmatmul.mubr.msk.bf16.gmra.mrb[4].mxu1 %vm202_vm3, %v6944_v10  ;;  %v6986_v52 = vld [vmem:[%s9434_s0 + $0x1d0] sm:$0xff]   ;;  %v6987_v53 = vld [vmem:[%s9434_s0 + $0x11c] sm:$0xff]   ;;  %v6989_v55 = vld [vmem:[%s9434_s0 + $0x124] sm:$0xff]  }
  0x12   :  { %6008 = vmatprep.mubr.msk.bf16.mxu0 %vm7169_vm2, %v9437_v0  ;;  %6060 = vmatprep.mubr.msk.bf16.mxu1 %vm7169_vm2, %v9437_v0  ;;  %v6988_v54 = vld [vmem:[%s9434_s0 + $0x1d8] sm:$0xff]   ;;  %v6990_v56 = vld [vmem:[%s9434_s0 + $0x1e0] sm:$0xff]   ;;  %v6991_v57 = vld [vmem:[%s9434_s0 + $0x12c] sm:$0xff]  }
  0x13   :  { %v6992_v58 = vld [vmem:[%s9434_s0 + $0x1e8] sm:$0xff]   ;;  %v6993_v59 = vld [vmem:[%s9434_s0 + $0x134] sm:$0xff]   ;;  %v6995_v2 = vld [vmem:[%s9434_s0 + $0x13c] sm:$0xff]  }
  0x14   :  { %v6994_v60 = vld [vmem:[%s9434_s0 + $0x1f0] sm:$0xff]   ;;  %v6996_v3 = vld [vmem:[%s9434_s0 + $0x1f8] sm:$0xff]  }
  0x19   :  { %6009 = vmatmul.mubr.msk.bf16.gmra.mrb[8].mxu0 %vm202_vm3, %v6945_v11  ;;  %6061 = vmatmul.mubr.msk.bf16.gmra.mrb[8].mxu1 %vm202_vm3, %v6946_v12 }
  0x1a   :  { %6012 = vmatprep.mubr.msk.bf16.mxu0 %vm7169_vm2, %v9437_v0  ;;  %6064 = vmatprep.mubr.msk.bf16.mxu1 %vm7169_vm2, %v9437_v0 }
  0x21   :  { %6013 = vmatmul.mubr.msk.bf16.gmra.mrb[12].mxu0 %vm202_vm3, %v6947_v13  ;;  %6065 = vmatmul.mubr.msk.bf16.gmra.mrb[12].mxu1 %vm202_vm3, %v6948_v14  ;;  %v6997_v13 = vld [vmem:[%s9434_s0 + $0x144] sm:$0xff]  }
  0x22   :  { %6016 = vmatprep.mubr.msk.bf16.mxu0 %vm7169_vm2, %v9437_v0  ;;  %6068 = vmatprep.mubr.msk.bf16.mxu1 %vm7169_vm2, %v9437_v0  ;;  %v6998_v14 = vld [vmem:[%s9434_s0 + $0x200] sm:$0xff]  }
  0x29   :  { %6017 = vmatmul.mubr.msk.bf16.gmra.mrb[16].mxu0 %vm202_vm3, %v6949_v15  ;;  %6069 = vmatmul.mubr.msk.bf16.gmra.mrb[16].mxu1 %vm202_vm3, %v6950_v16 }
  0x2a   :  { %6020 = vmatprep.mubr.msk.bf16.mxu0 %vm7169_vm2, %v9437_v0  ;;  %6072 = vmatprep.mubr.msk.bf16.mxu1 %vm7169_vm2, %v9437_v0 }
  0x31   :  { %6021 = vmatmul.mubr.msk.bf16.gmra.mrb[20].mxu0 %vm202_vm3, %v6951_v17  ;;  %6073 = vmatmul.mubr.msk.bf16.gmra.mrb[20].mxu1 %vm202_vm3, %v6952_v18 }
  0x32   :  { %6024 = vmatprep.mubr.msk.bf16.mxu0 %vm7169_vm2, %v9437_v0  ;;  %6076 = vmatprep.mubr.msk.bf16.mxu1 %vm7169_vm2, %v9437_v0 }
  0x39   :  { %6025 = vmatmul.mubr.msk.bf16.gmra.mrb[24].mxu0 %vm202_vm3, %v6953_v19  ;;  %6077 = vmatmul.mubr.msk.bf16.gmra.mrb[24].mxu1 %vm202_vm3, %v6954_v20 }
  0x3a   :  { %6028 = vmatprep.mubr.msk.bf16.mxu0 %vm7169_vm2, %v9437_v0  ;;  %6080 = vmatprep.mubr.msk.bf16.mxu1 %vm7169_vm2, %v9437_v0 }
  0x41   :  { %6029 = vmatmul.mubr.msk.bf16.gmra.mrb[28].mxu0 %vm202_vm3, %v6955_v21  ;;  %6081 = vmatmul.mubr.msk.bf16.gmra.mrb[28].mxu1 %vm202_vm3, %v6956_v22 }
  0x42   :  { %6032 = vmatprep.mubr.msk.bf16.mxu0 %vm7169_vm2, %v9437_v0  ;;  %6084 = vmatprep.mubr.msk.bf16.mxu1 %vm7169_vm2, %v9437_v0 }
  0x49   :  { %6033 = vmatmul.mubr.msk.bf16.gmra.mrb[32].mxu0 %vm202_vm3, %v6957_v23  ;;  %6085 = vmatmul.mubr.msk.bf16.gmra.mrb[32].mxu1 %vm202_vm3, %v6958_v24  ;;  %v6999_v23 = vld [vmem:[%s9434_s0 + $0x14c] sm:$0xff]  }
  0x4a   :  { %6036 = vmatprep.mubr.msk.bf16.mxu0 %vm7169_vm2, %v9437_v0  ;;  %6088 = vmatprep.mubr.msk.bf16.mxu1 %vm7169_vm2, %v9437_v0  ;;  %v7000_v24 = vld [vmem:[%s9434_s0 + $0x208] sm:$0xff]  }
  0x51   :  { %6037 = vmatmul.mubr.msk.bf16.gmra.mrb[36].mxu0 %vm202_vm3, %v6959_v25  ;;  %6089 = vmatmul.mubr.msk.bf16.gmra.mrb[36].mxu1 %vm202_vm3, %v6960_v26 }
  0x52   :  { %6040 = vmatprep.mubr.msk.bf16.mxu0 %vm7169_vm2, %v9437_v0  ;;  %6092 = vmatprep.mubr.msk.bf16.mxu1 %vm7169_vm2, %v9437_v0 }
  0x59   :  { %6041 = vmatmul.mubr.msk.bf16.gmra.mrb[40].mxu0 %vm202_vm3, %v6961_v27  ;;  %6093 = vmatmul.mubr.msk.bf16.gmra.mrb[40].mxu1 %vm202_vm3, %v6962_v28 }
  0x5a   :  { %6044 = vmatprep.mubr.msk.bf16.mxu0 %vm7169_vm2, %v9437_v0  ;;  %6096 = vmatprep.mubr.msk.bf16.mxu1 %vm7169_vm2, %v9437_v0 }
  0x61   :  { %6045 = vmatmul.mubr.msk.bf16.gmra.mrb[44].mxu0 %vm202_vm3, %v6963_v29  ;;  %6097 = vmatmul.mubr.msk.bf16.gmra.mrb[44].mxu1 %vm202_vm3, %v6964_v30 }
  0x62   :  { %6048 = vmatprep.mubr.msk.bf16.mxu0 %vm7169_vm2, %v9437_v0  ;;  %6104 = vmatprep.mubr.msk.bf16.mxu1 %vm7169_vm2, %v9437_v0 }
  0x69   :  { %6049 = vmatmul.mubr.msk.bf16.gmra.mrb[48].mxu0 %vm202_vm3, %v6965_v31  ;;  %6105 = vmatmul.mubr.msk.bf16.vlgmr.msra.gmra.mrb[48].mxu1 %vm202_vm3, %v6966_v32 }
  0x6a   :  { %6108 = vmatprep.mubr.msk.bf16.mxu1 %vm7169_vm2, %v9437_v0  ;;  %6208 = vmatprep.mubr.msk.bf16.mxu0 %vm7169_vm2, %v9437_v0 }
  0x6b   :  { %6309 = vmatpush3.bf16.msra.mxu1 %v7195_v1 }
  0x6c   :  { %6310 = vmatprep.subr.bf16.mxu1 %v9437_v0 }
  0x6f   :  { %6311 = vmatpush3.bf16.msra.mxu1 %v7204_v6 }
  0x70   :  { %6516 = vmatprep.subr.bf16.mxu1 %v9437_v0 }
  0x71   :  { %6109 = vmatmul.mubr.msk.bf16.gmra.mrb[52].mxu1 %vm202_vm3, %v6967_v33  ;;  %6209 = vmatmul.mubr.msk.bf16.vlgmr.msra.gmra.mrb[52].mxu0 %vm202_vm3, %v6968_v34  ;;  %v7001_v33 = vld [vmem:[%s9434_s0 + $0x154] sm:$0xff]  }
  0x72   :  { %6413 = vmatpush3.bf16.msra.mxu0 %v7195_v1  ;;  %6112 = vmatprep.mubr.msk.bf16.mxu1 %vm7169_vm2, %v9437_v0  ;;  %v7002_v34 = vld [vmem:[%s9434_s0 + $0x210] sm:$0xff]  }
  0x73   :  { %6212 = vmatprep.mubr.msk.bf16.mxu0 %vm7169_vm2, %v9437_v0  ;;  %6414 = vmatprep.subr.bf16.mxu0 %v9437_v0 }
  0x76   :  { %6415 = vmatpush3.bf16.msra.mxu0 %v7204_v6 }
  0x77   :  { %6620 = vmatprep.subr.bf16.mxu0 %v9437_v0 }
  0x79   :  { %6113 = vmatmul.mubr.msk.bf16.gmra.mrb[56].mxu1 %vm202_vm3, %v6969_v35  ;;  %6213 = vmatmul.mubr.msk.bf16.gmra.mrb[56].mxu0 %vm202_vm3, %v6970_v36 }
  0x7a   :  { %6116 = vmatprep.mubr.msk.bf16.mxu1 %vm7169_vm2, %v9437_v0  ;;  %6216 = vmatprep.mubr.msk.bf16.mxu0 %vm7169_vm2, %v9437_v0 }
  0x81   :  { %6117 = vmatmul.mubr.msk.bf16.gmra.mrb[60].mxu1 %vm202_vm3, %v6971_v37  ;;  %6217 = vmatmul.mubr.msk.bf16.gmra.mrb[60].mxu0 %vm202_vm3, %v6972_v38 }
  0x82   :  { %6120 = vmatprep.mubr.msk.bf16.mxu1 %vm7169_vm2, %v9437_v0  ;;  %6220 = vmatprep.mubr.msk.bf16.mxu0 %vm7169_vm2, %v9437_v0 }
  0x89   :  { %6121 = vmatmul.mubr.msk.bf16.gmra.mrb[64].mxu1 %vm202_vm3, %v6973_v39  ;;  %6221 = vmatmul.mubr.msk.bf16.gmra.mrb[64].mxu0 %vm202_vm3, %v6974_v40 }
  0x8a   :  { %6124 = vmatprep.mubr.msk.bf16.mxu1 %vm7169_vm2, %v9437_v0  ;;  %6224 = vmatprep.mubr.msk.bf16.mxu0 %vm7169_vm2, %v9437_v0 }
  0x91   :  { %6125 = vmatmul.mubr.msk.bf16.gmra.mrb[68].mxu1 %vm202_vm3, %v6975_v41  ;;  %6225 = vmatmul.mubr.msk.bf16.gmra.mrb[68].mxu0 %vm202_vm3, %v6976_v42 }
  0x92   :  { %6128 = vmatprep.mubr.msk.bf16.mxu1 %vm7169_vm2, %v9437_v0  ;;  %6228 = vmatprep.mubr.msk.bf16.mxu0 %vm7169_vm2, %v9437_v0 }
  0x99   :  { %6129 = vmatmul.mubr.msk.bf16.gmra.mrb[72].mxu1 %vm202_vm3, %v6977_v43  ;;  %6229 = vmatmul.mubr.msk.bf16.gmra.mrb[72].mxu0 %vm202_vm3, %v6978_v44  ;;  %v7003_v43 = vld [vmem:[%s9434_s0 + $0x15c] sm:$0xff]  }
  0x9a   :  { %6132 = vmatprep.mubr.msk.bf16.mxu1 %vm7169_vm2, %v9437_v0  ;;  %6232 = vmatprep.mubr.msk.bf16.mxu0 %vm7169_vm2, %v9437_v0  ;;  %v7004_v44 = vld [vmem:[%s9434_s0 + $0x218] sm:$0xff]  }
  0xa1   :  { %6133 = vmatmul.mubr.msk.bf16.gmra.mrb[76].mxu1 %vm202_vm3, %v6979_v45  ;;  %6233 = vmatmul.mubr.msk.bf16.gmra.mrb[76].mxu0 %vm202_vm3, %v6980_v46 }
  0xa2   :  { %6136 = vmatprep.mubr.msk.bf16.mxu1 %vm7169_vm2, %v9437_v0  ;;  %6236 = vmatprep.mubr.msk.bf16.mxu0 %vm7169_vm2, %v9437_v0 }
  0xa9   :  { %6137 = vmatmul.mubr.msk.bf16.gmra.mrb[80].mxu1 %vm202_vm3, %v6981_v47  ;;  %6237 = vmatmul.mubr.msk.bf16.gmra.mrb[80].mxu0 %vm202_vm3, %v6982_v48 }
  0xaa   :  { %6140 = vmatprep.mubr.msk.bf16.mxu1 %vm7169_vm2, %v9437_v0  ;;  %6240 = vmatprep.mubr.msk.bf16.mxu0 %vm7169_vm2, %v9437_v0 }
  0xb1   :  { %6141 = vmatmul.mubr.msk.bf16.gmra.mrb[84].mxu1 %vm202_vm3, %v6983_v49  ;;  %6241 = vmatmul.mubr.msk.bf16.gmra.mrb[84].mxu0 %vm202_vm3, %v6984_v50 }
  0xb2   :  { %6144 = vmatprep.mubr.msk.bf16.mxu1 %vm7169_vm2, %v9437_v0  ;;  %6244 = vmatprep.mubr.msk.bf16.mxu0 %vm7169_vm2, %v9437_v0 }
  0xb9   :  { %6145 = vmatmul.mubr.msk.bf16.gmra.mrb[88].mxu1 %vm202_vm3, %v6985_v51  ;;  %6245 = vmatmul.mubr.msk.bf16.gmra.mrb[88].mxu0 %vm202_vm3, %v6986_v52 }
  0xba   :  { %6148 = vmatprep.mubr.msk.bf16.mxu1 %vm7169_vm2, %v9437_v0  ;;  %6248 = vmatprep.mubr.msk.bf16.mxu0 %vm7169_vm2, %v9437_v0 }
  0xc1   :  { %6149 = vmatmul.mubr.msk.bf16.gmra.mrb[92].mxu1 %vm202_vm3, %v6987_v53  ;;  %6249 = vmatmul.mubr.msk.bf16.gmra.mrb[92].mxu0 %vm202_vm3, %v6988_v54  ;;  %v7005_v53 = vld [vmem:[%s9434_s0 + $0x164] sm:$0xff]  }
  0xc2   :  { %6152 = vmatprep.mubr.msk.bf16.mxu1 %vm7169_vm2, %v9437_v0  ;;  %6252 = vmatprep.mubr.msk.bf16.mxu0 %vm7169_vm2, %v9437_v0  ;;  %v7006_v54 = vld [vmem:[%s9434_s0 + $0x220] sm:$0xff]  }
  0xc9   :  { %6153 = vmatmul.mubr.msk.bf16.gmra.mrb[96].mxu1 %vm202_vm3, %v6989_v55  ;;  %6253 = vmatmul.mubr.msk.bf16.gmra.mrb[96].mxu0 %vm202_vm3, %v6990_v56 }
  0xca   :  { %6156 = vmatprep.mubr.msk.bf16.mxu1 %vm7169_vm2, %v9437_v0  ;;  %6256 = vmatprep.mubr.msk.bf16.mxu0 %vm7169_vm2, %v9437_v0 }
  0xd1   :  { %6157 = vmatmul.mubr.msk.bf16.gmra.mrb[100].mxu1 %vm202_vm3, %v6991_v57  ;;  %6257 = vmatmul.mubr.msk.bf16.gmra.mrb[100].mxu0 %vm202_vm3, %v6992_v58 }
  0xd2   :  { %6160 = vmatprep.mubr.msk.bf16.mxu1 %vm7169_vm2, %v9437_v0  ;;  %6260 = vmatprep.mubr.msk.bf16.mxu0 %vm7169_vm2, %v9437_v0 }
  0xd9   :  { %6161 = vmatmul.mubr.msk.bf16.gmra.mrb[104].mxu1 %vm202_vm3, %v6993_v59  ;;  %6261 = vmatmul.mubr.msk.bf16.gmra.mrb[104].mxu0 %vm202_vm3, %v6994_v60 }
  0xda   :  { %6164 = vmatprep.mubr.msk.bf16.mxu1 %vm7169_vm2, %v9437_v0  ;;  %6264 = vmatprep.mubr.msk.bf16.mxu0 %vm7169_vm2, %v9437_v0 }
  0xdc   :  { %v7554_v61 = vpop.f32.mrb[0].mxu0  ;;  %v7556_v62 = vpop.f32.mrb[0].mxu1 }
  0xdd   :  { %v6002_v63 = vpop.f32.mrb[1].mxu0  ;;  %v6054_v1 = vpop.f32.mrb[1].mxu1 }
  0xde   :  { %v7564_v4 = vpop.f32.mrb[2].mxu0  ;;  %v7566_v5 = vpop.f32.mrb[2].mxu1 }
  0xdf   :  { %v6003_v7 = vpop.f32.mrb[3].mxu0  ;;  %v6055_v8 = vpop.f32.mrb[3].mxu1 }
  0xe1   :  { %6165 = vmatmul.mubr.msk.bf16.gmra.mrb[108].mxu1 %vm202_vm3, %v6995_v2  ;;  %6265 = vmatmul.mubr.msk.bf16.gmra.mrb[108].mxu0 %vm202_vm3, %v6996_v3  ;;  %v7007_v2 = vld [vmem:[%s9434_s0 + $0x16c] sm:$0xff]  }
  0xe2   :  { %6168 = vmatprep.mubr.msk.bf16.mxu1 %vm7169_vm2, %v9437_v0  ;;  %6268 = vmatprep.mubr.msk.bf16.mxu0 %vm7169_vm2, %v9437_v0  ;;  %v7008_v3 = vld [vmem:[%s9434_s0 + $0x228] sm:$0xff]  }
  0xe4   :  { %v7574_v9 = vpop.f32.mrb[4].mxu0  ;;  %v7576_v10 = vpop.f32.mrb[4].mxu1 }
  0xe5   :  { %v6006_v11 = vpop.f32.mrb[5].mxu0  ;;  %v6058_v12 = vpop.f32.mrb[5].mxu1 }
  0xe6   :  { %v7584_v15 = vpop.f32.mrb[6].mxu0  ;;  %v7586_v16 = vpop.f32.mrb[6].mxu1 }
  0xe7   :  { %v6007_v17 = vpop.f32.mrb[7].mxu0  ;;  %v6059_v18 = vpop.f32.mrb[7].mxu1 }
  0xe9   :  { %6169 = vmatmul.mubr.msk.bf16.gmra.mrb[112].mxu1 %vm202_vm3, %v6997_v13  ;;  %6269 = vmatmul.mubr.msk.bf16.gmra.mrb[112].mxu0 %vm202_vm3, %v6998_v14 }
  0xea   :  { %6172 = vmatprep.mubr.msk.bf16.mxu1 %vm7169_vm2, %v9437_v0  ;;  %6272 = vmatprep.mubr.msk.bf16.mxu0 %vm7169_vm2, %v9437_v0 }
  0xec   :  { %v7594_v19 = vpop.f32.mrb[8].mxu0  ;;  %v7596_v20 = vpop.f32.mrb[8].mxu1 }
  0xed   :  { %v6010_v21 = vpop.f32.mrb[9].mxu0  ;;  %v6062_v22 = vpop.f32.mrb[9].mxu1 }
  0xee   :  { %v7604_v25 = vpop.f32.mrb[10].mxu0  ;;  %v7606_v26 = vpop.f32.mrb[10].mxu1  ;;  %v7009_v21 = vld [vmem:[%s9434_s0 + $0x174] sm:$0xff]  }
  0xef   :  { %v6011_v27 = vpop.f32.mrb[11].mxu0  ;;  %v6063_v28 = vpop.f32.mrb[11].mxu1  ;;  %v7010_v22 = vld [vmem:[%s9434_s0 + $0x230] sm:$0xff]  }
  0xf1   :  { %6173 = vmatmul.mubr.msk.bf16.gmra.mrb[116].mxu1 %vm202_vm3, %v6999_v23  ;;  %6273 = vmatmul.mubr.msk.bf16.gmra.mrb[116].mxu0 %vm202_vm3, %v7000_v24 }
  0xf2   :  { %6176 = vmatprep.mubr.msk.bf16.mxu1 %vm7169_vm2, %v9437_v0  ;;  %6276 = vmatprep.mubr.msk.bf16.mxu0 %vm7169_vm2, %v9437_v0 }
  0xf4   :  { %v7614_v29 = vpop.f32.mrb[12].mxu0  ;;  %v7616_v30 = vpop.f32.mrb[12].mxu1 }
  0xf5   :  { %v6014_v31 = vpop.f32.mrb[13].mxu0  ;;  %v6066_v32 = vpop.f32.mrb[13].mxu1 }
  0xf6   :  { %v7624_v35 = vpop.f32.mrb[14].mxu0  ;;  %v7626_v36 = vpop.f32.mrb[14].mxu1 }
  0xf7   :  { %v6015_v37 = vpop.f32.mrb[15].mxu0  ;;  %v6067_v38 = vpop.f32.mrb[15].mxu1 }
  0xf8   :  { %v7011_v37 = vld [vmem:[%s9434_s0 + $0x17c] sm:$0xff]  }
  0xf9   :  { %6177 = vmatmul.mubr.msk.bf16.gmra.mrb[120].mxu1 %vm202_vm3, %v7001_v33  ;;  %6277 = vmatmul.mubr.msk.bf16.gmra.mrb[120].mxu0 %vm202_vm3, %v7002_v34  ;;  %v7012_v38 = vld [vmem:[%s9434_s0 + $0x238] sm:$0xff]  }
  0xfa   :  { %6180 = vmatprep.mubr.msk.bf16.mxu1 %vm7169_vm2, %v9437_v0  ;;  %6280 = vmatprep.mubr.msk.bf16.mxu0 %vm7169_vm2, %v9437_v0 }
  0xfc   :  { %v7634_v39 = vpop.f32.mrb[16].mxu0  ;;  %v7636_v40 = vpop.f32.mrb[16].mxu1 }
  0xfd   :  { %v6018_v41 = vpop.f32.mrb[17].mxu0  ;;  %v6070_v42 = vpop.f32.mrb[17].mxu1 }
  0xfe   :  { %v7644_v45 = vpop.f32.mrb[18].mxu0  ;;  %v7646_v46 = vpop.f32.mrb[18].mxu1 }
  0xff   :  { %v6019_v47 = vpop.f32.mrb[19].mxu0  ;;  %v6071_v48 = vpop.f32.mrb[19].mxu1 }
 0x101   :  { %6181 = vmatmul.mubr.msk.bf16.gmra.mrb[124].mxu1 %vm202_vm3, %v7003_v43  ;;  %6281 = vmatmul.mubr.msk.bf16.gmra.mrb[124].mxu0 %vm202_vm3, %v7004_v44 }
 0x102   :  { %6184 = vmatprep.mubr.msk.bf16.mxu1 %vm7169_vm2, %v9437_v0  ;;  %6284 = vmatprep.mubr.msk.bf16.mxu0 %vm7169_vm2, %v9437_v0 }
 0x104   :  { %v7654_v49 = vpop.f32.mrb[20].mxu0  ;;  %v7656_v50 = vpop.f32.mrb[20].mxu1 }
 0x105   :  { %v6022_v51 = vpop.f32.mrb[21].mxu0  ;;  %v6074_v52 = vpop.f32.mrb[21].mxu1 }
 0x106   :  { %v7664_v55 = vpop.f32.mrb[22].mxu0  ;;  %v7666_v56 = vpop.f32.mrb[22].mxu1 }
 0x107   :  { %v6023_v57 = vpop.f32.mrb[23].mxu0  ;;  %v6075_v58 = vpop.f32.mrb[23].mxu1 }
 0x109   :  { %6185 = vmatmul.mubr.msk.bf16.gmra.mrb[128].mxu1 %vm202_vm3, %v7005_v53  ;;  %6285 = vmatmul.mubr.msk.bf16.gmra.mrb[128].mxu0 %vm202_vm3, %v7006_v54  ;;  %v7013_v53 = vld [vmem:[%s9434_s0 + $0x184] ss:$0 sps:$4 sm:$0xff]  }
 0x10a   :  { %6188 = vmatprep.mubr.msk.bf16.mxu1 %vm7169_vm2, %v9437_v0  ;;  %6288 = vmatprep.mubr.msk.bf16.mxu0 %vm7169_vm2, %v9437_v0  ;;  %v7014_v54 = vld [vmem:[%s9434_s0 + $0x240] sm:$0xff]  }
 0x10c   :  { %v7674_v59 = vpop.f32.mrb[24].mxu0  ;;  %v7676_v60 = vpop.f32.mrb[24].mxu1 }
 0x10d   :  { %v6026_v63 = vpop.f32.mrb[25].mxu0  ;;  %v6078_v1 = vpop.f32.mrb[25].mxu1 }
 0x10e   :  { %v7684_v7 = vpop.f32.mrb[26].mxu0  ;;  %v7686_v8 = vpop.f32.mrb[26].mxu1 }
 0x10f   :  { %v6027_v11 = vpop.f32.mrb[27].mxu0  ;;  %v6079_v12 = vpop.f32.mrb[27].mxu1 }
 0x111   :  { %6189 = vmatmul.mubr.msk.bf16.gmra.mrb[132].mxu1 %vm202_vm3, %v7007_v2  ;;  %6289 = vmatmul.mubr.msk.bf16.gmra.mrb[132].mxu0 %vm202_vm3, %v7008_v3 }
 0x112   :  { %6192 = vmatprep.mubr.msk.bf16.mxu1 %vm7169_vm2, %v9437_v0  ;;  %6292 = vmatprep.mubr.msk.bf16.mxu0 %vm7169_vm2, %v9437_v0 }
 0x114   :  { %v7694_v13 = vpop.f32.mrb[28].mxu0  ;;  %v7696_v14 = vpop.f32.mrb[28].mxu1 }
 0x115   :  { %v6030_v17 = vpop.f32.mrb[29].mxu0  ;;  %v6082_v18 = vpop.f32.mrb[29].mxu1 }
 0x116   :  { %v7704_v23 = vpop.f32.mrb[30].mxu0  ;;  %v7706_v24 = vpop.f32.mrb[30].mxu1  ;;  %v7015_v17 = vld [vmem:[%s9434_s0 + $0x248] ss:$0 sps:$4 sm:$0xff]   ;;  %v7016_v18 = vld [vmem:[%s9434_s0 + $0x24c] sm:$0xff]  }
 0x117   :  { %v6031_v27 = vpop.f32.mrb[31].mxu0  ;;  %v6083_v28 = vpop.f32.mrb[31].mxu1 }
 0x119   :  { %6193 = vmatmul.mubr.msk.bf16.gmra.mrb[136].mxu1 %vm202_vm3, %v7009_v21  ;;  %6293 = vmatmul.mubr.msk.bf16.gmra.mrb[136].mxu0 %vm202_vm3, %v7010_v22 }
 0x11a   :  { %6196 = vmatprep.mubr.msk.bf16.mxu1 %vm7169_vm2, %v9437_v0  ;;  %6296 = vmatprep.mubr.msk.bf16.mxu0 %vm7169_vm2, %v9437_v0 }
 0x11c   :  { %v7714_v31 = vpop.f32.mrb[32].mxu0  ;;  %v7716_v32 = vpop.f32.mrb[32].mxu1 }
 0x11d   :  { %v6034_v33 = vpop.f32.mrb[33].mxu0  ;;  %v6086_v34 = vpop.f32.mrb[33].mxu1 }
 0x11e   :  { %v7724_v41 = vpop.f32.mrb[34].mxu0  ;;  %v7726_v42 = vpop.f32.mrb[34].mxu1  ;;  %v7777_v33 = vld [vmem:[%s9433_s1] sm:$0xff]  }
 0x11f   :  { %v6035_v43 = vpop.f32.mrb[35].mxu0  ;;  %v6087_v44 = vpop.f32.mrb[35].mxu1 }
 0x120   :  { %v7017_v44 = vld [vmem:[%s9434_s0 + $0x254] sm:$0xff]  }
 0x121   :  { %6197 = vmatmul.mubr.msk.bf16.gmra.mrb[140].mxu1 %vm202_vm3, %v7011_v37  ;;  %6297 = vmatmul.mubr.msk.bf16.gmra.mrb[140].mxu0 %vm202_vm3, %v7012_v38 }
 0x122   :  { %6200 = vmatprep.mubr.msk.bf16.mxu1 %vm7169_vm2, %v9437_v0  ;;  %6300 = vmatprep.mubr.msk.bf16.mxu0 %vm7169_vm2, %v9437_v0 }
 0x124   :  { %v7734_v47 = vpop.f32.mrb[36].mxu0  ;;  %v7736_v48 = vpop.f32.mrb[36].mxu1 }
 0x125   :  { %v6038_v51 = vpop.f32.mrb[37].mxu0  ;;  %v6090_v52 = vpop.f32.mrb[37].mxu1 }
 0x126   :  { %v7744_v57 = vpop.f32.mrb[38].mxu0  ;;  %v7746_v58 = vpop.f32.mrb[38].mxu1  ;;  %v7018_v51 = vld [vmem:[%s9434_s0 + $0x310] sm:$0xff]  }
 0x127   :  { %v6039_v63 = vpop.f32.mrb[39].mxu0  ;;  %v6091_v1 = vpop.f32.mrb[39].mxu1 }
 0x129   :  { %6201 = vmatmul.mubr.msk.bf16.gmra.mrb[144].mxu1 %vm202_vm3, %v7013_v53  ;;  %6301 = vmatmul.mubr.msk.bf16.gmra.mrb[144].mxu0 %vm202_vm3, %v7014_v54 }
 0x12a   :  { %6304 = vmatprep.mubr.msk.bf16.mxu0 %vm7169_vm2, %v9437_v0  ;;  %6312 = vmatprep.mubr.msk.bf16.mxu1 %vm7169_vm2, %v9437_v0 }
 0x12c   :  { %v7754_v2 = vpop.f32.mrb[40].mxu0  ;;  %v7756_v3 = vpop.f32.mrb[40].mxu1 }
 0x12d   :  { %v6042_v11 = vpop.f32.mrb[41].mxu0  ;;  %v6094_v12 = vpop.f32.mrb[41].mxu1 }
 0x12e   :  { %v7764_v21 = vpop.f32.mrb[42].mxu0  ;;  %v7766_v22 = vpop.f32.mrb[42].mxu1 }
 0x12f   :  { %v6043_v27 = vpop.f32.mrb[43].mxu0  ;;  %v6095_v28 = vpop.f32.mrb[43].mxu1 }
 0x130   :  { %v7019_v27 = vld [vmem:[%s9434_s0 + $0x25c] sm:$0xff]  }
 0x131   :  { %6305 = vmatmul.mubr.msk.bf16.gmra.mrb[148].mxu0 %vm202_vm3, %v7015_v17  ;;  %6313 = vmatmul.mubr.msk.bf16.vlgmr.msra.gmra.mrb[148].mxu1 %vm202_vm3, %v7016_v18  ;;  %v7020_v28 = vld [vmem:[%s9434_s0 + $0x318] sm:$0xff]  }
 0x132   :  { %6316 = vmatprep.mubr.msk.bf16.mxu1 %vm7169_vm2, %v9437_v0  ;;  %6416 = vmatprep.mubr.msk.bf16.mxu0 %vm7169_vm2, %v9437_v0 }
 0x133   :  { %6517 = vmatpush3.bf16.msra.mxu1 %v7777_v33 }
 0x134   :  { %v7780_v34 = vpop.f32.mrb[44].mxu0  ;;  %v7782_v37 = vpop.f32.mrb[44].mxu1  ;;  %6518 = vmatprep.subr.bf16.mxu1 %v9437_v0 }
 0x135   :  { %v6046_v38 = vpop.f32.mrb[45].mxu0  ;;  %v6098_v43 = vpop.f32.mrb[45].mxu1 }
 0x136   :  { %v7791_v52 = vpop.f32.mrb[46].mxu0  ;;  %v514_v53 = vpop.f32.mrb[46].mxu1 }
 0x137   :  { %v6047_v54 = vpop.f32.mrb[47].mxu0  ;;  %v6099_v63 = vpop.f32.mrb[47].mxu1  ;;  %6519 = vmatpush3.bf16.msra.mxu1 %v7204_v6 }
 0x138   :  { %6724 = vmatprep.subr.bf16.mxu1 %v9437_v0 }
 0x139   :  { %6317 = vmatmul.mubr.msk.bf16.gmra.mrb[152].mxu1 %vm202_vm3, %v7017_v44  ;;  %6417 = vmatmul.mubr.msk.bf16.vlgmr.msra.gmra.mrb[152].mxu0 %vm202_vm3, %v7018_v51 }
 0x13a   :  { %6621 = vmatpush3.bf16.msra.mxu0 %v7777_v33  ;;  %6320 = vmatprep.mubr.msk.bf16.mxu1 %vm7169_vm2, %v9437_v0 }
 0x13b   :  { %6420 = vmatprep.mubr.msk.bf16.mxu0 %vm7169_vm2, %v9437_v0  ;;  %6622 = vmatprep.subr.bf16.mxu0 %v9437_v0 }
 0x13c   :  { %v7803_v1 = vpop.f32.mrb[48].mxu0  ;;  %v799_v11 = vpop.f32.mrb[48].mxu1 }
 0x13d   :  { %v997_v12 = vmax.f32 %v7554_v61, %v799_v11  ;;  %v6050_v17 = vpop.f32.mrb[49].mxu0  ;;  %v6106_v18 = vpop.f32.mrb[49].mxu1 }
 0x13e   :  { %v7812_v38 = vpop.f32.mrb[50].mxu0  ;;  %v802_v43 = vpop.f32.mrb[50].mxu1  ;;  %6623 = vmatpush3.bf16.msra.mxu0 %v7204_v6  ;;  %v7021_v18 = vld [vmem:[%s9434_s0 + $0x264] sm:$0xff]  }
 0x13f   :  { %v998_v44 = vmax.f32 %v7564_v4, %v802_v43  ;;  %v6051_v51 = vpop.f32.mrb[51].mxu0  ;;  %v6107_v53 = vpop.f32.mrb[51].mxu1  ;;  %6828 = vmatprep.subr.bf16.mxu0 %v9437_v0 }
 0x141   :  { %6321 = vmatmul.mubr.msk.bf16.gmra.mrb[156].mxu1 %vm202_vm3, %v7019_v27  ;;  %6421 = vmatmul.mubr.msk.bf16.gmra.mrb[156].mxu0 %vm202_vm3, %v7020_v28  ;;  %v7022_v27 = vld [vmem:[%s9434_s0 + $0x320] sm:$0xff]  }
 0x142   :  { %6324 = vmatprep.mubr.msk.bf16.mxu1 %vm7169_vm2, %v9437_v0  ;;  %6424 = vmatprep.mubr.msk.bf16.mxu0 %vm7169_vm2, %v9437_v0 }
 0x144   :  { %v807_v61 = vpop.f32.mrb[52].mxu1  ;;  %v1328_v54 = vpop.f32.mrb[52].mxu0 }
 0x145   :  { %v999_v63 = vmax.f32 %v7574_v9, %v807_v61  ;;  %v7824_v11 = vmax.f32 %v997_v12, %v1328_v54  ;;  %v6110_v4 = vpop.f32.mrb[53].mxu1  ;;  %v6210_v17 = vpop.f32.mrb[53].mxu0  ;;  %v9440_v12 = vmov 0.0  }
 0x146   :  { %v810_v28 = vpop.f32.mrb[54].mxu1  ;;  %v1331_v43 = vpop.f32.mrb[54].mxu0 }
 0x147   :  { %v1000_v51 = vmax.f32 %v7584_v15, %v810_v28  ;;  %v7833_v53 = vmax.f32 %v998_v44, %v1331_v43  ;;  %v6211_v0 = vpop.f32.mrb[55].mxu0  ;;  %v6111_v9 = vpop.f32.mrb[55].mxu1 }
 0x148   :  { %v7023_v0 = vld [vmem:[%s9434_s0 + $0x26c] sm:$0xff]  }
 0x149   :  { %9439 = vst [vmem:[#allocation2_spill] sm:$0xff] %v7833_v53  ;;  %6325 = vmatmul.mubr.msk.bf16.gmra.mrb[160].mxu1 %vm202_vm3, %v7021_v18  ;;  %6425 = vmatmul.mubr.msk.bf16.gmra.mrb[160].mxu0 %vm202_vm3, %v7022_v27  ;;  %v7024_v18 = vld [vmem:[%s9434_s0 + $0x328] sm:$0xff]  }
 0x14a   :  { %6328 = vmatprep.mubr.msk.bf16.mxu1 %vm7169_vm2, %v9440_v12  ;;  %6428 = vmatprep.mubr.msk.bf16.mxu0 %vm7169_vm2, %v9440_v12 }
 0x14c   :  { %v815_v61 = vpop.f32.mrb[56].mxu1  ;;  %v1336_v54 = vpop.f32.mrb[56].mxu0 }
 0x14d   :  { %v1001_v4 = vmax.f32 %v7594_v19, %v815_v61  ;;  %v7842_v17 = vmax.f32 %v999_v63, %v1336_v54  ;;  %v6114_v15 = vpop.f32.mrb[57].mxu1  ;;  %v6214_v44 = vpop.f32.mrb[57].mxu0 }
 0x14e   :  { %v818_v27 = vpop.f32.mrb[58].mxu1  ;;  %v1339_v28 = vpop.f32.mrb[58].mxu0  ;;  %v7026_v44 = vld [vmem:[%s9434_s0 + $0x330] sm:$0xff]  }
 0x14f   :  { %v1002_v43 = vmax.f32 %v7604_v25, %v818_v27  ;;  %v7851_v9 = vmax.f32 %v1000_v51, %v1339_v28  ;;  %v6215_v53 = vpop.f32.mrb[59].mxu0  ;;  %v6115_v19 = vpop.f32.mrb[59].mxu1 }
 0x150   :  { %v7025_v53 = vld [vmem:[%s9434_s0 + $0x274] sm:$0xff]  }
 0x151   :  { %6329 = vmatmul.mubr.msk.bf16.gmra.mrb[164].mxu1 %vm202_vm3, %v7023_v0  ;;  %6429 = vmatmul.mubr.msk.bf16.gmra.mrb[164].mxu0 %vm202_vm3, %v7024_v18 }
 0x152   :  { %6332 = vmatprep.mubr.msk.bf16.mxu1 %vm7169_vm2, %v9440_v12  ;;  %6432 = vmatprep.mubr.msk.bf16.mxu0 %vm7169_vm2, %v9440_v12 }
 0x154   :  { %v823_v63 = vpop.f32.mrb[60].mxu1  ;;  %v1344_v61 = vpop.f32.mrb[60].mxu0 }
 0x155   :  { %v1003_v54 = vmax.f32 %v7614_v29, %v823_v63  ;;  %v7860_v15 = vmax.f32 %v1001_v4, %v1344_v61  ;;  %v6118_v25 = vpop.f32.mrb[61].mxu1  ;;  %v6218_v51 = vpop.f32.mrb[61].mxu0 }
 0x156   :  { %v826_v0 = vpop.f32.mrb[62].mxu1  ;;  %v1347_v18 = vpop.f32.mrb[62].mxu0  ;;  %v7027_v51 = vld [vmem:[%s9434_s0 + $0x27c] sm:$0xff]  }
 0x157   :  { %v1004_v27 = vmax.f32 %v7624_v35, %v826_v0  ;;  %v7869_v28 = vmax.f32 %v1002_v43, %v1347_v18  ;;  %v6219_v19 = vpop.f32.mrb[63].mxu0  ;;  %v6119_v29 = vpop.f32.mrb[63].mxu1 }
 0x159   :  { %6333 = vmatmul.mubr.msk.bf16.gmra.mrb[168].mxu1 %vm202_vm3, %v7025_v53  ;;  %6433 = vmatmul.mubr.msk.bf16.gmra.mrb[168].mxu0 %vm202_vm3, %v7026_v44  ;;  %v7028_v53 = vld [vmem:[%s9434_s0 + $0x338] sm:$0xff]  }
 0x15a   :  { %6336 = vmatprep.mubr.msk.bf16.mxu1 %vm7169_vm2, %v9440_v12  ;;  %6436 = vmatprep.mubr.msk.bf16.mxu0 %vm7169_vm2, %v9440_v12 }
 0x15c   :  { %v831_v4 = vpop.f32.mrb[64].mxu1  ;;  %v1352_v63 = vpop.f32.mrb[64].mxu0 }
 0x15d   :  { %v1005_v61 = vmax.f32 %v7634_v39, %v831_v4  ;;  %v7878_v25 = vmax.f32 %v1003_v54, %v1352_v63  ;;  %v6122_v35 = vpop.f32.mrb[65].mxu1  ;;  %v6222_v43 = vpop.f32.mrb[65].mxu0 }
 0x15e   :  { %v834_v44 = vpop.f32.mrb[66].mxu1  ;;  %v1355_v0 = vpop.f32.mrb[66].mxu0  ;;  %v7029_v43 = vld [vmem:[%s9434_s0 + $0x284] sm:$0xff]  }
 0x15f   :  { %v1006_v18 = vmax.f32 %v7644_v45, %v834_v44  ;;  %v7887_v19 = vmax.f32 %v1004_v27, %v1355_v0  ;;  %v6223_v29 = vpop.f32.mrb[67].mxu0  ;;  %v6123_v39 = vpop.f32.mrb[67].mxu1 }
 0x161   :  { %6337 = vmatmul.mubr.msk.bf16.gmra.mrb[172].mxu1 %vm202_vm3, %v7027_v51  ;;  %6437 = vmatmul.mubr.msk.bf16.gmra.mrb[172].mxu0 %vm202_vm3, %v7028_v53  ;;  %v7030_v51 = vld [vmem:[%s9434_s0 + $0x340] sm:$0xff]  }
 0x162   :  { %6340 = vmatprep.mubr.msk.bf16.mxu1 %vm7169_vm2, %v9440_v12  ;;  %6440 = vmatprep.mubr.msk.bf16.mxu0 %vm7169_vm2, %v9440_v12 }
 0x164   :  { %v839_v54 = vpop.f32.mrb[68].mxu1  ;;  %v1360_v4 = vpop.f32.mrb[68].mxu0 }
 0x165   :  { %v1007_v63 = vmax.f32 %v7654_v49, %v839_v54  ;;  %v7896_v35 = vmax.f32 %v1005_v61, %v1360_v4  ;;  %v6126_v45 = vpop.f32.mrb[69].mxu1  ;;  %v6226_v27 = vpop.f32.mrb[69].mxu0 }
 0x166   :  { %v842_v53 = vpop.f32.mrb[70].mxu1  ;;  %v1363_v44 = vpop.f32.mrb[70].mxu0  ;;  %v7031_v27 = vld [vmem:[%s9434_s0 + $0x28c] sm:$0xff]  }
 0x167   :  { %v1008_v0 = vmax.f32 %v7664_v55, %v842_v53  ;;  %v7905_v29 = vmax.f32 %v1006_v18, %v1363_v44  ;;  %v6227_v39 = vpop.f32.mrb[71].mxu0  ;;  %v6127_v49 = vpop.f32.mrb[71].mxu1 }
 0x169   :  { %6341 = vmatmul.mubr.msk.bf16.gmra.mrb[176].mxu1 %vm202_vm3, %v7029_v43  ;;  %6441 = vmatmul.mubr.msk.bf16.gmra.mrb[176].mxu0 %vm202_vm3, %v7030_v51  ;;  %v7032_v43 = vld [vmem:[%s9434_s0 + $0x348] sm:$0xff]  }
 0x16a   :  { %6344 = vmatprep.mubr.msk.bf16.mxu1 %vm7169_vm2, %v9440_v12  ;;  %6444 = vmatprep.mubr.msk.bf16.mxu0 %vm7169_vm2, %v9440_v12 }
 0x16c   :  { %v847_v61 = vpop.f32.mrb[72].mxu1  ;;  %v1368_v54 = vpop.f32.mrb[72].mxu0 }
 0x16d   :  { %v1009_v4 = vmax.f32 %v7674_v59, %v847_v61  ;;  %v7914_v45 = vmax.f32 %v1007_v63, %v1368_v54  ;;  %v6130_v55 = vpop.f32.mrb[73].mxu1  ;;  %v6230_v18 = vpop.f32.mrb[73].mxu0 }
 0x16e   :  { %v850_v51 = vpop.f32.mrb[74].mxu1  ;;  %v1371_v53 = vpop.f32.mrb[74].mxu0  ;;  %v7033_v18 = vld [vmem:[%s9434_s0 + $0x294] sm:$0xff]  }
 0x16f   :  { %v1010_v44 = vmax.f32 %v7684_v7, %v850_v51  ;;  %v7923_v39 = vmax.f32 %v1008_v0, %v1371_v53  ;;  %v6231_v49 = vpop.f32.mrb[75].mxu0  ;;  %v6131_v59 = vpop.f32.mrb[75].mxu1 }
 0x171   :  { %6345 = vmatmul.mubr.msk.bf16.gmra.mrb[180].mxu1 %vm202_vm3, %v7031_v27  ;;  %6445 = vmatmul.mubr.msk.bf16.gmra.mrb[180].mxu0 %vm202_vm3, %v7032_v43  ;;  %v7034_v27 = vld [vmem:[%s9434_s0 + $0x350] sm:$0xff]  }
 0x172   :  { %6348 = vmatprep.mubr.msk.bf16.mxu1 %vm7169_vm2, %v9440_v12  ;;  %6448 = vmatprep.mubr.msk.bf16.mxu0 %vm7169_vm2, %v9440_v12 }
 0x174   :  { %v855_v63 = vpop.f32.mrb[76].mxu1  ;;  %v1376_v61 = vpop.f32.mrb[76].mxu0 }
 0x175   :  { %v1011_v54 = vmax.f32 %v7694_v13, %v855_v63  ;;  %v7932_v55 = vmax.f32 %v1009_v4, %v1376_v61  ;;  %v6134_v7 = vpop.f32.mrb[77].mxu1  ;;  %v6234_v0 = vpop.f32.mrb[77].mxu0 }
 0x176   :  { %v858_v43 = vpop.f32.mrb[78].mxu1  ;;  %v1379_v51 = vpop.f32.mrb[78].mxu0  ;;  %v7035_v0 = vld [vmem:[%s9434_s0 + $0x29c] sm:$0xff]  }
 0x177   :  { %v1012_v53 = vmax.f32 %v7704_v23, %v858_v43  ;;  %v7941_v49 = vmax.f32 %v1010_v44, %v1379_v51  ;;  %v6235_v59 = vpop.f32.mrb[79].mxu0  ;;  %v6135_v13 = vpop.f32.mrb[79].mxu1 }
 0x179   :  { %6349 = vmatmul.mubr.msk.bf16.gmra.mrb[184].mxu1 %vm202_vm3, %v7033_v18  ;;  %6449 = vmatmul.mubr.msk.bf16.gmra.mrb[184].mxu0 %vm202_vm3, %v7034_v27  ;;  %v7036_v18 = vld [vmem:[%s9434_s0 + $0x358] sm:$0xff]  }
 0x17a   :  { %6352 = vmatprep.mubr.msk.bf16.mxu1 %vm7169_vm2, %v9440_v12  ;;  %6452 = vmatprep.mubr.msk.bf16.mxu0 %vm7169_vm2, %v9440_v12 }
 0x17c   :  { %v863_v4 = vpop.f32.mrb[80].mxu1  ;;  %v1384_v63 = vpop.f32.mrb[80].mxu0 }
 0x17d   :  { %v1013_v61 = vmax.f32 %v7714_v31, %v863_v4  ;;  %v7950_v7 = vmax.f32 %v1011_v54, %v1384_v63  ;;  %v6138_v23 = vpop.f32.mrb[81].mxu1  ;;  %v6238_v44 = vpop.f32.mrb[81].mxu0 }
 0x17e   :  { %v866_v27 = vpop.f32.mrb[82].mxu1  ;;  %v1387_v43 = vpop.f32.mrb[82].mxu0  ;;  %v7037_v44 = vld [vmem:[%s9434_s0 + $0x2a4] sm:$0xff]  }
 0x17f   :  { %v1014_v51 = vmax.f32 %v7724_v41, %v866_v27  ;;  %v7959_v59 = vmax.f32 %v1012_v53, %v1387_v43  ;;  %v6239_v13 = vpop.f32.mrb[83].mxu0  ;;  %v6139_v31 = vpop.f32.mrb[83].mxu1 }
 0x181   :  { %6353 = vmatmul.mubr.msk.bf16.gmra.mrb[188].mxu1 %vm202_vm3, %v7035_v0  ;;  %6453 = vmatmul.mubr.msk.bf16.gmra.mrb[188].mxu0 %vm202_vm3, %v7036_v18  ;;  %v7038_v0 = vld [vmem:[%s9434_s0 + $0x360] sm:$0xff]  }
 0x182   :  { %6356 = vmatprep.mubr.msk.bf16.mxu1 %vm7169_vm2, %v9440_v12  ;;  %6456 = vmatprep.mubr.msk.bf16.mxu0 %vm7169_vm2, %v9440_v12 }
 0x184   :  { %v871_v54 = vpop.f32.mrb[84].mxu1  ;;  %v1392_v4 = vpop.f32.mrb[84].mxu0 }
 0x185   :  { %v1015_v63 = vmax.f32 %v7734_v47, %v871_v54  ;;  %v7968_v23 = vmax.f32 %v1013_v61, %v1392_v4  ;;  %v6142_v41 = vpop.f32.mrb[85].mxu1  ;;  %v6242_v53 = vpop.f32.mrb[85].mxu0 }
 0x186   :  { %v874_v18 = vpop.f32.mrb[86].mxu1  ;;  %v1395_v27 = vpop.f32.mrb[86].mxu0  ;;  %v7039_v53 = vld [vmem:[%s9434_s0 + $0x2ac] sm:$0xff]  }
 0x187   :  { %v1016_v43 = vmax.f32 %v7744_v57, %v874_v18  ;;  %v7977_v13 = vmax.f32 %v1014_v51, %v1395_v27  ;;  %v6243_v31 = vpop.f32.mrb[87].mxu0  ;;  %v6143_v47 = vpop.f32.mrb[87].mxu1 }
 0x189   :  { %6357 = vmatmul.mubr.msk.bf16.gmra.mrb[192].mxu1 %vm202_vm3, %v7037_v44  ;;  %6457 = vmatmul.mubr.msk.bf16.gmra.mrb[192].mxu0 %vm202_vm3, %v7038_v0  ;;  %v7040_v44 = vld [vmem:[%s9434_s0 + $0x368] sm:$0xff]  }
 0x18a   :  { %6360 = vmatprep.mubr.msk.bf16.mxu1 %vm7169_vm2, %v9440_v12  ;;  %6460 = vmatprep.mubr.msk.bf16.mxu0 %vm7169_vm2, %v9440_v12 }
 0x18c   :  { %v879_v61 = vpop.f32.mrb[88].mxu1  ;;  %v1400_v54 = vpop.f32.mrb[88].mxu0 }
 0x18d   :  { %v1017_v4 = vmax.f32 %v7754_v2, %v879_v61  ;;  %v7986_v41 = vmax.f32 %v1015_v63, %v1400_v54  ;;  %v6146_v57 = vpop.f32.mrb[89].mxu1  ;;  %v6246_v51 = vpop.f32.mrb[89].mxu0 }
 0x18e   :  { %v882_v0 = vpop.f32.mrb[90].mxu1  ;;  %v1403_v18 = vpop.f32.mrb[90].mxu0  ;;  %v7041_v51 = vld [vmem:[%s9434_s0 + $0x2b4] sm:$0xff]  }
 0x18f   :  { %v1018_v27 = vmax.f32 %v7764_v21, %v882_v0  ;;  %v7995_v31 = vmax.f32 %v1016_v43, %v1403_v18  ;;  %v6247_v47 = vpop.f32.mrb[91].mxu0  ;;  %v6147_v2 = vpop.f32.mrb[91].mxu1 }
 0x191   :  { %6361 = vmatmul.mubr.msk.bf16.gmra.mrb[196].mxu1 %vm202_vm3, %v7039_v53  ;;  %6461 = vmatmul.mubr.msk.bf16.gmra.mrb[196].mxu0 %vm202_vm3, %v7040_v44  ;;  %v7042_v53 = vld [vmem:[%s9434_s0 + $0x370] sm:$0xff]  }
 0x192   :  { %6364 = vmatprep.mubr.msk.bf16.mxu1 %vm7169_vm2, %v9440_v12  ;;  %6464 = vmatprep.mubr.msk.bf16.mxu0 %vm7169_vm2, %v9440_v12 }
 0x194   :  { %v887_v63 = vpop.f32.mrb[92].mxu1  ;;  %v1408_v61 = vpop.f32.mrb[92].mxu0 }
 0x195   :  { %v1019_v54 = vmax.f32 %v7780_v34, %v887_v63  ;;  %v8004_v57 = vmax.f32 %v1017_v4, %v1408_v61  ;;  %v6150_v21 = vpop.f32.mrb[93].mxu1  ;;  %v6250_v43 = vpop.f32.mrb[93].mxu0 }
 0x196   :  { %v890_v44 = vpop.f32.mrb[94].mxu1  ;;  %v1411_v0 = vpop.f32.mrb[94].mxu0  ;;  %v7044_v43 = vld [vmem:[%s9434_s0 + $0x378] sm:$0xff]  }
 0x197   :  { %v1020_v18 = vmax.f32 %v7791_v52, %v890_v44  ;;  %v8013_v47 = vmax.f32 %v1018_v27, %v1411_v0  ;;  %v6251_v2 = vpop.f32.mrb[95].mxu0  ;;  %v6151_v34 = vpop.f32.mrb[95].mxu1  ;;  %v7043_v27 = vld [vmem:[%s9434_s0 + $0x2bc] sm:$0xff]  }
 0x199   :  { %9441 = vst [vmem:[#allocation3_spill] sm:$0xff] %v8013_v47  ;;  %6365 = vmatmul.mubr.msk.bf16.gmra.mrb[200].mxu1 %vm202_vm3, %v7041_v51  ;;  %6465 = vmatmul.mubr.msk.bf16.gmra.mrb[200].mxu0 %vm202_vm3, %v7042_v53 }
 0x19a   :  { %6368 = vmatprep.mubr.msk.bf16.mxu1 %vm7169_vm2, %v9440_v12  ;;  %6468 = vmatprep.mubr.msk.bf16.mxu0 %vm7169_vm2, %v9440_v12 }
 0x19c   :  { %v895_v4 = vpop.f32.mrb[96].mxu1  ;;  %v1416_v63 = vpop.f32.mrb[96].mxu0 }
 0x19d   :  { %v1021_v61 = vmax.f32 %v7803_v1, %v895_v4  ;;  %v6154_v21 = vpop.f32.mrb[97].mxu1  ;;  %v6254_v52 = vpop.f32.mrb[97].mxu0  ;;  %v8028_v51 = vmax.f32 %v1019_v54, %v1416_v63 }
 0x19e   :  { %v898_v53 = vpop.f32.mrb[98].mxu1  ;;  %v1419_v44 = vpop.f32.mrb[98].mxu0  ;;  %v7046_v21 = vld [vmem:[%s9434_s0 + $0x380] sm:$0xff]  }
 0x19f   :  { %v1022_v0 = vmax.f32 %v7812_v38, %v898_v53  ;;  %v6255_v2 = vpop.f32.mrb[99].mxu0  ;;  %v6155_v34 = vpop.f32.mrb[99].mxu1  ;;  %v8031_v47 = vmax.f32 %v1020_v18, %v1419_v44  ;;  %v7045_v18 = vld [vmem:[%s9434_s0 + $0x2c4] sm:$0xff]  }
 0x1a1   :  { %6369 = vmatmul.mubr.msk.bf16.gmra.mrb[204].mxu1 %vm202_vm3, %v7043_v27  ;;  %6469 = vmatmul.mubr.msk.bf16.gmra.mrb[204].mxu0 %vm202_vm3, %v7044_v43 }
 0x1a2   :  { %6372 = vmatprep.mubr.msk.bf16.mxu1 %vm7169_vm2, %v9440_v12  ;;  %6472 = vmatprep.mubr.msk.bf16.mxu0 %vm7169_vm2, %v9440_v12 }
 0x1a4   :  { %v903_v1 = vpop.f32.mrb[100].mxu1  ;;  %v1424_v54 = vpop.f32.mrb[100].mxu0 }
 0x1a5   :  { %v1023_v4 = vmax.f32 %v7556_v62, %v903_v1  ;;  %v6158_v63 = vpop.f32.mrb[101].mxu1  ;;  %v6258_v38 = vpop.f32.mrb[101].mxu0  ;;  %v8046_v52 = vmax.f32 %v1021_v61, %v1424_v54 }
 0x1a6   :  { %v906_v27 = vpop.f32.mrb[102].mxu1  ;;  %v1427_v43 = vpop.f32.mrb[102].mxu0  ;;  %v7048_v63 = vld [vmem:[%s9434_s0 + $0x388] sm:$0xff]  }
 0x1a7   :  { %v1024_v53 = vmax.f32 %v7566_v5, %v906_v27  ;;  %v6259_v44 = vpop.f32.mrb[103].mxu0  ;;  %v6159_v2 = vpop.f32.mrb[103].mxu1  ;;  %v8049_v34 = vmax.f32 %v1022_v0, %v1427_v43  ;;  %v7047_v0 = vld [vmem:[%s9434_s0 + $0x2cc] sm:$0xff]  }
 0x1a9   :  { %6373 = vmatmul.mubr.msk.bf16.gmra.mrb[208].mxu1 %vm202_vm3, %v7045_v18  ;;  %6473 = vmatmul.mubr.msk.bf16.gmra.mrb[208].mxu0 %vm202_vm3, %v7046_v21 }
 0x1aa   :  { %6376 = vmatprep.mubr.msk.bf16.mxu1 %vm7169_vm2, %v9440_v12  ;;  %6476 = vmatprep.mubr.msk.bf16.mxu0 %vm7169_vm2, %v9440_v12 }
 0x1ac   :  { %v911_v62 = vpop.f32.mrb[104].mxu1  ;;  %v1432_v61 = vpop.f32.mrb[104].mxu0 }
 0x1ad   :  { %v1025_v1 = vmax.f32 %v7576_v10, %v911_v62  ;;  %v6162_v54 = vpop.f32.mrb[105].mxu1  ;;  %v6262_v5 = vpop.f32.mrb[105].mxu0  ;;  %v8064_v38 = vmax.f32 %v1023_v4, %v1432_v61 }
 0x1ae   :  { %v914_v18 = vpop.f32.mrb[106].mxu1  ;;  %v1435_v21 = vpop.f32.mrb[106].mxu0  ;;  %v7050_v54 = vld [vmem:[%s9434_s0 + $0x390] sm:$0xff]  }
 0x1af   :  { %v1026_v27 = vmax.f32 %v7586_v16, %v914_v18  ;;  %v6263_v43 = vpop.f32.mrb[107].mxu0  ;;  %v6163_v44 = vpop.f32.mrb[107].mxu1  ;;  %v8067_v2 = vmax.f32 %v1024_v53, %v1435_v21  ;;  %v7049_v53 = vld [vmem:[%s9434_s0 + $0x2d4] sm:$0xff]  }
 0x1b1   :  { %6377 = vmatmul.mubr.msk.bf16.gmra.mrb[212].mxu1 %vm202_vm3, %v7047_v0  ;;  %6477 = vmatmul.mubr.msk.bf16.gmra.mrb[212].mxu0 %vm202_vm3, %v7048_v63 }
 0x1b2   :  { %6380 = vmatprep.mubr.msk.bf16.mxu1 %vm7169_vm2, %v9440_v12  ;;  %6480 = vmatprep.mubr.msk.bf16.mxu0 %vm7169_vm2, %v9440_v12 }
 0x1b4   :  { %v919_v10 = vpop.f32.mrb[108].mxu1  ;;  %v1440_v4 = vpop.f32.mrb[108].mxu0 }
 0x1b5   :  { %v1027_v62 = vmax.f32 %v7596_v20, %v919_v10  ;;  %v6166_v61 = vpop.f32.mrb[109].mxu1  ;;  %v6266_v16 = vpop.f32.mrb[109].mxu0  ;;  %v8082_v5 = vmax.f32 %v1025_v1, %v1440_v4 }
 0x1b6   :  { %v922_v0 = vpop.f32.mrb[110].mxu1  ;;  %v1443_v63 = vpop.f32.mrb[110].mxu0  ;;  %v7052_v61 = vld [vmem:[%s9434_s0 + $0x398] sm:$0xff]  }
 0x1b7   :  { %v1028_v18 = vmax.f32 %v7606_v26, %v922_v0  ;;  %v6267_v21 = vpop.f32.mrb[111].mxu0  ;;  %v6167_v43 = vpop.f32.mrb[111].mxu1  ;;  %v8085_v44 = vmax.f32 %v1026_v27, %v1443_v63  ;;  %v7051_v27 = vld [vmem:[%s9434_s0 + $0x2dc] sm:$0xff]  }
 0x1b9   :  { %6381 = vmatmul.mubr.msk.bf16.gmra.mrb[216].mxu1 %vm202_vm3, %v7049_v53  ;;  %6481 = vmatmul.mubr.msk.bf16.gmra.mrb[216].mxu0 %vm202_vm3, %v7050_v54 }
 0x1ba   :  { %6384 = vmatprep.mubr.msk.bf16.mxu1 %vm7169_vm2, %v9440_v12  ;;  %6484 = vmatprep.mubr.msk.bf16.mxu0 %vm7169_vm2, %v9440_v12 }
 0x1bc   :  { %v927_v20 = vpop.f32.mrb[112].mxu1  ;;  %v1448_v1 = vpop.f32.mrb[112].mxu0 }
 0x1bd   :  { %v1029_v10 = vmax.f32 %v7616_v30, %v927_v20  ;;  %v6170_v4 = vpop.f32.mrb[113].mxu1  ;;  %v6270_v26 = vpop.f32.mrb[113].mxu0  ;;  %v8100_v16 = vmax.f32 %v1027_v62, %v1448_v1 }
 0x1be   :  { %v930_v53 = vpop.f32.mrb[114].mxu1  ;;  %v1451_v54 = vpop.f32.mrb[114].mxu0  ;;  %v7054_v4 = vld [vmem:[%s9434_s0 + $0x3a0] sm:$0xff]  }
 0x1bf   :  { %v1030_v0 = vmax.f32 %v7626_v36, %v930_v53  ;;  %v6271_v63 = vpop.f32.mrb[115].mxu0  ;;  %v6171_v21 = vpop.f32.mrb[115].mxu1  ;;  %v8103_v43 = vmax.f32 %v1028_v18, %v1451_v54  ;;  %v7053_v18 = vld [vmem:[%s9434_s0 + $0x2e4] sm:$0xff]  }
 0x1c1   :  { %6385 = vmatmul.mubr.msk.bf16.gmra.mrb[220].mxu1 %vm202_vm3, %v7051_v27  ;;  %6485 = vmatmul.mubr.msk.bf16.gmra.mrb[220].mxu0 %vm202_vm3, %v7052_v61 }
 0x1c2   :  { %6388 = vmatprep.mubr.msk.bf16.mxu1 %vm7169_vm2, %v9440_v12  ;;  %6488 = vmatprep.mubr.msk.bf16.mxu0 %vm7169_vm2, %v9440_v12 }
 0x1c4   :  { %v935_v30 = vpop.f32.mrb[116].mxu1  ;;  %v1456_v62 = vpop.f32.mrb[116].mxu0 }
 0x1c5   :  { %v1031_v20 = vmax.f32 %v7636_v40, %v935_v30  ;;  %v6174_v1 = vpop.f32.mrb[117].mxu1  ;;  %v6274_v36 = vpop.f32.mrb[117].mxu0  ;;  %v8118_v26 = vmax.f32 %v1029_v10, %v1456_v62 }
 0x1c6   :  { %v938_v27 = vpop.f32.mrb[118].mxu1  ;;  %v1459_v61 = vpop.f32.mrb[118].mxu0  ;;  %v7056_v1 = vld [vmem:[%s9434_s0 + $0x3a8] sm:$0xff]  }
 0x1c7   :  { %v1032_v53 = vmax.f32 %v7646_v46, %v938_v27  ;;  %v6275_v54 = vpop.f32.mrb[119].mxu0  ;;  %v6175_v63 = vpop.f32.mrb[119].mxu1  ;;  %v8121_v21 = vmax.f32 %v1030_v0, %v1459_v61  ;;  %v7055_v0 = vld [vmem:[%s9434_s0 + $0x2ec] sm:$0xff]  }
 0x1c9   :  { %6389 = vmatmul.mubr.msk.bf16.gmra.mrb[224].mxu1 %vm202_vm3, %v7053_v18  ;;  %6489 = vmatmul.mubr.msk.bf16.gmra.mrb[224].mxu0 %vm202_vm3, %v7054_v4 }
 0x1ca   :  { %6392 = vmatprep.mubr.msk.bf16.mxu1 %vm7169_vm2, %v9440_v12  ;;  %6492 = vmatprep.mubr.msk.bf16.mxu0 %vm7169_vm2, %v9440_v12 }
 0x1cc   :  { %v943_v40 = vpop.f32.mrb[120].mxu1  ;;  %v1464_v10 = vpop.f32.mrb[120].mxu0 }
 0x1cd   :  { %v1033_v30 = vmax.f32 %v7656_v50, %v943_v40  ;;  %v6178_v62 = vpop.f32.mrb[121].mxu1  ;;  %v6278_v46 = vpop.f32.mrb[121].mxu0  ;;  %v8136_v36 = vmax.f32 %v1031_v20, %v1464_v10 }
 0x1ce   :  { %v946_v18 = vpop.f32.mrb[122].mxu1  ;;  %v1467_v4 = vpop.f32.mrb[122].mxu0  ;;  %v7058_v62 = vld [vmem:[%s9434_s0 + $0x3b0] sm:$0xff]  }
 0x1cf   :  { %v1034_v27 = vmax.f32 %v7666_v56, %v946_v18  ;;  %v6279_v61 = vpop.f32.mrb[123].mxu0  ;;  %v6179_v54 = vpop.f32.mrb[123].mxu1  ;;  %v8139_v63 = vmax.f32 %v1032_v53, %v1467_v4  ;;  %v7057_v53 = vld [vmem:[%s9434_s0 + $0x2f4] sm:$0xff]  }
 0x1d1   :  { %6393 = vmatmul.mubr.msk.bf16.gmra.mrb[228].mxu1 %vm202_vm3, %v7055_v0  ;;  %6493 = vmatmul.mubr.msk.bf16.gmra.mrb[228].mxu0 %vm202_vm3, %v7056_v1 }
 0x1d2   :  { %6396 = vmatprep.mubr.msk.bf16.mxu1 %vm7169_vm2, %v9440_v12  ;;  %6496 = vmatprep.mubr.msk.bf16.mxu0 %vm7169_vm2, %v9440_v12 }
 0x1d4   :  { %v951_v50 = vpop.f32.mrb[124].mxu1  ;;  %v1472_v20 = vpop.f32.mrb[124].mxu0 }
 0x1d5   :  { %v1035_v40 = vmax.f32 %v7676_v60, %v951_v50  ;;  %v6182_v10 = vpop.f32.mrb[125].mxu1  ;;  %v6282_v56 = vpop.f32.mrb[125].mxu0  ;;  %v8154_v46 = vmax.f32 %v1033_v30, %v1472_v20 }
 0x1d6   :  { %v954_v0 = vpop.f32.mrb[126].mxu1  ;;  %v1475_v1 = vpop.f32.mrb[126].mxu0  ;;  %v7060_v10 = vld [vmem:[%s9434_s0 + $0x3b8] sm:$0xff]  }
 0x1d7   :  { %v1036_v18 = vmax.f32 %v7686_v8, %v954_v0  ;;  %v6283_v4 = vpop.f32.mrb[127].mxu0  ;;  %v6183_v61 = vpop.f32.mrb[127].mxu1  ;;  %v8157_v54 = vmax.f32 %v1034_v27, %v1475_v1  ;;  %v7059_v27 = vld [vmem:[%s9434_s0 + $0x2fc] sm:$0xff]  }
 0x1d9   :  { %6397 = vmatmul.mubr.msk.bf16.gmra.mrb[232].mxu1 %vm202_vm3, %v7057_v53  ;;  %6497 = vmatmul.mubr.msk.bf16.gmra.mrb[232].mxu0 %vm202_vm3, %v7058_v62 }
 0x1da   :  { %6400 = vmatprep.mubr.msk.bf16.mxu1 %vm7169_vm2, %v9440_v12  ;;  %6500 = vmatprep.mubr.msk.bf16.mxu0 %vm7169_vm2, %v9440_v12 }
 0x1dc   :  { %v959_v60 = vpop.f32.mrb[128].mxu1  ;;  %v1480_v30 = vpop.f32.mrb[128].mxu0 }
 0x1dd   :  { %v1037_v50 = vmax.f32 %v7696_v14, %v959_v60  ;;  %v6186_v20 = vpop.f32.mrb[129].mxu1  ;;  %v6286_v8 = vpop.f32.mrb[129].mxu0  ;;  %v8172_v56 = vmax.f32 %v1035_v40, %v1480_v30 }
 0x1de   :  { %v962_v53 = vpop.f32.mrb[130].mxu1  ;;  %v1483_v62 = vpop.f32.mrb[130].mxu0  ;;  %v7062_v20 = vld [vmem:[%s9434_s0 + $0x3c0] sm:$0xff]  }
 0x1df   :  { %v1038_v0 = vmax.f32 %v7706_v24, %v962_v53  ;;  %v6287_v1 = vpop.f32.mrb[131].mxu0  ;;  %v6187_v4 = vpop.f32.mrb[131].mxu1  ;;  %v8175_v61 = vmax.f32 %v1036_v18, %v1483_v62  ;;  %v7061_v18 = vld [vmem:[%s9434_s0 + $0x304] sm:$0xff]  }
 0x1e1   :  { %6401 = vmatmul.mubr.msk.bf16.gmra.mrb[236].mxu1 %vm202_vm3, %v7059_v27  ;;  %6501 = vmatmul.mubr.msk.bf16.gmra.mrb[236].mxu0 %vm202_vm3, %v7060_v10 }
 0x1e2   :  { %6404 = vmatprep.mubr.msk.bf16.mxu1 %vm7169_vm2, %v9440_v12  ;;  %6504 = vmatprep.mubr.msk.bf16.mxu0 %vm7169_vm2, %v9440_v12 }
 0x1e4   :  { %v967_v14 = vpop.f32.mrb[132].mxu1  ;;  %v1488_v40 = vpop.f32.mrb[132].mxu0 }
 0x1e5   :  { %v1039_v60 = vmax.f32 %v7716_v32, %v967_v14  ;;  %v6190_v30 = vpop.f32.mrb[133].mxu1  ;;  %v6290_v24 = vpop.f32.mrb[133].mxu0  ;;  %v8190_v8 = vmax.f32 %v1037_v50, %v1488_v40 }
 0x1e6   :  { %v970_v27 = vpop.f32.mrb[134].mxu1  ;;  %v1491_v10 = vpop.f32.mrb[134].mxu0  ;;  %v7064_v30 = vld [vmem:[%s9434_s0 + $0x3c8] sm:$0xff]  }
 0x1e7   :  { %v1040_v53 = vmax.f32 %v7726_v42, %v970_v27  ;;  %v6291_v62 = vpop.f32.mrb[135].mxu0  ;;  %v6191_v1 = vpop.f32.mrb[135].mxu1  ;;  %v8193_v4 = vmax.f32 %v1038_v0, %v1491_v10  ;;  %v7063_v0 = vld [vmem:[%s9434_s0 + $0x30c] ss:$0 sps:$4 sm:$0xff]  }
 0x1e9   :  { %6405 = vmatmul.mubr.msk.bf16.gmra.mrb[240].mxu1 %vm202_vm3, %v7061_v18  ;;  %6505 = vmatmul.mubr.msk.bf16.gmra.mrb[240].mxu0 %vm202_vm3, %v7062_v20 }
 0x1ea   :  { %6408 = vmatprep.mubr.msk.bf16.mxu1 %vm7169_vm2, %v9440_v12  ;;  %6508 = vmatprep.mubr.msk.bf16.mxu0 %vm7169_vm2, %v9440_v12 }
 0x1ec   :  { %v975_v32 = vpop.f32.mrb[136].mxu1  ;;  %v1496_v50 = vpop.f32.mrb[136].mxu0 }
 0x1ed   :  { %v1041_v14 = vmax.f32 %v7736_v48, %v975_v32  ;;  %v6194_v40 = vpop.f32.mrb[137].mxu1  ;;  %v6294_v42 = vpop.f32.mrb[137].mxu0  ;;  %v8208_v24 = vmax.f32 %v1039_v60, %v1496_v50 }
 0x1ee   :  { %v978_v18 = vpop.f32.mrb[138].mxu1  ;;  %v1499_v20 = vpop.f32.mrb[138].mxu0  ;;  %v7066_v40 = vld [vmem:[%s9434_s0 + $0x3d4] sm:$0xff]  }
 0x1ef   :  { %v1042_v27 = vmax.f32 %v7746_v58, %v978_v18  ;;  %v6295_v10 = vpop.f32.mrb[139].mxu0  ;;  %v6195_v62 = vpop.f32.mrb[139].mxu1  ;;  %v8211_v1 = vmax.f32 %v1040_v53, %v1499_v20  ;;  %v7065_v53 = vld [vmem:[%s9434_s0 + $0x3d0] ss:$0 sps:$4 sm:$0xff]  }
 0x1f1   :  { %6409 = vmatmul.mubr.msk.bf16.gmra.mrb[244].mxu1 %vm202_vm3, %v7063_v0  ;;  %6509 = vmatmul.mubr.msk.bf16.gmra.mrb[244].mxu0 %vm202_vm3, %v7064_v30 }
 0x1f2   :  { %6512 = vmatprep.mubr.msk.bf16.mxu0 %vm7169_vm2, %v9440_v12  ;;  %6520 = vmatprep.mubr.msk.bf16.mxu1 %vm7169_vm2, %v9440_v12 }
 0x1f4   :  { %v983_v48 = vpop.f32.mrb[140].mxu1  ;;  %v1504_v60 = vpop.f32.mrb[140].mxu0 }
 0x1f5   :  { %v1043_v32 = vmax.f32 %v7756_v3, %v983_v48  ;;  %v6198_v50 = vpop.f32.mrb[141].mxu1  ;;  %v6298_v58 = vpop.f32.mrb[141].mxu0  ;;  %v8226_v42 = vmax.f32 %v1041_v14, %v1504_v60  ;;  %v7067_v60 = vld [vmem:[%s9434_s0 + $0x3dc] sm:$0xff]  }
 0x1f6   :  { %v986_v0 = vpop.f32.mrb[142].mxu1  ;;  %v1507_v30 = vpop.f32.mrb[142].mxu0  ;;  %v7068_v50 = vld [vmem:[%s9434_s0 + $0x498] sm:$0xff]  }
 0x1f7   :  { %v1044_v18 = vmax.f32 %v7766_v22, %v986_v0  ;;  %v6299_v20 = vpop.f32.mrb[143].mxu0  ;;  %v6199_v10 = vpop.f32.mrb[143].mxu1  ;;  %v8229_v62 = vmax.f32 %v1042_v27, %v1507_v30 }
 0x1f9   :  { %6513 = vmatmul.mubr.msk.bf16.gmra.mrb[248].mxu0 %vm202_vm3, %v7065_v53  ;;  %6521 = vmatmul.mubr.msk.bf16.vlgmr.msra.gmra.mrb[248].mxu1 %vm202_vm3, %v7066_v40 }
 0x1fa   :  { %6524 = vmatprep.mubr.msk.bf16.mxu1 %vm7169_vm2, %v9440_v12  ;;  %6624 = vmatprep.mubr.msk.bf16.mxu0 %vm7169_vm2, %v9440_v12 }
 0x1fb   :  { %6725 = vmatpush3.bf16.msra.mxu1 %v7777_v33 }
 0x1fc   :  { %v991_v3 = vpop.f32.mrb[144].mxu1  ;;  %v1512_v14 = vpop.f32.mrb[144].mxu0  ;;  %6726 = vmatprep.subr.bf16.mxu1 %v9440_v12 }
 0x1fd   :  { %v1045_v22 = vmax.f32 %v7782_v37, %v991_v3  ;;  %v6302_v27 = vpop.f32.mrb[145].mxu0  ;;  %v6202_v48 = vpop.f32.mrb[145].mxu1  ;;  %v8246_v58 = vmax.f32 %v1043_v32, %v1512_v14  ;;  %v7069_v14 = vld [vmem:[%s9434_s0 + $0x3e4] sm:$0xff]  }
 0x1fe   :  { %v1515_v53 = vpop.f32.mrb[146].mxu0  ;;  %v994_v40 = vpop.f32.mrb[146].mxu1 }
 0x1ff   :  { %v6303_v0 = vpop.f32.mrb[147].mxu0  ;;  %v6203_v30 = vpop.f32.mrb[147].mxu1  ;;  %6727 = vmatpush3.bf16.msra.mxu1 %v7204_v6  ;;  %v8249_v20 = vmax.f32 %v1044_v18, %v1515_v53 }
 0x201   :  { %6525 = vmatmul.mubr.msk.bf16.gmra.mrb[252].mxu1 %vm202_vm3, %v7067_v60  ;;  %6625 = vmatmul.mubr.msk.bf16.vlgmr.msra.gmra.mrb[252].mxu0 %vm202_vm3, %v7068_v50  ;;  %v9442_v50 = vld [vmem:[#allocation2_spill] sm:$0xff] }
 0x202   :  { %6829 = vmatpush3.bf16.msra.mxu0 %v7777_v33  ;;  %6528 = vmatprep.mubr.msk.bf16.mxu1 %vm7169_vm2, %v9440_v12  ;;  %v7070_v33 = vld [vmem:[%s9434_s0 + $0x4a0] sm:$0xff]  }
 0x203   :  { %6628 = vmatprep.mubr.msk.bf16.mxu0 %vm7169_vm2, %v9440_v12  ;;  %6830 = vmatprep.subr.bf16.mxu0 %v9440_v12 }
 0x204   :  { %v1520_v37 = vpop.f32.mrb[148].mxu0  ;;  %v1857_v32 = vpop.f32.mrb[148].mxu1 }
 0x205   :  { %v2055_v10 = vmax.f32 %v7824_v11, %v1857_v32  ;;  %v6306_v18 = vpop.f32.mrb[149].mxu0  ;;  %v6314_v3 = vpop.f32.mrb[149].mxu1  ;;  %v8266_v27 = vmax.f32 %v1045_v22, %v1520_v37  ;;  %v7071_v32 = vld [vmem:[%s9434_s0 + $0x3ec] sm:$0xff]  }
 0x206   :  { %v1523_v48 = vpop.f32.mrb[150].mxu0  ;;  %v1860_v60 = vpop.f32.mrb[150].mxu1  ;;  %6831 = vmatpush3.bf16.msra.mxu0 %v7204_v6  ;;  %v7072_v18 = vld [vmem:[%s9434_s0 + $0x4a8] sm:$0xff]  }
 0x207   :  { %v2056_v53 = vmax.f32 %v9442_v50, %v1860_v60  ;;  %v6307_v40 = vpop.f32.mrb[151].mxu0  ;;  %v6315_v11 = vpop.f32.mrb[151].mxu1 }
 0x209   :  { %6529 = vmatmul.mubr.msk.bf16.gmra.mrb[0].mxu1 %vm202_vm3, %v7069_v14  ;;  %6629 = vmatmul.mubr.msk.bf16.gmra.mrb[0].mxu0 %vm202_vm3, %v7070_v33 }
 0x20a   :  { %6532 = vmatprep.mubr.msk.bf16.mxu1 %vm7169_vm2, %v9440_v12  ;;  %6632 = vmatprep.mubr.msk.bf16.mxu0 %vm7169_vm2, %v9440_v12 }
 0x20c   :  { %v1865_v22 = vpop.f32.mrb[152].mxu1  ;;  %v2386_v0 = vpop.f32.mrb[152].mxu0 }
 0x20d   :  { %v2057_v30 = vmax.f32 %v7842_v17, %v1865_v22  ;;  %v6318_v37 = vpop.f32.mrb[153].mxu1  ;;  %v6418_v6 = vpop.f32.mrb[153].mxu0  ;;  %v8283_v3 = vmax.f32 %v2055_v10, %v2386_v0  ;;  %v7074_v0 = vld [vmem:[%s9434_s0 + $0x4b0] sm:$0xff]  }
 0x20e   :  { %v1868_v14 = vpop.f32.mrb[154].mxu1  ;;  %v2389_v33 = vpop.f32.mrb[154].mxu0 }
 0x20f   :  { %v2058_v48 = vmax.f32 %v7851_v9, %v1868_v14  ;;  %v6419_v60 = vpop.f32.mrb[155].mxu0  ;;  %v6319_v50 = vpop.f32.mrb[155].mxu1  ;;  %v8286_v40 = vmax.f32 %v2056_v53, %v2389_v33  ;;  %v7073_v53 = vld [vmem:[%s9434_s0 + $0x3f4] sm:$0xff]  }
 0x211   :  { %6533 = vmatmul.mubr.msk.bf16.gmra.mrb[4].mxu1 %vm202_vm3, %v7071_v32  ;;  %6633 = vmatmul.mubr.msk.bf16.gmra.mrb[4].mxu0 %vm202_vm3, %v7072_v18 }
 0x212   :  { %6536 = vmatprep.mubr.msk.bf16.mxu1 %vm7169_vm2, %v9440_v12  ;;  %6636 = vmatprep.mubr.msk.bf16.mxu0 %vm7169_vm2, %v9440_v12 }
 0x214   :  { %v1873_v17 = vpop.f32.mrb[156].mxu1  ;;  %v2394_v10 = vpop.f32.mrb[156].mxu0 }
 0x215   :  { %v2059_v11 = vmax.f32 %v7860_v15, %v1873_v17  ;;  %v6322_v22 = vpop.f32.mrb[157].mxu1  ;;  %v6422_v9 = vpop.f32.mrb[157].mxu0  ;;  %v8301_v37 = vmax.f32 %v2057_v30, %v2394_v10  ;;  %v7076_v10 = vld [vmem:[%s9434_s0 + $0x4b8] sm:$0xff]  }
 0x216   :  { %v1876_v6 = vpop.f32.mrb[158].mxu1  ;;  %v2397_v32 = vpop.f32.mrb[158].mxu0 }
 0x217   :  { %v2060_v18 = vmax.f32 %v7869_v28, %v1876_v6  ;;  %v6423_v14 = vpop.f32.mrb[159].mxu0  ;;  %v6323_v33 = vpop.f32.mrb[159].mxu1  ;;  %v8304_v60 = vmax.f32 %v2058_v48, %v2397_v32  ;;  %v7075_v48 = vld [vmem:[%s9434_s0 + $0x3fc] sm:$0xff]  }
 0x219   :  { %6537 = vmatmul.mubr.msk.bf16.gmra.mrb[8].mxu1 %vm202_vm3, %v7073_v53  ;;  %6637 = vmatmul.mubr.msk.bf16.gmra.mrb[8].mxu0 %vm202_vm3, %v7074_v0 }
 0x21a   :  { %6540 = vmatprep.mubr.msk.bf16.mxu1 %vm7169_vm2, %v9440_v12  ;;  %6640 = vmatprep.mubr.msk.bf16.mxu0 %vm7169_vm2, %v9440_v12 }
 0x21c   :  { %v1881_v15 = vpop.f32.mrb[160].mxu1  ;;  %v2402_v30 = vpop.f32.mrb[160].mxu0 }
 0x21d   :  { %v2061_v50 = vmax.f32 %v7878_v25, %v1881_v15  ;;  %v6326_v17 = vpop.f32.mrb[161].mxu1  ;;  %v6426_v28 = vpop.f32.mrb[161].mxu0  ;;  %v8319_v22 = vmax.f32 %v2059_v11, %v2402_v30  ;;  %v7078_v30 = vld [vmem:[%s9434_s0 + $0x4c0] sm:$0xff]  }
 0x21e   :  { %v1884_v9 = vpop.f32.mrb[162].mxu1  ;;  %v2405_v53 = vpop.f32.mrb[162].mxu0 }
 0x21f   :  { %v2062_v0 = vmax.f32 %v7887_v19, %v1884_v9  ;;  %v6427_v6 = vpop.f32.mrb[163].mxu0  ;;  %v6327_v32 = vpop.f32.mrb[163].mxu1  ;;  %v8322_v14 = vmax.f32 %v2060_v18, %v2405_v53  ;;  %v7077_v18 = vld [vmem:[%s9434_s0 + $0x404] sm:$0xff]  }
 0x221   :  { %6541 = vmatmul.mubr.msk.bf16.gmra.mrb[12].mxu1 %vm202_vm3, %v7075_v48  ;;  %6641 = vmatmul.mubr.msk.bf16.gmra.mrb[12].mxu0 %vm202_vm3, %v7076_v10 }
 0x222   :  { %6544 = vmatprep.mubr.msk.bf16.mxu1 %vm7169_vm2, %v9440_v12  ;;  %6644 = vmatprep.mubr.msk.bf16.mxu0 %vm7169_vm2, %v9440_v12 }
 0x224   :  { %v1889_v25 = vpop.f32.mrb[164].mxu1  ;;  %v2410_v11 = vpop.f32.mrb[164].mxu0 }
 0x225   :  { %v2063_v33 = vmax.f32 %v7896_v35, %v1889_v25  ;;  %v6330_v15 = vpop.f32.mrb[165].mxu1  ;;  %v6430_v19 = vpop.f32.mrb[165].mxu0  ;;  %v8337_v17 = vmax.f32 %v2061_v50, %v2410_v11  ;;  %v7080_v11 = vld [vmem:[%s9434_s0 + $0x4c8] sm:$0xff]  }
 0x226   :  { %v1892_v28 = vpop.f32.mrb[166].mxu1  ;;  %v2413_v48 = vpop.f32.mrb[166].mxu0 }
 0x227   :  { %v2064_v10 = vmax.f32 %v7905_v29, %v1892_v28  ;;  %v6431_v9 = vpop.f32.mrb[167].mxu0  ;;  %v6331_v53 = vpop.f32.mrb[167].mxu1  ;;  %v8340_v6 = vmax.f32 %v2062_v0, %v2413_v48  ;;  %v7079_v0 = vld [vmem:[%s9434_s0 + $0x40c] sm:$0xff]  }
 0x229   :  { %6545 = vmatmul.mubr.msk.bf16.gmra.mrb[16].mxu1 %vm202_vm3, %v7077_v18  ;;  %6645 = vmatmul.mubr.msk.bf16.gmra.mrb[16].mxu0 %vm202_vm3, %v7078_v30 }
 0x22a   :  { %6548 = vmatprep.mubr.msk.bf16.mxu1 %vm7169_vm2, %v9440_v12  ;;  %6648 = vmatprep.mubr.msk.bf16.mxu0 %vm7169_vm2, %v9440_v12 }
 0x22c   :  { %v1897_v35 = vpop.f32.mrb[168].mxu1  ;;  %v2418_v50 = vpop.f32.mrb[168].mxu0 }
 0x22d   :  { %v2065_v32 = vmax.f32 %v7914_v45, %v1897_v35  ;;  %v6334_v25 = vpop.f32.mrb[169].mxu1  ;;  %v6434_v29 = vpop.f32.mrb[169].mxu0  ;;  %v8355_v15 = vmax.f32 %v2063_v33, %v2418_v50  ;;  %v7082_v50 = vld [vmem:[%s9434_s0 + $0x4d0] sm:$0xff]  }
 0x22e   :  { %v1900_v19 = vpop.f32.mrb[170].mxu1  ;;  %v2421_v18 = vpop.f32.mrb[170].mxu0 }
 0x22f   :  { %v2066_v30 = vmax.f32 %v7923_v39, %v1900_v19  ;;  %v6435_v28 = vpop.f32.mrb[171].mxu0  ;;  %v6335_v48 = vpop.f32.mrb[171].mxu1  ;;  %v8358_v9 = vmax.f32 %v2064_v10, %v2421_v18  ;;  %v7081_v10 = vld [vmem:[%s9434_s0 + $0x414] sm:$0xff]  }
 0x231   :  { %6549 = vmatmul.mubr.msk.bf16.gmra.mrb[20].mxu1 %vm202_vm3, %v7079_v0  ;;  %6649 = vmatmul.mubr.msk.bf16.gmra.mrb[20].mxu0 %vm202_vm3, %v7080_v11 }
 0x232   :  { %6552 = vmatprep.mubr.msk.bf16.mxu1 %vm7169_vm2, %v9440_v12  ;;  %6652 = vmatprep.mubr.msk.bf16.mxu0 %vm7169_vm2, %v9440_v12 }
 0x234   :  { %v1905_v45 = vpop.f32.mrb[172].mxu1  ;;  %v2426_v33 = vpop.f32.mrb[172].mxu0 }
 0x235   :  { %v2067_v53 = vmax.f32 %v7932_v55, %v1905_v45  ;;  %v6338_v35 = vpop.f32.mrb[173].mxu1  ;;  %v6438_v39 = vpop.f32.mrb[173].mxu0  ;;  %v8373_v25 = vmax.f32 %v2065_v32, %v2426_v33  ;;  %v7084_v33 = vld [vmem:[%s9434_s0 + $0x4d8] sm:$0xff]  }
 0x236   :  { %v1908_v29 = vpop.f32.mrb[174].mxu1  ;;  %v2429_v0 = vpop.f32.mrb[174].mxu0 }
 0x237   :  { %v2068_v11 = vmax.f32 %v7941_v49, %v1908_v29  ;;  %v6439_v19 = vpop.f32.mrb[175].mxu0  ;;  %v6339_v18 = vpop.f32.mrb[175].mxu1  ;;  %v8376_v28 = vmax.f32 %v2066_v30, %v2429_v0  ;;  %v7083_v30 = vld [vmem:[%s9434_s0 + $0x41c] sm:$0xff]  }
 0x239   :  { %6553 = vmatmul.mubr.msk.bf16.gmra.mrb[24].mxu1 %vm202_vm3, %v7081_v10  ;;  %6653 = vmatmul.mubr.msk.bf16.gmra.mrb[24].mxu0 %vm202_vm3, %v7082_v50 }
 0x23a   :  { %6556 = vmatprep.mubr.msk.bf16.mxu1 %vm7169_vm2, %v9440_v12  ;;  %6656 = vmatprep.mubr.msk.bf16.mxu0 %vm7169_vm2, %v9440_v12 }
 0x23c   :  { %v1913_v55 = vpop.f32.mrb[176].mxu1  ;;  %v2434_v32 = vpop.f32.mrb[176].mxu0 }
 0x23d   :  { %v2069_v48 = vmax.f32 %v7950_v7, %v1913_v55  ;;  %v6342_v45 = vpop.f32.mrb[177].mxu1  ;;  %v6442_v49 = vpop.f32.mrb[177].mxu0  ;;  %v8391_v35 = vmax.f32 %v2067_v53, %v2434_v32  ;;  %v7086_v32 = vld [vmem:[%s9434_s0 + $0x4e0] sm:$0xff]  }
 0x23e   :  { %v1916_v39 = vpop.f32.mrb[178].mxu1  ;;  %v2437_v10 = vpop.f32.mrb[178].mxu0 }
 0x23f   :  { %v2070_v50 = vmax.f32 %v7959_v59, %v1916_v39  ;;  %v6443_v29 = vpop.f32.mrb[179].mxu0  ;;  %v6343_v0 = vpop.f32.mrb[179].mxu1  ;;  %v8394_v19 = vmax.f32 %v2068_v11, %v2437_v10  ;;  %v7085_v11 = vld [vmem:[%s9434_s0 + $0x424] sm:$0xff]  }
 0x241   :  { %6557 = vmatmul.mubr.msk.bf16.gmra.mrb[28].mxu1 %vm202_vm3, %v7083_v30  ;;  %6657 = vmatmul.mubr.msk.bf16.gmra.mrb[28].mxu0 %vm202_vm3, %v7084_v33 }
 0x242   :  { %6560 = vmatprep.mubr.msk.bf16.mxu1 %vm7169_vm2, %v9440_v12  ;;  %6660 = vmatprep.mubr.msk.bf16.mxu0 %vm7169_vm2, %v9440_v12 }
 0x244   :  { %v1921_v7 = vpop.f32.mrb[180].mxu1  ;;  %v2442_v53 = vpop.f32.mrb[180].mxu0 }
 0x245   :  { %v2071_v18 = vmax.f32 %v7968_v23, %v1921_v7  ;;  %v6346_v55 = vpop.f32.mrb[181].mxu1  ;;  %v6446_v59 = vpop.f32.mrb[181].mxu0  ;;  %v8409_v45 = vmax.f32 %v2069_v48, %v2442_v53  ;;  %v7088_v53 = vld [vmem:[%s9434_s0 + $0x4e8] sm:$0xff]  }
 0x246   :  { %v1924_v49 = vpop.f32.mrb[182].mxu1  ;;  %v2445_v30 = vpop.f32.mrb[182].mxu0 }
 0x247   :  { %v2072_v33 = vmax.f32 %v7977_v13, %v1924_v49  ;;  %v6447_v39 = vpop.f32.mrb[183].mxu0  ;;  %v6347_v10 = vpop.f32.mrb[183].mxu1  ;;  %v8412_v29 = vmax.f32 %v2070_v50, %v2445_v30  ;;  %v7087_v50 = vld [vmem:[%s9434_s0 + $0x42c] sm:$0xff]  }
 0x249   :  { %6561 = vmatmul.mubr.msk.bf16.gmra.mrb[32].mxu1 %vm202_vm3, %v7085_v11  ;;  %6661 = vmatmul.mubr.msk.bf16.gmra.mrb[32].mxu0 %vm202_vm3, %v7086_v32 }
 0x24a   :  { %6564 = vmatprep.mubr.msk.bf16.mxu1 %vm7169_vm2, %v9440_v12  ;;  %6664 = vmatprep.mubr.msk.bf16.mxu0 %vm7169_vm2, %v9440_v12 }
 0x24c   :  { %v1929_v23 = vpop.f32.mrb[184].mxu1  ;;  %v2450_v48 = vpop.f32.mrb[184].mxu0 }
 0x24d   :  { %v2073_v0 = vmax.f32 %v7986_v41, %v1929_v23  ;;  %v6350_v7 = vpop.f32.mrb[185].mxu1  ;;  %v6450_v13 = vpop.f32.mrb[185].mxu0  ;;  %v8427_v55 = vmax.f32 %v2071_v18, %v2450_v48  ;;  %v7090_v48 = vld [vmem:[%s9434_s0 + $0x4f0] sm:$0xff]  }
 0x24e   :  { %v1932_v59 = vpop.f32.mrb[186].mxu1  ;;  %v2453_v11 = vpop.f32.mrb[186].mxu0 }
 0x24f   :  { %v2074_v32 = vmax.f32 %v7995_v31, %v1932_v59  ;;  %v6451_v49 = vpop.f32.mrb[187].mxu0  ;;  %v6351_v30 = vpop.f32.mrb[187].mxu1  ;;  %v8430_v39 = vmax.f32 %v2072_v33, %v2453_v11  ;;  %v7089_v33 = vld [vmem:[%s9434_s0 + $0x434] sm:$0xff]  }
 0x251   :  { %6565 = vmatmul.mubr.msk.bf16.gmra.mrb[36].mxu1 %vm202_vm3, %v7087_v50  ;;  %6665 = vmatmul.mubr.msk.bf16.gmra.mrb[36].mxu0 %vm202_vm3, %v7088_v53  ;;  %v9443_v53 = vld [vmem:[#allocation3_spill] sm:$0xff] }
 0x252   :  { %6568 = vmatprep.mubr.msk.bf16.mxu1 %vm7169_vm2, %v9440_v12  ;;  %6668 = vmatprep.mubr.msk.bf16.mxu0 %vm7169_vm2, %v9440_v12 }
 0x254   :  { %v1937_v41 = vpop.f32.mrb[188].mxu1  ;;  %v2458_v18 = vpop.f32.mrb[188].mxu0 }
 0x255   :  { %v2075_v10 = vmax.f32 %v8004_v57, %v1937_v41  ;;  %v6354_v23 = vpop.f32.mrb[189].mxu1  ;;  %v6454_v31 = vpop.f32.mrb[189].mxu0  ;;  %v8445_v7 = vmax.f32 %v2073_v0, %v2458_v18 }
 0x256   :  { %v1940_v13 = vpop.f32.mrb[190].mxu1  ;;  %v2461_v50 = vpop.f32.mrb[190].mxu0  ;;  %v7092_v31 = vld [vmem:[%s9434_s0 + $0x4f8] sm:$0xff]  }
 0x257   :  { %v2076_v59 = vmax.f32 %v9443_v53, %v1940_v13  ;;  %v6455_v11 = vpop.f32.mrb[191].mxu0  ;;  %v6355_v49 = vpop.f32.mrb[191].mxu1  ;;  %v8448_v30 = vmax.f32 %v2074_v32, %v2461_v50  ;;  %v7091_v32 = vld [vmem:[%s9434_s0 + $0x43c] sm:$0xff]  }
 0x259   :  { %6569 = vmatmul.mubr.msk.bf16.gmra.mrb[40].mxu1 %vm202_vm3, %v7089_v33  ;;  %6669 = vmatmul.mubr.msk.bf16.gmra.mrb[40].mxu0 %vm202_vm3, %v7090_v48 }
 0x25a   :  { %6572 = vmatprep.mubr.msk.bf16.mxu1 %vm7169_vm2, %v9440_v12  ;;  %6672 = vmatprep.mubr.msk.bf16.mxu0 %vm7169_vm2, %v9440_v12 }
 0x25c   :  { %v1945_v57 = vpop.f32.mrb[192].mxu1  ;;  %v2466_v0 = vpop.f32.mrb[192].mxu0 }
 0x25d   :  { %v2077_v41 = vmax.f32 %v8028_v51, %v1945_v57  ;;  %v6358_v18 = vpop.f32.mrb[193].mxu1  ;;  %v6458_v23 = vpop.f32.mrb[193].mxu0  ;;  %v8463_v33 = vmax.f32 %v2075_v10, %v2466_v0 }
 0x25e   :  { %v1948_v48 = vpop.f32.mrb[194].mxu1  ;;  %v2469_v13 = vpop.f32.mrb[194].mxu0  ;;  %v7094_v23 = vld [vmem:[%s9434_s0 + $0x500] sm:$0xff]  }
 0x25f   :  { %v2078_v50 = vmax.f32 %v8031_v47, %v1948_v48  ;;  %v6459_v53 = vpop.f32.mrb[195].mxu0  ;;  %v6359_v11 = vpop.f32.mrb[195].mxu1  ;;  %v8466_v49 = vmax.f32 %v2076_v59, %v2469_v13  ;;  %v7093_v59 = vld [vmem:[%s9434_s0 + $0x444] sm:$0xff]  }
 0x261   :  { %6573 = vmatmul.mubr.msk.bf16.gmra.mrb[44].mxu1 %vm202_vm3, %v7091_v32  ;;  %6673 = vmatmul.mubr.msk.bf16.gmra.mrb[44].mxu0 %vm202_vm3, %v7092_v31 }
 0x262   :  { %6576 = vmatprep.mubr.msk.bf16.mxu1 %vm7169_vm2, %v9440_v12  ;;  %6676 = vmatprep.mubr.msk.bf16.mxu0 %vm7169_vm2, %v9440_v12 }
 0x264   :  { %v1953_v51 = vpop.f32.mrb[196].mxu1  ;;  %v2474_v10 = vpop.f32.mrb[196].mxu0 }
 0x265   :  { %v2079_v57 = vmax.f32 %v8046_v52, %v1953_v51  ;;  %v8475_v0 = vmax.f32 %v2077_v41, %v2474_v10  ;;  %v6362_v47 = vpop.f32.mrb[197].mxu1  ;;  %v6462_v18 = vpop.f32.mrb[197].mxu0 }
 0x266   :  { %v1956_v32 = vpop.f32.mrb[198].mxu1  ;;  %v2477_v31 = vpop.f32.mrb[198].mxu0  ;;  %v7095_v47 = vld [vmem:[%s9434_s0 + $0x44c] sm:$0xff]  }
 0x267   :  { %v2080_v48 = vmax.f32 %v8049_v34, %v1956_v32  ;;  %v8484_v13 = vmax.f32 %v2078_v50, %v2477_v31  ;;  %v6463_v53 = vpop.f32.mrb[199].mxu0  ;;  %v6363_v52 = vpop.f32.mrb[199].mxu1  ;;  %v7096_v18 = vld [vmem:[%s9434_s0 + $0x508] sm:$0xff]  }
 0x269   :  { %6577 = vmatmul.mubr.msk.bf16.gmra.mrb[48].mxu1 %vm202_vm3, %v7093_v59  ;;  %6677 = vmatmul.mubr.msk.bf16.gmra.mrb[48].mxu0 %vm202_vm3, %v7094_v23 }
 0x26a   :  { %6580 = vmatprep.mubr.msk.bf16.mxu1 %vm7169_vm2, %v9440_v12  ;;  %6680 = vmatprep.mubr.msk.bf16.mxu0 %vm7169_vm2, %v9440_v12 }
 0x26c   :  { %v1961_v41 = vpop.f32.mrb[200].mxu1  ;;  %v2482_v11 = vpop.f32.mrb[200].mxu0 }
 0x26d   :  { %v2081_v51 = vmax.f32 %v8064_v38, %v1961_v41  ;;  %v8493_v10 = vmax.f32 %v2079_v57, %v2482_v11  ;;  %v6366_v34 = vpop.f32.mrb[201].mxu1  ;;  %v6466_v50 = vpop.f32.mrb[201].mxu0 }
 0x26e   :  { %v1964_v59 = vpop.f32.mrb[202].mxu1  ;;  %v2485_v23 = vpop.f32.mrb[202].mxu0  ;;  %v7097_v34 = vld [vmem:[%s9434_s0 + $0x454] sm:$0xff]  }
 0x26f   :  { %v2082_v32 = vmax.f32 %v8067_v2, %v1964_v59  ;;  %v8502_v31 = vmax.f32 %v2080_v48, %v2485_v23  ;;  %v6467_v53 = vpop.f32.mrb[203].mxu0  ;;  %v6367_v38 = vpop.f32.mrb[203].mxu1  ;;  %v7098_v50 = vld [vmem:[%s9434_s0 + $0x510] sm:$0xff]  }
 0x271   :  { %6581 = vmatmul.mubr.msk.bf16.gmra.mrb[52].mxu1 %vm202_vm3, %v7095_v47  ;;  %6681 = vmatmul.mubr.msk.bf16.gmra.mrb[52].mxu0 %vm202_vm3, %v7096_v18 }
 0x272   :  { %6584 = vmatprep.mubr.msk.bf16.mxu1 %vm7169_vm2, %v9440_v12  ;;  %6684 = vmatprep.mubr.msk.bf16.mxu0 %vm7169_vm2, %v9440_v12 }
 0x274   :  { %v1969_v57 = vpop.f32.mrb[204].mxu1  ;;  %v2490_v52 = vpop.f32.mrb[204].mxu0 }
 0x275   :  { %v2083_v41 = vmax.f32 %v8082_v5, %v1969_v57  ;;  %v8511_v11 = vmax.f32 %v2081_v51, %v2490_v52  ;;  %v6370_v2 = vpop.f32.mrb[205].mxu1  ;;  %v6470_v48 = vpop.f32.mrb[205].mxu0 }
 0x276   :  { %v1972_v47 = vpop.f32.mrb[206].mxu1  ;;  %v2493_v18 = vpop.f32.mrb[206].mxu0  ;;  %v7099_v2 = vld [vmem:[%s9434_s0 + $0x45c] sm:$0xff]  }
 0x277   :  { %v2084_v59 = vmax.f32 %v8085_v44, %v1972_v47  ;;  %v8520_v23 = vmax.f32 %v2082_v32, %v2493_v18  ;;  %v6471_v53 = vpop.f32.mrb[207].mxu0  ;;  %v6371_v5 = vpop.f32.mrb[207].mxu1  ;;  %v7100_v48 = vld [vmem:[%s9434_s0 + $0x518] sm:$0xff]  }
 0x279   :  { %6585 = vmatmul.mubr.msk.bf16.gmra.mrb[56].mxu1 %vm202_vm3, %v7097_v34  ;;  %6685 = vmatmul.mubr.msk.bf16.gmra.mrb[56].mxu0 %vm202_vm3, %v7098_v50 }
 0x27a   :  { %6588 = vmatprep.mubr.msk.bf16.mxu1 %vm7169_vm2, %v9440_v12  ;;  %6688 = vmatprep.mubr.msk.bf16.mxu0 %vm7169_vm2, %v9440_v12 }
 0x27c   :  { %v1977_v51 = vpop.f32.mrb[208].mxu1  ;;  %v2498_v38 = vpop.f32.mrb[208].mxu0 }
 0x27d   :  { %v2085_v57 = vmax.f32 %v8100_v16, %v1977_v51  ;;  %v8529_v52 = vmax.f32 %v2083_v41, %v2498_v38  ;;  %v6374_v44 = vpop.f32.mrb[209].mxu1  ;;  %v6474_v32 = vpop.f32.mrb[209].mxu0 }
 0x27e   :  { %v1980_v34 = vpop.f32.mrb[210].mxu1  ;;  %v2501_v50 = vpop.f32.mrb[210].mxu0  ;;  %v7101_v44 = vld [vmem:[%s9434_s0 + $0x464] sm:$0xff]  }
 0x27f   :  { %v2086_v47 = vmax.f32 %v8103_v43, %v1980_v34  ;;  %v8538_v18 = vmax.f32 %v2084_v59, %v2501_v50  ;;  %v6475_v53 = vpop.f32.mrb[211].mxu0  ;;  %v6375_v16 = vpop.f32.mrb[211].mxu1  ;;  %v7102_v32 = vld [vmem:[%s9434_s0 + $0x520] sm:$0xff]  }
 0x281   :  { %6589 = vmatmul.mubr.msk.bf16.gmra.mrb[60].mxu1 %vm202_vm3, %v7099_v2  ;;  %6689 = vmatmul.mubr.msk.bf16.gmra.mrb[60].mxu0 %vm202_vm3, %v7100_v48 }
 0x282   :  { %6592 = vmatprep.mubr.msk.bf16.mxu1 %vm7169_vm2, %v9440_v12  ;;  %6692 = vmatprep.mubr.msk.bf16.mxu0 %vm7169_vm2, %v9440_v12 }
 0x284   :  { %v1985_v41 = vpop.f32.mrb[212].mxu1  ;;  %v2506_v5 = vpop.f32.mrb[212].mxu0 }
 0x285   :  { %v2087_v51 = vmax.f32 %v8118_v26, %v1985_v41  ;;  %v8547_v38 = vmax.f32 %v2085_v57, %v2506_v5  ;;  %v6378_v43 = vpop.f32.mrb[213].mxu1  ;;  %v6478_v59 = vpop.f32.mrb[213].mxu0 }
 0x286   :  { %v1988_v2 = vpop.f32.mrb[214].mxu1  ;;  %v2509_v48 = vpop.f32.mrb[214].mxu0  ;;  %v7103_v43 = vld [vmem:[%s9434_s0 + $0x46c] sm:$0xff]  }
 0x287   :  { %v2088_v34 = vmax.f32 %v8121_v21, %v1988_v2  ;;  %v8556_v50 = vmax.f32 %v2086_v47, %v2509_v48  ;;  %v6479_v53 = vpop.f32.mrb[215].mxu0  ;;  %v6379_v26 = vpop.f32.mrb[215].mxu1  ;;  %v7104_v59 = vld [vmem:[%s9434_s0 + $0x528] sm:$0xff]  }
 0x289   :  { %6593 = vmatmul.mubr.msk.bf16.gmra.mrb[64].mxu1 %vm202_vm3, %v7101_v44  ;;  %6693 = vmatmul.mubr.msk.bf16.gmra.mrb[64].mxu0 %vm202_vm3, %v7102_v32 }
 0x28a   :  { %6596 = vmatprep.mubr.msk.bf16.mxu1 %vm7169_vm2, %v9440_v12  ;;  %6696 = vmatprep.mubr.msk.bf16.mxu0 %vm7169_vm2, %v9440_v12 }
 0x28c   :  { %v1993_v57 = vpop.f32.mrb[216].mxu1  ;;  %v2514_v16 = vpop.f32.mrb[216].mxu0 }
 0x28d   :  { %v2089_v41 = vmax.f32 %v8136_v36, %v1993_v57  ;;  %v8565_v5 = vmax.f32 %v2087_v51, %v2514_v16  ;;  %v6382_v21 = vpop.f32.mrb[217].mxu1  ;;  %v6482_v47 = vpop.f32.mrb[217].mxu0 }
 0x28e   :  { %v1996_v44 = vpop.f32.mrb[218].mxu1  ;;  %v2517_v32 = vpop.f32.mrb[218].mxu0  ;;  %v7105_v21 = vld [vmem:[%s9434_s0 + $0x474] sm:$0xff]  }
 0x28f   :  { %v2090_v2 = vmax.f32 %v8139_v63, %v1996_v44  ;;  %v8574_v48 = vmax.f32 %v2088_v34, %v2517_v32  ;;  %v6483_v53 = vpop.f32.mrb[219].mxu0  ;;  %v6383_v36 = vpop.f32.mrb[219].mxu1  ;;  %v7106_v47 = vld [vmem:[%s9434_s0 + $0x530] sm:$0xff]  }
 0x291   :  { %6597 = vmatmul.mubr.msk.bf16.gmra.mrb[68].mxu1 %vm202_vm3, %v7103_v43  ;;  %6697 = vmatmul.mubr.msk.bf16.gmra.mrb[68].mxu0 %vm202_vm3, %v7104_v59 }
 0x292   :  { %6600 = vmatprep.mubr.msk.bf16.mxu1 %vm7169_vm2, %v9440_v12  ;;  %6700 = vmatprep.mubr.msk.bf16.mxu0 %vm7169_vm2, %v9440_v12 }
 0x294   :  { %v2001_v51 = vpop.f32.mrb[220].mxu1  ;;  %v2522_v26 = vpop.f32.mrb[220].mxu0 }
 0x295   :  { %v2091_v57 = vmax.f32 %v8154_v46, %v2001_v51  ;;  %v8583_v16 = vmax.f32 %v2089_v41, %v2522_v26  ;;  %v6386_v63 = vpop.f32.mrb[221].mxu1  ;;  %v6486_v34 = vpop.f32.mrb[221].mxu0 }
 0x296   :  { %v2004_v43 = vpop.f32.mrb[222].mxu1  ;;  %v2525_v59 = vpop.f32.mrb[222].mxu0  ;;  %v7107_v63 = vld [vmem:[%s9434_s0 + $0x47c] sm:$0xff]  }
 0x297   :  { %v2092_v44 = vmax.f32 %v8157_v54, %v2004_v43  ;;  %v8592_v32 = vmax.f32 %v2090_v2, %v2525_v59  ;;  %v6487_v53 = vpop.f32.mrb[223].mxu0  ;;  %v6387_v46 = vpop.f32.mrb[223].mxu1  ;;  %v7108_v34 = vld [vmem:[%s9434_s0 + $0x538] sm:$0xff]  }
 0x299   :  { %6601 = vmatmul.mubr.msk.bf16.gmra.mrb[72].mxu1 %vm202_vm3, %v7105_v21  ;;  %6701 = vmatmul.mubr.msk.bf16.gmra.mrb[72].mxu0 %vm202_vm3, %v7106_v47 }
 0x29a   :  { %6604 = vmatprep.mubr.msk.bf16.mxu1 %vm7169_vm2, %v9440_v12  ;;  %6704 = vmatprep.mubr.msk.bf16.mxu0 %vm7169_vm2, %v9440_v12 }
 0x29c   :  { %v2009_v41 = vpop.f32.mrb[224].mxu1  ;;  %v2530_v36 = vpop.f32.mrb[224].mxu0 }
 0x29d   :  { %v2093_v51 = vmax.f32 %v8172_v56, %v2009_v41  ;;  %v8601_v26 = vmax.f32 %v2091_v57, %v2530_v36  ;;  %v6390_v54 = vpop.f32.mrb[225].mxu1  ;;  %v6490_v2 = vpop.f32.mrb[225].mxu0 }
 0x29e   :  { %v2012_v21 = vpop.f32.mrb[226].mxu1  ;;  %v2533_v47 = vpop.f32.mrb[226].mxu0  ;;  %v7109_v54 = vld [vmem:[%s9434_s0 + $0x484] sm:$0xff]  }
 0x29f   :  { %v2094_v43 = vmax.f32 %v8175_v61, %v2012_v21  ;;  %v8610_v59 = vmax.f32 %v2092_v44, %v2533_v47  ;;  %v6491_v53 = vpop.f32.mrb[227].mxu0  ;;  %v6391_v56 = vpop.f32.mrb[227].mxu1  ;;  %v7110_v2 = vld [vmem:[%s9434_s0 + $0x540] sm:$0xff]  }
 0x2a1   :  { %6605 = vmatmul.mubr.msk.bf16.gmra.mrb[76].mxu1 %vm202_vm3, %v7107_v63  ;;  %6705 = vmatmul.mubr.msk.bf16.gmra.mrb[76].mxu0 %vm202_vm3, %v7108_v34 }
 0x2a2   :  { %6608 = vmatprep.mubr.msk.bf16.mxu1 %vm7169_vm2, %v9440_v12  ;;  %6708 = vmatprep.mubr.msk.bf16.mxu0 %vm7169_vm2, %v9440_v12 }
 0x2a4   :  { %v2017_v57 = vpop.f32.mrb[228].mxu1  ;;  %v2538_v46 = vpop.f32.mrb[228].mxu0 }
 0x2a5   :  { %v2095_v41 = vmax.f32 %v8190_v8, %v2017_v57  ;;  %v8619_v36 = vmax.f32 %v2093_v51, %v2538_v46  ;;  %v6394_v61 = vpop.f32.mrb[229].mxu1  ;;  %v6494_v44 = vpop.f32.mrb[229].mxu0 }
 0x2a6   :  { %v2020_v63 = vpop.f32.mrb[230].mxu1  ;;  %v2541_v34 = vpop.f32.mrb[230].mxu0  ;;  %v7111_v61 = vld [vmem:[%s9434_s0 + $0x48c] sm:$0xff]  }
 0x2a7   :  { %v2096_v21 = vmax.f32 %v8193_v4, %v2020_v63  ;;  %v8628_v47 = vmax.f32 %v2094_v43, %v2541_v34  ;;  %v6495_v53 = vpop.f32.mrb[231].mxu0  ;;  %v6395_v8 = vpop.f32.mrb[231].mxu1  ;;  %v7112_v44 = vld [vmem:[%s9434_s0 + $0x548] sm:$0xff]  }
 0x2a9   :  { %6609 = vmatmul.mubr.msk.bf16.gmra.mrb[80].mxu1 %vm202_vm3, %v7109_v54  ;;  %6709 = vmatmul.mubr.msk.bf16.gmra.mrb[80].mxu0 %vm202_vm3, %v7110_v2 }
 0x2aa   :  { %6612 = vmatprep.mubr.msk.bf16.mxu1 %vm7169_vm2, %v9440_v12  ;;  %6712 = vmatprep.mubr.msk.bf16.mxu0 %vm7169_vm2, %v9440_v12 }
 0x2ac   :  { %v2025_v51 = vpop.f32.mrb[232].mxu1  ;;  %v2546_v56 = vpop.f32.mrb[232].mxu0 }
 0x2ad   :  { %v2097_v57 = vmax.f32 %v8208_v24, %v2025_v51  ;;  %v8637_v46 = vmax.f32 %v2095_v41, %v2546_v56  ;;  %v6398_v4 = vpop.f32.mrb[233].mxu1  ;;  %v6498_v43 = vpop.f32.mrb[233].mxu0 }
 0x2ae   :  { %v2028_v54 = vpop.f32.mrb[234].mxu1  ;;  %v2549_v2 = vpop.f32.mrb[234].mxu0  ;;  %v7113_v4 = vld [vmem:[%s9434_s0 + $0x494] ss:$0 sps:$4 sm:$0xff]  }
 0x2af   :  { %v2098_v63 = vmax.f32 %v8211_v1, %v2028_v54  ;;  %v8646_v34 = vmax.f32 %v2096_v21, %v2549_v2  ;;  %v6499_v53 = vpop.f32.mrb[235].mxu0  ;;  %v6399_v24 = vpop.f32.mrb[235].mxu1  ;;  %v7114_v43 = vld [vmem:[%s9434_s0 + $0x550] sm:$0xff]  }
 0x2b1   :  { %6613 = vmatmul.mubr.msk.bf16.gmra.mrb[84].mxu1 %vm202_vm3, %v7111_v61  ;;  %6713 = vmatmul.mubr.msk.bf16.gmra.mrb[84].mxu0 %vm202_vm3, %v7112_v44 }
 0x2b2   :  { %6616 = vmatprep.mubr.msk.bf16.mxu1 %vm7169_vm2, %v9440_v12  ;;  %6716 = vmatprep.mubr.msk.bf16.mxu0 %vm7169_vm2, %v9440_v12 }
 0x2b4   :  { %v2033_v41 = vpop.f32.mrb[236].mxu1  ;;  %v2554_v8 = vpop.f32.mrb[236].mxu0 }
 0x2b5   :  { %v2099_v51 = vmax.f32 %v8226_v42, %v2033_v41  ;;  %v8655_v56 = vmax.f32 %v2097_v57, %v2554_v8  ;;  %v6402_v1 = vpop.f32.mrb[237].mxu1  ;;  %v6502_v21 = vpop.f32.mrb[237].mxu0 }
 0x2b6   :  { %v2036_v61 = vpop.f32.mrb[238].mxu1  ;;  %v2557_v44 = vpop.f32.mrb[238].mxu0  ;;  %v7115_v1 = vld [vmem:[%s9434_s0 + $0x558] ss:$0 sps:$4 sm:$0xff]   ;;  %v7116_v21 = vld [vmem:[%s9434_s0 + $0x55c] sm:$0xff]  }
 0x2b7   :  { %v2100_v54 = vmax.f32 %v8229_v62, %v2036_v61  ;;  %v8664_v2 = vmax.f32 %v2098_v63, %v2557_v44  ;;  %v6503_v53 = vpop.f32.mrb[239].mxu0  ;;  %v6403_v42 = vpop.f32.mrb[239].mxu1 }
 0x2b9   :  { %6617 = vmatmul.mubr.msk.bf16.gmra.mrb[88].mxu1 %vm202_vm3, %v7113_v4  ;;  %6717 = vmatmul.mubr.msk.bf16.gmra.mrb[88].mxu0 %vm202_vm3, %v7114_v43 }
 0x2ba   :  { %6720 = vmatprep.mubr.msk.bf16.mxu0 %vm7169_vm2, %v9440_v12  ;;  %6728 = vmatprep.mubr.msk.bf16.mxu1 %vm7169_vm2, %v9440_v12 }
 0x2bc   :  { %v2041_v57 = vpop.f32.mrb[240].mxu1  ;;  %v2562_v24 = vpop.f32.mrb[240].mxu0 }
 0x2bd   :  { %v2101_v41 = vmax.f32 %v8246_v58, %v2041_v57  ;;  %v8673_v8 = vmax.f32 %v2099_v51, %v2562_v24  ;;  %v6406_v62 = vpop.f32.mrb[241].mxu1  ;;  %v6506_v63 = vpop.f32.mrb[241].mxu0 }
 0x2be   :  { %v2044_v4 = vpop.f32.mrb[242].mxu1  ;;  %v2565_v43 = vpop.f32.mrb[242].mxu0  ;;  %v7117_v62 = vld [vmem:[%s9434_s0 + $0x564] sm:$0xff]  }
 0x2bf   :  { %v2102_v61 = vmax.f32 %v8249_v20, %v2044_v4  ;;  %v8682_v44 = vmax.f32 %v2100_v54, %v2565_v43  ;;  %v6507_v53 = vpop.f32.mrb[243].mxu0  ;;  %v6407_v58 = vpop.f32.mrb[243].mxu1  ;;  %v7118_v63 = vld [vmem:[%s9434_s0 + $0x620] sm:$0xff]  }
 0x2c1   :  { %6721 = vmatmul.mubr.msk.bf16.gmra.mrb[92].mxu0 %vm202_vm3, %v7115_v1  ;;  %6729 = vmatmul.mubr.msk.bf16.vlgmr.msra.gmra.mrb[92].mxu1 %vm202_vm3, %v7116_v21 }
 0x2c2   :  { %6732 = vmatprep.mubr.msk.bf16.mxu1 %vm7169_vm2, %v9440_v12  ;;  %6832 = vmatprep.mubr.msk.bf16.mxu0 %vm7169_vm2, %v9440_v12 }
 0x2c4   :  { %v2049_v51 = vpop.f32.mrb[244].mxu1  ;;  %v2570_v42 = vpop.f32.mrb[244].mxu0 }
 0x2c5   :  { %v2103_v57 = vmax.f32 %v8266_v27, %v2049_v51  ;;  %v8691_v24 = vmax.f32 %v2101_v41, %v2570_v42  ;;  %v6510_v20 = vpop.f32.mrb[245].mxu0  ;;  %v6410_v54 = vpop.f32.mrb[245].mxu1 }
 0x2c6   :  { %v2573_v1 = vpop.f32.mrb[246].mxu0  ;;  %v2052_v21 = vpop.f32.mrb[246].mxu1  ;;  %v7119_v20 = vld [vmem:[%s9434_s0 + $0x56c] sm:$0xff]  }
 0x2c7   :  { %v8699_v4 = vmax.f32 %v2102_v61, %v2573_v1  ;;  %v6511_v43 = vpop.f32.mrb[247].mxu0  ;;  %v6411_v53 = vpop.f32.mrb[247].mxu1  ;;  %v7120_v54 = vld [vmem:[%s9434_s0 + $0x628] sm:$0xff]  }
 0x2c9   :  { %6733 = vmatmul.mubr.msk.bf16.gmra.mrb[96].mxu1 %vm202_vm3, %v7117_v62  ;;  %6833 = vmatmul.mubr.msk.bf16.vlgmr.msra.gmra.mrb[96].mxu0 %vm202_vm3, %v7118_v63 }
 0x2ca   :  { %6736 = vmatprep.mubr.msk.bf16.mxu1 %vm7169_vm2, %v9440_v12  ;;  %6836 = vmatprep.mubr.msk.bf16.mxu0 %vm7169_vm2, %v9440_v12 }
 0x2cc   :  { %v2578_v27 = vpop.f32.mrb[248].mxu0  ;;  %v2915_v41 = vpop.f32.mrb[248].mxu1 }
 0x2cd   :  { %v8707_v58 = vmax.f32 %v2103_v57, %v2578_v27  ;;  %v3113_v51 = vmax.f32 %v8283_v3, %v2915_v41  ;;  %v6514_v61 = vpop.f32.mrb[249].mxu0  ;;  %v6522_v42 = vpop.f32.mrb[249].mxu1 }
 0x2ce   :  { %v2581_v62 = vpop.f32.mrb[250].mxu0  ;;  %v2918_v63 = vpop.f32.mrb[250].mxu1  ;;  %v7121_v61 = vld [vmem:[%s9434_s0 + $0x574] sm:$0xff]  }
 0x2cf   :  { %v3114_v1 = vmax.f32 %v8286_v40, %v2918_v63  ;;  %v6515_v21 = vpop.f32.mrb[251].mxu0  ;;  %v6523_v43 = vpop.f32.mrb[251].mxu1  ;;  %v7122_v42 = vld [vmem:[%s9434_s0 + $0x630] sm:$0xff]  }
 0x2d1   :  { %6737 = vmatmul.mubr.msk.bf16.gmra.mrb[100].mxu1 %vm202_vm3, %v7119_v20  ;;  %6837 = vmatmul.mubr.msk.bf16.gmra.mrb[100].mxu0 %vm202_vm3, %v7120_v54 }
 0x2d2   :  { %6740 = vmatprep.mubr.msk.bf16.mxu1 %vm7169_vm2, %v9440_v12  ;;  %6840 = vmatprep.mubr.msk.bf16.mxu0 %vm7169_vm2, %v9440_v12 }
 0x2d4   :  { %v2923_v3 = vpop.f32.mrb[252].mxu1  ;;  %v3444_v57 = vpop.f32.mrb[252].mxu0 }
 0x2d5   :  { %v3115_v53 = vmax.f32 %v8301_v37, %v2923_v3  ;;  %v8724_v27 = vmax.f32 %v3113_v51, %v3444_v57  ;;  %v6526_v41 = vpop.f32.mrb[253].mxu1  ;;  %v6626_v40 = vpop.f32.mrb[253].mxu0 }
 0x2d6   :  { %v2926_v20 = vpop.f32.mrb[254].mxu1  ;;  %v3447_v54 = vpop.f32.mrb[254].mxu0  ;;  %v7123_v41 = vld [vmem:[%s9434_s0 + $0x57c] sm:$0xff]  }
 0x2d7   :  { %v3116_v62 = vmax.f32 %v8304_v60, %v2926_v20  ;;  %v8733_v63 = vmax.f32 %v3114_v1, %v3447_v54  ;;  %v6627_v21 = vpop.f32.mrb[255].mxu0  ;;  %v6527_v37 = vpop.f32.mrb[255].mxu1  ;;  %v7124_v40 = vld [vmem:[%s9434_s0 + $0x638] sm:$0xff]  }
 0x2d9   :  { %6741 = vmatmul.mubr.msk.bf16.gmra.mrb[104].mxu1 %vm202_vm3, %v7121_v61  ;;  %6841 = vmatmul.mubr.msk.bf16.gmra.mrb[104].mxu0 %vm202_vm3, %v7122_v42 }
 0x2da   :  { %6744 = vmatprep.mubr.msk.bf16.mxu1 %vm7169_vm2, %v9440_v12  ;;  %6844 = vmatprep.mubr.msk.bf16.mxu0 %vm7169_vm2, %v9440_v12 }
 0x2dc   :  { %v2931_v51 = vpop.f32.mrb[0].mxu1  ;;  %v3452_v43 = vpop.f32.mrb[0].mxu0 }
 0x2dd   :  { %v3117_v3 = vmax.f32 %v8319_v22, %v2931_v51  ;;  %v8742_v57 = vmax.f32 %v3115_v53, %v3452_v43  ;;  %v6530_v60 = vpop.f32.mrb[1].mxu1  ;;  %v6630_v1 = vpop.f32.mrb[1].mxu0 }
 0x2de   :  { %v2934_v61 = vpop.f32.mrb[2].mxu1  ;;  %v3455_v42 = vpop.f32.mrb[2].mxu0  ;;  %v7125_v60 = vld [vmem:[%s9434_s0 + $0x584] sm:$0xff]  }
 0x2df   :  { %v3118_v20 = vmax.f32 %v8322_v14, %v2934_v61  ;;  %v8751_v54 = vmax.f32 %v3116_v62, %v3455_v42  ;;  %v6631_v21 = vpop.f32.mrb[3].mxu0  ;;  %v6531_v22 = vpop.f32.mrb[3].mxu1  ;;  %v7126_v1 = vld [vmem:[%s9434_s0 + $0x640] sm:$0xff]  }
 0x2e1   :  { %6745 = vmatmul.mubr.msk.bf16.gmra.mrb[108].mxu1 %vm202_vm3, %v7123_v41  ;;  %6845 = vmatmul.mubr.msk.bf16.gmra.mrb[108].mxu0 %vm202_vm3, %v7124_v40 }
 0x2e2   :  { %6748 = vmatprep.mubr.msk.bf16.mxu1 %vm7169_vm2, %v9440_v12  ;;  %6848 = vmatprep.mubr.msk.bf16.mxu0 %vm7169_vm2, %v9440_v12 }
 0x2e4   :  { %v2939_v53 = vpop.f32.mrb[4].mxu1  ;;  %v3460_v37 = vpop.f32.mrb[4].mxu0 }
 0x2e5   :  { %v3119_v51 = vmax.f32 %v8337_v17, %v2939_v53  ;;  %v8760_v43 = vmax.f32 %v3117_v3, %v3460_v37  ;;  %v6534_v14 = vpop.f32.mrb[5].mxu1  ;;  %v6634_v62 = vpop.f32.mrb[5].mxu0 }
 0x2e6   :  { %v2942_v41 = vpop.f32.mrb[6].mxu1  ;;  %v3463_v40 = vpop.f32.mrb[6].mxu0  ;;  %v7127_v14 = vld [vmem:[%s9434_s0 + $0x58c] sm:$0xff]  }
 0x2e7   :  { %v3120_v61 = vmax.f32 %v8340_v6, %v2942_v41  ;;  %v8769_v42 = vmax.f32 %v3118_v20, %v3463_v40  ;;  %v6635_v21 = vpop.f32.mrb[7].mxu0  ;;  %v6535_v17 = vpop.f32.mrb[7].mxu1  ;;  %v7128_v62 = vld [vmem:[%s9434_s0 + $0x648] sm:$0xff]  }
 0x2e9   :  { %6749 = vmatmul.mubr.msk.bf16.gmra.mrb[112].mxu1 %vm202_vm3, %v7125_v60  ;;  %6849 = vmatmul.mubr.msk.bf16.gmra.mrb[112].mxu0 %vm202_vm3, %v7126_v1 }
 0x2ea   :  { %6752 = vmatprep.mubr.msk.bf16.mxu1 %vm7169_vm2, %v9440_v12  ;;  %6852 = vmatprep.mubr.msk.bf16.mxu0 %vm7169_vm2, %v9440_v12 }
 0x2ec   :  { %v2947_v3 = vpop.f32.mrb[8].mxu1  ;;  %v3468_v22 = vpop.f32.mrb[8].mxu0 }
 0x2ed   :  { %v3121_v53 = vmax.f32 %v8355_v15, %v2947_v3  ;;  %v8778_v37 = vmax.f32 %v3119_v51, %v3468_v22  ;;  %v6538_v6 = vpop.f32.mrb[9].mxu1  ;;  %v6638_v20 = vpop.f32.mrb[9].mxu0 }
 0x2ee   :  { %v2950_v60 = vpop.f32.mrb[10].mxu1  ;;  %v3471_v1 = vpop.f32.mrb[10].mxu0  ;;  %v7129_v6 = vld [vmem:[%s9434_s0 + $0x594] sm:$0xff]  }
 0x2ef   :  { %v3122_v41 = vmax.f32 %v8358_v9, %v2950_v60  ;;  %v8787_v40 = vmax.f32 %v3120_v61, %v3471_v1  ;;  %v6639_v21 = vpop.f32.mrb[11].mxu0  ;;  %v6539_v15 = vpop.f32.mrb[11].mxu1  ;;  %v7130_v20 = vld [vmem:[%s9434_s0 + $0x650] sm:$0xff]  }
 0x2f1   :  { %6753 = vmatmul.mubr.msk.bf16.gmra.mrb[116].mxu1 %vm202_vm3, %v7127_v14  ;;  %6853 = vmatmul.mubr.msk.bf16.gmra.mrb[116].mxu0 %vm202_vm3, %v7128_v62 }
 0x2f2   :  { %6756 = vmatprep.mubr.msk.bf16.mxu1 %vm7169_vm2, %v9440_v12  ;;  %6856 = vmatprep.mubr.msk.bf16.mxu0 %vm7169_vm2, %v9440_v12 }
 0x2f4   :  { %v2955_v51 = vpop.f32.mrb[12].mxu1  ;;  %v3476_v17 = vpop.f32.mrb[12].mxu0 }
 0x2f5   :  { %v3123_v3 = vmax.f32 %v8373_v25, %v2955_v51  ;;  %v8796_v22 = vmax.f32 %v3121_v53, %v3476_v17  ;;  %v6542_v9 = vpop.f32.mrb[13].mxu1  ;;  %v6642_v61 = vpop.f32.mrb[13].mxu0 }
 0x2f6   :  { %v2958_v14 = vpop.f32.mrb[14].mxu1  ;;  %v3479_v62 = vpop.f32.mrb[14].mxu0  ;;  %v7131_v9 = vld [vmem:[%s9434_s0 + $0x59c] sm:$0xff]  }
 0x2f7   :  { %v3124_v60 = vmax.f32 %v8376_v28, %v2958_v14  ;;  %v8805_v1 = vmax.f32 %v3122_v41, %v3479_v62  ;;  %v6643_v21 = vpop.f32.mrb[15].mxu0  ;;  %v6543_v25 = vpop.f32.mrb[15].mxu1  ;;  %v7132_v61 = vld [vmem:[%s9434_s0 + $0x658] sm:$0xff]  }
 0x2f9   :  { %6757 = vmatmul.mubr.msk.bf16.gmra.mrb[120].mxu1 %vm202_vm3, %v7129_v6  ;;  %6857 = vmatmul.mubr.msk.bf16.gmra.mrb[120].mxu0 %vm202_vm3, %v7130_v20 }
 0x2fa   :  { %6760 = vmatprep.mubr.msk.bf16.mxu1 %vm7169_vm2, %v9440_v12  ;;  %6860 = vmatprep.mubr.msk.bf16.mxu0 %vm7169_vm2, %v9440_v12 }
 0x2fc   :  { %v2963_v53 = vpop.f32.mrb[16].mxu1  ;;  %v3484_v15 = vpop.f32.mrb[16].mxu0 }
 0x2fd   :  { %v3125_v51 = vmax.f32 %v8391_v35, %v2963_v53  ;;  %v8814_v17 = vmax.f32 %v3123_v3, %v3484_v15  ;;  %v6546_v28 = vpop.f32.mrb[17].mxu1  ;;  %v6646_v41 = vpop.f32.mrb[17].mxu0 }
 0x2fe   :  { %v2966_v6 = vpop.f32.mrb[18].mxu1  ;;  %v3487_v20 = vpop.f32.mrb[18].mxu0  ;;  %v7133_v28 = vld [vmem:[%s9434_s0 + $0x5a4] sm:$0xff]  }
 0x2ff   :  { %v3126_v14 = vmax.f32 %v8394_v19, %v2966_v6  ;;  %v8823_v62 = vmax.f32 %v3124_v60, %v3487_v20  ;;  %v6647_v21 = vpop.f32.mrb[19].mxu0  ;;  %v6547_v35 = vpop.f32.mrb[19].mxu1  ;;  %v7134_v41 = vld [vmem:[%s9434_s0 + $0x660] sm:$0xff]  }
 0x301   :  { %6761 = vmatmul.mubr.msk.bf16.gmra.mrb[124].mxu1 %vm202_vm3, %v7131_v9  ;;  %6861 = vmatmul.mubr.msk.bf16.gmra.mrb[124].mxu0 %vm202_vm3, %v7132_v61 }
 0x302   :  { %6764 = vmatprep.mubr.msk.bf16.mxu1 %vm7169_vm2, %v9440_v12  ;;  %6864 = vmatprep.mubr.msk.bf16.mxu0 %vm7169_vm2, %v9440_v12 }
 0x304   :  { %v2971_v3 = vpop.f32.mrb[20].mxu1  ;;  %v3492_v25 = vpop.f32.mrb[20].mxu0 }
 0x305   :  { %v3127_v53 = vmax.f32 %v8409_v45, %v2971_v3  ;;  %v8832_v15 = vmax.f32 %v3125_v51, %v3492_v25  ;;  %v6550_v19 = vpop.f32.mrb[21].mxu1  ;;  %v6650_v60 = vpop.f32.mrb[21].mxu0 }
 0x306   :  { %v2974_v9 = vpop.f32.mrb[22].mxu1  ;;  %v3495_v61 = vpop.f32.mrb[22].mxu0  ;;  %v7135_v19 = vld [vmem:[%s9434_s0 + $0x5ac] sm:$0xff]  }
 0x307   :  { %v3128_v6 = vmax.f32 %v8412_v29, %v2974_v9  ;;  %v8841_v20 = vmax.f32 %v3126_v14, %v3495_v61  ;;  %v6651_v21 = vpop.f32.mrb[23].mxu0  ;;  %v6551_v45 = vpop.f32.mrb[23].mxu1  ;;  %v7136_v60 = vld [vmem:[%s9434_s0 + $0x668] sm:$0xff]  }
 0x309   :  { %6765 = vmatmul.mubr.msk.bf16.gmra.mrb[128].mxu1 %vm202_vm3, %v7133_v28  ;;  %6865 = vmatmul.mubr.msk.bf16.gmra.mrb[128].mxu0 %vm202_vm3, %v7134_v41 }
 0x30a   :  { %6768 = vmatprep.mubr.msk.bf16.mxu1 %vm7169_vm2, %v9440_v12  ;;  %6868 = vmatprep.mubr.msk.bf16.mxu0 %vm7169_vm2, %v9440_v12 }
 0x30c   :  { %v2979_v51 = vpop.f32.mrb[24].mxu1  ;;  %v3500_v35 = vpop.f32.mrb[24].mxu0 }
 0x30d   :  { %v3129_v3 = vmax.f32 %v8427_v55, %v2979_v51  ;;  %v8850_v25 = vmax.f32 %v3127_v53, %v3500_v35  ;;  %v6554_v29 = vpop.f32.mrb[25].mxu1  ;;  %v6654_v14 = vpop.f32.mrb[25].mxu0 }
 0x30e   :  { %v2982_v28 = vpop.f32.mrb[26].mxu1  ;;  %v3503_v41 = vpop.f32.mrb[26].mxu0  ;;  %v7137_v29 = vld [vmem:[%s9434_s0 + $0x5b4] sm:$0xff]  }
 0x30f   :  { %v3130_v9 = vmax.f32 %v8430_v39, %v2982_v28  ;;  %v8859_v61 = vmax.f32 %v3128_v6, %v3503_v41  ;;  %v6655_v21 = vpop.f32.mrb[27].mxu0  ;;  %v6555_v55 = vpop.f32.mrb[27].mxu1  ;;  %v7138_v14 = vld [vmem:[%s9434_s0 + $0x670] sm:$0xff]  }
 0x311   :  { %6769 = vmatmul.mubr.msk.bf16.gmra.mrb[132].mxu1 %vm202_vm3, %v7135_v19  ;;  %6869 = vmatmul.mubr.msk.bf16.gmra.mrb[132].mxu0 %vm202_vm3, %v7136_v60 }
 0x312   :  { %6772 = vmatprep.mubr.msk.bf16.mxu1 %vm7169_vm2, %v9440_v12  ;;  %6872 = vmatprep.mubr.msk.bf16.mxu0 %vm7169_vm2, %v9440_v12 }
 0x314   :  { %v2987_v53 = vpop.f32.mrb[28].mxu1  ;;  %v3508_v45 = vpop.f32.mrb[28].mxu0 }
 0x315   :  { %v3131_v51 = vmax.f32 %v8445_v7, %v2987_v53  ;;  %v8868_v35 = vmax.f32 %v3129_v3, %v3508_v45  ;;  %v6558_v39 = vpop.f32.mrb[29].mxu1  ;;  %v6658_v6 = vpop.f32.mrb[29].mxu0 }
 0x316   :  { %v2990_v19 = vpop.f32.mrb[30].mxu1  ;;  %v3511_v60 = vpop.f32.mrb[30].mxu0  ;;  %v7139_v39 = vld [vmem:[%s9434_s0 + $0x5bc] sm:$0xff]  }
 0x317   :  { %v3132_v28 = vmax.f32 %v8448_v30, %v2990_v19  ;;  %v8877_v41 = vmax.f32 %v3130_v9, %v3511_v60  ;;  %v6659_v21 = vpop.f32.mrb[31].mxu0  ;;  %v6559_v7 = vpop.f32.mrb[31].mxu1  ;;  %v7140_v6 = vld [vmem:[%s9434_s0 + $0x678] sm:$0xff]  }
 0x319   :  { %6773 = vmatmul.mubr.msk.bf16.gmra.mrb[136].mxu1 %vm202_vm3, %v7137_v29  ;;  %6873 = vmatmul.mubr.msk.bf16.gmra.mrb[136].mxu0 %vm202_vm3, %v7138_v14 }
 0x31a   :  { %6776 = vmatprep.mubr.msk.bf16.mxu1 %vm7169_vm2, %v9440_v12  ;;  %6876 = vmatprep.mubr.msk.bf16.mxu0 %vm7169_vm2, %v9440_v12 }
 0x31c   :  { %v2995_v3 = vpop.f32.mrb[32].mxu1  ;;  %v3516_v55 = vpop.f32.mrb[32].mxu0 }
 0x31d   :  { %v3133_v53 = vmax.f32 %v8463_v33, %v2995_v3  ;;  %v8886_v45 = vmax.f32 %v3131_v51, %v3516_v55  ;;  %v6562_v30 = vpop.f32.mrb[33].mxu1  ;;  %v6662_v9 = vpop.f32.mrb[33].mxu0 }
 0x31e   :  { %v2998_v29 = vpop.f32.mrb[34].mxu1  ;;  %v3519_v14 = vpop.f32.mrb[34].mxu0  ;;  %v7141_v30 = vld [vmem:[%s9434_s0 + $0x5c4] sm:$0xff]  }
 0x31f   :  { %v3134_v19 = vmax.f32 %v8466_v49, %v2998_v29  ;;  %v8895_v60 = vmax.f32 %v3132_v28, %v3519_v14  ;;  %v6663_v21 = vpop.f32.mrb[35].mxu0  ;;  %v6563_v33 = vpop.f32.mrb[35].mxu1  ;;  %v7142_v9 = vld [vmem:[%s9434_s0 + $0x680] sm:$0xff]  }
 0x321   :  { %6777 = vmatmul.mubr.msk.bf16.gmra.mrb[140].mxu1 %vm202_vm3, %v7139_v39  ;;  %6877 = vmatmul.mubr.msk.bf16.gmra.mrb[140].mxu0 %vm202_vm3, %v7140_v6 }
 0x322   :  { %6780 = vmatprep.mubr.msk.bf16.mxu1 %vm7169_vm2, %v9440_v12  ;;  %6880 = vmatprep.mubr.msk.bf16.mxu0 %vm7169_vm2, %v9440_v12 }
 0x324   :  { %v3003_v51 = vpop.f32.mrb[36].mxu1  ;;  %v3524_v7 = vpop.f32.mrb[36].mxu0 }
 0x325   :  { %v3135_v3 = vmax.f32 %v8475_v0, %v3003_v51  ;;  %v8904_v55 = vmax.f32 %v3133_v53, %v3524_v7  ;;  %v6566_v49 = vpop.f32.mrb[37].mxu1  ;;  %v6666_v28 = vpop.f32.mrb[37].mxu0 }
 0x326   :  { %v3006_v39 = vpop.f32.mrb[38].mxu1  ;;  %v3527_v6 = vpop.f32.mrb[38].mxu0  ;;  %v7143_v49 = vld [vmem:[%s9434_s0 + $0x5cc] sm:$0xff]  }
 0x327   :  { %v3136_v29 = vmax.f32 %v8484_v13, %v3006_v39  ;;  %v8913_v14 = vmax.f32 %v3134_v19, %v3527_v6  ;;  %v6667_v21 = vpop.f32.mrb[39].mxu0  ;;  %v6567_v0 = vpop.f32.mrb[39].mxu1  ;;  %v7144_v28 = vld [vmem:[%s9434_s0 + $0x688] sm:$0xff]  }
 0x329   :  { %6781 = vmatmul.mubr.msk.bf16.gmra.mrb[144].mxu1 %vm202_vm3, %v7141_v30  ;;  %6881 = vmatmul.mubr.msk.bf16.gmra.mrb[144].mxu0 %vm202_vm3, %v7142_v9 }
 0x32a   :  { %6784 = vmatprep.mubr.msk.bf16.mxu1 %vm7169_vm2, %v9440_v12  ;;  %6884 = vmatprep.mubr.msk.bf16.mxu0 %vm7169_vm2, %v9440_v12 }
 0x32c   :  { %v3011_v53 = vpop.f32.mrb[40].mxu1  ;;  %v3532_v33 = vpop.f32.mrb[40].mxu0 }
 0x32d   :  { %v3137_v51 = vmax.f32 %v8493_v10, %v3011_v53  ;;  %v8922_v7 = vmax.f32 %v3135_v3, %v3532_v33  ;;  %v6570_v13 = vpop.f32.mrb[41].mxu1  ;;  %v6670_v19 = vpop.f32.mrb[41].mxu0 }
 0x32e   :  { %v3014_v30 = vpop.f32.mrb[42].mxu1  ;;  %v3535_v9 = vpop.f32.mrb[42].mxu0  ;;  %v7145_v13 = vld [vmem:[%s9434_s0 + $0x5d4] sm:$0xff]  }
 0x32f   :  { %v3138_v39 = vmax.f32 %v8502_v31, %v3014_v30  ;;  %v8931_v6 = vmax.f32 %v3136_v29, %v3535_v9  ;;  %v6671_v21 = vpop.f32.mrb[43].mxu0  ;;  %v6571_v10 = vpop.f32.mrb[43].mxu1  ;;  %v7146_v19 = vld [vmem:[%s9434_s0 + $0x690] sm:$0xff]  }
 0x331   :  { %6785 = vmatmul.mubr.msk.bf16.gmra.mrb[148].mxu1 %vm202_vm3, %v7143_v49  ;;  %6885 = vmatmul.mubr.msk.bf16.gmra.mrb[148].mxu0 %vm202_vm3, %v7144_v28 }
 0x332   :  { %6788 = vmatprep.mubr.msk.bf16.mxu1 %vm7169_vm2, %v9440_v12  ;;  %6888 = vmatprep.mubr.msk.bf16.mxu0 %vm7169_vm2, %v9440_v12 }
 0x334   :  { %v3019_v3 = vpop.f32.mrb[44].mxu1  ;;  %v3540_v0 = vpop.f32.mrb[44].mxu0 }
 0x335   :  { %v3139_v53 = vmax.f32 %v8511_v11, %v3019_v3  ;;  %v8940_v33 = vmax.f32 %v3137_v51, %v3540_v0  ;;  %v6574_v31 = vpop.f32.mrb[45].mxu1  ;;  %v6674_v29 = vpop.f32.mrb[45].mxu0 }
 0x336   :  { %v3022_v49 = vpop.f32.mrb[46].mxu1  ;;  %v3543_v28 = vpop.f32.mrb[46].mxu0  ;;  %v7147_v31 = vld [vmem:[%s9434_s0 + $0x5dc] sm:$0xff]  }
 0x337   :  { %v3140_v30 = vmax.f32 %v8520_v23, %v3022_v49  ;;  %v8949_v9 = vmax.f32 %v3138_v39, %v3543_v28  ;;  %v6675_v21 = vpop.f32.mrb[47].mxu0  ;;  %v6575_v11 = vpop.f32.mrb[47].mxu1  ;;  %v7148_v29 = vld [vmem:[%s9434_s0 + $0x698] sm:$0xff]  }
 0x339   :  { %6789 = vmatmul.mubr.msk.bf16.gmra.mrb[152].mxu1 %vm202_vm3, %v7145_v13  ;;  %6889 = vmatmul.mubr.msk.bf16.gmra.mrb[152].mxu0 %vm202_vm3, %v7146_v19 }
 0x33a   :  { %6792 = vmatprep.mubr.msk.bf16.mxu1 %vm7169_vm2, %v9440_v12  ;;  %6892 = vmatprep.mubr.msk.bf16.mxu0 %vm7169_vm2, %v9440_v12 }
 0x33c   :  { %v3027_v51 = vpop.f32.mrb[48].mxu1  ;;  %v3548_v10 = vpop.f32.mrb[48].mxu0 }
 0x33d   :  { %v3141_v3 = vmax.f32 %v8529_v52, %v3027_v51  ;;  %v8958_v0 = vmax.f32 %v3139_v53, %v3548_v10  ;;  %v6578_v23 = vpop.f32.mrb[49].mxu1  ;;  %v6678_v39 = vpop.f32.mrb[49].mxu0 }
 0x33e   :  { %v3030_v13 = vpop.f32.mrb[50].mxu1  ;;  %v3551_v19 = vpop.f32.mrb[50].mxu0  ;;  %v7149_v23 = vld [vmem:[%s9434_s0 + $0x5e4] sm:$0xff]  }
 0x33f   :  { %v3142_v49 = vmax.f32 %v8538_v18, %v3030_v13  ;;  %v8967_v28 = vmax.f32 %v3140_v30, %v3551_v19  ;;  %v6679_v21 = vpop.f32.mrb[51].mxu0  ;;  %v6579_v52 = vpop.f32.mrb[51].mxu1  ;;  %v7150_v39 = vld [vmem:[%s9434_s0 + $0x6a0] sm:$0xff]  }
 0x341   :  { %6793 = vmatmul.mubr.msk.bf16.gmra.mrb[156].mxu1 %vm202_vm3, %v7147_v31  ;;  %6893 = vmatmul.mubr.msk.bf16.gmra.mrb[156].mxu0 %vm202_vm3, %v7148_v29 }
 0x342   :  { %6796 = vmatprep.mubr.msk.bf16.mxu1 %vm7169_vm2, %v9440_v12  ;;  %6896 = vmatprep.mubr.msk.bf16.mxu0 %vm7169_vm2, %v9440_v12 }
 0x344   :  { %v3035_v53 = vpop.f32.mrb[52].mxu1  ;;  %v3556_v11 = vpop.f32.mrb[52].mxu0 }
 0x345   :  { %v3143_v51 = vmax.f32 %v8547_v38, %v3035_v53  ;;  %v8976_v10 = vmax.f32 %v3141_v3, %v3556_v11  ;;  %v6582_v18 = vpop.f32.mrb[53].mxu1  ;;  %v6682_v30 = vpop.f32.mrb[53].mxu0 }
 0x346   :  { %v3038_v31 = vpop.f32.mrb[54].mxu1  ;;  %v3559_v29 = vpop.f32.mrb[54].mxu0  ;;  %v7151_v18 = vld [vmem:[%s9434_s0 + $0x5ec] sm:$0xff]  }
 0x347   :  { %v3144_v13 = vmax.f32 %v8556_v50, %v3038_v31  ;;  %v8985_v19 = vmax.f32 %v3142_v49, %v3559_v29  ;;  %v6683_v21 = vpop.f32.mrb[55].mxu0  ;;  %v6583_v38 = vpop.f32.mrb[55].mxu1  ;;  %v7152_v30 = vld [vmem:[%s9434_s0 + $0x6a8] sm:$0xff]  }
 0x349   :  { %6797 = vmatmul.mubr.msk.bf16.gmra.mrb[160].mxu1 %vm202_vm3, %v7149_v23  ;;  %6897 = vmatmul.mubr.msk.bf16.gmra.mrb[160].mxu0 %vm202_vm3, %v7150_v39 }
 0x34a   :  { %6800 = vmatprep.mubr.msk.bf16.mxu1 %vm7169_vm2, %v9440_v12  ;;  %6900 = vmatprep.mubr.msk.bf16.mxu0 %vm7169_vm2, %v9440_v12 }
 0x34c   :  { %v3043_v3 = vpop.f32.mrb[56].mxu1  ;;  %v3564_v52 = vpop.f32.mrb[56].mxu0 }
 0x34d   :  { %v3145_v53 = vmax.f32 %v8565_v5, %v3043_v3  ;;  %v8994_v11 = vmax.f32 %v3143_v51, %v3564_v52  ;;  %v6586_v50 = vpop.f32.mrb[57].mxu1  ;;  %v6686_v49 = vpop.f32.mrb[57].mxu0 }
 0x34e   :  { %v3046_v23 = vpop.f32.mrb[58].mxu1  ;;  %v3567_v39 = vpop.f32.mrb[58].mxu0  ;;  %v7153_v50 = vld [vmem:[%s9434_s0 + $0x5f4] sm:$0xff]  }
 0x34f   :  { %v3146_v31 = vmax.f32 %v8574_v48, %v3046_v23  ;;  %v9003_v29 = vmax.f32 %v3144_v13, %v3567_v39  ;;  %v6687_v21 = vpop.f32.mrb[59].mxu0  ;;  %v6587_v5 = vpop.f32.mrb[59].mxu1  ;;  %v7154_v49 = vld [vmem:[%s9434_s0 + $0x6b0] sm:$0xff]  }
 0x351   :  { %6801 = vmatmul.mubr.msk.bf16.gmra.mrb[164].mxu1 %vm202_vm3, %v7151_v18  ;;  %6901 = vmatmul.mubr.msk.bf16.gmra.mrb[164].mxu0 %vm202_vm3, %v7152_v30 }
 0x352   :  { %6804 = vmatprep.mubr.msk.bf16.mxu1 %vm7169_vm2, %v9440_v12  ;;  %6904 = vmatprep.mubr.msk.bf16.mxu0 %vm7169_vm2, %v9440_v12 }
 0x354   :  { %v3051_v51 = vpop.f32.mrb[60].mxu1  ;;  %v3572_v38 = vpop.f32.mrb[60].mxu0 }
 0x355   :  { %v3147_v3 = vmax.f32 %v8583_v16, %v3051_v51  ;;  %v9012_v52 = vmax.f32 %v3145_v53, %v3572_v38  ;;  %v6590_v48 = vpop.f32.mrb[61].mxu1  ;;  %v6690_v13 = vpop.f32.mrb[61].mxu0 }
 0x356   :  { %v3054_v18 = vpop.f32.mrb[62].mxu1  ;;  %v3575_v30 = vpop.f32.mrb[62].mxu0  ;;  %v7155_v48 = vld [vmem:[%s9434_s0 + $0x5fc] sm:$0xff]  }
 0x357   :  { %v3148_v23 = vmax.f32 %v8592_v32, %v3054_v18  ;;  %v9021_v39 = vmax.f32 %v3146_v31, %v3575_v30  ;;  %v6691_v21 = vpop.f32.mrb[63].mxu0  ;;  %v6591_v16 = vpop.f32.mrb[63].mxu1  ;;  %v7156_v13 = vld [vmem:[%s9434_s0 + $0x6b8] sm:$0xff]  }
 0x359   :  { %6805 = vmatmul.mubr.msk.bf16.gmra.mrb[168].mxu1 %vm202_vm3, %v7153_v50  ;;  %6905 = vmatmul.mubr.msk.bf16.gmra.mrb[168].mxu0 %vm202_vm3, %v7154_v49 }
 0x35a   :  { %6808 = vmatprep.mubr.msk.bf16.mxu1 %vm7169_vm2, %v9440_v12  ;;  %6908 = vmatprep.mubr.msk.bf16.mxu0 %vm7169_vm2, %v9440_v12 }
 0x35c   :  { %v3059_v53 = vpop.f32.mrb[64].mxu1  ;;  %v3580_v5 = vpop.f32.mrb[64].mxu0 }
 0x35d   :  { %v3149_v51 = vmax.f32 %v8601_v26, %v3059_v53  ;;  %v9030_v38 = vmax.f32 %v3147_v3, %v3580_v5  ;;  %v6594_v32 = vpop.f32.mrb[65].mxu1  ;;  %v6694_v31 = vpop.f32.mrb[65].mxu0 }
 0x35e   :  { %v3062_v50 = vpop.f32.mrb[66].mxu1  ;;  %v3583_v49 = vpop.f32.mrb[66].mxu0  ;;  %v7157_v32 = vld [vmem:[%s9434_s0 + $0x604] sm:$0xff]  }
 0x35f   :  { %v3150_v18 = vmax.f32 %v8610_v59, %v3062_v50  ;;  %v9039_v30 = vmax.f32 %v3148_v23, %v3583_v49  ;;  %v6695_v21 = vpop.f32.mrb[67].mxu0  ;;  %v6595_v26 = vpop.f32.mrb[67].mxu1  ;;  %v7158_v31 = vld [vmem:[%s9434_s0 + $0x6c0] sm:$0xff]  }
 0x361   :  { %6809 = vmatmul.mubr.msk.bf16.gmra.mrb[172].mxu1 %vm202_vm3, %v7155_v48  ;;  %6909 = vmatmul.mubr.msk.bf16.gmra.mrb[172].mxu0 %vm202_vm3, %v7156_v13 }
 0x362   :  { %6812 = vmatprep.mubr.msk.bf16.mxu1 %vm7169_vm2, %v9440_v12  ;;  %6912 = vmatprep.mubr.msk.bf16.mxu0 %vm7169_vm2, %v9440_v12 }
 0x364   :  { %v3067_v3 = vpop.f32.mrb[68].mxu1  ;;  %v3588_v16 = vpop.f32.mrb[68].mxu0 }
 0x365   :  { %v3151_v53 = vmax.f32 %v8619_v36, %v3067_v3  ;;  %v9048_v5 = vmax.f32 %v3149_v51, %v3588_v16  ;;  %v6598_v59 = vpop.f32.mrb[69].mxu1  ;;  %v6698_v23 = vpop.f32.mrb[69].mxu0 }
 0x366   :  { %v3070_v48 = vpop.f32.mrb[70].mxu1  ;;  %v3591_v13 = vpop.f32.mrb[70].mxu0  ;;  %v7159_v59 = vld [vmem:[%s9434_s0 + $0x60c] sm:$0xff]  }
 0x367   :  { %v3152_v50 = vmax.f32 %v8628_v47, %v3070_v48  ;;  %v9057_v49 = vmax.f32 %v3150_v18, %v3591_v13  ;;  %v6699_v21 = vpop.f32.mrb[71].mxu0  ;;  %v6599_v36 = vpop.f32.mrb[71].mxu1  ;;  %v7160_v23 = vld [vmem:[%s9434_s0 + $0x6c8] sm:$0xff]  }
 0x369   :  { %6813 = vmatmul.mubr.msk.bf16.gmra.mrb[176].mxu1 %vm202_vm3, %v7157_v32  ;;  %6913 = vmatmul.mubr.msk.bf16.gmra.mrb[176].mxu0 %vm202_vm3, %v7158_v31 }
 0x36a   :  { %6816 = vmatprep.mubr.msk.bf16.mxu1 %vm7169_vm2, %v9440_v12  ;;  %6916 = vmatprep.mubr.msk.bf16.mxu0 %vm7169_vm2, %v9440_v12 }
 0x36c   :  { %v3075_v51 = vpop.f32.mrb[72].mxu1  ;;  %v3596_v26 = vpop.f32.mrb[72].mxu0 }
 0x36d   :  { %v3153_v3 = vmax.f32 %v8637_v46, %v3075_v51  ;;  %v9066_v16 = vmax.f32 %v3151_v53, %v3596_v26  ;;  %v6602_v47 = vpop.f32.mrb[73].mxu1  ;;  %v6702_v18 = vpop.f32.mrb[73].mxu0 }
 0x36e   :  { %v3078_v32 = vpop.f32.mrb[74].mxu1  ;;  %v3599_v31 = vpop.f32.mrb[74].mxu0  ;;  %v7161_v47 = vld [vmem:[%s9434_s0 + $0x614] sm:$0xff]  }
 0x36f   :  { %v3154_v48 = vmax.f32 %v8646_v34, %v3078_v32  ;;  %v9075_v13 = vmax.f32 %v3152_v50, %v3599_v31  ;;  %v6703_v21 = vpop.f32.mrb[75].mxu0  ;;  %v6603_v46 = vpop.f32.mrb[75].mxu1  ;;  %v7162_v18 = vld [vmem:[%s9434_s0 + $0x6d0] sm:$0xff]  }
 0x371   :  { %6817 = vmatmul.mubr.msk.bf16.gmra.mrb[180].mxu1 %vm202_vm3, %v7159_v59  ;;  %6917 = vmatmul.mubr.msk.bf16.gmra.mrb[180].mxu0 %vm202_vm3, %v7160_v23 }
 0x372   :  { %6820 = vmatprep.mubr.msk.bf16.mxu1 %vm7169_vm2, %v9440_v12  ;;  %6920 = vmatprep.mubr.msk.bf16.mxu0 %vm7169_vm2, %v9440_v12 }
 0x374   :  { %v3083_v53 = vpop.f32.mrb[76].mxu1  ;;  %v3604_v36 = vpop.f32.mrb[76].mxu0 }
 0x375   :  { %v3155_v51 = vmax.f32 %v8655_v56, %v3083_v53  ;;  %v9084_v26 = vmax.f32 %v3153_v3, %v3604_v36  ;;  %v6606_v34 = vpop.f32.mrb[77].mxu1  ;;  %v6706_v50 = vpop.f32.mrb[77].mxu0 }
 0x376   :  { %v3086_v59 = vpop.f32.mrb[78].mxu1  ;;  %v3607_v23 = vpop.f32.mrb[78].mxu0  ;;  %v7163_v34 = vld [vmem:[%s9434_s0 + $0x61c] ss:$0 sps:$4 sm:$0xff]  }
 0x377   :  { %v3156_v32 = vmax.f32 %v8664_v2, %v3086_v59  ;;  %v9093_v31 = vmax.f32 %v3154_v48, %v3607_v23  ;;  %v6707_v21 = vpop.f32.mrb[79].mxu0  ;;  %v6607_v56 = vpop.f32.mrb[79].mxu1  ;;  %v7164_v50 = vld [vmem:[%s9434_s0 + $0x6d8] sm:$0xff]  }
 0x379   :  { %6821 = vmatmul.mubr.msk.bf16.gmra.mrb[184].mxu1 %vm202_vm3, %v7161_v47  ;;  %6921 = vmatmul.mubr.msk.bf16.gmra.mrb[184].mxu0 %vm202_vm3, %v7162_v18 }
 0x37a   :  { %6824 = vmatprep.mubr.msk.bf16.mxu1 %vm7169_vm2, %v9440_v12  ;;  %6924 = vmatprep.mubr.msk.bf16.mxu0 %vm7169_vm2, %v9440_v12 }
 0x37c   :  { %v3091_v3 = vpop.f32.mrb[80].mxu1  ;;  %v3612_v46 = vpop.f32.mrb[80].mxu0 }
 0x37d   :  { %v3157_v53 = vmax.f32 %v8673_v8, %v3091_v3  ;;  %v9102_v36 = vmax.f32 %v3155_v51, %v3612_v46  ;;  %v6610_v2 = vpop.f32.mrb[81].mxu1  ;;  %v6710_v48 = vpop.f32.mrb[81].mxu0 }
 0x37e   :  { %v3094_v47 = vpop.f32.mrb[82].mxu1  ;;  %v3615_v18 = vpop.f32.mrb[82].mxu0 }
 0x37f   :  { %v3158_v59 = vmax.f32 %v8682_v44, %v3094_v47  ;;  %v9111_v23 = vmax.f32 %v3156_v32, %v3615_v18  ;;  %v6711_v21 = vpop.f32.mrb[83].mxu0  ;;  %v6611_v8 = vpop.f32.mrb[83].mxu1  ;;  %v7165_v44 = vld [vmem:[%s9434_s0 + $0x6e0] ss:$0 sps:$4 sm:$0xff]  }
 0x381   :  { %9444 = vst [vmem:[#allocation2_spill] sm:$0xff] %v9111_v23  ;;  %6825 = vmatmul.mubr.msk.bf16.gmra.mrb[188].mxu1 %vm202_vm3, %v7163_v34  ;;  %6925 = vmatmul.mubr.msk.bf16.gmra.mrb[188].mxu0 %vm202_vm3, %v7164_v50 }
 0x382   :  { %6928 = vmatprep.mubr.msk.bf16.mxu0 %vm7169_vm2, %v9440_v12 }
 0x384   :  { %v3099_v51 = vpop.f32.mrb[84].mxu1  ;;  %v3620_v56 = vpop.f32.mrb[84].mxu0 }
 0x385   :  { %v3159_v3 = vmax.f32 %v8691_v24, %v3099_v51  ;;  %v9118_v46 = vmax.f32 %v3157_v53, %v3620_v56  ;;  %v6614_v2 = vpop.f32.mrb[85].mxu1  ;;  %v6714_v48 = vpop.f32.mrb[85].mxu0 }
 0x386   :  { %v3102_v32 = vpop.f32.mrb[86].mxu1  ;;  %v3623_v47 = vpop.f32.mrb[86].mxu0 }
 0x387   :  { %9445 = vst [vmem:[#allocation3_spill] sm:$0xff] %v9118_v46  ;;  %v3160_v34 = vmax.f32 %v8699_v4, %v3102_v32  ;;  %v9124_v50 = vmax.f32 %v3158_v59, %v3623_v47  ;;  %v6715_v18 = vpop.f32.mrb[87].mxu0  ;;  %v6615_v12 = vpop.f32.mrb[87].mxu1 }
 0x389   :  { %9446 = vst [vmem:[#allocation4_spill] sm:$0xff] %v9124_v50  ;;  %6929 = vmatmul.mubr.msk.bf16.gmra.mrb[192].mxu0 %vm202_vm3, %v7165_v44 }
 0x38c   :  { %v3107_v21 = vpop.f32.mrb[88].mxu1  ;;  %v3628_v24 = vpop.f32.mrb[88].mxu0 }
 0x38d   :  { %v3161_v53 = vmax.f32 %v8707_v58, %v3107_v21  ;;  %v9128_v8 = vmax.f32 %v3159_v3, %v3628_v24  ;;  %v6718_v51 = vpop.f32.mrb[89].mxu0  ;;  %v6618_v56 = vpop.f32.mrb[89].mxu1 }
 0x38e   :  { %v3631_v2 = vpop.f32.mrb[90].mxu0  ;;  %v3110_v48 = vpop.f32.mrb[90].mxu1 }
 0x38f   :  { %v9130_v46 = vmax.f32 %v3160_v34, %v3631_v2  ;;  %v6719_v23 = vpop.f32.mrb[91].mxu0  ;;  %v6619_v4 = vpop.f32.mrb[91].mxu1 }
 0x390   :  { %v9139_v23 = vld [vmem:[%s9435_s2] ss:$0 sm:$0xff] }
 0x394   :  { %v3636_v59 = vpop.f32.mrb[92].mxu0  ;;  %v3973_v32 = vpop.f32.mrb[92].mxu1 }
 0x395   :  { %v9132_v47 = vmax.f32 %v3161_v53, %v3636_v59  ;;  %v4171_v44 = vmax.f32 %v8724_v27, %v3973_v32  ;;  %v6722_v18 = vpop.f32.mrb[93].mxu0  ;;  %v6730_v12 = vpop.f32.mrb[93].mxu1 }
 0x396   :  { %v3639_v50 = vpop.f32.mrb[94].mxu0  ;;  %v3976_v58 = vpop.f32.mrb[94].mxu1 }
 0x397   :  { %v4172_v3 = vmax.f32 %v8733_v63, %v3976_v58  ;;  %v6723_v21 = vpop.f32.mrb[95].mxu0  ;;  %v6731_v24 = vpop.f32.mrb[95].mxu1 }
 0x39c   :  { %v3981_v51 = vpop.f32.mrb[96].mxu1  ;;  %v4502_v56 = vpop.f32.mrb[96].mxu0 }
 0x39d   :  { %v4173_v34 = vmax.f32 %v8742_v57, %v3981_v51  ;;  %v4700_v53 = vmax.f32 %v4171_v44, %v4502_v56  ;;  %v6734_v2 = vpop.f32.mrb[97].mxu1  ;;  %v6834_v27 = vpop.f32.mrb[97].mxu0 }
 0x39e   :  { %v3984_v48 = vpop.f32.mrb[98].mxu1  ;;  %v4505_v4 = vpop.f32.mrb[98].mxu0 }
 0x39f   :  { %v4756_v50 = vadd.f32 %v9139_v23, %v4700_v53  ;;  %v4174_v63 = vmax.f32 %v8751_v54, %v3984_v48  ;;  %v4701_v59 = vmax.f32 %v4172_v3, %v4505_v4  ;;  %v6835_v32 = vpop.f32.mrb[99].mxu0  ;;  %v6735_v18 = vpop.f32.mrb[99].mxu1 }
 0x3a1   :  { %v4805_v12 = vmax.f32 %v4756_v50, 0.0  ;;  %v4757_v58 = vadd.f32 %v9139_v23, %v4701_v59 }
 0x3a3   :  { %4855 = vst.msk [vmem:[%s9436_s3] sm:$0xff] %vm4854_vm4, %v4805_v12  ;;  %v4806_v57 = vmax.f32 %v4757_v58, 0.0 }
 0x3a4   :  { %v3989_v44 = vpop.f32.mrb[100].mxu1  ;;  %v4510_v21 = vpop.f32.mrb[100].mxu0 }
 0x3a5   :  { %4856 = vst.msk [vmem:[%s9436_s3 + $0x8] sm:$0xff] %vm4854_vm4, %v4806_v57  ;;  %v4175_v54 = vmax.f32 %v8760_v43, %v3989_v44  ;;  %v4702_v3 = vmax.f32 %v4173_v34, %v4510_v21  ;;  %v6738_v24 = vpop.f32.mrb[101].mxu1  ;;  %v6838_v51 = vpop.f32.mrb[101].mxu0 }
 0x3a6   :  { %v3992_v56 = vpop.f32.mrb[102].mxu1  ;;  %v4513_v53 = vpop.f32.mrb[102].mxu0 }
 0x3a7   :  { %v4758_v2 = vadd.f32 %v9139_v23, %v4702_v3  ;;  %v4176_v27 = vmax.f32 %v8769_v42, %v3992_v56  ;;  %v4703_v48 = vmax.f32 %v4174_v63, %v4513_v53  ;;  %v6839_v4 = vpop.f32.mrb[103].mxu0  ;;  %v6739_v50 = vpop.f32.mrb[103].mxu1 }
 0x3a9   :  { %v4807_v59 = vmax.f32 %v4758_v2, 0.0  ;;  %v4759_v32 = vadd.f32 %v9139_v23, %v4703_v48 }
 0x3ab   :  { %4857 = vst.msk [vmem:[%s9436_s3 + $0x10] sm:$0xff] %vm4854_vm4, %v4807_v59  ;;  %v4808_v43 = vmax.f32 %v4759_v32, 0.0 }
 0x3ac   :  { %v3997_v34 = vpop.f32.mrb[104].mxu1  ;;  %v4518_v18 = vpop.f32.mrb[104].mxu0 }
 0x3ad   :  { %4858 = vst.msk [vmem:[%s9436_s3 + $0x18] sm:$0xff] %vm4854_vm4, %v4808_v43  ;;  %v4177_v42 = vmax.f32 %v8778_v37, %v3997_v34  ;;  %v4704_v63 = vmax.f32 %v4175_v54, %v4518_v18  ;;  %v6742_v12 = vpop.f32.mrb[105].mxu1  ;;  %v6842_v58 = vpop.f32.mrb[105].mxu0 }
 0x3ae   :  { %v4000_v57 = vpop.f32.mrb[106].mxu1  ;;  %v4521_v44 = vpop.f32.mrb[106].mxu0 }
 0x3af   :  { %v4760_v21 = vadd.f32 %v9139_v23, %v4704_v63  ;;  %v4178_v3 = vmax.f32 %v8787_v40, %v4000_v57  ;;  %v4705_v24 = vmax.f32 %v4176_v27, %v4521_v44  ;;  %v6843_v51 = vpop.f32.mrb[107].mxu0  ;;  %v6743_v56 = vpop.f32.mrb[107].mxu1 }
 0x3b1   :  { %v4809_v53 = vmax.f32 %v4760_v21, 0.0  ;;  %v4761_v2 = vadd.f32 %v9139_v23, %v4705_v24 }
 0x3b3   :  { %4859 = vst.msk [vmem:[%s9436_s3 + $0x20] sm:$0xff] %vm4854_vm4, %v4809_v53  ;;  %v4810_v37 = vmax.f32 %v4761_v2, 0.0 }
 0x3b4   :  { %v4005_v54 = vpop.f32.mrb[108].mxu1  ;;  %v4526_v48 = vpop.f32.mrb[108].mxu0 }
 0x3b5   :  { %4860 = vst.msk [vmem:[%s9436_s3 + $0x28] sm:$0xff] %vm4854_vm4, %v4810_v37  ;;  %v4179_v40 = vmax.f32 %v8796_v22, %v4005_v54  ;;  %v4706_v27 = vmax.f32 %v4177_v42, %v4526_v48  ;;  %v6746_v4 = vpop.f32.mrb[109].mxu1  ;;  %v6846_v50 = vpop.f32.mrb[109].mxu0 }
 0x3b6   :  { %v4008_v59 = vpop.f32.mrb[110].mxu1  ;;  %v4529_v32 = vpop.f32.mrb[110].mxu0 }
 0x3b7   :  { %v4762_v43 = vadd.f32 %v9139_v23, %v4706_v27  ;;  %v4180_v34 = vmax.f32 %v8805_v1, %v4008_v59  ;;  %v4707_v18 = vmax.f32 %v4178_v3, %v4529_v32  ;;  %v6847_v63 = vpop.f32.mrb[111].mxu0  ;;  %v6747_v12 = vpop.f32.mrb[111].mxu1 }
 0x3b9   :  { %v4811_v58 = vmax.f32 %v4762_v43, 0.0  ;;  %v4763_v57 = vadd.f32 %v9139_v23, %v4707_v18 }
 0x3bb   :  { %4861 = vst.msk [vmem:[%s9436_s3 + $0x30] sm:$0xff] %vm4854_vm4, %v4811_v58  ;;  %v4812_v22 = vmax.f32 %v4763_v57, 0.0 }
 0x3bc   :  { %v4013_v42 = vpop.f32.mrb[112].mxu1  ;;  %v4534_v44 = vpop.f32.mrb[112].mxu0 }
 0x3bd   :  { %4862 = vst.msk [vmem:[%s9436_s3 + $0x38] sm:$0xff] %vm4854_vm4, %v4812_v22  ;;  %v4181_v1 = vmax.f32 %v8814_v17, %v4013_v42  ;;  %v4708_v21 = vmax.f32 %v4179_v40, %v4534_v44  ;;  %v6750_v3 = vpop.f32.mrb[113].mxu1  ;;  %v6850_v24 = vpop.f32.mrb[113].mxu0 }
 0x3be   :  { %v4016_v51 = vpop.f32.mrb[114].mxu1  ;;  %v4537_v56 = vpop.f32.mrb[114].mxu0 }
 0x3bf   :  { %v4764_v53 = vadd.f32 %v9139_v23, %v4708_v21  ;;  %v4182_v2 = vmax.f32 %v8823_v62, %v4016_v51  ;;  %v4709_v37 = vmax.f32 %v4180_v34, %v4537_v56  ;;  %v6851_v54 = vpop.f32.mrb[115].mxu0  ;;  %v6751_v48 = vpop.f32.mrb[115].mxu1 }
 0x3c1   :  { %v4813_v27 = vmax.f32 %v4764_v53, 0.0  ;;  %v4765_v4 = vadd.f32 %v9139_v23, %v4709_v37 }
 0x3c3   :  { %4863 = vst.msk [vmem:[%s9436_s3 + $0x40] sm:$0xff] %vm4854_vm4, %v4813_v27  ;;  %v4814_v17 = vmax.f32 %v4765_v4, 0.0 }
 0x3c4   :  { %v4021_v40 = vpop.f32.mrb[116].mxu1  ;;  %v4542_v50 = vpop.f32.mrb[116].mxu0 }
 0x3c5   :  { %4864 = vst.msk [vmem:[%s9436_s3 + $0x48] sm:$0xff] %vm4854_vm4, %v4814_v17  ;;  %v4183_v62 = vmax.f32 %v8832_v15, %v4021_v40  ;;  %v4710_v59 = vmax.f32 %v4181_v1, %v4542_v50  ;;  %v6754_v32 = vpop.f32.mrb[117].mxu1  ;;  %v6854_v43 = vpop.f32.mrb[117].mxu0 }
 0x3c6   :  { %v4024_v34 = vpop.f32.mrb[118].mxu1  ;;  %v4545_v18 = vpop.f32.mrb[118].mxu0 }
 0x3c7   :  { %v4766_v63 = vadd.f32 %v9139_v23, %v4710_v59  ;;  %v4184_v12 = vmax.f32 %v8841_v20, %v4024_v34  ;;  %v4711_v58 = vmax.f32 %v4182_v2, %v4545_v18  ;;  %v6855_v57 = vpop.f32.mrb[119].mxu0  ;;  %v6755_v22 = vpop.f32.mrb[119].mxu1 }
 0x3c9   :  { %v4815_v42 = vmax.f32 %v4766_v63, 0.0  ;;  %v4767_v44 = vadd.f32 %v9139_v23, %v4711_v58 }
 0x3cb   :  { %4865 = vst.msk [vmem:[%s9436_s3 + $0x50] sm:$0xff] %vm4854_vm4, %v4815_v42  ;;  %v4816_v15 = vmax.f32 %v4767_v44, 0.0 }
 0x3cc   :  { %v4029_v1 = vpop.f32.mrb[120].mxu1  ;;  %v4550_v21 = vpop.f32.mrb[120].mxu0 }
 0x3cd   :  { %4866 = vst.msk [vmem:[%s9436_s3 + $0x58] sm:$0xff] %vm4854_vm4, %v4816_v15  ;;  %v4185_v20 = vmax.f32 %v8850_v25, %v4029_v1  ;;  %v4712_v3 = vmax.f32 %v4183_v62, %v4550_v21  ;;  %v6758_v24 = vpop.f32.mrb[121].mxu1  ;;  %v6858_v51 = vpop.f32.mrb[121].mxu0 }
 0x3ce   :  { %v4032_v56 = vpop.f32.mrb[122].mxu1  ;;  %v4553_v53 = vpop.f32.mrb[122].mxu0 }
 0x3cf   :  { %v4768_v2 = vadd.f32 %v9139_v23, %v4712_v3  ;;  %v4186_v37 = vmax.f32 %v8859_v61, %v4032_v56  ;;  %v4713_v54 = vmax.f32 %v4184_v12, %v4553_v53  ;;  %v6859_v48 = vpop.f32.mrb[123].mxu0  ;;  %v6759_v27 = vpop.f32.mrb[123].mxu1 }
 0x3d1   :  { %v4817_v4 = vmax.f32 %v4768_v2, 0.0  ;;  %v4769_v17 = vadd.f32 %v9139_v23, %v4713_v54 }
 0x3d3   :  { %4867 = vst.msk [vmem:[%s9436_s3 + $0x60] sm:$0xff] %vm4854_vm4, %v4817_v4  ;;  %v4818_v25 = vmax.f32 %v4769_v17, 0.0 }
 0x3d4   :  { %v4037_v40 = vpop.f32.mrb[124].mxu1  ;;  %v4558_v50 = vpop.f32.mrb[124].mxu0 }
 0x3d5   :  { %4868 = vst.msk [vmem:[%s9436_s3 + $0x68] sm:$0xff] %vm4854_vm4, %v4818_v25  ;;  %v4187_v61 = vmax.f32 %v8868_v35, %v4037_v40  ;;  %v4714_v62 = vmax.f32 %v4185_v20, %v4558_v50  ;;  %v6762_v59 = vpop.f32.mrb[125].mxu1  ;;  %v6862_v32 = vpop.f32.mrb[125].mxu0 }
 0x3d6   :  { %v4040_v43 = vpop.f32.mrb[126].mxu1  ;;  %v4561_v34 = vpop.f32.mrb[126].mxu0 }
 0x3d7   :  { %v4770_v18 = vadd.f32 %v9139_v23, %v4714_v62  ;;  %v4188_v63 = vmax.f32 %v8877_v41, %v4040_v43  ;;  %v4715_v12 = vmax.f32 %v4186_v37, %v4561_v34  ;;  %v6863_v58 = vpop.f32.mrb[127].mxu0  ;;  %v6763_v57 = vpop.f32.mrb[127].mxu1 }
 0x3d9   :  { %v4819_v22 = vmax.f32 %v4770_v18, 0.0  ;;  %v4771_v42 = vadd.f32 %v9139_v23, %v4715_v12 }
 0x3db   :  { %4869 = vst.msk [vmem:[%s9436_s3 + $0x70] sm:$0xff] %vm4854_vm4, %v4819_v22  ;;  %v4820_v35 = vmax.f32 %v4771_v42, 0.0 }
 0x3dc   :  { %v4045_v44 = vpop.f32.mrb[128].mxu1  ;;  %v4566_v15 = vpop.f32.mrb[128].mxu0 }
 0x3dd   :  { %4870 = vst.msk [vmem:[%s9436_s3 + $0x78] sm:$0xff] %vm4854_vm4, %v4820_v35  ;;  %v4189_v41 = vmax.f32 %v8886_v45, %v4045_v44  ;;  %v4716_v1 = vmax.f32 %v4187_v61, %v4566_v15  ;;  %v6766_v21 = vpop.f32.mrb[129].mxu1  ;;  %v6866_v20 = vpop.f32.mrb[129].mxu0 }
 0x3de   :  { %v4048_v3 = vpop.f32.mrb[130].mxu1  ;;  %v4569_v24 = vpop.f32.mrb[130].mxu0 }
 0x3df   :  { %v4772_v51 = vadd.f32 %v9139_v23, %v4716_v1  ;;  %v4190_v56 = vmax.f32 %v8895_v60, %v4048_v3  ;;  %v4717_v53 = vmax.f32 %v4188_v63, %v4569_v24  ;;  %v6867_v2 = vpop.f32.mrb[131].mxu0  ;;  %v6767_v37 = vpop.f32.mrb[131].mxu1 }
 0x3e1   :  { %v4821_v54 = vmax.f32 %v4772_v51, 0.0  ;;  %v4773_v48 = vadd.f32 %v9139_v23, %v4717_v53 }
 0x3e3   :  { %4871 = vst.msk [vmem:[%s9436_s3 + $0x80] sm:$0xff] %vm4854_vm4, %v4821_v54  ;;  %v4822_v45 = vmax.f32 %v4773_v48, 0.0 }
 0x3e4   :  { %v4053_v27 = vpop.f32.mrb[132].mxu1  ;;  %v4574_v4 = vpop.f32.mrb[132].mxu0 }
 0x3e5   :  { %4872 = vst.msk [vmem:[%s9436_s3 + $0x88] sm:$0xff] %vm4854_vm4, %v4822_v45  ;;  %v4191_v60 = vmax.f32 %v8904_v55, %v4053_v27  ;;  %v4718_v17 = vmax.f32 %v4189_v41, %v4574_v4  ;;  %v6770_v25 = vpop.f32.mrb[133].mxu1  ;;  %v6870_v40 = vpop.f32.mrb[133].mxu0 }
 0x3e6   :  { %v4056_v50 = vpop.f32.mrb[134].mxu1  ;;  %v4577_v61 = vpop.f32.mrb[134].mxu0 }
 0x3e7   :  { %v4774_v62 = vadd.f32 %v9139_v23, %v4718_v17  ;;  %v4192_v59 = vmax.f32 %v8913_v14, %v4056_v50  ;;  %v4719_v32 = vmax.f32 %v4190_v56, %v4577_v61  ;;  %v6871_v43 = vpop.f32.mrb[135].mxu0  ;;  %v6771_v34 = vpop.f32.mrb[135].mxu1 }
 0x3e9   :  { %v4823_v18 = vmax.f32 %v4774_v62, 0.0  ;;  %v4775_v63 = vadd.f32 %v9139_v23, %v4719_v32 }
 0x3eb   :  { %4873 = vst.msk [vmem:[%s9436_s3 + $0x90] sm:$0xff] %vm4854_vm4, %v4823_v18  ;;  %v4824_v55 = vmax.f32 %v4775_v63, 0.0 }
 0x3ec   :  { %v4061_v12 = vpop.f32.mrb[136].mxu1  ;;  %v4582_v58 = vpop.f32.mrb[136].mxu0 }
 0x3ed   :  { %4874 = vst.msk [vmem:[%s9436_s3 + $0x98] sm:$0xff] %vm4854_vm4, %v4824_v55  ;;  %v4193_v14 = vmax.f32 %v8922_v7, %v4061_v12  ;;  %v4720_v57 = vmax.f32 %v4191_v60, %v4582_v58  ;;  %v6774_v22 = vpop.f32.mrb[137].mxu1  ;;  %v6874_v42 = vpop.f32.mrb[137].mxu0 }
 0x3ee   :  { %v4064_v35 = vpop.f32.mrb[138].mxu1  ;;  %v4585_v44 = vpop.f32.mrb[138].mxu0 }
 0x3ef   :  { %v4776_v15 = vadd.f32 %v9139_v23, %v4720_v57  ;;  %v4194_v41 = vmax.f32 %v8931_v6, %v4064_v35  ;;  %v4721_v1 = vmax.f32 %v4192_v59, %v4585_v44  ;;  %v6875_v21 = vpop.f32.mrb[139].mxu0  ;;  %v6775_v20 = vpop.f32.mrb[139].mxu1 }
 0x3f1   :  { %v4825_v3 = vmax.f32 %v4776_v15, 0.0  ;;  %v4777_v24 = vadd.f32 %v9139_v23, %v4721_v1 }
 0x3f3   :  { %4875 = vst.msk [vmem:[%s9436_s3 + $0xa0] sm:$0xff] %vm4854_vm4, %v4825_v3  ;;  %v4826_v7 = vmax.f32 %v4777_v24, 0.0 }
 0x3f4   :  { %v4069_v51 = vpop.f32.mrb[140].mxu1  ;;  %v4590_v56 = vpop.f32.mrb[140].mxu0 }
 0x3f5   :  { %4876 = vst.msk [vmem:[%s9436_s3 + $0xa8] sm:$0xff] %vm4854_vm4, %v4826_v7  ;;  %v4195_v6 = vmax.f32 %v8940_v33, %v4069_v51  ;;  %v4722_v53 = vmax.f32 %v4193_v14, %v4590_v56  ;;  %v6778_v2 = vpop.f32.mrb[141].mxu1  ;;  %v6878_v37 = vpop.f32.mrb[141].mxu0 }
 0x3f6   :  { %v4072_v54 = vpop.f32.mrb[142].mxu1  ;;  %v4593_v48 = vpop.f32.mrb[142].mxu0 }
 0x3f7   :  { %v4778_v45 = vadd.f32 %v9139_v23, %v4722_v53  ;;  %v4196_v27 = vmax.f32 %v8949_v9, %v4072_v54  ;;  %v4723_v4 = vmax.f32 %v4194_v41, %v4593_v48  ;;  %v6879_v60 = vpop.f32.mrb[143].mxu0  ;;  %v6779_v17 = vpop.f32.mrb[143].mxu1 }
 0x3f9   :  { %v4827_v25 = vmax.f32 %v4778_v45, 0.0  ;;  %v4779_v40 = vadd.f32 %v9139_v23, %v4723_v4 }
 0x3fb   :  { %4877 = vst.msk [vmem:[%s9436_s3 + $0xb0] sm:$0xff] %vm4854_vm4, %v4827_v25  ;;  %v4828_v33 = vmax.f32 %v4779_v40, 0.0 }
 0x3fc   :  { %v4077_v50 = vpop.f32.mrb[144].mxu1  ;;  %v4598_v61 = vpop.f32.mrb[144].mxu0 }
 0x3fd   :  { %4878 = vst.msk [vmem:[%s9436_s3 + $0xb8] sm:$0xff] %vm4854_vm4, %v4828_v33  ;;  %v4197_v9 = vmax.f32 %v8958_v0, %v4077_v50  ;;  %v4724_v62 = vmax.f32 %v4195_v6, %v4598_v61  ;;  %v6782_v59 = vpop.f32.mrb[145].mxu1  ;;  %v6882_v32 = vpop.f32.mrb[145].mxu0 }
 0x3fe   :  { %v4080_v43 = vpop.f32.mrb[146].mxu1  ;;  %v4601_v34 = vpop.f32.mrb[146].mxu0 }
 0x3ff   :  { %v4780_v18 = vadd.f32 %v9139_v23, %v4724_v62  ;;  %v4198_v63 = vmax.f32 %v8967_v28, %v4080_v43  ;;  %v4725_v55 = vmax.f32 %v4196_v27, %v4601_v34  ;;  %v6883_v12 = vpop.f32.mrb[147].mxu0  ;;  %v6783_v58 = vpop.f32.mrb[147].mxu1 }
 0x401   :  { %v4829_v14 = vmax.f32 %v4780_v18, 0.0  ;;  %v4781_v57 = vadd.f32 %v9139_v23, %v4725_v55 }
 0x403   :  { %4879 = vst.msk [vmem:[%s9436_s3 + $0xc0] sm:$0xff] %vm4854_vm4, %v4829_v14  ;;  %v4830_v0 = vmax.f32 %v4781_v57, 0.0 }
 0x404   :  { %v4085_v22 = vpop.f32.mrb[148].mxu1  ;;  %v4606_v42 = vpop.f32.mrb[148].mxu0 }
 0x405   :  { %4880 = vst.msk [vmem:[%s9436_s3 + $0xc8] sm:$0xff] %vm4854_vm4, %v4830_v0  ;;  %v4199_v28 = vmax.f32 %v8976_v10, %v4085_v22  ;;  %v4726_v35 = vmax.f32 %v4197_v9, %v4606_v42  ;;  %v6786_v44 = vpop.f32.mrb[149].mxu1  ;;  %v6886_v15 = vpop.f32.mrb[149].mxu0 }
 0x406   :  { %v4088_v41 = vpop.f32.mrb[150].mxu1  ;;  %v4609_v1 = vpop.f32.mrb[150].mxu0 }
 0x407   :  { %v4782_v21 = vadd.f32 %v9139_v23, %v4726_v35  ;;  %v4200_v20 = vmax.f32 %v8985_v19, %v4088_v41  ;;  %v4727_v3 = vmax.f32 %v4198_v63, %v4609_v1  ;;  %v6887_v24 = vpop.f32.mrb[151].mxu0  ;;  %v6787_v7 = vpop.f32.mrb[151].mxu1 }
 0x409   :  { %v4831_v51 = vmax.f32 %v4782_v21, 0.0  ;;  %v4783_v56 = vadd.f32 %v9139_v23, %v4727_v3 }
 0x40b   :  { %4881 = vst.msk [vmem:[%s9436_s3 + $0xd0] sm:$0xff] %vm4854_vm4, %v4831_v51  ;;  %v4832_v10 = vmax.f32 %v4783_v56, 0.0 }
 0x40c   :  { %v4093_v6 = vpop.f32.mrb[152].mxu1  ;;  %v4614_v53 = vpop.f32.mrb[152].mxu0 }
 0x40d   :  { %4882 = vst.msk [vmem:[%s9436_s3 + $0xd8] sm:$0xff] %vm4854_vm4, %v4832_v10  ;;  %v4201_v19 = vmax.f32 %v8994_v11, %v4093_v6  ;;  %v4728_v2 = vmax.f32 %v4199_v28, %v4614_v53  ;;  %v6790_v37 = vpop.f32.mrb[153].mxu1  ;;  %v6890_v54 = vpop.f32.mrb[153].mxu0 }
 0x40e   :  { %v4096_v48 = vpop.f32.mrb[154].mxu1  ;;  %v4617_v45 = vpop.f32.mrb[154].mxu0 }
 0x40f   :  { %v4784_v27 = vadd.f32 %v9139_v23, %v4728_v2  ;;  %v4202_v4 = vmax.f32 %v9003_v29, %v4096_v48  ;;  %v4729_v60 = vmax.f32 %v4200_v20, %v4617_v45  ;;  %v6891_v17 = vpop.f32.mrb[155].mxu0  ;;  %v6791_v25 = vpop.f32.mrb[155].mxu1 }
 0x411   :  { %v4833_v40 = vmax.f32 %v4784_v27, 0.0  ;;  %v4785_v33 = vadd.f32 %v9139_v23, %v4729_v60 }
 0x413   :  { %4883 = vst.msk [vmem:[%s9436_s3 + $0xe0] sm:$0xff] %vm4854_vm4, %v4833_v40  ;;  %v4834_v11 = vmax.f32 %v4785_v33, 0.0 }
 0x414   :  { %v4101_v50 = vpop.f32.mrb[156].mxu1  ;;  %v4622_v61 = vpop.f32.mrb[156].mxu0 }
 0x415   :  { %4884 = vst.msk [vmem:[%s9436_s3 + $0xe8] sm:$0xff] %vm4854_vm4, %v4834_v11  ;;  %v4203_v29 = vmax.f32 %v9012_v52, %v4101_v50  ;;  %v4730_v9 = vmax.f32 %v4201_v19, %v4622_v61  ;;  %v6794_v62 = vpop.f32.mrb[157].mxu1  ;;  %v6894_v59 = vpop.f32.mrb[157].mxu0 }
 0x416   :  { %v4104_v32 = vpop.f32.mrb[158].mxu1  ;;  %v4625_v43 = vpop.f32.mrb[158].mxu0 }
 0x417   :  { %v4786_v34 = vadd.f32 %v9139_v23, %v4730_v9  ;;  %v4204_v18 = vmax.f32 %v9021_v39, %v4104_v32  ;;  %v4731_v63 = vmax.f32 %v4202_v4, %v4625_v43  ;;  %v6895_v55 = vpop.f32.mrb[159].mxu0  ;;  %v6795_v12 = vpop.f32.mrb[159].mxu1 }
 0x419   :  { %v4835_v58 = vmax.f32 %v4786_v34, 0.0  ;;  %v4787_v14 = vadd.f32 %v9139_v23, %v4731_v63 }
 0x41b   :  { %4885 = vst.msk [vmem:[%s9436_s3 + $0xf0] sm:$0xff] %vm4854_vm4, %v4835_v58  ;;  %v4836_v52 = vmax.f32 %v4787_v14, 0.0 }
 0x41c   :  { %v4109_v57 = vpop.f32.mrb[160].mxu1  ;;  %v4630_v0 = vpop.f32.mrb[160].mxu0 }
 0x41d   :  { %4886 = vst.msk [vmem:[%s9436_s3 + $0xf8] sm:$0xff] %vm4854_vm4, %v4836_v52  ;;  %v4205_v39 = vmax.f32 %v9030_v38, %v4109_v57  ;;  %v4732_v22 = vmax.f32 %v4203_v29, %v4630_v0  ;;  %v6798_v42 = vpop.f32.mrb[161].mxu1  ;;  %v6898_v28 = vpop.f32.mrb[161].mxu0 }
 0x41e   :  { %v4112_v35 = vpop.f32.mrb[162].mxu1  ;;  %v4633_v44 = vpop.f32.mrb[162].mxu0 }
 0x41f   :  { %v4788_v15 = vadd.f32 %v9139_v23, %v4732_v22  ;;  %v4206_v41 = vmax.f32 %v9039_v30, %v4112_v35  ;;  %v4733_v1 = vmax.f32 %v4204_v18, %v4633_v44  ;;  %v6899_v21 = vpop.f32.mrb[163].mxu0  ;;  %v6799_v20 = vpop.f32.mrb[163].mxu1 }
 0x421   :  { %v4837_v3 = vmax.f32 %v4788_v15, 0.0  ;;  %v4789_v24 = vadd.f32 %v9139_v23, %v4733_v1 }
 0x423   :  { %4887 = vst.msk [vmem:[%s9436_s3 + $0x100] sm:$0xff] %vm4854_vm4, %v4837_v3  ;;  %v4838_v38 = vmax.f32 %v4789_v24, 0.0  ;;  %v9447_v24 = vld [vmem:[#allocation2_spill] sm:$0xff] }
 0x424   :  { %v4117_v7 = vpop.f32.mrb[164].mxu1  ;;  %v4638_v51 = vpop.f32.mrb[164].mxu0 }
 0x425   :  { %4888 = vst.msk [vmem:[%s9436_s3 + $0x108] sm:$0xff] %vm4854_vm4, %v4838_v38  ;;  %v4207_v30 = vmax.f32 %v9048_v5, %v4117_v7  ;;  %v4734_v56 = vmax.f32 %v4205_v39, %v4638_v51  ;;  %v6802_v10 = vpop.f32.mrb[165].mxu1  ;;  %v6902_v6 = vpop.f32.mrb[165].mxu0 }
 0x426   :  { %v4120_v53 = vpop.f32.mrb[166].mxu1  ;;  %v4641_v19 = vpop.f32.mrb[166].mxu0 }
 0x427   :  { %v4790_v2 = vadd.f32 %v9139_v23, %v4734_v56  ;;  %v4208_v37 = vmax.f32 %v9057_v49, %v4120_v53  ;;  %v4735_v54 = vmax.f32 %v4206_v41, %v4641_v19  ;;  %v6903_v48 = vpop.f32.mrb[167].mxu0  ;;  %v6803_v45 = vpop.f32.mrb[167].mxu1  ;;  %v9448_v19 = vld [vmem:[#allocation3_spill] sm:$0xff] }
 0x429   :  { %v4839_v27 = vmax.f32 %v4790_v2, 0.0  ;;  %v4791_v4 = vadd.f32 %v9139_v23, %v4735_v54 }
 0x42b   :  { %4889 = vst.msk [vmem:[%s9436_s3 + $0x110] sm:$0xff] %vm4854_vm4, %v4839_v27  ;;  %v4840_v5 = vmax.f32 %v4791_v4, 0.0 }
 0x42c   :  { %v4125_v60 = vpop.f32.mrb[168].mxu1  ;;  %v4646_v17 = vpop.f32.mrb[168].mxu0 }
 0x42d   :  { %4890 = vst.msk [vmem:[%s9436_s3 + $0x118] sm:$0xff] %vm4854_vm4, %v4840_v5  ;;  %v4209_v49 = vmax.f32 %v9066_v16, %v4125_v60  ;;  %v4736_v25 = vmax.f32 %v4207_v30, %v4646_v17  ;;  %v6806_v40 = vpop.f32.mrb[169].mxu1  ;;  %v6906_v33 = vpop.f32.mrb[169].mxu0  ;;  %v9449_v5 = vld [vmem:[#allocation4_spill] sm:$0xff] }
 0x42e   :  { %v4128_v11 = vpop.f32.mrb[170].mxu1  ;;  %v4649_v50 = vpop.f32.mrb[170].mxu0 }
 0x42f   :  { %v4792_v61 = vadd.f32 %v9139_v23, %v4736_v25  ;;  %v4210_v29 = vmax.f32 %v9075_v13, %v4128_v11  ;;  %v4737_v9 = vmax.f32 %v4208_v37, %v4649_v50  ;;  %v6907_v62 = vpop.f32.mrb[171].mxu0  ;;  %v6807_v59 = vpop.f32.mrb[171].mxu1 }
 0x431   :  { %v4841_v32 = vmax.f32 %v4792_v61, 0.0  ;;  %v4793_v43 = vadd.f32 %v9139_v23, %v4737_v9 }
 0x433   :  { %4891 = vst.msk [vmem:[%s9436_s3 + $0x120] sm:$0xff] %vm4854_vm4, %v4841_v32  ;;  %v4842_v16 = vmax.f32 %v4793_v43, 0.0 }
 0x434   :  { %v4133_v34 = vpop.f32.mrb[172].mxu1  ;;  %v4654_v18 = vpop.f32.mrb[172].mxu0 }
 0x435   :  { %4892 = vst.msk [vmem:[%s9436_s3 + $0x128] sm:$0xff] %vm4854_vm4, %v4842_v16  ;;  %v4211_v13 = vmax.f32 %v9084_v26, %v4133_v34  ;;  %v4738_v63 = vmax.f32 %v4209_v49, %v4654_v18  ;;  %v6810_v55 = vpop.f32.mrb[173].mxu1  ;;  %v6910_v12 = vpop.f32.mrb[173].mxu0 }
 0x436   :  { %v4136_v58 = vpop.f32.mrb[174].mxu1  ;;  %v4657_v14 = vpop.f32.mrb[174].mxu0 }
 0x437   :  { %v4794_v52 = vadd.f32 %v9139_v23, %v4738_v63  ;;  %v4212_v57 = vmax.f32 %v9093_v31, %v4136_v58  ;;  %v4739_v0 = vmax.f32 %v4210_v29, %v4657_v14  ;;  %v6911_v39 = vpop.f32.mrb[175].mxu0  ;;  %v6811_v22 = vpop.f32.mrb[175].mxu1 }
 0x439   :  { %v4843_v42 = vmax.f32 %v4794_v52, 0.0  ;;  %v4795_v28 = vadd.f32 %v9139_v23, %v4739_v0 }
 0x43b   :  { %4893 = vst.msk [vmem:[%s9436_s3 + $0x130] sm:$0xff] %vm4854_vm4, %v4843_v42  ;;  %v4844_v26 = vmax.f32 %v4795_v28, 0.0 }
 0x43c   :  { %v4141_v35 = vpop.f32.mrb[176].mxu1  ;;  %v4662_v44 = vpop.f32.mrb[176].mxu0 }
 0x43d   :  { %4894 = vst.msk [vmem:[%s9436_s3 + $0x138] sm:$0xff] %vm4854_vm4, %v4844_v26  ;;  %v4213_v31 = vmax.f32 %v9102_v36, %v4141_v35  ;;  %v4740_v15 = vmax.f32 %v4211_v13, %v4662_v44  ;;  %v6814_v41 = vpop.f32.mrb[177].mxu1  ;;  %v6914_v1 = vpop.f32.mrb[177].mxu0 }
 0x43e   :  { %v4144_v21 = vpop.f32.mrb[178].mxu1  ;;  %v4665_v20 = vpop.f32.mrb[178].mxu0 }
 0x43f   :  { %v4796_v3 = vadd.f32 %v9139_v23, %v4740_v15  ;;  %v4214_v38 = vmax.f32 %v9447_v24, %v4144_v21  ;;  %v4741_v7 = vmax.f32 %v4212_v57, %v4665_v20  ;;  %v6915_v51 = vpop.f32.mrb[179].mxu0  ;;  %v6815_v30 = vpop.f32.mrb[179].mxu1 }
 0x441   :  { %v4845_v56 = vmax.f32 %v4796_v3, 0.0  ;;  %v4797_v10 = vadd.f32 %v9139_v23, %v4741_v7 }
 0x443   :  { %4895 = vst.msk [vmem:[%s9436_s3 + $0x140] sm:$0xff] %vm4854_vm4, %v4845_v56  ;;  %v4846_v36 = vmax.f32 %v4797_v10, 0.0 }
 0x444   :  { %v4149_v6 = vpop.f32.mrb[180].mxu1  ;;  %v4670_v53 = vpop.f32.mrb[180].mxu0 }
 0x445   :  { %4896 = vst.msk [vmem:[%s9436_s3 + $0x148] sm:$0xff] %vm4854_vm4, %v4846_v36  ;;  %v4215_v2 = vmax.f32 %v9448_v19, %v4149_v6  ;;  %v4742_v37 = vmax.f32 %v4213_v31, %v4670_v53  ;;  %v6818_v54 = vpop.f32.mrb[181].mxu1  ;;  %v6918_v48 = vpop.f32.mrb[181].mxu0 }
 0x446   :  { %v4152_v45 = vpop.f32.mrb[182].mxu1  ;;  %v4673_v27 = vpop.f32.mrb[182].mxu0 }
 0x447   :  { %v4798_v4 = vadd.f32 %v9139_v23, %v4742_v37  ;;  %v4216_v60 = vmax.f32 %v9449_v5, %v4152_v45  ;;  %v4743_v17 = vmax.f32 %v4214_v38, %v4673_v27  ;;  %v6919_v49 = vpop.f32.mrb[183].mxu0  ;;  %v6819_v25 = vpop.f32.mrb[183].mxu1 }
 0x449   :  { %v4847_v40 = vmax.f32 %v4798_v4, 0.0  ;;  %v4799_v33 = vadd.f32 %v9139_v23, %v4743_v17 }
 0x44b   :  { %4897 = vst.msk [vmem:[%s9436_s3 + $0x150] sm:$0xff] %vm4854_vm4, %v4847_v40  ;;  %v4848_v11 = vmax.f32 %v4799_v33, 0.0 }
 0x44c   :  { %v4157_v50 = vpop.f32.mrb[184].mxu1  ;;  %v4678_v61 = vpop.f32.mrb[184].mxu0 }
 0x44d   :  { %4898 = vst.msk [vmem:[%s9436_s3 + $0x158] sm:$0xff] %vm4854_vm4, %v4848_v11  ;;  %v4217_v29 = vmax.f32 %v9128_v8, %v4157_v50  ;;  %v4744_v9 = vmax.f32 %v4215_v2, %v4678_v61  ;;  %v6822_v62 = vpop.f32.mrb[185].mxu1  ;;  %v6922_v59 = vpop.f32.mrb[185].mxu0 }
 0x44e   :  { %v4160_v32 = vpop.f32.mrb[186].mxu1  ;;  %v4681_v43 = vpop.f32.mrb[186].mxu0 }
 0x44f   :  { %v4800_v16 = vadd.f32 %v9139_v23, %v4744_v9  ;;  %v4218_v34 = vmax.f32 %v9130_v46, %v4160_v32  ;;  %v4745_v18 = vmax.f32 %v4216_v60, %v4681_v43  ;;  %v6923_v13 = vpop.f32.mrb[187].mxu0  ;;  %v6823_v63 = vpop.f32.mrb[187].mxu1 }
 0x451   :  { %v4849_v55 = vmax.f32 %v4800_v16, 0.0  ;;  %v4801_v12 = vadd.f32 %v9139_v23, %v4745_v18 }
 0x453   :  { %4899 = vst.msk [vmem:[%s9436_s3 + $0x160] sm:$0xff] %vm4854_vm4, %v4849_v55  ;;  %v4850_v8 = vmax.f32 %v4801_v12, 0.0 }
 0x454   :  { %v4165_v58 = vpop.f32.mrb[188].mxu1  ;;  %v4686_v14 = vpop.f32.mrb[188].mxu0 }
 0x455   :  { %4900 = vst.msk [vmem:[%s9436_s3 + $0x168] sm:$0xff] %vm4854_vm4, %v4850_v8  ;;  %v4219_v46 = vmax.f32 %v9132_v47, %v4165_v58  ;;  %v4746_v52 = vmax.f32 %v4217_v29, %v4686_v14  ;;  %v6926_v57 = vpop.f32.mrb[189].mxu0  ;;  %v6826_v0 = vpop.f32.mrb[189].mxu1 }
 0x456   :  { %v4689_v39 = vpop.f32.mrb[190].mxu0  ;;  %v4168_v22 = vpop.f32.mrb[190].mxu1 }
 0x457   :  { %v4802_v42 = vadd.f32 %v9139_v23, %v4746_v52  ;;  %v4747_v28 = vmax.f32 %v4218_v34, %v4689_v39  ;;  %v6927_v26 = vpop.f32.mrb[191].mxu0  ;;  %v6827_v35 = vpop.f32.mrb[191].mxu1 }
 0x459   :  { %v4851_v44 = vmax.f32 %v4802_v42, 0.0  ;;  %v4803_v31 = vadd.f32 %v9139_v23, %v4747_v28 }
 0x45b   :  { %4901 = vst.msk [vmem:[%s9436_s3 + $0x170] sm:$0xff] %vm4854_vm4, %v4851_v44  ;;  %v4852_v15 = vmax.f32 %v4803_v31, 0.0 }
 0x45c   :  { %v4694_v47 = vpop.f32.mrb[192].mxu0 }
 0x45d   :  { %4902 = vst.msk [vmem:[%s9436_s3 + $0x178] sm:$0xff] %vm4854_vm4, %v4852_v15  ;;  %v4748_v41 = vmax.f32 %v4219_v46, %v4694_v47  ;;  %v6930_v1 = vpop.f32.mrb[193].mxu0 }
 0x45e   :  { %v4697_v21 = vpop.f32.mrb[194].mxu0 }
 0x45f   :  { %v4804_v20 = vadd.f32 %v9139_v23, %v4748_v41  ;;  %v6931_v3 = vpop.f32.mrb[195].mxu0 }
 0x461   :  { %v4853_v24 = vmax.f32 %v4804_v20, 0.0 }
 0x463   :  { %4903 = vst.msk [vmem:[%s9436_s3 + $0x180] sm:$0xff] %vm4854_vm4, %v4853_v24 }

// kernel: forward.4
= control target key start
LH: loop header
LB: loop body
LE: loop exit
PB: predicated region body
PF: predicated region fallthrough
CT: control target
= control target key end

     0   :  { %vm228_vm0 = vcmask 261120   ;;  %vm2126_vm1 = vcmask 523264   ;;  %s3848_s1 = inlined_call_operand.vmem [shape: bf16[288,64], index: 1, kind: input, shape index: {}]   ;;  %s3849_s0 = inlined_call_operand.vmem [shape: bf16[9,56,288], index: 0, kind: input, shape index: {}]   ;;  %s3850_s2 = inlined_call_operand.vmem [shape: f32[1,64], index: 2, kind: input, shape index: {}]   ;;  %s3851_s3 = inlined_call_operand.vmem [shape: f32[56,64], index: 3, kind: output, shape index: {}]  }
   0x1   :  { %v3113_v0 = vld [vmem:[%s3848_s1 + $0x40] sm:$0xff]   ;;  %v3130_v3 = vld [vmem:[%s3848_s1 + $0x48] sm:$0xff]   ;;  %v3149_v6 = vld [vmem:[%s3848_s1 + $0x50] sm:$0xff]  }
   0x2   :  { %v3118_v1 = vld [vmem:[%s3848_s1 + $0x80] sm:$0xff]   ;;  %2413 = vmatprep.subr.bf16.mxu0 %v3113_v0  ;;  %v3137_v4 = vld [vmem:[%s3848_s1 + $0x88] sm:$0xff]   ;;  %v3159_v8 = vld [vmem:[%s3848_s1 + $0x10] sm:$0xff]  }
   0x3   :  { %v3124_v2 = vld [vmem:[%s3848_s1] sm:$0xff]   ;;  %2827 = vmatprep.subr.bf16.mxu1 %v3118_v1  ;;  %v3143_v5 = vld [vmem:[%s3848_s1 + $0x8] sm:$0xff]   ;;  %v3170_v10 = vld [vmem:[%s3848_s1 + $0x58] sm:$0xff]  }
   0x4   :  { %2414 = vmatpush3.bf16.msra.mxu0 %v3124_v2  ;;  %2828 = vmatpush3.bf16.msra.mxu1 %v3118_v1  ;;  %v2942_v7 = vld [vmem:[%s3849_s0 + $0x8] ss:$12 sps:$4 sm:$0xff]   ;;  %v2944_v9 = vld [vmem:[%s3849_s0 + $0x20] ss:$12 sps:$4 sm:$0xff]   ;;  %v3178_v11 = vld [vmem:[%s3848_s1 + $0x18] sm:$0xff]  }
   0x5   :  { %2415 = vmatprep.subr.bf16.mxu0 %v3130_v3  ;;  %2829 = vmatprep.subr.bf16.mxu1 %v3137_v4  ;;  %v3185_v12 = vld [vmem:[%s3848_s1 + $0x60] sm:$0xff]   ;;  %v3199_v14 = vld [vmem:[%s3848_s1 + $0x68] sm:$0xff]   ;;  %v3211_v16 = vld [vmem:[%s3848_s1 + $0x70] sm:$0xff]  }
   0x6   :  { %2831 = vmatprep.mubr.msk.bf16.mxu1 %vm228_vm0, %v2942_v7  ;;  %v3192_v13 = vld [vmem:[%s3848_s1 + $0x20] sm:$0xff]   ;;  %v3204_v15 = vld [vmem:[%s3848_s1 + $0x28] sm:$0xff]   ;;  %v2959_v19 = vld [vmem:[%s3849_s0 + $0x50] ss:$0 sps:$4 sm:$0xff]  }
   0x7   :  { %v2957_v17 = vld [vmem:[%s3849_s0 + $0x4] ss:$12 sps:$4 sm:$0xff]   ;;  %v3236_v21 = vld [vmem:[%s3848_s1 + $0x78] sm:$0xff]   ;;  %v2955_v24 = vld [vmem:[%s3849_s0] ss:$12 sps:$4 sm:$0xff]  }
   0x8   :  { %2416 = vmatpush3.bf16.msra.mxu0 %v3143_v5  ;;  %2830 = vmatpush3.bf16.msra.mxu1 %v3137_v4  ;;  %v2958_v18 = vld [vmem:[%s3849_s0 + $0x38] ss:$12 sps:$4 sm:$0xff]   ;;  %v3229_v20 = vld [vmem:[%s3848_s1 + $0x30] sm:$0xff]   ;;  %v2960_v25 = vld [vmem:[%s3849_s0 + $0x1c] ss:$12 sps:$4 sm:$0xff]  }
   0x9   :  { %2417 = vmatprep.subr.bf16.mxu0 %v3149_v6  ;;  %2459 = vmatprep.subr.bf16.mxu1 %v3113_v0  ;;  %v2964_v22 = vld [vmem:[%s3849_s0 + $0x58] ss:$12 sps:$4 sm:$0xff]   ;;  %v2962_v26 = vld [vmem:[%s3849_s0 + $0x54] ss:$12 sps:$4 sm:$0xff]   ;;  %v2968_v29 = vld [vmem:[%s3849_s0 + $0x70] ss:$12 sps:$4 sm:$0xff]  }
   0xa   :  { %273 = vmatprep.mubr.bf16.mxu0 %v2957_v17  ;;  %v3248_v23 = vld [vmem:[%s3848_s1 + $0x38] sm:$0xff]   ;;  %v2966_v28 = vld [vmem:[%s3849_s0 + $0x34] ss:$12 sps:$4 sm:$0xff]   ;;  %v63_v30 = vld [vmem:[%s3849_s0 + $0x48] sm:$0xff] }
   0xb   :  { %2832 = vmatmul.mubr.msk.bf16.vlgmr.msra.gmra.mrb[0].mxu1 %vm228_vm0, %v2944_v9  ;;  %v2965_v27 = vld [vmem:[%s3849_s0 + $0x18] ss:$12 sps:$4 sm:$0xff]   ;;  %v2970_v31 = vld [vmem:[%s3849_s0 + $0x30] ss:$12 sps:$4 sm:$0xff]   ;;  %v2148_v33 = vcombine.high %v63_v30, %v63_v30  ;;  %v2973_v34 = vld [vmem:[%s3849_s0 + $0x88] ss:$12 sps:$4 sm:$0xff]   ;;  %v2147_v36 = vcombine.low %v63_v30, %v63_v30 }
   0xc   :  { %2418 = vmatpush3.bf16.msra.mxu0 %v3159_v8  ;;  %2460 = vmatpush3.bf16.msra.mxu1 %v3124_v2  ;;  %v2971_v32 = vld [vmem:[%s3849_s0 + $0x6c] ss:$12 sps:$4 sm:$0xff]   ;;  %v2184_v35 = vld [vmem:[%s3849_s0 + $0x9c] sm:$0xff]  ;;  %v2976_v37 = vld [vmem:[%s3849_s0 + $0x84] ss:$12 sps:$4 sm:$0xff]  }
   0xd   :  { %2419 = vmatprep.subr.bf16.mxu0 %v3170_v10  ;;  %2461 = vmatprep.subr.bf16.mxu1 %v3130_v3  ;;  %v2196_v38 = vcombine.high %v2184_v35, %v2184_v35  ;;  %v2978_v39 = vld [vmem:[%s3849_s0 + $0x5c] ss:$12 sps:$4 sm:$0xff]   ;;  %v2195_v40 = vcombine.low %v2184_v35, %v2184_v35  ;;  %v2980_v41 = vld [vmem:[%s3849_s0 + $0x74] ss:$12 sps:$4 sm:$0xff]   ;;  %v2981_v42 = vld [vmem:[%s3849_s0 + $0x8c] ss:$12 sps:$4 sm:$0xff]  }
   0xe   :  { %2835 = vmatprep.mubr.msk.bf16.mxu1 %vm228_vm0, %v2958_v18  ;;  %v2984_v43 = vld [vmem:[%s3849_s0 + $0xac] ss:$12 sps:$4 sm:$0xff]   ;;  %v2982_v44 = vld [vmem:[%s3849_s0 + $0xa8] ss:$12 sps:$4 sm:$0xff]   ;;  %v2985_v45 = vld [vmem:[%s3849_s0 + $0xa4] ss:$0 sps:$4 sm:$0xff]  }
   0xf   :  { %v2986_v46 = vld [vmem:[%s3849_s0 + $0xc4] ss:$12 sps:$4 sm:$0xff]   ;;  %v2989_v48 = vld [vmem:[%s3849_s0 + $0xc0] ss:$12 sps:$4 sm:$0xff]   ;;  %v2990_v49 = vld [vmem:[%s3849_s0 + $0xc8] ss:$12 sps:$4 sm:$0xff]  }
  0x10   :  { %2420 = vmatpush3.bf16.msra.mxu0 %v3178_v11  ;;  %2462 = vmatpush3.bf16.msra.mxu1 %v3143_v5  ;;  %v2988_v47 = vld [vmem:[%s3849_s0 + $0xb0] ss:$12 sps:$4 sm:$0xff]   ;;  %v2993_v51 = vld [vmem:[%s3849_s0 + $0xe0] ss:$12 sps:$4 sm:$0xff]   ;;  %v2994_v53 = vld [vmem:[%s3849_s0 + $0xd8] ss:$12 sps:$4 sm:$0xff]  }
  0x11   :  { %2421 = vmatprep.subr.bf16.mxu0 %v3185_v12  ;;  %2463 = vmatprep.subr.bf16.mxu1 %v3149_v6  ;;  %v2991_v50 = vld [vmem:[%s3849_s0 + $0xdc] ss:$12 sps:$4 sm:$0xff]   ;;  %v2214_v52 = vld [vmem:[%s3849_s0 + $0xf0] sm:$0xff]  ;;  %v2995_v54 = vld [vmem:[%s3849_s0 + $0xf8] ss:$0 sps:$4 sm:$0xff]  }
  0x12   :  { %v2226_v55 = vcombine.high %v2214_v52, %v2214_v52  ;;  %v2997_v56 = vld [vmem:[%s3849_s0 + $0x104] ss:$12 sps:$4 sm:$0xff]   ;;  %v2225_v57 = vcombine.low %v2214_v52, %v2214_v52  ;;  %v2999_v58 = vld [vmem:[%s3849_s0 + $0x11c] ss:$12 sps:$4 sm:$0xff]   ;;  %v3002_v59 = vld [vmem:[%s3849_s0 + $0x100] ss:$12 sps:$4 sm:$0xff]  }
  0x13   :  { %2836 = vmatmul.mubr.msk.bf16.gmra.mrb[4].mxu1 %vm228_vm0, %v2959_v19  ;;  %v3006_v60 = vld [vmem:[%s3849_s0 + $0x134] ss:$12 sps:$4 sm:$0xff]   ;;  %v3000_v61 = vld [vmem:[%s3849_s0 + $0xfc] ss:$12 sps:$4 sm:$0xff]   ;;  %v3007_v62 = vld [vmem:[%s3849_s0 + $0x14c] ss:$0 sps:$4 sm:$0xff]  }
  0x14   :  { %2422 = vmatpush3.bf16.msra.mxu0 %v3192_v13  ;;  %2464 = vmatpush3.bf16.msra.mxu1 %v3159_v8  ;;  %v3003_v63 = vld [vmem:[%s3849_s0 + $0x118] ss:$12 sps:$4 sm:$0xff]   ;;  %v3013_v7 = vld [vmem:[%s3849_s0 + $0x154] ss:$12 sps:$4 sm:$0xff]   ;;  %v3008_v17 = vld [vmem:[%s3849_s0 + $0x130] ss:$12 sps:$4 sm:$0xff]  }
  0x15   :  { %2423 = vmatprep.subr.bf16.mxu0 %v3199_v14  ;;  %2465 = vmatprep.subr.bf16.mxu1 %v3170_v10  ;;  %v3005_v9 = vld [vmem:[%s3849_s0 + $0x114] ss:$12 sps:$4 sm:$0xff]   ;;  %v2244_v18 = vld [vmem:[%s3849_s0 + $0x144] sm:$0xff]  ;;  %v3010_v19 = vld [vmem:[%s3849_s0 + $0x12c] ss:$12 sps:$4 sm:$0xff]  }
  0x16   :  { %483 = vmatprep.mubr.bf16.mxu1 %v2964_v22  ;;  %v2256_v22 = vcombine.high %v2244_v18, %v2244_v18  ;;  %v3021_v30 = vld [vmem:[%s3849_s0 + $0x184] ss:$12 sps:$4 sm:$0xff]   ;;  %v3046_v52 = vld [vmem:[%s3849_s0 + $0x214] ss:$12 sps:$4 sm:$0xff]  }
  0x18   :  { %2424 = vmatpush3.bf16.msra.mxu0 %v3204_v15  ;;  %2466 = vmatpush3.bf16.msra.mxu1 %v3178_v11 }
  0x19   :  { %2425 = vmatprep.subr.bf16.mxu0 %v3211_v16  ;;  %2467 = vmatprep.subr.bf16.mxu1 %v3185_v12 }
  0x1c   :  { %2426 = vmatpush3.bf16.msra.mxu0 %v3229_v20  ;;  %2468 = vmatpush3.bf16.msra.mxu1 %v3192_v13 }
  0x1d   :  { %2427 = vmatprep.subr.bf16.mxu0 %v3236_v21  ;;  %2469 = vmatprep.subr.bf16.mxu1 %v3199_v14 }
  0x20   :  { %2428 = vmatpush3.bf16.msra.mxu0 %v3248_v23  ;;  %2470 = vmatpush3.bf16.msra.mxu1 %v3204_v15 }
  0x21   :  { %2471 = vmatprep.subr.bf16.mxu1 %v3211_v16  ;;  %2839 = vmatprep.subr.bf16.mxu0 %v3118_v1 }
  0x23   :  { %274 = vmatmul.mubr.bf16.vlgmr.msra.gmra.mrb[0].mxu0 %v2955_v24  ;;  %v3011_v24 = vld [vmem:[%s3849_s0 + $0x150] ss:$12 sps:$4 sm:$0xff]  }
  0x24   :  { %2472 = vmatpush3.bf16.msra.mxu1 %v3229_v20  ;;  %2840 = vmatpush3.bf16.msra.mxu0 %v3118_v1 }
  0x25   :  { %2473 = vmatprep.subr.bf16.mxu1 %v3236_v21  ;;  %281 = vmatprep.mubr.bf16.mxu0 %v2960_v25  ;;  %v2255_v25 = vcombine.low %v2244_v18, %v2244_v18  ;;  %v3065_v18 = vld [vmem:[%s3849_s0 + $0x264] ss:$12 sps:$4 sm:$0xff]  }
  0x26   :  { %2841 = vmatprep.subr.bf16.mxu0 %v3137_v4 }
  0x28   :  { %2474 = vmatpush3.bf16.msra.mxu1 %v3248_v23  ;;  %2842 = vmatpush3.bf16.msra.mxu0 %v3137_v4 }
  0x29   :  { %2505 = vmatprep.subr.bf16.mxu1 %v3113_v0  ;;  %2851 = vmatprep.subr.bf16.mxu0 %v3118_v1 }
  0x2b   :  { %282 = vmatmul.mubr.bf16.gmra.mrb[4].mxu0 %v2965_v27  ;;  %484 = vmatmul.mubr.bf16.vlgmr.msra.gmra.mrb[8].mxu1 %v2962_v26  ;;  %v3016_v26 = vld [vmem:[%s3849_s0 + $0x16c] ss:$12 sps:$4 sm:$0xff]  }
  0x2c   :  { %2506 = vmatpush3.bf16.msra.mxu1 %v3124_v2  ;;  %289 = vmatprep.mubr.bf16.mxu0 %v2966_v28  ;;  %v3019_v27 = vld [vmem:[%s3849_s0 + $0x158] ss:$12 sps:$4 sm:$0xff]   ;;  %v3018_v28 = vld [vmem:[%s3849_s0 + $0x168] ss:$12 sps:$4 sm:$0xff]  }
  0x2d   :  { %2507 = vmatprep.subr.bf16.mxu1 %v3130_v3  ;;  %491 = vmatprep.mubr.bf16.mxu1 %v2968_v29  ;;  %v3020_v29 = vld [vmem:[%s3849_s0 + $0x170] ss:$12 sps:$4 sm:$0xff]  }
  0x30   :  { %2508 = vmatpush3.bf16.msra.mxu1 %v3143_v5 }
  0x31   :  { %2509 = vmatprep.subr.bf16.mxu1 %v3149_v6 }
  0x33   :  { %290 = vmatmul.mubr.bf16.gmra.mrb[8].mxu0 %v2970_v31  ;;  %492 = vmatmul.mubr.bf16.gmra.mrb[12].mxu1 %v2971_v32  ;;  %v3024_v31 = vld [vmem:[%s3849_s0 + $0x188] ss:$12 sps:$4 sm:$0xff]   ;;  %v2274_v32 = vld [vmem:[%s3849_s0 + $0x198] sm:$0xff] }
  0x34   :  { %2510 = vmatpush3.bf16.msra.mxu1 %v3159_v8  ;;  %297 = vmatprep.mubr.bf16.mxu0 %v2148_v33  ;;  %v3023_v33 = vld [vmem:[%s3849_s0 + $0x180] ss:$12 sps:$4 sm:$0xff]   ;;  %v2286_v35 = vcombine.high %v2274_v32, %v2274_v32 }
  0x35   :  { %2511 = vmatprep.subr.bf16.mxu1 %v3170_v10  ;;  %499 = vmatprep.mubr.bf16.mxu1 %v2973_v34  ;;  %v3025_v34 = vld [vmem:[%s3849_s0 + $0x1a0] ss:$0 sps:$4 sm:$0xff]  }
  0x38   :  { %2512 = vmatpush3.bf16.msra.mxu1 %v3178_v11 }
  0x39   :  { %2513 = vmatprep.subr.bf16.mxu1 %v3185_v12 }
  0x3b   :  { %298 = vmatmul.mubr.bf16.gmra.mrb[12].mxu0 %v2147_v36  ;;  %500 = vmatmul.mubr.bf16.gmra.mrb[16].mxu1 %v2976_v37  ;;  %v3028_v36 = vld [vmem:[%s3849_s0 + $0x1ac] ss:$12 sps:$4 sm:$0xff]   ;;  %v2285_v37 = vcombine.low %v2274_v32, %v2274_v32  ;;  %v3081_v32 = vld [vmem:[%s3849_s0 + $0x2d4] ss:$12 sps:$4 sm:$0xff]  }
  0x3c   :  { %2514 = vmatpush3.bf16.msra.mxu1 %v3192_v13  ;;  %507 = vmatprep.mubr.bf16.mxu1 %v2196_v38  ;;  %v3029_v38 = vld [vmem:[%s3849_s0 + $0x1c4] ss:$12 sps:$4 sm:$0xff]  }
  0x3d   :  { %2515 = vmatprep.subr.bf16.mxu1 %v3199_v14  ;;  %2843 = vmatprep.mubr.msk.bf16.mxu0 %vm228_vm0, %v2978_v39  ;;  %v3032_v39 = vld [vmem:[%s3849_s0 + $0x1a8] ss:$12 sps:$4 sm:$0xff]  }
  0x40   :  { %2516 = vmatpush3.bf16.msra.mxu1 %v3204_v15 }
  0x41   :  { %2517 = vmatprep.subr.bf16.mxu1 %v3211_v16 }
  0x43   :  { %508 = vmatmul.mubr.bf16.gmra.mrb[20].mxu1 %v2195_v40  ;;  %2844 = vmatmul.mubr.msk.bf16.vlgmr.msra.gmra.mrb[16].mxu0 %vm228_vm0, %v2980_v41  ;;  %v3038_v40 = vld [vmem:[%s3849_s0 + $0x1dc] ss:$12 sps:$4 sm:$0xff]   ;;  %v3030_v41 = vld [vmem:[%s3849_s0 + $0x1a4] ss:$12 sps:$4 sm:$0xff]  }
  0x44   :  { %2518 = vmatpush3.bf16.msra.mxu1 %v3229_v20  ;;  %2852 = vmatpush3.bf16.msra.mxu0 %v3118_v1 }
  0x45   :  { %2519 = vmatprep.subr.bf16.mxu1 %v3236_v21  ;;  %2847 = vmatprep.mubr.msk.bf16.mxu0 %vm228_vm0, %v2981_v42  ;;  %v3040_v42 = vld [vmem:[%s3849_s0 + $0x1f4] ss:$0 sps:$4 sm:$0xff]  }
  0x46   :  { %700 = vmatprep.mubr.bf16.mxu1 %v2984_v43  ;;  %2853 = vmatprep.subr.bf16.mxu0 %v3137_v4  ;;  %v3033_v43 = vld [vmem:[%s3849_s0 + $0x1c0] ss:$12 sps:$4 sm:$0xff]  }
  0x48   :  { %2520 = vmatpush3.bf16.msra.mxu1 %v3248_v23  ;;  %2854 = vmatpush3.bf16.msra.mxu0 %v3137_v4 }
  0x49   :  { %2551 = vmatprep.subr.bf16.mxu1 %v3113_v0  ;;  %2863 = vmatprep.subr.bf16.mxu0 %v3118_v1 }
  0x4b   :  { %2848 = vmatmul.mubr.msk.bf16.gmra.mrb[20].mxu0 %vm228_vm0, %v2985_v45  ;;  %701 = vmatmul.mubr.bf16.vlgmr.msra.gmra.mrb[24].mxu1 %v2982_v44  ;;  %v3044_v44 = vld [vmem:[%s3849_s0 + $0x1fc] ss:$12 sps:$4 sm:$0xff]  }
  0x4c   :  { %2552 = vmatpush3.bf16.msra.mxu1 %v3124_v2  ;;  %708 = vmatprep.mubr.bf16.mxu1 %v2986_v46  ;;  %v3035_v45 = vld [vmem:[%s3849_s0 + $0x1bc] ss:$12 sps:$4 sm:$0xff]   ;;  %v3036_v46 = vld [vmem:[%s3849_s0 + $0x1d8] ss:$12 sps:$4 sm:$0xff]  }
  0x4d   :  { %2553 = vmatprep.subr.bf16.mxu1 %v3130_v3  ;;  %2855 = vmatprep.mubr.msk.bf16.mxu0 %vm228_vm0, %v2988_v47  ;;  %v2304_v47 = vld [vmem:[%s3849_s0 + $0x1ec] sm:$0xff] }
  0x50   :  { %2554 = vmatpush3.bf16.msra.mxu1 %v3143_v5 }
  0x51   :  { %2555 = vmatprep.subr.bf16.mxu1 %v3149_v6 }
  0x53   :  { %709 = vmatmul.mubr.bf16.gmra.mrb[28].mxu1 %v2989_v48  ;;  %2856 = vmatmul.mubr.msk.bf16.vlgmr.msra.gmra.mrb[24].mxu0 %vm228_vm0, %v2990_v49  ;;  %v3039_v48 = vld [vmem:[%s3849_s0 + $0x1d4] ss:$12 sps:$4 sm:$0xff]   ;;  %v2316_v49 = vcombine.high %v2304_v47, %v2304_v47 }
  0x54   :  { %2556 = vmatpush3.bf16.msra.mxu1 %v3159_v8  ;;  %2864 = vmatpush3.bf16.msra.mxu0 %v3118_v1 }
  0x55   :  { %2557 = vmatprep.subr.bf16.mxu1 %v3170_v10  ;;  %716 = vmatprep.mubr.bf16.mxu1 %v2991_v50  ;;  %v3042_v50 = vld [vmem:[%s3849_s0 + $0x1f8] ss:$12 sps:$4 sm:$0xff]  }
  0x56   :  { %2859 = vmatprep.mubr.msk.bf16.mxu0 %vm228_vm0, %v2993_v51  ;;  %2865 = vmatprep.subr.bf16.mxu0 %v3137_v4  ;;  %v2315_v51 = vcombine.low %v2304_v47, %v2304_v47 }
  0x58   :  { %2558 = vmatpush3.bf16.msra.mxu1 %v3178_v11  ;;  %2866 = vmatpush3.bf16.msra.mxu0 %v3137_v4 }
  0x59   :  { %2559 = vmatprep.subr.bf16.mxu1 %v3185_v12  ;;  %2597 = vmatprep.subr.bf16.mxu0 %v3113_v0 }
  0x5b   :  { %717 = vmatmul.mubr.bf16.gmra.mrb[32].mxu1 %v2994_v53  ;;  %2860 = vmatmul.mubr.msk.bf16.gmra.mrb[28].mxu0 %vm228_vm0, %v2995_v54  ;;  %v3048_v53 = vld [vmem:[%s3849_s0 + $0x200] ss:$12 sps:$4 sm:$0xff]   ;;  %v3049_v54 = vld [vmem:[%s3849_s0 + $0x210] ss:$12 sps:$4 sm:$0xff]  }
  0x5c   :  { %2560 = vmatpush3.bf16.msra.mxu1 %v3192_v13  ;;  %724 = vmatprep.mubr.bf16.mxu1 %v2226_v55  ;;  %v3050_v55 = vld [vmem:[%s3849_s0 + $0x218] ss:$12 sps:$4 sm:$0xff]  }
  0x5d   :  { %2561 = vmatprep.subr.bf16.mxu1 %v3199_v14  ;;  %2867 = vmatprep.mubr.msk.bf16.mxu0 %vm228_vm0, %v2997_v56  ;;  %v3051_v56 = vld [vmem:[%s3849_s0 + $0x22c] ss:$12 sps:$4 sm:$0xff]  }
  0x60   :  { %2562 = vmatpush3.bf16.msra.mxu1 %v3204_v15 }
  0x61   :  { %2563 = vmatprep.subr.bf16.mxu1 %v3211_v16 }
  0x63   :  { %725 = vmatmul.mubr.bf16.gmra.mrb[36].mxu1 %v2225_v57  ;;  %2868 = vmatmul.mubr.msk.bf16.vlgmr.msra.gmra.mrb[32].mxu0 %vm228_vm0, %v2999_v58  ;;  %v3053_v57 = vld [vmem:[%s3849_s0 + $0x230] ss:$12 sps:$4 sm:$0xff]   ;;  %v2334_v58 = vld [vmem:[%s3849_s0 + $0x240] sm:$0xff] }
  0x64   :  { %2598 = vmatpush3.bf16.msra.mxu0 %v3124_v2  ;;  %2564 = vmatpush3.bf16.msra.mxu1 %v3229_v20 }
  0x65   :  { %2599 = vmatprep.subr.bf16.mxu0 %v3130_v3  ;;  %2565 = vmatprep.subr.bf16.mxu1 %v3236_v21 }
  0x66   :  { %917 = vmatprep.mubr.bf16.mxu1 %v3002_v59  ;;  %2871 = vmatprep.mubr.msk.bf16.mxu0 %vm228_vm0, %v3006_v60  ;;  %v3054_v59 = vld [vmem:[%s3849_s0 + $0x228] ss:$12 sps:$4 sm:$0xff]  }
  0x67   :  { %v3055_v60 = vld [vmem:[%s3849_s0 + $0x248] ss:$0 sps:$4 sm:$0xff]  }
  0x68   :  { %2600 = vmatpush3.bf16.msra.mxu0 %v3143_v5  ;;  %2566 = vmatpush3.bf16.msra.mxu1 %v3248_v23 }
  0x69   :  { %2601 = vmatprep.subr.bf16.mxu0 %v3149_v6  ;;  %2875 = vmatprep.subr.bf16.mxu1 %v3118_v1 }
  0x6b   :  { %918 = vmatmul.mubr.bf16.vlgmr.msra.gmra.mrb[40].mxu1 %v3000_v61  ;;  %2872 = vmatmul.mubr.msk.bf16.gmra.mrb[36].mxu0 %vm228_vm0, %v3007_v62  ;;  %v3057_v61 = vld [vmem:[%s3849_s0 + $0x254] ss:$12 sps:$4 sm:$0xff]   ;;  %v3059_v62 = vld [vmem:[%s3849_s0 + $0x26c] ss:$12 sps:$4 sm:$0xff]  }
  0x6c   :  { %2602 = vmatpush3.bf16.msra.mxu0 %v3159_v8  ;;  %925 = vmatprep.mubr.bf16.mxu1 %v3003_v63  ;;  %v3066_v63 = vld [vmem:[%s3849_s0 + $0x284] ss:$12 sps:$4 sm:$0xff]  }
  0x6d   :  { %2603 = vmatprep.subr.bf16.mxu0 %v3170_v10  ;;  %2876 = vmatpush3.bf16.msra.mxu1 %v3118_v1 }
  0x6e   :  { %1134 = vmatprep.mubr.bf16.mxu0 %v3013_v7  ;;  %2877 = vmatprep.subr.bf16.mxu1 %v3137_v4  ;;  %v3060_v7 = vld [vmem:[%s3849_s0 + $0x24c] ss:$12 sps:$4 sm:$0xff]  }
  0x70   :  { %2604 = vmatpush3.bf16.msra.mxu0 %v3178_v11 }
  0x71   :  { %2605 = vmatprep.subr.bf16.mxu0 %v3185_v12  ;;  %2878 = vmatpush3.bf16.msra.mxu1 %v3137_v4 }
  0x72   :  { %2887 = vmatprep.subr.bf16.mxu1 %v3118_v1 }
  0x73   :  { %926 = vmatmul.mubr.bf16.gmra.mrb[44].mxu1 %v3005_v9  ;;  %v3067_v9 = vld [vmem:[%s3849_s0 + $0x29c] ss:$0 sps:$4 sm:$0xff]  }
  0x74   :  { %2606 = vmatpush3.bf16.msra.mxu0 %v3192_v13  ;;  %933 = vmatprep.mubr.bf16.mxu1 %v3008_v17  ;;  %v3073_v17 = vld [vmem:[%s3849_s0 + $0x2a4] ss:$12 sps:$4 sm:$0xff]  }
  0x75   :  { %2607 = vmatprep.subr.bf16.mxu0 %v3199_v14 }
  0x78   :  { %2608 = vmatpush3.bf16.msra.mxu0 %v3204_v15 }
  0x79   :  { %2609 = vmatprep.subr.bf16.mxu0 %v3211_v16 }
  0x7b   :  { %934 = vmatmul.mubr.bf16.gmra.mrb[48].mxu1 %v3010_v19 }
  0x7c   :  { %2610 = vmatpush3.bf16.msra.mxu0 %v3229_v20  ;;  %941 = vmatprep.mubr.bf16.mxu1 %v2256_v22 }
  0x7d   :  { %2611 = vmatprep.subr.bf16.mxu0 %v3236_v21 }
  0x80   :  { %2612 = vmatpush3.bf16.msra.mxu0 %v3248_v23 }
  0x81   :  { %2643 = vmatprep.subr.bf16.mxu0 %v3113_v0 }
  0x83   :  { %1135 = vmatmul.mubr.bf16.vlgmr.msra.gmra.mrb[40].mxu0 %v3011_v24  ;;  %942 = vmatmul.mubr.bf16.gmra.mrb[52].mxu1 %v2255_v25  ;;  %v3070_v24 = vld [vmem:[%s3849_s0 + $0x27c] ss:$12 sps:$4 sm:$0xff]  }
  0x84   :  { %2644 = vmatpush3.bf16.msra.mxu0 %v3124_v2  ;;  %1142 = vmatprep.mubr.bf16.mxu0 %v3016_v26 }
  0x85   :  { %2645 = vmatprep.subr.bf16.mxu0 %v3130_v3  ;;  %2879 = vmatprep.mubr.msk.bf16.mxu1 %vm228_vm0, %v3019_v27 }
  0x88   :  { %2646 = vmatpush3.bf16.msra.mxu0 %v3143_v5 }
  0x89   :  { %2647 = vmatprep.subr.bf16.mxu0 %v3149_v6 }
  0x8b   :  { %1143 = vmatmul.mubr.bf16.gmra.mrb[44].mxu0 %v3018_v28  ;;  %2880 = vmatmul.mubr.msk.bf16.vlgmr.msra.gmra.mrb[56].mxu1 %vm228_vm0, %v3020_v29  ;;  %v3080_v29 = vld [vmem:[%s3849_s0 + $0x2c0] ss:$12 sps:$4 sm:$0xff]  }
  0x8c   :  { %2648 = vmatpush3.bf16.msra.mxu0 %v3159_v8  ;;  %1150 = vmatprep.mubr.bf16.mxu0 %v3021_v30 }
  0x8d   :  { %2649 = vmatprep.subr.bf16.mxu0 %v3170_v10  ;;  %2883 = vmatprep.mubr.msk.bf16.mxu1 %vm228_vm0, %v3024_v31 }
  0x8e   :  { %2888 = vmatpush3.bf16.msra.mxu1 %v3118_v1 }
  0x8f   :  { %2889 = vmatprep.subr.bf16.mxu1 %v3137_v4 }
  0x90   :  { %2650 = vmatpush3.bf16.msra.mxu0 %v3178_v11 }
  0x91   :  { %2651 = vmatprep.subr.bf16.mxu0 %v3185_v12 }
  0x92   :  { %2890 = vmatpush3.bf16.msra.mxu1 %v3137_v4 }
  0x93   :  { %1151 = vmatmul.mubr.bf16.gmra.mrb[48].mxu0 %v3023_v33  ;;  %2884 = vmatmul.mubr.msk.bf16.gmra.mrb[60].mxu1 %vm228_vm0, %v3025_v34  ;;  %v3084_v33 = vld [vmem:[%s3849_s0 + $0x2d8] ss:$12 sps:$4 sm:$0xff]  }
  0x94   :  { %2652 = vmatpush3.bf16.msra.mxu0 %v3192_v13  ;;  %1158 = vmatprep.mubr.bf16.mxu0 %v2286_v35 }
  0x95   :  { %2653 = vmatprep.subr.bf16.mxu0 %v3199_v14  ;;  %2891 = vmatprep.mubr.msk.bf16.mxu1 %vm228_vm0, %v3028_v36 }
  0x96   :  { %2689 = vmatprep.subr.bf16.mxu1 %v3113_v0 }
  0x98   :  { %2654 = vmatpush3.bf16.msra.mxu0 %v3204_v15 }
  0x99   :  { %2655 = vmatprep.subr.bf16.mxu0 %v3211_v16 }
  0x9b   :  { %1159 = vmatmul.mubr.bf16.gmra.mrb[52].mxu0 %v2285_v37  ;;  %2892 = vmatmul.mubr.msk.bf16.vlgmr.msra.gmra.mrb[64].mxu1 %vm228_vm0, %v3029_v38  ;;  %v2394_v38 = vld [vmem:[%s3849_s0 + $0x2e8] sm:$0xff] }
  0x9c   :  { %2656 = vmatpush3.bf16.msra.mxu0 %v3229_v20  ;;  %2690 = vmatpush3.bf16.msra.mxu1 %v3124_v2 }
  0x9d   :  { %2657 = vmatprep.subr.bf16.mxu0 %v3236_v21  ;;  %2691 = vmatprep.subr.bf16.mxu1 %v3130_v3 }
  0x9e   :  { %1351 = vmatprep.mubr.bf16.mxu0 %v3032_v39  ;;  %2895 = vmatprep.mubr.msk.bf16.mxu1 %vm228_vm0, %v3038_v40 }
  0xa0   :  { %2658 = vmatpush3.bf16.msra.mxu0 %v3248_v23  ;;  %2692 = vmatpush3.bf16.msra.mxu1 %v3143_v5 }
  0xa1   :  { %2693 = vmatprep.subr.bf16.mxu1 %v3149_v6  ;;  %2899 = vmatprep.subr.bf16.mxu0 %v3118_v1 }
  0xa3   :  { %1352 = vmatmul.mubr.bf16.vlgmr.msra.gmra.mrb[56].mxu0 %v3030_v41  ;;  %2896 = vmatmul.mubr.msk.bf16.gmra.mrb[68].mxu1 %vm228_vm0, %v3040_v42  ;;  %v3083_v42 = vld [vmem:[%s3849_s0 + $0x2d0] ss:$12 sps:$4 sm:$0xff]  }
  0xa4   :  { %2694 = vmatpush3.bf16.msra.mxu1 %v3159_v8  ;;  %2900 = vmatpush3.bf16.msra.mxu0 %v3118_v1 }
  0xa5   :  { %2695 = vmatprep.subr.bf16.mxu1 %v3170_v10  ;;  %1359 = vmatprep.mubr.bf16.mxu0 %v3033_v43 }
  0xa6   :  { %2901 = vmatprep.subr.bf16.mxu0 %v3137_v4  ;;  %1568 = vmatprep.mubr.bf16.mxu1 %v3044_v44  ;;  %v3085_v44 = vld [vmem:[%s3849_s0 + $0x2f0] ss:$0 sps:$4 sm:$0xff]  }
  0xa8   :  { %2696 = vmatpush3.bf16.msra.mxu1 %v3178_v11  ;;  %2902 = vmatpush3.bf16.msra.mxu0 %v3137_v4 }
  0xa9   :  { %2697 = vmatprep.subr.bf16.mxu1 %v3185_v12  ;;  %2911 = vmatprep.subr.bf16.mxu0 %v3118_v1 }
  0xab   :  { %1360 = vmatmul.mubr.bf16.gmra.mrb[60].mxu0 %v3035_v45 }
  0xac   :  { %2698 = vmatpush3.bf16.msra.mxu1 %v3192_v13  ;;  %1367 = vmatprep.mubr.bf16.mxu0 %v3036_v46 }
  0xad   :  { %2699 = vmatprep.subr.bf16.mxu1 %v3199_v14 }
  0xb0   :  { %2700 = vmatpush3.bf16.msra.mxu1 %v3204_v15 }
  0xb1   :  { %2701 = vmatprep.subr.bf16.mxu1 %v3211_v16 }
  0xb3   :  { %1368 = vmatmul.mubr.bf16.gmra.mrb[64].mxu0 %v3039_v48 }
  0xb4   :  { %2702 = vmatpush3.bf16.msra.mxu1 %v3229_v20  ;;  %1375 = vmatprep.mubr.bf16.mxu0 %v2316_v49  ;;  %v2406_v49 = vcombine.high %v2394_v38, %v2394_v38 }
  0xb5   :  { %2703 = vmatprep.subr.bf16.mxu1 %v3236_v21 }
  0xb8   :  { %2704 = vmatpush3.bf16.msra.mxu1 %v3248_v23 }
  0xb9   :  { %2735 = vmatprep.subr.bf16.mxu1 %v3113_v0 }
  0xbb   :  { %1376 = vmatmul.mubr.bf16.gmra.mrb[68].mxu0 %v2315_v51  ;;  %1569 = vmatmul.mubr.bf16.vlgmr.msra.gmra.mrb[72].mxu1 %v3042_v50 }
  0xbc   :  { %2736 = vmatpush3.bf16.msra.mxu1 %v3124_v2  ;;  %1576 = vmatprep.mubr.bf16.mxu1 %v3046_v52 }
  0xbd   :  { %2737 = vmatprep.subr.bf16.mxu1 %v3130_v3  ;;  %2903 = vmatprep.mubr.msk.bf16.mxu0 %vm228_vm0, %v3048_v53 }
  0xc0   :  { %2738 = vmatpush3.bf16.msra.mxu1 %v3143_v5 }
  0xc1   :  { %2739 = vmatprep.subr.bf16.mxu1 %v3149_v6 }
  0xc3   :  { %1577 = vmatmul.mubr.bf16.gmra.mrb[76].mxu1 %v3049_v54  ;;  %2904 = vmatmul.mubr.msk.bf16.vlgmr.msra.gmra.mrb[72].mxu0 %vm228_vm0, %v3050_v55 }
  0xc4   :  { %2740 = vmatpush3.bf16.msra.mxu1 %v3159_v8  ;;  %2912 = vmatpush3.bf16.msra.mxu0 %v3118_v1  ;;  %v2346_v1 = vcombine.high %v2334_v58, %v2334_v58 }
  0xc5   :  { %2741 = vmatprep.subr.bf16.mxu1 %v3170_v10  ;;  %1584 = vmatprep.mubr.bf16.mxu1 %v3051_v56 }
  0xc6   :  { %2907 = vmatprep.mubr.msk.bf16.mxu0 %vm228_vm0, %v3053_v57  ;;  %2913 = vmatprep.subr.bf16.mxu0 %v3137_v4 }
  0xc8   :  { %2742 = vmatpush3.bf16.msra.mxu1 %v3178_v11  ;;  %2914 = vmatpush3.bf16.msra.mxu0 %v3137_v4  ;;  %v2345_v4 = vcombine.low %v2334_v58, %v2334_v58 }
  0xc9   :  { %2743 = vmatprep.subr.bf16.mxu1 %v3185_v12  ;;  %2781 = vmatprep.subr.bf16.mxu0 %v3113_v0  ;;  %v3062_v0 = vld [vmem:[%s3849_s0 + $0x250] ss:$12 sps:$4 sm:$0xff]  }
  0xcb   :  { %1585 = vmatmul.mubr.bf16.gmra.mrb[80].mxu1 %v3054_v59  ;;  %2908 = vmatmul.mubr.msk.bf16.gmra.mrb[76].mxu0 %vm228_vm0, %v3055_v60  ;;  %v2405_v59 = vcombine.low %v2394_v38, %v2394_v38 }
  0xcc   :  { %2744 = vmatpush3.bf16.msra.mxu1 %v3192_v13  ;;  %1592 = vmatprep.mubr.bf16.mxu1 %v2346_v1 }
  0xcd   :  { %2745 = vmatprep.subr.bf16.mxu1 %v3199_v14  ;;  %2915 = vmatprep.mubr.msk.bf16.mxu0 %vm228_vm0, %v3057_v61 }
  0xd0   :  { %2746 = vmatpush3.bf16.msra.mxu1 %v3204_v15 }
  0xd1   :  { %2747 = vmatprep.subr.bf16.mxu1 %v3211_v16 }
  0xd3   :  { %1593 = vmatmul.mubr.bf16.gmra.mrb[84].mxu1 %v2345_v4  ;;  %2916 = vmatmul.mubr.msk.bf16.vlgmr.msra.gmra.mrb[80].mxu0 %vm228_vm0, %v3059_v62 }
  0xd4   :  { %2782 = vmatpush3.bf16.msra.mxu0 %v3124_v2  ;;  %2748 = vmatpush3.bf16.msra.mxu1 %v3229_v20  ;;  %v3063_v2 = vld [vmem:[%s3849_s0 + $0x268] ss:$12 sps:$4 sm:$0xff]  }
  0xd5   :  { %2783 = vmatprep.subr.bf16.mxu0 %v3130_v3  ;;  %2749 = vmatprep.subr.bf16.mxu1 %v3236_v21  ;;  %v3088_v3 = vld [vmem:[%s3848_s1 + $0x80] sm:$0xff]  }
  0xd6   :  { %1785 = vmatprep.mubr.bf16.mxu1 %v3062_v0  ;;  %2919 = vmatprep.mubr.msk.bf16.mxu0 %vm228_vm0, %v3066_v63 }
  0xd8   :  { %2784 = vmatpush3.bf16.msra.mxu0 %v3143_v5  ;;  %2750 = vmatpush3.bf16.msra.mxu1 %v3248_v23 }
  0xd9   :  { %2785 = vmatprep.subr.bf16.mxu0 %v3149_v6  ;;  %2923 = vmatprep.subr.bf16.mxu1 %v3088_v3  ;;  %v3089_v6 = vld [vmem:[%s3848_s1 + $0x88] sm:$0xff]  }
  0xdb   :  { %1786 = vmatmul.mubr.bf16.vlgmr.msra.gmra.mrb[88].mxu1 %v3060_v7  ;;  %2920 = vmatmul.mubr.msk.bf16.gmra.mrb[84].mxu0 %vm228_vm0, %v3067_v9 }
  0xdc   :  { %2786 = vmatpush3.bf16.msra.mxu0 %v3159_v8  ;;  %1793 = vmatprep.mubr.bf16.mxu1 %v3063_v2 }
  0xdd   :  { %2787 = vmatprep.subr.bf16.mxu0 %v3170_v10  ;;  %2924 = vmatpush3.bf16.msra.mxu1 %v3088_v3  ;;  %v3068_v10 = vld [vmem:[%s3849_s0 + $0x280] ss:$12 sps:$4 sm:$0xff]  }
  0xde   :  { %v3657_v5 = vpop.f32.mrb[0].mxu1  ;;  %2002 = vmatprep.mubr.bf16.mxu0 %v3073_v17  ;;  %2925 = vmatprep.subr.bf16.mxu1 %v3089_v6 }
  0xdf   :  { %v339_v19 = vpop.f32.mrb[1].mxu1 }
  0xe0   :  { %2788 = vmatpush3.bf16.msra.mxu0 %v3178_v11  ;;  %v3666_v8 = vpop.f32.mrb[2].mxu1  ;;  %v2364_v11 = vld [vmem:[%s3849_s0 + $0x294] sm:$0xff] }
  0xe1   :  { %2789 = vmatprep.subr.bf16.mxu0 %v3185_v12  ;;  %v342_v22 = vpop.f32.mrb[3].mxu1  ;;  %2926 = vmatpush3.bf16.msra.mxu1 %v3089_v6  ;;  %v2376_v25 = vcombine.high %v2364_v11, %v2364_v11 }
  0xe3   :  { %1794 = vmatmul.mubr.bf16.gmra.mrb[92].mxu1 %v3065_v18 }
  0xe4   :  { %2790 = vmatpush3.bf16.msra.mxu0 %v3192_v13  ;;  %1801 = vmatprep.mubr.bf16.mxu1 %v3068_v10  ;;  %v3071_v13 = vld [vmem:[%s3849_s0 + $0x2a0] ss:$12 sps:$4 sm:$0xff]  }
  0xe5   :  { %2791 = vmatprep.subr.bf16.mxu0 %v3199_v14  ;;  %v2375_v14 = vcombine.low %v2364_v11, %v2364_v11 }
  0xe6   :  { %v3684_v12 = vpop.f32.mrb[4].mxu1 }
  0xe7   :  { %v355_v26 = vpop.f32.mrb[5].mxu1 }
  0xe8   :  { %2792 = vmatpush3.bf16.msra.mxu0 %v3204_v15  ;;  %v3076_v15 = vld [vmem:[%s3849_s0 + $0x2bc] ss:$12 sps:$4 sm:$0xff]  }
  0xe9   :  { %2793 = vmatprep.subr.bf16.mxu0 %v3211_v16  ;;  %v3079_v16 = vld [vmem:[%s3849_s0 + $0x2a8] ss:$12 sps:$4 sm:$0xff]  }
  0xeb   :  { %1802 = vmatmul.mubr.bf16.gmra.mrb[96].mxu1 %v3070_v24 }
  0xec   :  { %2794 = vmatpush3.bf16.msra.mxu0 %v3229_v20  ;;  %1809 = vmatprep.mubr.bf16.mxu1 %v2376_v25  ;;  %v2838_v20 = vpop.f32.mrb[6].mxu1 }
  0xed   :  { %2795 = vmatprep.subr.bf16.mxu0 %v3236_v21  ;;  %v358_v21 = vpop.f32.mrb[7].mxu1 }
  0xf0   :  { %2796 = vmatpush3.bf16.msra.mxu0 %v3248_v23  ;;  %v3078_v23 = vld [vmem:[%s3849_s0 + $0x2b8] ss:$12 sps:$4 sm:$0xff]  }
  0xf3   :  { %2003 = vmatmul.mubr.bf16.vlgmr.msra.gmra.mrb[88].mxu0 %v3071_v13  ;;  %1810 = vmatmul.mubr.bf16.gmra.mrb[100].mxu1 %v2375_v14 }
  0xf4   :  { %2010 = vmatprep.mubr.bf16.mxu0 %v3076_v15  ;;  %2927 = vmatprep.mubr.msk.bf16.mxu1 %vm228_vm0, %v3079_v16 }
  0xf6   :  { %v2429_v27 = vpop.f32.mrb[0].mxu0 }
  0xf7   :  { %v2430_v28 = vpop.f32.mrb[1].mxu0 }
  0xf8   :  { %v2431_v30 = vadd.f32 %v2430_v28, %v2429_v27  ;;  %v2432_v31 = vpop.f32.mrb[2].mxu0 }
  0xf9   :  { %v2433_v34 = vpop.f32.mrb[3].mxu0 }
  0xfa   :  { %v3709_v35 = vadd.f32 %v2431_v30, %v339_v19  ;;  %v2434_v36 = vadd.f32 %v2433_v34, %v2432_v31 }
  0xfb   :  { %2011 = vmatmul.mubr.bf16.gmra.mrb[92].mxu0 %v3078_v23  ;;  %2928 = vmatmul.mubr.msk.bf16.vlgmr.msra.gmra.mrb[104].mxu1 %vm228_vm0, %v3080_v29 }
  0xfc   :  { %v3712_v37 = vadd.f32 %v2434_v36, %v342_v22  ;;  %2018 = vmatprep.mubr.bf16.mxu0 %v3081_v32  ;;  %2931 = vmatprep.mubr.msk.bf16.mxu1 %vm228_vm0, %v3084_v33 }
  0xfe   :  { %v2435_v39 = vpop.f32.mrb[4].mxu0  ;;  %v2475_v40 = vpop.f32.mrb[8].mxu1 }
  0xff   :  { %v2436_v41 = vpop.f32.mrb[5].mxu0  ;;  %v2476_v43 = vpop.f32.mrb[9].mxu1 }
 0x100   :  { %v2437_v45 = vadd.f32 %v2436_v41, %v2435_v39  ;;  %v2438_v46 = vpop.f32.mrb[6].mxu0  ;;  %v2477_v47 = vadd.f32 %v2476_v43, %v2475_v40  ;;  %v2478_v48 = vpop.f32.mrb[10].mxu1 }
 0x101   :  { %v2439_v50 = vpop.f32.mrb[7].mxu0  ;;  %v2479_v51 = vpop.f32.mrb[11].mxu1 }
 0x102   :  { %v3725_v52 = vadd.f32 %v3657_v5, %v2437_v45  ;;  %v2440_v53 = vadd.f32 %v2439_v50, %v2438_v46  ;;  %v2480_v54 = vadd.f32 %v2479_v51, %v2478_v48 }
 0x103   :  { %2019 = vmatmul.mubr.bf16.gmra.mrb[96].mxu0 %v3083_v42  ;;  %2932 = vmatmul.mubr.msk.bf16.gmra.mrb[108].mxu1 %vm228_vm0, %v3085_v44 }
 0x104   :  { %v3729_v55 = vadd.f32 %v3666_v8, %v2440_v53  ;;  %2026 = vmatprep.mubr.bf16.mxu0 %v2406_v49 }
 0x106   :  { %v2441_v56 = vpop.f32.mrb[8].mxu0  ;;  %v2481_v57 = vpop.f32.mrb[12].mxu1 }
 0x107   :  { %v2442_v58 = vpop.f32.mrb[9].mxu0  ;;  %v2482_v60 = vpop.f32.mrb[13].mxu1 }
 0x108   :  { %v2443_v1 = vadd.f32 %v2442_v58, %v2441_v56  ;;  %v2444_v61 = vpop.f32.mrb[10].mxu0  ;;  %v2483_v4 = vadd.f32 %v2482_v60, %v2481_v57  ;;  %v2484_v62 = vpop.f32.mrb[14].mxu1 }
 0x109   :  { %v2445_v0 = vpop.f32.mrb[11].mxu0  ;;  %v2485_v63 = vpop.f32.mrb[15].mxu1 }
 0x10a   :  { %v3731_v7 = vadd.f32 %v2443_v1, %v355_v26  ;;  %v2446_v9 = vadd.f32 %v2445_v0, %v2444_v61  ;;  %v2486_v2 = vadd.f32 %v2485_v63, %v2484_v62 }
 0x10b   :  { %2027 = vmatmul.mubr.bf16.gmra.mrb[100].mxu0 %v2405_v59 }
 0x10c   :  { %v3733_v3 = vadd.f32 %v2446_v9, %v358_v21 }
 0x10e   :  { %v2447_v17 = vpop.f32.mrb[12].mxu0  ;;  %v2487_v5 = vpop.f32.mrb[16].mxu1 }
 0x10f   :  { %v2448_v6 = vpop.f32.mrb[13].mxu0  ;;  %v2488_v18 = vpop.f32.mrb[17].mxu1 }
 0x110   :  { %v2449_v19 = vadd.f32 %v2448_v6, %v2447_v17  ;;  %v2450_v8 = vpop.f32.mrb[14].mxu0  ;;  %v2489_v10 = vadd.f32 %v2488_v18, %v2487_v5  ;;  %v2490_v22 = vpop.f32.mrb[18].mxu1 }
 0x111   :  { %v2451_v11 = vpop.f32.mrb[15].mxu0  ;;  %v2491_v24 = vpop.f32.mrb[19].mxu1 }
 0x112   :  { %v3736_v25 = vadd.f32 %v3684_v12, %v2449_v19  ;;  %v2492_v13 = vadd.f32 %v2491_v24, %v2490_v22 }
 0x116   :  { %v2845_v14 = vpop.f32.mrb[16].mxu0  ;;  %v2493_v26 = vpop.f32.mrb[20].mxu1 }
 0x117   :  { %v558_v15 = vadd.f32 %v2845_v14, %v2483_v4  ;;  %v549_v16 = vpop.f32.mrb[17].mxu0  ;;  %v2494_v20 = vpop.f32.mrb[21].mxu1 }
 0x118   :  { %v550_v21 = vadd.f32 %v2477_v47, %v549_v16  ;;  %v2846_v27 = vpop.f32.mrb[18].mxu0  ;;  %v2495_v28 = vadd.f32 %v2494_v20, %v2493_v26  ;;  %v2496_v23 = vpop.f32.mrb[22].mxu1 }
 0x119   :  { %v581_v29 = vmax.f32 %v3725_v52, %v558_v15  ;;  %v561_v30 = vadd.f32 %v2846_v27, %v2486_v2  ;;  %v552_v31 = vpop.f32.mrb[19].mxu0  ;;  %v2497_v32 = vpop.f32.mrb[23].mxu1 }
 0x11a   :  { %v579_v33 = vmax.f32 %v3709_v35, %v550_v21  ;;  %v553_v34 = vadd.f32 %v2480_v54, %v552_v31 }
 0x11b   :  { %v582_v12 = vmax.f32 %v3729_v55, %v561_v30 }
 0x11c   :  { %v580_v36 = vmax.f32 %v3712_v37, %v553_v34 }
 0x11e   :  { %v2849_v38 = vpop.f32.mrb[20].mxu0  ;;  %v2521_v39 = vpop.f32.mrb[24].mxu1 }
 0x11f   :  { %v574_v40 = vadd.f32 %v2849_v38, %v2495_v28  ;;  %v565_v41 = vpop.f32.mrb[21].mxu0  ;;  %v2522_v42 = vpop.f32.mrb[25].mxu1 }
 0x120   :  { %v566_v43 = vadd.f32 %v2489_v10, %v565_v41  ;;  %v2850_v44 = vpop.f32.mrb[22].mxu0  ;;  %v2523_v45 = vadd.f32 %v2522_v42, %v2521_v39  ;;  %v2524_v46 = vpop.f32.mrb[26].mxu1 }
 0x121   :  { %v585_v47 = vmax.f32 %v3736_v25, %v574_v40  ;;  %v568_v48 = vpop.f32.mrb[23].mxu0  ;;  %v2525_v49 = vpop.f32.mrb[27].mxu1 }
 0x122   :  { %v583_v35 = vmax.f32 %v3731_v7, %v566_v43  ;;  %v569_v50 = vadd.f32 %v2492_v13, %v568_v48  ;;  %v2526_v51 = vadd.f32 %v2525_v49, %v2524_v46 }
 0x124   :  { %v584_v52 = vmax.f32 %v3733_v3, %v569_v50 }
 0x126   :  { %v2527_v37 = vpop.f32.mrb[28].mxu1  ;;  %v2857_v53 = vpop.f32.mrb[24].mxu0 }
 0x127   :  { %v2528_v54 = vpop.f32.mrb[29].mxu1  ;;  %v766_v55 = vpop.f32.mrb[25].mxu0 }
 0x128   :  { %v2529_v56 = vadd.f32 %v2528_v54, %v2527_v37  ;;  %v767_v57 = vadd.f32 %v2523_v45, %v766_v55  ;;  %v2530_v58 = vpop.f32.mrb[30].mxu1  ;;  %v2858_v59 = vpop.f32.mrb[26].mxu0 }
 0x129   :  { %v2531_v60 = vpop.f32.mrb[31].mxu1  ;;  %v769_v1 = vpop.f32.mrb[27].mxu0 }
 0x12a   :  { %v775_v61 = vadd.f32 %v2857_v53, %v2529_v56  ;;  %v3745_v4 = vmax.f32 %v579_v33, %v767_v57  ;;  %v2532_v62 = vadd.f32 %v2531_v60, %v2530_v58  ;;  %v770_v0 = vadd.f32 %v2526_v51, %v769_v1 }
 0x12c   :  { %v3747_v63 = vmax.f32 %v581_v29, %v775_v61  ;;  %v778_v7 = vadd.f32 %v2858_v59, %v2532_v62  ;;  %v3749_v9 = vmax.f32 %v580_v36, %v770_v0 }
 0x12e   :  { %v3751_v2 = vmax.f32 %v582_v12, %v778_v7  ;;  %v2533_v3 = vpop.f32.mrb[32].mxu1  ;;  %v2861_v17 = vpop.f32.mrb[28].mxu0 }
 0x12f   :  { %v2534_v5 = vpop.f32.mrb[33].mxu1  ;;  %v782_v6 = vpop.f32.mrb[29].mxu0 }
 0x130   :  { %v2535_v18 = vadd.f32 %v2534_v5, %v2533_v3  ;;  %v2536_v19 = vpop.f32.mrb[34].mxu1  ;;  %v2862_v8 = vpop.f32.mrb[30].mxu0 }
 0x131   :  { %v2537_v10 = vpop.f32.mrb[35].mxu1  ;;  %v785_v22 = vpop.f32.mrb[31].mxu0 }
 0x132   :  { %v783_v11 = vadd.f32 %v2535_v18, %v782_v6  ;;  %v2538_v24 = vadd.f32 %v2537_v10, %v2536_v19 }
 0x134   :  { %v3753_v25 = vmax.f32 %v583_v35, %v783_v11  ;;  %v786_v13 = vadd.f32 %v2538_v24, %v785_v22 }
 0x136   :  { %v3755_v14 = vmax.f32 %v584_v52, %v786_v13  ;;  %v2539_v26 = vpop.f32.mrb[36].mxu1  ;;  %v2869_v15 = vpop.f32.mrb[32].mxu0 }
 0x137   :  { %v2540_v16 = vpop.f32.mrb[37].mxu1  ;;  %v983_v20 = vpop.f32.mrb[33].mxu0 }
 0x138   :  { %v2541_v21 = vadd.f32 %v2540_v16, %v2539_v26  ;;  %v2870_v27 = vpop.f32.mrb[34].mxu0  ;;  %v2542_v28 = vpop.f32.mrb[38].mxu1 }
 0x139   :  { %v986_v23 = vpop.f32.mrb[35].mxu0  ;;  %v2543_v29 = vpop.f32.mrb[39].mxu1 }
 0x13a   :  { %v791_v30 = vadd.f32 %v2861_v17, %v2541_v21 }
 0x13c   :  { %v3757_v31 = vmax.f32 %v585_v47, %v791_v30 }
 0x13e   :  { %v2567_v32 = vpop.f32.mrb[40].mxu1  ;;  %v2873_v33 = vpop.f32.mrb[36].mxu0 }
 0x13f   :  { %v2568_v34 = vpop.f32.mrb[41].mxu1  ;;  %v999_v12 = vpop.f32.mrb[37].mxu0 }
 0x140   :  { %v2569_v36 = vadd.f32 %v2568_v34, %v2567_v32  ;;  %v2570_v38 = vpop.f32.mrb[42].mxu1  ;;  %v2874_v39 = vpop.f32.mrb[38].mxu0 }
 0x141   :  { %v2571_v40 = vpop.f32.mrb[43].mxu1  ;;  %v1002_v41 = vpop.f32.mrb[39].mxu0 }
 0x142   :  { %v984_v42 = vadd.f32 %v2569_v36, %v983_v20  ;;  %v2572_v43 = vadd.f32 %v2571_v40, %v2570_v38 }
 0x144   :  { %v987_v44 = vadd.f32 %v2572_v43, %v986_v23  ;;  %v1013_v45 = vmax.f32 %v3745_v4, %v984_v42 }
 0x146   :  { %v2573_v46 = vpop.f32.mrb[44].mxu1  ;;  %v1014_v48 = vmax.f32 %v3749_v9, %v987_v44 }
 0x147   :  { %v2574_v49 = vpop.f32.mrb[45].mxu1 }
 0x148   :  { %v2575_v47 = vadd.f32 %v2574_v49, %v2573_v46  ;;  %v2576_v35 = vpop.f32.mrb[46].mxu1 }
 0x149   :  { %v2577_v50 = vpop.f32.mrb[47].mxu1 }
 0x14a   :  { %v992_v51 = vadd.f32 %v2869_v15, %v2575_v47  ;;  %v2578_v52 = vadd.f32 %v2577_v50, %v2576_v35 }
 0x14c   :  { %v995_v37 = vadd.f32 %v2870_v27, %v2578_v52  ;;  %v1015_v53 = vmax.f32 %v3747_v63, %v992_v51 }
 0x14e   :  { %v2579_v54 = vpop.f32.mrb[48].mxu1  ;;  %v1016_v55 = vmax.f32 %v3751_v2, %v995_v37 }
 0x14f   :  { %v2580_v56 = vpop.f32.mrb[49].mxu1 }
 0x150   :  { %v2581_v57 = vadd.f32 %v2580_v56, %v2579_v54  ;;  %v2582_v58 = vpop.f32.mrb[50].mxu1 }
 0x151   :  { %v2583_v59 = vpop.f32.mrb[51].mxu1 }
 0x152   :  { %v1000_v60 = vadd.f32 %v2581_v57, %v999_v12  ;;  %v2584_v1 = vadd.f32 %v2583_v59, %v2582_v58 }
 0x154   :  { %v1003_v61 = vadd.f32 %v2584_v1, %v1002_v41  ;;  %v1017_v4 = vmax.f32 %v3753_v25, %v1000_v60 }
 0x156   :  { %v2613_v62 = vpop.f32.mrb[40].mxu0  ;;  %v2585_v0 = vpop.f32.mrb[52].mxu1  ;;  %v1018_v7 = vmax.f32 %v3755_v14, %v1003_v61 }
 0x157   :  { %v2614_v9 = vpop.f32.mrb[41].mxu0  ;;  %v2586_v3 = vpop.f32.mrb[53].mxu1 }
 0x158   :  { %v2615_v17 = vadd.f32 %v2614_v9, %v2613_v62  ;;  %v2587_v63 = vadd.f32 %v2586_v3, %v2585_v0  ;;  %v2616_v5 = vpop.f32.mrb[42].mxu0  ;;  %v2588_v6 = vpop.f32.mrb[54].mxu1 }
 0x159   :  { %v2617_v2 = vpop.f32.mrb[43].mxu0  ;;  %v2589_v18 = vpop.f32.mrb[55].mxu1 }
 0x15a   :  { %v1008_v19 = vadd.f32 %v2873_v33, %v2587_v63  ;;  %v2618_v8 = vadd.f32 %v2617_v2, %v2616_v5 }
 0x15c   :  { %v1019_v10 = vmax.f32 %v3757_v31, %v1008_v19 }
 0x15e   :  { %v2619_v22 = vpop.f32.mrb[44].mxu0  ;;  %v2881_v11 = vpop.f32.mrb[56].mxu1 }
 0x15f   :  { %v2620_v24 = vpop.f32.mrb[45].mxu0  ;;  %v1200_v25 = vpop.f32.mrb[57].mxu1 }
 0x160   :  { %v2621_v13 = vadd.f32 %v2620_v24, %v2619_v22  ;;  %v2622_v26 = vpop.f32.mrb[46].mxu0  ;;  %v1201_v15 = vadd.f32 %v2615_v17, %v1200_v25  ;;  %v2882_v14 = vpop.f32.mrb[58].mxu1 }
 0x161   :  { %v2623_v16 = vpop.f32.mrb[47].mxu0  ;;  %v1203_v20 = vpop.f32.mrb[59].mxu1 }
 0x162   :  { %v1209_v21 = vadd.f32 %v2881_v11, %v2621_v13  ;;  %v3766_v27 = vmax.f32 %v1013_v45, %v1201_v15  ;;  %v2624_v28 = vadd.f32 %v2623_v16, %v2622_v26  ;;  %v1204_v23 = vadd.f32 %v2618_v8, %v1203_v20 }
 0x164   :  { %v3768_v29 = vmax.f32 %v1015_v53, %v1209_v21  ;;  %v1212_v30 = vadd.f32 %v2882_v14, %v2624_v28  ;;  %v3770_v32 = vmax.f32 %v1014_v48, %v1204_v23 }
 0x166   :  { %v3772_v31 = vmax.f32 %v1016_v55, %v1212_v30  ;;  %v2625_v33 = vpop.f32.mrb[48].mxu0  ;;  %v2885_v34 = vpop.f32.mrb[60].mxu1 }
 0x167   :  { %v2626_v12 = vpop.f32.mrb[49].mxu0  ;;  %v1216_v36 = vpop.f32.mrb[61].mxu1 }
 0x168   :  { %v2627_v38 = vadd.f32 %v2626_v12, %v2625_v33  ;;  %v2628_v39 = vpop.f32.mrb[50].mxu0  ;;  %v2886_v40 = vpop.f32.mrb[62].mxu1 }
 0x169   :  { %v2629_v41 = vpop.f32.mrb[51].mxu0  ;;  %v1219_v42 = vpop.f32.mrb[63].mxu1 }
 0x16a   :  { %v2630_v43 = vadd.f32 %v2629_v41, %v2628_v39  ;;  %v1217_v44 = vadd.f32 %v2627_v38, %v1216_v36 }
 0x16c   :  { %v3774_v45 = vmax.f32 %v1017_v4, %v1217_v44  ;;  %v1220_v46 = vadd.f32 %v2630_v43, %v1219_v42 }
 0x16e   :  { %v3776_v49 = vmax.f32 %v1018_v7, %v1220_v46  ;;  %v2631_v48 = vpop.f32.mrb[52].mxu0  ;;  %v2893_v47 = vpop.f32.mrb[64].mxu1 }
 0x16f   :  { %v2632_v35 = vpop.f32.mrb[53].mxu0  ;;  %v1417_v50 = vpop.f32.mrb[65].mxu1 }
 0x170   :  { %v2633_v51 = vadd.f32 %v2632_v35, %v2631_v48  ;;  %v2634_v52 = vpop.f32.mrb[54].mxu0  ;;  %v2894_v37 = vpop.f32.mrb[66].mxu1 }
 0x171   :  { %v2635_v53 = vpop.f32.mrb[55].mxu0  ;;  %v1420_v54 = vpop.f32.mrb[67].mxu1 }
 0x172   :  { %v1225_v55 = vadd.f32 %v2885_v34, %v2633_v51 }
 0x174   :  { %v3778_v56 = vmax.f32 %v1019_v10, %v1225_v55 }
 0x176   :  { %v2659_v57 = vpop.f32.mrb[56].mxu0  ;;  %v2897_v58 = vpop.f32.mrb[68].mxu1 }
 0x177   :  { %v2660_v59 = vpop.f32.mrb[57].mxu0  ;;  %v1433_v60 = vpop.f32.mrb[69].mxu1 }
 0x178   :  { %v2661_v1 = vadd.f32 %v2660_v59, %v2659_v57  ;;  %v2662_v61 = vpop.f32.mrb[58].mxu0  ;;  %v2898_v4 = vpop.f32.mrb[70].mxu1 }
 0x179   :  { %v2663_v62 = vpop.f32.mrb[59].mxu0  ;;  %v1436_v0 = vpop.f32.mrb[71].mxu1 }
 0x17a   :  { %v1418_v7 = vadd.f32 %v2661_v1, %v1417_v50  ;;  %v2664_v9 = vadd.f32 %v2663_v62, %v2662_v61 }
 0x17c   :  { %v1421_v3 = vadd.f32 %v2664_v9, %v1420_v54  ;;  %v1447_v17 = vmax.f32 %v3766_v27, %v1418_v7 }
 0x17e   :  { %v2665_v63 = vpop.f32.mrb[60].mxu0  ;;  %v1448_v5 = vmax.f32 %v3770_v32, %v1421_v3 }
 0x17f   :  { %v2666_v6 = vpop.f32.mrb[61].mxu0 }
 0x180   :  { %v2667_v2 = vadd.f32 %v2666_v6, %v2665_v63  ;;  %v2668_v18 = vpop.f32.mrb[62].mxu0 }
 0x181   :  { %v2669_v19 = vpop.f32.mrb[63].mxu0 }
 0x182   :  { %v1426_v8 = vadd.f32 %v2893_v47, %v2667_v2  ;;  %v2670_v10 = vadd.f32 %v2669_v19, %v2668_v18 }
 0x184   :  { %v1449_v22 = vmax.f32 %v3768_v29, %v1426_v8  ;;  %v1429_v11 = vadd.f32 %v2894_v37, %v2670_v10 }
 0x186   :  { %v1450_v24 = vmax.f32 %v3772_v31, %v1429_v11  ;;  %v2671_v25 = vpop.f32.mrb[64].mxu0 }
 0x187   :  { %v2672_v13 = vpop.f32.mrb[65].mxu0 }
 0x188   :  { %v2673_v26 = vadd.f32 %v2672_v13, %v2671_v25  ;;  %v2674_v15 = vpop.f32.mrb[66].mxu0 }
 0x189   :  { %v2675_v14 = vpop.f32.mrb[67].mxu0 }
 0x18a   :  { %v2676_v16 = vadd.f32 %v2675_v14, %v2674_v15  ;;  %v1434_v20 = vadd.f32 %v2673_v26, %v1433_v60 }
 0x18c   :  { %v1451_v21 = vmax.f32 %v3774_v45, %v1434_v20  ;;  %v1437_v27 = vadd.f32 %v2676_v16, %v1436_v0 }
 0x18e   :  { %v1452_v28 = vmax.f32 %v3776_v49, %v1437_v27  ;;  %v2677_v23 = vpop.f32.mrb[68].mxu0  ;;  %v2705_v30 = vpop.f32.mrb[72].mxu1 }
 0x18f   :  { %v2678_v32 = vpop.f32.mrb[69].mxu0  ;;  %v2706_v33 = vpop.f32.mrb[73].mxu1 }
 0x190   :  { %v2679_v29 = vadd.f32 %v2678_v32, %v2677_v23  ;;  %v2680_v34 = vpop.f32.mrb[70].mxu0  ;;  %v2707_v12 = vadd.f32 %v2706_v33, %v2705_v30  ;;  %v2708_v31 = vpop.f32.mrb[74].mxu1 }
 0x191   :  { %v2681_v36 = vpop.f32.mrb[71].mxu0  ;;  %v2709_v38 = vpop.f32.mrb[75].mxu1 }
 0x192   :  { %v1442_v39 = vadd.f32 %v2897_v58, %v2679_v29  ;;  %v2710_v40 = vadd.f32 %v2709_v38, %v2708_v31 }
 0x194   :  { %v1453_v41 = vmax.f32 %v3778_v56, %v1442_v39 }
 0x196   :  { %v2711_v42 = vpop.f32.mrb[76].mxu1  ;;  %v2905_v43 = vpop.f32.mrb[72].mxu0 }
 0x197   :  { %v2712_v44 = vpop.f32.mrb[77].mxu1  ;;  %v1634_v45 = vpop.f32.mrb[73].mxu0 }
 0x198   :  { %v2713_v46 = vadd.f32 %v2712_v44, %v2711_v42  ;;  %v1635_v49 = vadd.f32 %v2707_v12, %v1634_v45  ;;  %v2714_v48 = vpop.f32.mrb[78].mxu1  ;;  %v2906_v47 = vpop.f32.mrb[74].mxu0 }
 0x199   :  { %v2715_v35 = vpop.f32.mrb[79].mxu1  ;;  %v1637_v50 = vpop.f32.mrb[75].mxu0 }
 0x19a   :  { %v1643_v51 = vadd.f32 %v2905_v43, %v2713_v46  ;;  %v3787_v52 = vmax.f32 %v1447_v17, %v1635_v49  ;;  %v2716_v37 = vadd.f32 %v2715_v35, %v2714_v48  ;;  %v1638_v53 = vadd.f32 %v2710_v40, %v1637_v50 }
 0x19c   :  { %v3789_v54 = vmax.f32 %v1449_v22, %v1643_v51  ;;  %v1646_v55 = vadd.f32 %v2906_v47, %v2716_v37  ;;  %v3791_v57 = vmax.f32 %v1448_v5, %v1638_v53 }
 0x19e   :  { %v3793_v56 = vmax.f32 %v1450_v24, %v1646_v55  ;;  %v2717_v58 = vpop.f32.mrb[80].mxu1  ;;  %v2909_v59 = vpop.f32.mrb[76].mxu0 }
 0x19f   :  { %v2718_v60 = vpop.f32.mrb[81].mxu1  ;;  %v1650_v1 = vpop.f32.mrb[77].mxu0 }
 0x1a0   :  { %v2719_v61 = vadd.f32 %v2718_v60, %v2717_v58  ;;  %v2720_v4 = vpop.f32.mrb[82].mxu1  ;;  %v2910_v62 = vpop.f32.mrb[78].mxu0 }
 0x1a1   :  { %v2721_v0 = vpop.f32.mrb[83].mxu1  ;;  %v1653_v7 = vpop.f32.mrb[79].mxu0 }
 0x1a2   :  { %v1651_v9 = vadd.f32 %v2719_v61, %v1650_v1  ;;  %v2722_v3 = vadd.f32 %v2721_v0, %v2720_v4 }
 0x1a4   :  { %v3795_v17 = vmax.f32 %v1451_v21, %v1651_v9  ;;  %v1654_v63 = vadd.f32 %v2722_v3, %v1653_v7 }
 0x1a6   :  { %v3797_v6 = vmax.f32 %v1452_v28, %v1654_v63  ;;  %v2723_v5 = vpop.f32.mrb[84].mxu1  ;;  %v2917_v2 = vpop.f32.mrb[80].mxu0 }
 0x1a7   :  { %v2724_v18 = vpop.f32.mrb[85].mxu1  ;;  %v1851_v19 = vpop.f32.mrb[81].mxu0 }
 0x1a8   :  { %v2725_v8 = vadd.f32 %v2724_v18, %v2723_v5  ;;  %v2918_v10 = vpop.f32.mrb[82].mxu0  ;;  %v2726_v22 = vpop.f32.mrb[86].mxu1  ;;  %v2412_v18 = vld [vmem:[%s3850_s2] ss:$0 sm:$0xff] }
 0x1a9   :  { %v1854_v11 = vpop.f32.mrb[83].mxu0  ;;  %v2727_v24 = vpop.f32.mrb[87].mxu1 }
 0x1aa   :  { %v1659_v25 = vadd.f32 %v2909_v59, %v2725_v8 }
 0x1ac   :  { %v3799_v13 = vmax.f32 %v1453_v41, %v1659_v25 }
 0x1ae   :  { %v2751_v26 = vpop.f32.mrb[88].mxu1  ;;  %v2921_v15 = vpop.f32.mrb[84].mxu0 }
 0x1af   :  { %v2752_v14 = vpop.f32.mrb[89].mxu1  ;;  %v1867_v16 = vpop.f32.mrb[85].mxu0 }
 0x1b0   :  { %v2753_v20 = vadd.f32 %v2752_v14, %v2751_v26  ;;  %v2754_v21 = vpop.f32.mrb[90].mxu1  ;;  %v2922_v27 = vpop.f32.mrb[86].mxu0 }
 0x1b1   :  { %v2755_v28 = vpop.f32.mrb[91].mxu1  ;;  %v1870_v23 = vpop.f32.mrb[87].mxu0 }
 0x1b2   :  { %v1852_v30 = vadd.f32 %v2753_v20, %v1851_v19  ;;  %v2756_v32 = vadd.f32 %v2755_v28, %v2754_v21 }
 0x1b4   :  { %v1855_v33 = vadd.f32 %v2756_v32, %v1854_v11  ;;  %v1881_v29 = vmax.f32 %v3787_v52, %v1852_v30 }
 0x1b6   :  { %v2757_v34 = vpop.f32.mrb[92].mxu1  ;;  %v1882_v12 = vmax.f32 %v3791_v57, %v1855_v33 }
 0x1b7   :  { %v2758_v31 = vpop.f32.mrb[93].mxu1 }
 0x1b8   :  { %v2759_v36 = vadd.f32 %v2758_v31, %v2757_v34  ;;  %v2760_v38 = vpop.f32.mrb[94].mxu1 }
 0x1b9   :  { %v2761_v39 = vpop.f32.mrb[95].mxu1 }
 0x1ba   :  { %v1860_v40 = vadd.f32 %v2917_v2, %v2759_v36  ;;  %v2762_v41 = vadd.f32 %v2761_v39, %v2760_v38 }
 0x1bc   :  { %v1863_v42 = vadd.f32 %v2918_v10, %v2762_v41  ;;  %v1883_v43 = vmax.f32 %v3789_v54, %v1860_v40 }
 0x1be   :  { %v2763_v44 = vpop.f32.mrb[96].mxu1  ;;  %v1884_v45 = vmax.f32 %v3793_v56, %v1863_v42 }
 0x1bf   :  { %v2764_v46 = vpop.f32.mrb[97].mxu1 }
 0x1c0   :  { %v2765_v49 = vadd.f32 %v2764_v46, %v2763_v44  ;;  %v2766_v48 = vpop.f32.mrb[98].mxu1 }
 0x1c1   :  { %v2767_v47 = vpop.f32.mrb[99].mxu1 }
 0x1c2   :  { %v3805_v35 = vadd.f32 %v2765_v49, %v1867_v16  ;;  %v2768_v50 = vadd.f32 %v2767_v47, %v2766_v48 }
 0x1c4   :  { %v3807_v51 = vadd.f32 %v2768_v50, %v1870_v23  ;;  %v1885_v52 = vmax.f32 %v3795_v17, %v3805_v35 }
 0x1c6   :  { %v2797_v37 = vpop.f32.mrb[88].mxu0  ;;  %v2769_v53 = vpop.f32.mrb[100].mxu1  ;;  %v1886_v54 = vmax.f32 %v3797_v6, %v3807_v51 }
 0x1c7   :  { %v2798_v55 = vpop.f32.mrb[89].mxu0  ;;  %v2770_v57 = vpop.f32.mrb[101].mxu1 }
 0x1c8   :  { %v2799_v56 = vadd.f32 %v2798_v55, %v2797_v37  ;;  %v2771_v58 = vadd.f32 %v2770_v57, %v2769_v53  ;;  %v2800_v59 = vpop.f32.mrb[90].mxu0  ;;  %v2772_v60 = vpop.f32.mrb[102].mxu1 }
 0x1c9   :  { %v2801_v1 = vpop.f32.mrb[91].mxu0  ;;  %v2773_v61 = vpop.f32.mrb[103].mxu1 }
 0x1ca   :  { %v3813_v4 = vadd.f32 %v2921_v15, %v2771_v58  ;;  %v2802_v62 = vadd.f32 %v2801_v1, %v2800_v59 }
 0x1cc   :  { %v1887_v0 = vmax.f32 %v3799_v13, %v3813_v4 }
 0x1ce   :  { %v2803_v7 = vpop.f32.mrb[92].mxu0  ;;  %v2929_v9 = vpop.f32.mrb[104].mxu1 }
 0x1cf   :  { %v2804_v3 = vpop.f32.mrb[93].mxu0  ;;  %v2068_v17 = vpop.f32.mrb[105].mxu1 }
 0x1d0   :  { %v2805_v63 = vadd.f32 %v2804_v3, %v2803_v7  ;;  %v2806_v6 = vpop.f32.mrb[94].mxu0  ;;  %v2069_v5 = vadd.f32 %v2799_v56, %v2068_v17  ;;  %v2930_v2 = vpop.f32.mrb[106].mxu1 }
 0x1d1   :  { %v2807_v19 = vpop.f32.mrb[95].mxu0  ;;  %v2071_v8 = vpop.f32.mrb[107].mxu1 }
 0x1d2   :  { %v2077_v10 = vadd.f32 %v2929_v9, %v2805_v63  ;;  %v2098_v22 = vmax.f32 %v1881_v29, %v2069_v5  ;;  %v2808_v11 = vadd.f32 %v2807_v19, %v2806_v6  ;;  %v2072_v24 = vadd.f32 %v2802_v62, %v2071_v8 }
 0x1d4   :  { %v2100_v25 = vmax.f32 %v1883_v43, %v2077_v10  ;;  %v2112_v13 = vadd.f32 %v2412_v18, %v2098_v22  ;;  %v2080_v26 = vadd.f32 %v2930_v2, %v2808_v11  ;;  %v2099_v15 = vmax.f32 %v1882_v12, %v2072_v24 }
 0x1d6   :  { %v2114_v14 = vadd.f32 %v2412_v18, %v2100_v25  ;;  %v2119_v16 = vmax.f32 %v2112_v13, 0.0  ;;  %v2101_v20 = vmax.f32 %v1884_v45, %v2080_v26  ;;  %v2113_v21 = vadd.f32 %v2412_v18, %v2099_v15  ;;  %v2809_v27 = vpop.f32.mrb[96].mxu0  ;;  %v2933_v28 = vpop.f32.mrb[108].mxu1 }
 0x1d7   :  { %v2810_v23 = vpop.f32.mrb[97].mxu0  ;;  %v2084_v30 = vpop.f32.mrb[109].mxu1 }
 0x1d8   :  { %v2121_v32 = vmax.f32 %v2114_v14, 0.0  ;;  %2127 = vst.msk [vmem:[%s3851_s3] sm:$0xff] %vm2126_vm1, %v2119_v16  ;;  %v2115_v33 = vadd.f32 %v2412_v18, %v2101_v20  ;;  %v2120_v29 = vmax.f32 %v2113_v21, 0.0  ;;  %v2811_v34 = vadd.f32 %v2810_v23, %v2809_v27  ;;  %v2812_v31 = vpop.f32.mrb[98].mxu0  ;;  %v2934_v12 = vpop.f32.mrb[110].mxu1 }
 0x1d9   :  { %v2813_v36 = vpop.f32.mrb[99].mxu0  ;;  %v2087_v38 = vpop.f32.mrb[111].mxu1 }
 0x1da   :  { %2129 = vst.msk [vmem:[%s3851_s3 + $0x10] sm:$0xff] %vm2126_vm1, %v2121_v32  ;;  %v2122_v39 = vmax.f32 %v2115_v33, 0.0  ;;  %2128 = vst.msk [vmem:[%s3851_s3 + $0x8] sm:$0xff] %vm2126_vm1, %v2120_v29  ;;  %v2814_v40 = vadd.f32 %v2813_v36, %v2812_v31  ;;  %v2085_v41 = vadd.f32 %v2811_v34, %v2084_v30 }
 0x1dc   :  { %2130 = vst.msk [vmem:[%s3851_s3 + $0x18] sm:$0xff] %vm2126_vm1, %v2122_v39  ;;  %v2102_v42 = vmax.f32 %v1885_v52, %v2085_v41  ;;  %v2088_v43 = vadd.f32 %v2814_v40, %v2087_v38 }
 0x1de   :  { %v2116_v44 = vadd.f32 %v2412_v18, %v2102_v42  ;;  %v2103_v45 = vmax.f32 %v1886_v54, %v2088_v43  ;;  %v2815_v46 = vpop.f32.mrb[100].mxu0 }
 0x1df   :  { %v2816_v49 = vpop.f32.mrb[101].mxu0 }
 0x1e0   :  { %v2123_v48 = vmax.f32 %v2116_v44, 0.0  ;;  %v2117_v47 = vadd.f32 %v2412_v18, %v2103_v45  ;;  %v2817_v35 = vadd.f32 %v2816_v49, %v2815_v46  ;;  %v2818_v50 = vpop.f32.mrb[102].mxu0 }
 0x1e1   :  { %v2819_v51 = vpop.f32.mrb[103].mxu0 }
 0x1e2   :  { %2131 = vst.msk [vmem:[%s3851_s3 + $0x20] sm:$0xff] %vm2126_vm1, %v2123_v48  ;;  %v2124_v37 = vmax.f32 %v2117_v47, 0.0  ;;  %v2093_v53 = vadd.f32 %v2933_v28, %v2817_v35 }
 0x1e4   :  { %2132 = vst.msk [vmem:[%s3851_s3 + $0x28] sm:$0xff] %vm2126_vm1, %v2124_v37  ;;  %v2104_v52 = vmax.f32 %v1887_v0, %v2093_v53 }
 0x1e6   :  { %v2118_v54 = vadd.f32 %v2412_v18, %v2104_v52 }
 0x1e8   :  { %v2125_v55 = vmax.f32 %v2118_v54, 0.0 }
 0x1ea   :  { %2133 = vst.msk [vmem:[%s3851_s3 + $0x30] sm:$0xff] %vm2126_vm1, %v2125_v55 }

// kernel: forward.5
= control target key start
LH: loop header
LB: loop body
LE: loop exit
PB: predicated region body
PF: predicated region fallthrough
CT: control target
= control target key end

     0   :  { %vm4895_vm0 = vcmask 523264   ;;  %vm8300_vm1 = vcmask 80896   ;;  %s13510_s1 = inlined_call_operand.vmem [shape: bf16[1600,1024], index: 1, kind: input, shape index: {}]   ;;  %s13511_s0 = inlined_call_operand.vmem [shape: f32[8,1600], index: 0, kind: input, shape index: {}]   ;;  %s13512_s3 = inlined_call_operand.vmem [shape: bf16[1024,512], index: 3, kind: input, shape index: {}]   ;;  %s13513_s2 = inlined_call_operand.vmem [shape: f32[1,1024], index: 2, kind: input, shape index: {}]   ;;  %s13514_s5 = inlined_call_operand.vmem [shape: bf16[512,10], index: 5, kind: input, shape index: {}]   ;;  %s13515_s4 = inlined_call_operand.vmem [shape: f32[1,512], index: 4, kind: input, shape index: {}]   ;;  %s13516_s6 = inlined_call_operand.vmem [shape: f32[1,10], index: 6, kind: input, shape index: {}]   ;;  %s13517_s7 = inlined_call_operand.vmem [shape: f32[8,10], index: 7, kind: output, shape index: {}]  }
   0x1   :  { %v53_v0 = vld [vmem:[%s13510_s1] sm:$0xff]  ;;  %v54_v2 = vld [vmem:[%s13510_s1 + $0x8] sm:$0xff] }
   0x2   :  { %v57_v1 = vld [vmem:[%s13510_s1 + $0x20] sm:$0xff]  ;;  %v58_v4 = vld [vmem:[%s13510_s1 + $0x28] sm:$0xff] }
   0x3   :  { %v8319_v3 = vcombine.high %v53_v0, %v57_v1  ;;  %v8318_v5 = vcombine.low %v53_v0, %v57_v1  ;;  %v61_v6 = vld [vmem:[%s13510_s1 + $0x40] sm:$0xff]  ;;  %v8321_v8 = vcombine.high %v54_v2, %v58_v4  ;;  %v8320_v9 = vcombine.low %v54_v2, %v58_v4  ;;  %v62_v11 = vld [vmem:[%s13510_s1 + $0x48] sm:$0xff] }
   0x4   :  { %v65_v7 = vld [vmem:[%s13510_s1 + $0x60] sm:$0xff]  ;;  %v66_v12 = vld [vmem:[%s13510_s1 + $0x68] sm:$0xff] }
   0x5   :  { %v8327_v10 = vcombine.high %v61_v6, %v65_v7  ;;  %v69_v13 = vld [vmem:[%s13510_s1 + $0x80] sm:$0xff]  ;;  %4899 = vmatprep.subr.bf16.mxu0 %v8319_v3  ;;  %v8329_v14 = vcombine.high %v62_v11, %v66_v12  ;;  %v70_v16 = vld [vmem:[%s13510_s1 + $0x88] sm:$0xff]  ;;  %5186 = vmatprep.subr.bf16.mxu1 %v8321_v8  ;;  %v8326_v18 = vcombine.low %v61_v6, %v65_v7 }
   0x6   :  { %v73_v15 = vld [vmem:[%s13510_s1 + $0xa0] sm:$0xff]  ;;  %v74_v17 = vld [vmem:[%s13510_s1 + $0xa8] sm:$0xff]  ;;  %4900 = vmatpush1.bf16.msra.mxu0 %v8318_v5  ;;  %5187 = vmatpush1.bf16.msra.mxu1 %v8320_v9  ;;  %v8328_v19 = vcombine.low %v62_v11, %v66_v12 }
   0x7   :  { %4901 = vmatprep.subr.bf16.mxu0 %v8327_v10  ;;  %v8335_v20 = vcombine.high %v69_v13, %v73_v15  ;;  %5188 = vmatprep.subr.bf16.mxu1 %v8329_v14  ;;  %v8337_v21 = vcombine.high %v70_v16, %v74_v17  ;;  %v77_v22 = vld [vmem:[%s13510_s1 + $0xc0] sm:$0xff]  ;;  %v78_v24 = vld [vmem:[%s13510_s1 + $0xc8] sm:$0xff]  ;;  %v8334_v26 = vcombine.low %v69_v13, %v73_v15 }
   0x8   :  { %v81_v23 = vld [vmem:[%s13510_s1 + $0xe0] sm:$0xff]  ;;  %v82_v25 = vld [vmem:[%s13510_s1 + $0xe8] sm:$0xff]  ;;  %v8336_v27 = vcombine.low %v70_v16, %v74_v17 }
   0x9   :  { %v8343_v28 = vcombine.high %v77_v22, %v81_v23  ;;  %v8345_v29 = vcombine.high %v78_v24, %v82_v25  ;;  %v85_v30 = vld [vmem:[%s13510_s1 + $0x100] sm:$0xff]  ;;  %v86_v32 = vld [vmem:[%s13510_s1 + $0x108] sm:$0xff]  ;;  %v8342_v34 = vcombine.low %v77_v22, %v81_v23  ;;  %v8344_v35 = vcombine.low %v78_v24, %v82_v25 }
   0xa   :  { %4902 = vmatpush1.bf16.msra.mxu0 %v8326_v18  ;;  %5189 = vmatpush1.bf16.msra.mxu1 %v8328_v19  ;;  %v89_v31 = vld [vmem:[%s13510_s1 + $0x120] sm:$0xff]  ;;  %v90_v33 = vld [vmem:[%s13510_s1 + $0x128] sm:$0xff] }
   0xb   :  { %4903 = vmatprep.subr.bf16.mxu0 %v8335_v20  ;;  %5190 = vmatprep.subr.bf16.mxu1 %v8337_v21  ;;  %v8351_v36 = vcombine.high %v85_v30, %v89_v31  ;;  %v8353_v37 = vcombine.high %v86_v32, %v90_v33  ;;  %v93_v38 = vld [vmem:[%s13510_s1 + $0x140] sm:$0xff]  ;;  %v94_v40 = vld [vmem:[%s13510_s1 + $0x148] sm:$0xff]  ;;  %v8350_v42 = vcombine.low %v85_v30, %v89_v31 }
   0xc   :  { %v97_v39 = vld [vmem:[%s13510_s1 + $0x160] sm:$0xff]  ;;  %v98_v41 = vld [vmem:[%s13510_s1 + $0x168] sm:$0xff]  ;;  %v8352_v43 = vcombine.low %v86_v32, %v90_v33 }
   0xd   :  { %v8359_v44 = vcombine.high %v93_v38, %v97_v39  ;;  %v8361_v45 = vcombine.high %v94_v40, %v98_v41  ;;  %v101_v46 = vld [vmem:[%s13510_s1 + $0x180] sm:$0xff]  ;;  %v102_v48 = vld [vmem:[%s13510_s1 + $0x188] sm:$0xff]  ;;  %v8358_v50 = vcombine.low %v93_v38, %v97_v39  ;;  %v8360_v51 = vcombine.low %v94_v40, %v98_v41 }
   0xe   :  { %4904 = vmatpush1.bf16.msra.mxu0 %v8334_v26  ;;  %5191 = vmatpush1.bf16.msra.mxu1 %v8336_v27  ;;  %v105_v47 = vld [vmem:[%s13510_s1 + $0x1a0] sm:$0xff]  ;;  %v106_v49 = vld [vmem:[%s13510_s1 + $0x1a8] sm:$0xff] }
   0xf   :  { %4905 = vmatprep.subr.bf16.mxu0 %v8343_v28  ;;  %5192 = vmatprep.subr.bf16.mxu1 %v8345_v29  ;;  %v8367_v52 = vcombine.high %v101_v46, %v105_v47  ;;  %v28_v53 = vld [vmem:[%s13511_s0 + $0x8] sm:$0xff]  ;;  %v8369_v54 = vcombine.high %v102_v48, %v106_v49  ;;  %v109_v55 = vld [vmem:[%s13510_s1 + $0x1c0] sm:$0xff]  ;;  %v8366_v60 = vcombine.low %v101_v46, %v105_v47 }
  0x10   :  { %v113_v56 = vld [vmem:[%s13510_s1 + $0x1e0] sm:$0xff]  ;;  %v10143_v57 = vpack.c.bf16 %v28_v53, %v28_v53  ;;  %v110_v58 = vld [vmem:[%s13510_s1 + $0x1c8] sm:$0xff]  ;;  %v8368_v61 = vcombine.low %v102_v48, %v106_v49 }
  0x11   :  { %v114_v59 = vld [vmem:[%s13510_s1 + $0x1e8] sm:$0xff]  ;;  %v8375_v62 = vcombine.high %v109_v55, %v113_v56  ;;  %v117_v0 = vld [vmem:[%s13510_s1 + $0x200] sm:$0xff]  ;;  %v8374_v4 = vcombine.low %v109_v55, %v113_v56 }
  0x12   :  { %4906 = vmatpush1.bf16.msra.mxu0 %v8342_v34  ;;  %5193 = vmatpush1.bf16.msra.mxu1 %v8344_v35  ;;  %v8377_v63 = vcombine.high %v110_v58, %v114_v59  ;;  %v121_v1 = vld [vmem:[%s13510_s1 + $0x220] sm:$0xff]  ;;  %v118_v2 = vld [vmem:[%s13510_s1 + $0x208] sm:$0xff]  ;;  %v8376_v5 = vcombine.low %v110_v58, %v114_v59 }
  0x13   :  { %4907 = vmatprep.subr.bf16.mxu0 %v8351_v36  ;;  %5194 = vmatprep.subr.bf16.mxu1 %v8353_v37  ;;  %v122_v3 = vld [vmem:[%s13510_s1 + $0x228] sm:$0xff]  ;;  %v8383_v6 = vcombine.high %v117_v0, %v121_v1  ;;  %v125_v8 = vld [vmem:[%s13510_s1 + $0x240] sm:$0xff]  ;;  %v8382_v12 = vcombine.low %v117_v0, %v121_v1 }
  0x14   :  { %4931 = vmatprep.mubr.bf16.mxu0 %v10143_v57  ;;  %5218 = vmatprep.mubr.bf16.mxu1 %v10143_v57  ;;  %v8385_v7 = vcombine.high %v118_v2, %v122_v3  ;;  %v129_v9 = vld [vmem:[%s13510_s1 + $0x260] sm:$0xff]  ;;  %v126_v10 = vld [vmem:[%s13510_s1 + $0x248] sm:$0xff]  ;;  %v8384_v13 = vcombine.low %v118_v2, %v122_v3 }
  0x15   :  { %v130_v11 = vld [vmem:[%s13510_s1 + $0x268] sm:$0xff]  ;;  %v8391_v14 = vcombine.high %v125_v8, %v129_v9  ;;  %v133_v16 = vld [vmem:[%s13510_s1 + $0x280] sm:$0xff]  ;;  %v8390_v20 = vcombine.low %v125_v8, %v129_v9 }
  0x16   :  { %4908 = vmatpush1.bf16.msra.mxu0 %v8350_v42  ;;  %5195 = vmatpush1.bf16.msra.mxu1 %v8352_v43  ;;  %v8393_v15 = vcombine.high %v126_v10, %v130_v11  ;;  %v137_v17 = vld [vmem:[%s13510_s1 + $0x2a0] sm:$0xff]  ;;  %v134_v18 = vld [vmem:[%s13510_s1 + $0x288] sm:$0xff]  ;;  %v8392_v21 = vcombine.low %v126_v10, %v130_v11 }
  0x17   :  { %4909 = vmatprep.subr.bf16.mxu0 %v8359_v44  ;;  %5196 = vmatprep.subr.bf16.mxu1 %v8361_v45  ;;  %v138_v19 = vld [vmem:[%s13510_s1 + $0x2a8] sm:$0xff]  ;;  %v8399_v22 = vcombine.high %v133_v16, %v137_v17  ;;  %v141_v24 = vld [vmem:[%s13510_s1 + $0x2c0] sm:$0xff]  ;;  %v8398_v28 = vcombine.low %v133_v16, %v137_v17 }
  0x18   :  { %v8401_v23 = vcombine.high %v134_v18, %v138_v19  ;;  %v145_v25 = vld [vmem:[%s13510_s1 + $0x2e0] sm:$0xff]  ;;  %v142_v26 = vld [vmem:[%s13510_s1 + $0x2c8] sm:$0xff]  ;;  %v8400_v29 = vcombine.low %v134_v18, %v138_v19 }
  0x19   :  { %v146_v27 = vld [vmem:[%s13510_s1 + $0x2e8] sm:$0xff]  ;;  %v8407_v30 = vcombine.high %v141_v24, %v145_v25  ;;  %v149_v32 = vld [vmem:[%s13510_s1 + $0x300] sm:$0xff]  ;;  %v8406_v36 = vcombine.low %v141_v24, %v145_v25 }
  0x1a   :  { %4910 = vmatpush1.bf16.msra.mxu0 %v8358_v50  ;;  %5197 = vmatpush1.bf16.msra.mxu1 %v8360_v51  ;;  %v8409_v31 = vcombine.high %v142_v26, %v146_v27  ;;  %v153_v33 = vld [vmem:[%s13510_s1 + $0x320] sm:$0xff]  ;;  %v150_v34 = vld [vmem:[%s13510_s1 + $0x308] sm:$0xff]  ;;  %v8408_v37 = vcombine.low %v142_v26, %v146_v27 }
  0x1b   :  { %4911 = vmatprep.subr.bf16.mxu0 %v8367_v52  ;;  %5198 = vmatprep.subr.bf16.mxu1 %v8369_v54  ;;  %v154_v35 = vld [vmem:[%s13510_s1 + $0x328] sm:$0xff]  ;;  %v8415_v38 = vcombine.high %v149_v32, %v153_v33  ;;  %v157_v40 = vld [vmem:[%s13510_s1 + $0x340] sm:$0xff]  ;;  %v8414_v44 = vcombine.low %v149_v32, %v153_v33 }
  0x1c   :  { %v8417_v39 = vcombine.high %v150_v34, %v154_v35  ;;  %v161_v41 = vld [vmem:[%s13510_s1 + $0x360] sm:$0xff]  ;;  %v158_v42 = vld [vmem:[%s13510_s1 + $0x348] sm:$0xff]  ;;  %v8416_v45 = vcombine.low %v150_v34, %v154_v35 }
  0x1d   :  { %v162_v43 = vld [vmem:[%s13510_s1 + $0x368] sm:$0xff]  ;;  %v8423_v46 = vcombine.high %v157_v40, %v161_v41  ;;  %v165_v48 = vld [vmem:[%s13510_s1 + $0x380] sm:$0xff]  ;;  %v8422_v52 = vcombine.low %v157_v40, %v161_v41 }
  0x1e   :  { %4912 = vmatpush1.bf16.msra.mxu0 %v8366_v60  ;;  %5199 = vmatpush1.bf16.msra.mxu1 %v8368_v61  ;;  %v8425_v47 = vcombine.high %v158_v42, %v162_v43  ;;  %v169_v49 = vld [vmem:[%s13510_s1 + $0x3a0] sm:$0xff]  ;;  %v166_v50 = vld [vmem:[%s13510_s1 + $0x388] sm:$0xff]  ;;  %v8424_v53 = vcombine.low %v158_v42, %v162_v43 }
  0x1f   :  { %4913 = vmatprep.subr.bf16.mxu0 %v8375_v62  ;;  %5200 = vmatprep.subr.bf16.mxu1 %v8377_v63  ;;  %v170_v51 = vld [vmem:[%s13510_s1 + $0x3a8] sm:$0xff]  ;;  %v8431_v54 = vcombine.high %v165_v48, %v169_v49  ;;  %v173_v56 = vld [vmem:[%s13510_s1 + $0x3c0] sm:$0xff]  ;;  %v8430_v61 = vcombine.low %v165_v48, %v169_v49 }
  0x20   :  { %v8433_v55 = vcombine.high %v166_v50, %v170_v51  ;;  %v177_v58 = vld [vmem:[%s13510_s1 + $0x3e0] sm:$0xff]  ;;  %v174_v59 = vld [vmem:[%s13510_s1 + $0x3c8] sm:$0xff]  ;;  %v8432_v62 = vcombine.low %v166_v50, %v170_v51 }
  0x21   :  { %v178_v60 = vld [vmem:[%s13510_s1 + $0x3e8] sm:$0xff]  ;;  %v8439_v63 = vcombine.high %v173_v56, %v177_v58  ;;  %v181_v1 = vld [vmem:[%s13510_s1 + $0x400] sm:$0xff] }
  0x22   :  { %4914 = vmatpush1.bf16.msra.mxu0 %v8374_v4  ;;  %5201 = vmatpush1.bf16.msra.mxu1 %v8376_v5  ;;  %v8441_v0 = vcombine.high %v174_v59, %v178_v60  ;;  %v185_v2 = vld [vmem:[%s13510_s1 + $0x420] sm:$0xff]  ;;  %v182_v3 = vld [vmem:[%s13510_s1 + $0x408] sm:$0xff]  ;;  %v8438_v5 = vcombine.low %v173_v56, %v177_v58 }
  0x23   :  { %4915 = vmatprep.subr.bf16.mxu0 %v8383_v6  ;;  %5202 = vmatprep.subr.bf16.mxu1 %v8385_v7  ;;  %v186_v4 = vld [vmem:[%s13510_s1 + $0x428] sm:$0xff]  ;;  %v27_v6 = vld [vmem:[%s13511_s0] sm:$0xff]  ;;  %v8440_v7 = vcombine.low %v174_v59, %v178_v60  ;;  %v8447_v8 = vcombine.high %v181_v1, %v185_v2  ;;  %v8446_v16 = vcombine.low %v181_v1, %v185_v2 }
  0x24   :  { %v8449_v9 = vcombine.high %v182_v3, %v186_v4  ;;  %v189_v10 = vld [vmem:[%s13510_s1 + $0x440] sm:$0xff]  ;;  %v8448_v17 = vcombine.low %v182_v3, %v186_v4  ;;  %v202_v24 = vld [vmem:[%s13510_s1 + $0x4a8] sm:$0xff] }
  0x25   :  { %v193_v11 = vld [vmem:[%s13510_s1 + $0x460] sm:$0xff]  ;;  %v210_v32 = vld [vmem:[%s13510_s1 + $0x4e8] sm:$0xff] }
  0x26   :  { %4916 = vmatpush1.bf16.msra.mxu0 %v8382_v12  ;;  %5203 = vmatpush1.bf16.msra.mxu1 %v8384_v13  ;;  %v10270_v12 = vpack.c.bf16 %v27_v6, %v27_v6  ;;  %v190_v13 = vld [vmem:[%s13510_s1 + $0x448] sm:$0xff]  ;;  %v8455_v18 = vcombine.high %v189_v10, %v193_v11  ;;  %v8454_v25 = vcombine.low %v189_v10, %v193_v11  ;;  %v245_v6 = vld [vmem:[%s13510_s1 + $0x600] sm:$0xff] }
  0x27   :  { %4917 = vmatprep.subr.bf16.mxu0 %v8391_v14  ;;  %5204 = vmatprep.subr.bf16.mxu1 %v8393_v15  ;;  %v194_v14 = vld [vmem:[%s13510_s1 + $0x468] sm:$0xff]  ;;  %v30_v15 = vld [vmem:[%s13511_s0 + $0x18] sm:$0xff] }
  0x28   :  { %v8457_v19 = vcombine.high %v190_v13, %v194_v14  ;;  %v8456_v26 = vcombine.low %v190_v13, %v194_v14  ;;  %v218_v40 = vld [vmem:[%s13510_s1 + $0x528] sm:$0xff] }
  0x29   :  { %v226_v48 = vld [vmem:[%s13510_s1 + $0x568] sm:$0xff] }
  0x2a   :  { %4918 = vmatpush1.bf16.msra.mxu0 %v8390_v20  ;;  %5205 = vmatpush1.bf16.msra.mxu1 %v8392_v21  ;;  %v197_v20 = vld [vmem:[%s13510_s1 + $0x480] sm:$0xff]  ;;  %v234_v56 = vld [vmem:[%s13510_s1 + $0x5a8] sm:$0xff] }
  0x2b   :  { %4919 = vmatprep.subr.bf16.mxu0 %v8399_v22  ;;  %5206 = vmatprep.subr.bf16.mxu1 %v8401_v23  ;;  %v201_v21 = vld [vmem:[%s13510_s1 + $0x4a0] sm:$0xff]  ;;  %v10287_v22 = vpack.c.bf16 %v30_v15, %v30_v15  ;;  %v198_v23 = vld [vmem:[%s13510_s1 + $0x488] sm:$0xff] }
  0x2c   :  { %v8463_v27 = vcombine.high %v197_v20, %v201_v21  ;;  %v8462_v33 = vcombine.low %v197_v20, %v201_v21  ;;  %v8464_v34 = vcombine.low %v198_v23, %v202_v24  ;;  %v242_v1 = vld [vmem:[%s13510_s1 + $0x5e8] sm:$0xff]  ;;  %v253_v15 = vld [vmem:[%s13510_s1 + $0x640] sm:$0xff] }
  0x2e   :  { %4920 = vmatpush1.bf16.msra.mxu0 %v8398_v28  ;;  %5207 = vmatpush1.bf16.msra.mxu1 %v8400_v29  ;;  %v8465_v28 = vcombine.high %v198_v23, %v202_v24  ;;  %v205_v29 = vld [vmem:[%s13510_s1 + $0x4c0] sm:$0xff] }
  0x2f   :  { %4921 = vmatprep.subr.bf16.mxu0 %v8407_v30  ;;  %5208 = vmatprep.subr.bf16.mxu1 %v8409_v31  ;;  %v209_v30 = vld [vmem:[%s13510_s1 + $0x4e0] sm:$0xff]  ;;  %v206_v31 = vld [vmem:[%s13510_s1 + $0x4c8] sm:$0xff] }
  0x30   :  { %v8471_v35 = vcombine.high %v205_v29, %v209_v30  ;;  %v8470_v41 = vcombine.low %v205_v29, %v209_v30  ;;  %v8472_v42 = vcombine.low %v206_v31, %v210_v32  ;;  %v261_v24 = vld [vmem:[%s13510_s1 + $0x680] sm:$0xff] }
  0x32   :  { %4922 = vmatpush1.bf16.msra.mxu0 %v8406_v36  ;;  %5209 = vmatpush1.bf16.msra.mxu1 %v8408_v37  ;;  %v8473_v36 = vcombine.high %v206_v31, %v210_v32  ;;  %v213_v37 = vld [vmem:[%s13510_s1 + $0x500] sm:$0xff] }
  0x33   :  { %4923 = vmatprep.subr.bf16.mxu0 %v8415_v38  ;;  %5210 = vmatprep.subr.bf16.mxu1 %v8417_v39  ;;  %v217_v38 = vld [vmem:[%s13510_s1 + $0x520] sm:$0xff]  ;;  %v214_v39 = vld [vmem:[%s13510_s1 + $0x508] sm:$0xff] }
  0x34   :  { %v8479_v43 = vcombine.high %v213_v37, %v217_v38  ;;  %v8478_v49 = vcombine.low %v213_v37, %v217_v38  ;;  %v8480_v50 = vcombine.low %v214_v39, %v218_v40  ;;  %v269_v32 = vld [vmem:[%s13510_s1 + $0x6c0] sm:$0xff] }
  0x36   :  { %4924 = vmatpush1.bf16.msra.mxu0 %v8414_v44  ;;  %5211 = vmatpush1.bf16.msra.mxu1 %v8416_v45  ;;  %v8481_v44 = vcombine.high %v214_v39, %v218_v40  ;;  %v221_v45 = vld [vmem:[%s13510_s1 + $0x540] sm:$0xff] }
  0x37   :  { %4925 = vmatprep.subr.bf16.mxu0 %v8423_v46  ;;  %5212 = vmatprep.subr.bf16.mxu1 %v8425_v47  ;;  %v225_v46 = vld [vmem:[%s13510_s1 + $0x560] sm:$0xff]  ;;  %v222_v47 = vld [vmem:[%s13510_s1 + $0x548] sm:$0xff] }
  0x38   :  { %v8487_v51 = vcombine.high %v221_v45, %v225_v46  ;;  %v8486_v58 = vcombine.low %v221_v45, %v225_v46  ;;  %v8488_v59 = vcombine.low %v222_v47, %v226_v48  ;;  %v277_v40 = vld [vmem:[%s13510_s1 + $0x700] sm:$0xff] }
  0x3a   :  { %4926 = vmatpush1.bf16.msra.mxu0 %v8422_v52  ;;  %5213 = vmatpush1.bf16.msra.mxu1 %v8424_v53  ;;  %v8489_v52 = vcombine.high %v222_v47, %v226_v48  ;;  %v229_v53 = vld [vmem:[%s13510_s1 + $0x580] sm:$0xff] }
  0x3b   :  { %4927 = vmatprep.subr.bf16.mxu0 %v8431_v54  ;;  %5214 = vmatprep.subr.bf16.mxu1 %v8433_v55  ;;  %v233_v54 = vld [vmem:[%s13510_s1 + $0x5a0] sm:$0xff]  ;;  %v230_v55 = vld [vmem:[%s13510_s1 + $0x588] sm:$0xff] }
  0x3c   :  { %v8495_v60 = vcombine.high %v229_v53, %v233_v54  ;;  %v8494_v2 = vcombine.low %v229_v53, %v233_v54  ;;  %v8496_v3 = vcombine.low %v230_v55, %v234_v56  ;;  %v285_v48 = vld [vmem:[%s13510_s1 + $0x740] sm:$0xff] }
  0x3e   :  { %4928 = vmatpush1.bf16.msra.mxu0 %v8430_v61  ;;  %5215 = vmatpush1.bf16.msra.mxu1 %v8432_v62  ;;  %v8497_v61 = vcombine.high %v230_v55, %v234_v56  ;;  %v237_v62 = vld [vmem:[%s13510_s1 + $0x5c0] sm:$0xff] }
  0x3f   :  { %4929 = vmatprep.subr.bf16.mxu0 %v8439_v63  ;;  %5216 = vmatprep.subr.bf16.mxu1 %v8441_v0  ;;  %v241_v63 = vld [vmem:[%s13510_s1 + $0x5e0] sm:$0xff]  ;;  %v238_v0 = vld [vmem:[%s13510_s1 + $0x5c8] sm:$0xff] }
  0x40   :  { %v8503_v4 = vcombine.high %v237_v62, %v241_v63  ;;  %v8502_v10 = vcombine.low %v237_v62, %v241_v63  ;;  %v8504_v11 = vcombine.low %v238_v0, %v242_v1  ;;  %v293_v56 = vld [vmem:[%s13510_s1 + $0x780] sm:$0xff] }
  0x42   :  { %4930 = vmatpush1.bf16.msra.mxu0 %v8438_v5  ;;  %5217 = vmatpush1.bf16.msra.mxu1 %v8440_v7  ;;  %v8505_v5 = vcombine.high %v238_v0, %v242_v1  ;;  %v249_v7 = vld [vmem:[%s13510_s1 + $0x620] sm:$0xff] }
  0x43   :  { %4940 = vmatprep.subr.bf16.mxu0 %v8447_v8  ;;  %5227 = vmatprep.subr.bf16.mxu1 %v8449_v9  ;;  %v246_v8 = vld [vmem:[%s13510_s1 + $0x608] sm:$0xff]  ;;  %v8511_v13 = vcombine.high %v245_v6, %v249_v7  ;;  %v301_v1 = vld [vmem:[%s13510_s1 + $0x7c0] sm:$0xff] }
  0x44   :  { %v250_v9 = vld [vmem:[%s13510_s1 + $0x628] sm:$0xff] }
  0x45   :  { %4932 = vmatmul.mubr.bf16.vlgmr.msra.gmra.mrb[0].mxu0 %v10270_v12  ;;  %5219 = vmatmul.mubr.bf16.vlgmr.msra.gmra.mrb[0].mxu1 %v10270_v12  ;;  %v8513_v14 = vcombine.high %v246_v8, %v250_v9  ;;  %v8512_v20 = vcombine.low %v246_v8, %v250_v9  ;;  %v309_v9 = vld [vmem:[%s13510_s1 + $0x800] sm:$0xff] }
  0x46   :  { %4941 = vmatpush1.bf16.msra.mxu0 %v8446_v16  ;;  %5228 = vmatpush1.bf16.msra.mxu1 %v8448_v17  ;;  %v257_v16 = vld [vmem:[%s13510_s1 + $0x660] sm:$0xff]  ;;  %v254_v17 = vld [vmem:[%s13510_s1 + $0x648] sm:$0xff] }
  0x47   :  { %4942 = vmatprep.subr.bf16.mxu0 %v8455_v18  ;;  %5229 = vmatprep.subr.bf16.mxu1 %v8457_v19  ;;  %v258_v18 = vld [vmem:[%s13510_s1 + $0x668] sm:$0xff]  ;;  %v8510_v19 = vcombine.low %v245_v6, %v249_v7  ;;  %v8519_v21 = vcombine.high %v253_v15, %v257_v16 }
  0x48   :  { %4972 = vmatprep.mubr.bf16.mxu0 %v10287_v22  ;;  %5259 = vmatprep.mubr.bf16.mxu1 %v10287_v22  ;;  %v8521_v23 = vcombine.high %v254_v17, %v258_v18  ;;  %v8520_v29 = vcombine.low %v254_v17, %v258_v18 }
  0x4a   :  { %4943 = vmatpush1.bf16.msra.mxu0 %v8454_v25  ;;  %5230 = vmatpush1.bf16.msra.mxu1 %v8456_v26  ;;  %v265_v25 = vld [vmem:[%s13510_s1 + $0x6a0] sm:$0xff]  ;;  %v262_v26 = vld [vmem:[%s13510_s1 + $0x688] sm:$0xff] }
  0x4b   :  { %4944 = vmatprep.subr.bf16.mxu0 %v8463_v27  ;;  %5231 = vmatprep.subr.bf16.mxu1 %v8465_v28  ;;  %v266_v27 = vld [vmem:[%s13510_s1 + $0x6a8] sm:$0xff]  ;;  %v8518_v28 = vcombine.low %v253_v15, %v257_v16  ;;  %v8527_v30 = vcombine.high %v261_v24, %v265_v25  ;;  %v29_v15 = vld [vmem:[%s13511_s0 + $0x10] sm:$0xff] }
  0x4c   :  { %v8529_v31 = vcombine.high %v262_v26, %v266_v27  ;;  %v8528_v37 = vcombine.low %v262_v26, %v266_v27 }
  0x4e   :  { %4945 = vmatpush1.bf16.msra.mxu0 %v8462_v33  ;;  %5232 = vmatpush1.bf16.msra.mxu1 %v8464_v34  ;;  %v273_v33 = vld [vmem:[%s13510_s1 + $0x6e0] sm:$0xff]  ;;  %v270_v34 = vld [vmem:[%s13510_s1 + $0x6c8] sm:$0xff] }
  0x4f   :  { %4946 = vmatprep.subr.bf16.mxu0 %v8471_v35  ;;  %5233 = vmatprep.subr.bf16.mxu1 %v8473_v36  ;;  %v274_v35 = vld [vmem:[%s13510_s1 + $0x6e8] sm:$0xff]  ;;  %v8526_v36 = vcombine.low %v261_v24, %v265_v25  ;;  %v8535_v38 = vcombine.high %v269_v32, %v273_v33 }
  0x50   :  { %v8537_v39 = vcombine.high %v270_v34, %v274_v35  ;;  %v8536_v45 = vcombine.low %v270_v34, %v274_v35  ;;  %v322_v24 = vld [vmem:[%s13510_s1 + $0x868] sm:$0xff] }
  0x51   :  { %v32_v25 = vld [vmem:[%s13511_s0 + $0x28] sm:$0xff] }
  0x52   :  { %4947 = vmatpush1.bf16.msra.mxu0 %v8470_v41  ;;  %5234 = vmatpush1.bf16.msra.mxu1 %v8472_v42  ;;  %v281_v41 = vld [vmem:[%s13510_s1 + $0x720] sm:$0xff]  ;;  %v278_v42 = vld [vmem:[%s13510_s1 + $0x708] sm:$0xff] }
  0x53   :  { %4948 = vmatprep.subr.bf16.mxu0 %v8479_v43  ;;  %5235 = vmatprep.subr.bf16.mxu1 %v8481_v44  ;;  %v282_v43 = vld [vmem:[%s13510_s1 + $0x728] sm:$0xff]  ;;  %v8534_v44 = vcombine.low %v269_v32, %v273_v33  ;;  %v8543_v46 = vcombine.high %v277_v40, %v281_v41  ;;  %v10493_v32 = vpack.c.bf16 %v32_v25, %v32_v25 }
  0x54   :  { %v8545_v47 = vcombine.high %v278_v42, %v282_v43  ;;  %v8544_v53 = vcombine.low %v278_v42, %v282_v43  ;;  %v326_v33 = vld [vmem:[%s13510_s1 + $0x888] sm:$0xff] }
  0x55   :  { %v330_v34 = vld [vmem:[%s13510_s1 + $0x8a8] sm:$0xff] }
  0x56   :  { %4949 = vmatpush1.bf16.msra.mxu0 %v8478_v49  ;;  %5236 = vmatpush1.bf16.msra.mxu1 %v8480_v50  ;;  %v289_v49 = vld [vmem:[%s13510_s1 + $0x760] sm:$0xff]  ;;  %v286_v50 = vld [vmem:[%s13510_s1 + $0x748] sm:$0xff] }
  0x57   :  { %4950 = vmatprep.subr.bf16.mxu0 %v8487_v51  ;;  %5237 = vmatprep.subr.bf16.mxu1 %v8489_v52  ;;  %v290_v51 = vld [vmem:[%s13510_s1 + $0x768] sm:$0xff]  ;;  %v8542_v52 = vcombine.low %v277_v40, %v281_v41  ;;  %v8551_v54 = vcombine.high %v285_v48, %v289_v49  ;;  %v337_v40 = vld [vmem:[%s13510_s1 + $0x8e0] sm:$0xff] }
  0x58   :  { %v8553_v55 = vcombine.high %v286_v50, %v290_v51  ;;  %v8552_v62 = vcombine.low %v286_v50, %v290_v51  ;;  %v334_v41 = vld [vmem:[%s13510_s1 + $0x8c8] sm:$0xff] }
  0x59   :  { %v338_v42 = vld [vmem:[%s13510_s1 + $0x8e8] sm:$0xff] }
  0x5a   :  { %4951 = vmatpush1.bf16.msra.mxu0 %v8486_v58  ;;  %5238 = vmatpush1.bf16.msra.mxu1 %v8488_v59  ;;  %v297_v58 = vld [vmem:[%s13510_s1 + $0x7a0] sm:$0xff]  ;;  %v294_v59 = vld [vmem:[%s13510_s1 + $0x788] sm:$0xff] }
  0x5b   :  { %4952 = vmatprep.subr.bf16.mxu0 %v8495_v60  ;;  %5239 = vmatprep.subr.bf16.mxu1 %v8497_v61  ;;  %v298_v60 = vld [vmem:[%s13510_s1 + $0x7a8] sm:$0xff]  ;;  %v8550_v61 = vcombine.low %v285_v48, %v289_v49  ;;  %v8559_v63 = vcombine.high %v293_v56, %v297_v58  ;;  %v345_v48 = vld [vmem:[%s13510_s1 + $0x920] sm:$0xff] }
  0x5c   :  { %v8561_v0 = vcombine.high %v294_v59, %v298_v60  ;;  %v8560_v6 = vcombine.low %v294_v59, %v298_v60  ;;  %v342_v49 = vld [vmem:[%s13510_s1 + $0x908] sm:$0xff] }
  0x5d   :  { %v346_v50 = vld [vmem:[%s13510_s1 + $0x928] sm:$0xff] }
  0x5e   :  { %4953 = vmatpush1.bf16.msra.mxu0 %v8494_v2  ;;  %5240 = vmatpush1.bf16.msra.mxu1 %v8496_v3  ;;  %v305_v2 = vld [vmem:[%s13510_s1 + $0x7e0] sm:$0xff]  ;;  %v302_v3 = vld [vmem:[%s13510_s1 + $0x7c8] sm:$0xff] }
  0x5f   :  { %4954 = vmatprep.subr.bf16.mxu0 %v8503_v4  ;;  %5241 = vmatprep.subr.bf16.mxu1 %v8505_v5  ;;  %v306_v4 = vld [vmem:[%s13510_s1 + $0x7e8] sm:$0xff]  ;;  %v8558_v5 = vcombine.low %v293_v56, %v297_v58  ;;  %v8567_v7 = vcombine.high %v301_v1, %v305_v2  ;;  %v353_v56 = vld [vmem:[%s13510_s1 + $0x960] sm:$0xff] }
  0x60   :  { %v8569_v8 = vcombine.high %v302_v3, %v306_v4  ;;  %v8568_v16 = vcombine.low %v302_v3, %v306_v4  ;;  %v350_v58 = vld [vmem:[%s13510_s1 + $0x948] sm:$0xff] }
  0x61   :  { %v354_v59 = vld [vmem:[%s13510_s1 + $0x968] sm:$0xff] }
  0x62   :  { %4955 = vmatpush1.bf16.msra.mxu0 %v8502_v10  ;;  %5242 = vmatpush1.bf16.msra.mxu1 %v8504_v11  ;;  %v313_v10 = vld [vmem:[%s13510_s1 + $0x820] sm:$0xff]  ;;  %v310_v11 = vld [vmem:[%s13510_s1 + $0x808] sm:$0xff] }
  0x63   :  { %4956 = vmatprep.subr.bf16.mxu0 %v8511_v13  ;;  %5243 = vmatprep.subr.bf16.mxu1 %v8513_v14  ;;  %v314_v13 = vld [vmem:[%s13510_s1 + $0x828] sm:$0xff]  ;;  %v8566_v14 = vcombine.low %v301_v1, %v305_v2  ;;  %v8575_v17 = vcombine.high %v309_v9, %v313_v10  ;;  %v8574_v26 = vcombine.low %v309_v9, %v313_v10  ;;  %v361_v1 = vld [vmem:[%s13510_s1 + $0x9a0] sm:$0xff] }
  0x64   :  { %v8577_v18 = vcombine.high %v310_v11, %v314_v13  ;;  %v8576_v27 = vcombine.low %v310_v11, %v314_v13  ;;  %v358_v2 = vld [vmem:[%s13510_s1 + $0x988] sm:$0xff]  ;;  %v369_v9 = vld [vmem:[%s13510_s1 + $0x9e0] sm:$0xff] }
  0x65   :  { %v362_v3 = vld [vmem:[%s13510_s1 + $0x9a8] sm:$0xff] }
  0x66   :  { %4957 = vmatpush1.bf16.msra.mxu0 %v8510_v19  ;;  %5244 = vmatpush1.bf16.msra.mxu1 %v8512_v20  ;;  %v317_v19 = vld [vmem:[%s13510_s1 + $0x840] sm:$0xff]  ;;  %v366_v10 = vld [vmem:[%s13510_s1 + $0x9c8] sm:$0xff] }
  0x67   :  { %4958 = vmatprep.subr.bf16.mxu0 %v8519_v21  ;;  %5245 = vmatprep.subr.bf16.mxu1 %v8521_v23  ;;  %v321_v20 = vld [vmem:[%s13510_s1 + $0x860] sm:$0xff]  ;;  %v10476_v21 = vpack.c.bf16 %v29_v15, %v29_v15  ;;  %v318_v23 = vld [vmem:[%s13510_s1 + $0x848] sm:$0xff] }
  0x68   :  { %v8582_v35 = vcombine.low %v317_v19, %v321_v20  ;;  %v370_v11 = vld [vmem:[%s13510_s1 + $0x9e8] sm:$0xff] }
  0x6a   :  { %4959 = vmatpush1.bf16.msra.mxu0 %v8518_v28  ;;  %5246 = vmatpush1.bf16.msra.mxu1 %v8520_v29  ;;  %v8583_v28 = vcombine.high %v317_v19, %v321_v20  ;;  %v8585_v29 = vcombine.high %v318_v23, %v322_v24  ;;  %v374_v19 = vld [vmem:[%s13510_s1 + $0xa08] sm:$0xff] }
  0x6b   :  { %4960 = vmatprep.subr.bf16.mxu0 %v8527_v30  ;;  %5247 = vmatprep.subr.bf16.mxu1 %v8529_v31  ;;  %v325_v30 = vld [vmem:[%s13510_s1 + $0x880] sm:$0xff]  ;;  %v378_v20 = vld [vmem:[%s13510_s1 + $0xa28] sm:$0xff] }
  0x6c   :  { %v329_v31 = vld [vmem:[%s13510_s1 + $0x8a0] sm:$0xff] }
  0x6d   :  { %v8590_v43 = vcombine.low %v325_v30, %v329_v31 }
  0x6e   :  { %4961 = vmatpush1.bf16.msra.mxu0 %v8526_v36  ;;  %5248 = vmatpush1.bf16.msra.mxu1 %v8528_v37  ;;  %v8584_v36 = vcombine.low %v318_v23, %v322_v24  ;;  %v8591_v37 = vcombine.high %v325_v30, %v329_v31  ;;  %v8632_v24 = vcombine.low %v366_v10, %v370_v11  ;;  %v386_v30 = vld [vmem:[%s13510_s1 + $0xa68] sm:$0xff] }
  0x6f   :  { %4962 = vmatprep.subr.bf16.mxu0 %v8535_v38  ;;  %5249 = vmatprep.subr.bf16.mxu1 %v8537_v39  ;;  %v8593_v38 = vcombine.high %v326_v33, %v330_v34  ;;  %v333_v39 = vld [vmem:[%s13510_s1 + $0x8c0] sm:$0xff] }
  0x70   :  { %v8598_v51 = vcombine.low %v333_v39, %v337_v40 }
  0x72   :  { %4963 = vmatpush1.bf16.msra.mxu0 %v8534_v44  ;;  %5250 = vmatpush1.bf16.msra.mxu1 %v8536_v45  ;;  %v8592_v44 = vcombine.low %v326_v33, %v330_v34  ;;  %v8599_v45 = vcombine.high %v333_v39, %v337_v40  ;;  %v8640_v33 = vcombine.low %v374_v19, %v378_v20  ;;  %v394_v39 = vld [vmem:[%s13510_s1 + $0xaa8] sm:$0xff] }
  0x73   :  { %4964 = vmatprep.subr.bf16.mxu0 %v8543_v46  ;;  %5251 = vmatprep.subr.bf16.mxu1 %v8545_v47  ;;  %v8601_v46 = vcombine.high %v334_v41, %v338_v42  ;;  %v341_v47 = vld [vmem:[%s13510_s1 + $0x900] sm:$0xff] }
  0x74   :  { %v8606_v60 = vcombine.low %v341_v47, %v345_v48 }
  0x76   :  { %4965 = vmatpush1.bf16.msra.mxu0 %v8542_v52  ;;  %5252 = vmatpush1.bf16.msra.mxu1 %v8544_v53  ;;  %v8600_v52 = vcombine.low %v334_v41, %v338_v42  ;;  %v8607_v53 = vcombine.high %v341_v47, %v345_v48  ;;  %v402_v47 = vld [vmem:[%s13510_s1 + $0xae8] sm:$0xff] }
  0x77   :  { %4966 = vmatprep.subr.bf16.mxu0 %v8551_v54  ;;  %5253 = vmatprep.subr.bf16.mxu1 %v8553_v55  ;;  %v8609_v54 = vcombine.high %v342_v49, %v346_v50  ;;  %v349_v55 = vld [vmem:[%s13510_s1 + $0x940] sm:$0xff] }
  0x78   :  { %v8614_v4 = vcombine.low %v349_v55, %v353_v56 }
  0x7a   :  { %4967 = vmatpush1.bf16.msra.mxu0 %v8550_v61  ;;  %5254 = vmatpush1.bf16.msra.mxu1 %v8552_v62  ;;  %v8608_v61 = vcombine.low %v342_v49, %v346_v50  ;;  %v8615_v62 = vcombine.high %v349_v55, %v353_v56  ;;  %v410_v55 = vld [vmem:[%s13510_s1 + $0xb28] sm:$0xff] }
  0x7b   :  { %4968 = vmatprep.subr.bf16.mxu0 %v8559_v63  ;;  %5255 = vmatprep.subr.bf16.mxu1 %v8561_v0  ;;  %v8617_v63 = vcombine.high %v350_v58, %v354_v59  ;;  %v357_v0 = vld [vmem:[%s13510_s1 + $0x980] sm:$0xff] }
  0x7c   :  { %v8622_v13 = vcombine.low %v357_v0, %v361_v1 }
  0x7e   :  { %4969 = vmatpush1.bf16.msra.mxu0 %v8558_v5  ;;  %5256 = vmatpush1.bf16.msra.mxu1 %v8560_v6  ;;  %v8616_v5 = vcombine.low %v350_v58, %v354_v59  ;;  %v8623_v6 = vcombine.high %v357_v0, %v361_v1  ;;  %v418_v0 = vld [vmem:[%s13510_s1 + $0xb68] sm:$0xff] }
  0x7f   :  { %4970 = vmatprep.subr.bf16.mxu0 %v8567_v7  ;;  %5257 = vmatprep.subr.bf16.mxu1 %v8569_v8  ;;  %v8625_v7 = vcombine.high %v358_v2, %v362_v3  ;;  %v365_v8 = vld [vmem:[%s13510_s1 + $0x9c0] sm:$0xff] }
  0x80   :  { %v8631_v15 = vcombine.high %v365_v8, %v369_v9  ;;  %v8630_v23 = vcombine.low %v365_v8, %v369_v9  ;;  %v426_v8 = vld [vmem:[%s13510_s1 + $0xba8] sm:$0xff] }
  0x82   :  { %4971 = vmatpush1.bf16.msra.mxu0 %v8566_v14  ;;  %5258 = vmatpush1.bf16.msra.mxu1 %v8568_v16  ;;  %v8624_v14 = vcombine.low %v358_v2, %v362_v3  ;;  %v8633_v16 = vcombine.high %v366_v10, %v370_v11 }
  0x83   :  { %4981 = vmatprep.subr.bf16.mxu0 %v8575_v17  ;;  %5268 = vmatprep.subr.bf16.mxu1 %v8577_v18  ;;  %v373_v17 = vld [vmem:[%s13510_s1 + $0xa00] sm:$0xff] }
  0x84   :  { %v377_v18 = vld [vmem:[%s13510_s1 + $0xa20] sm:$0xff] }
  0x85   :  { %4973 = vmatmul.mubr.bf16.vlgmr.msra.gmra.mrb[0].mxu0 %v10476_v21  ;;  %5260 = vmatmul.mubr.bf16.vlgmr.msra.gmra.mrb[0].mxu1 %v10476_v21  ;;  %v8639_v25 = vcombine.high %v373_v17, %v377_v18  ;;  %v8638_v31 = vcombine.low %v373_v17, %v377_v18  ;;  %v434_v17 = vld [vmem:[%s13510_s1 + $0xbe8] sm:$0xff] }
  0x86   :  { %4982 = vmatpush1.bf16.msra.mxu0 %v8574_v26  ;;  %5269 = vmatpush1.bf16.msra.mxu1 %v8576_v27  ;;  %v8641_v26 = vcombine.high %v374_v19, %v378_v20  ;;  %v381_v27 = vld [vmem:[%s13510_s1 + $0xa40] sm:$0xff] }
  0x87   :  { %4983 = vmatprep.subr.bf16.mxu0 %v8583_v28  ;;  %5270 = vmatprep.subr.bf16.mxu1 %v8585_v29  ;;  %v385_v28 = vld [vmem:[%s13510_s1 + $0xa60] sm:$0xff]  ;;  %v382_v29 = vld [vmem:[%s13510_s1 + $0xa48] sm:$0xff] }
  0x88   :  { %5013 = vmatprep.mubr.bf16.mxu0 %v10493_v32  ;;  %5300 = vmatprep.mubr.bf16.mxu1 %v10493_v32  ;;  %v8647_v34 = vcombine.high %v381_v27, %v385_v28  ;;  %v8646_v40 = vcombine.low %v381_v27, %v385_v28  ;;  %v8648_v41 = vcombine.low %v382_v29, %v386_v30  ;;  %v442_v27 = vld [vmem:[%s13510_s1 + $0xc28] sm:$0xff] }
  0x8a   :  { %4984 = vmatpush1.bf16.msra.mxu0 %v8582_v35  ;;  %5271 = vmatpush1.bf16.msra.mxu1 %v8584_v36  ;;  %v8649_v35 = vcombine.high %v382_v29, %v386_v30  ;;  %v389_v36 = vld [vmem:[%s13510_s1 + $0xa80] sm:$0xff] }
  0x8b   :  { %4985 = vmatprep.subr.bf16.mxu0 %v8591_v37  ;;  %5272 = vmatprep.subr.bf16.mxu1 %v8593_v38  ;;  %v393_v37 = vld [vmem:[%s13510_s1 + $0xaa0] sm:$0xff]  ;;  %v390_v38 = vld [vmem:[%s13510_s1 + $0xa88] sm:$0xff] }
  0x8c   :  { %v8655_v42 = vcombine.high %v389_v36, %v393_v37  ;;  %v8654_v48 = vcombine.low %v389_v36, %v393_v37  ;;  %v8656_v49 = vcombine.low %v390_v38, %v394_v39  ;;  %v31_v29 = vld [vmem:[%s13511_s0 + $0x20] sm:$0xff]  ;;  %v446_v37 = vld [vmem:[%s13510_s1 + $0xc48] sm:$0xff] }
  0x8d   :  { %v10682_v36 = vpack.c.bf16 %v31_v29, %v31_v29 }
  0x8e   :  { %4986 = vmatpush1.bf16.msra.mxu0 %v8590_v43  ;;  %5273 = vmatpush1.bf16.msra.mxu1 %v8592_v44  ;;  %v8657_v43 = vcombine.high %v390_v38, %v394_v39  ;;  %v397_v44 = vld [vmem:[%s13510_s1 + $0xac0] sm:$0xff]  ;;  %v450_v38 = vld [vmem:[%s13510_s1 + $0xc68] sm:$0xff]  ;;  %v34_v39 = vld [vmem:[%s13511_s0 + $0x38] sm:$0xff] }
  0x8f   :  { %4987 = vmatprep.subr.bf16.mxu0 %v8599_v45  ;;  %5274 = vmatprep.subr.bf16.mxu1 %v8601_v46  ;;  %v401_v45 = vld [vmem:[%s13510_s1 + $0xae0] sm:$0xff]  ;;  %v398_v46 = vld [vmem:[%s13510_s1 + $0xac8] sm:$0xff] }
  0x90   :  { %v8663_v50 = vcombine.high %v397_v44, %v401_v45  ;;  %v8662_v56 = vcombine.low %v397_v44, %v401_v45  ;;  %v8664_v58 = vcombine.low %v398_v46, %v402_v47  ;;  %v453_v44 = vld [vmem:[%s13510_s1 + $0xc80] sm:$0xff] }
  0x91   :  { %v457_v45 = vld [vmem:[%s13510_s1 + $0xca0] sm:$0xff] }
  0x92   :  { %4988 = vmatpush1.bf16.msra.mxu0 %v8598_v51  ;;  %5275 = vmatpush1.bf16.msra.mxu1 %v8600_v52  ;;  %v8665_v51 = vcombine.high %v398_v46, %v402_v47  ;;  %v405_v52 = vld [vmem:[%s13510_s1 + $0xb00] sm:$0xff]  ;;  %v10699_v46 = vpack.c.bf16 %v34_v39, %v34_v39  ;;  %v454_v47 = vld [vmem:[%s13510_s1 + $0xc88] sm:$0xff] }
  0x93   :  { %4989 = vmatprep.subr.bf16.mxu0 %v8607_v53  ;;  %5276 = vmatprep.subr.bf16.mxu1 %v8609_v54  ;;  %v409_v53 = vld [vmem:[%s13510_s1 + $0xb20] sm:$0xff]  ;;  %v406_v54 = vld [vmem:[%s13510_s1 + $0xb08] sm:$0xff] }
  0x94   :  { %v8671_v59 = vcombine.high %v405_v52, %v409_v53  ;;  %v8670_v1 = vcombine.low %v405_v52, %v409_v53  ;;  %v8672_v2 = vcombine.low %v406_v54, %v410_v55  ;;  %v461_v53 = vld [vmem:[%s13510_s1 + $0xcc0] sm:$0xff] }
  0x96   :  { %4990 = vmatpush1.bf16.msra.mxu0 %v8606_v60  ;;  %5277 = vmatpush1.bf16.msra.mxu1 %v8608_v61  ;;  %v8673_v60 = vcombine.high %v406_v54, %v410_v55  ;;  %v413_v61 = vld [vmem:[%s13510_s1 + $0xb40] sm:$0xff]  ;;  %v462_v55 = vld [vmem:[%s13510_s1 + $0xcc8] sm:$0xff] }
  0x97   :  { %4991 = vmatprep.subr.bf16.mxu0 %v8615_v62  ;;  %5278 = vmatprep.subr.bf16.mxu1 %v8617_v63  ;;  %v417_v62 = vld [vmem:[%s13510_s1 + $0xb60] sm:$0xff]  ;;  %v414_v63 = vld [vmem:[%s13510_s1 + $0xb48] sm:$0xff] }
  0x98   :  { %v8679_v3 = vcombine.high %v413_v61, %v417_v62  ;;  %v8678_v9 = vcombine.low %v413_v61, %v417_v62  ;;  %v8680_v10 = vcombine.low %v414_v63, %v418_v0  ;;  %v465_v54 = vld [vmem:[%s13510_s1 + $0xce0] sm:$0xff] }
  0x99   :  { %v469_v62 = vld [vmem:[%s13510_s1 + $0xd00] sm:$0xff] }
  0x9a   :  { %4992 = vmatpush1.bf16.msra.mxu0 %v8614_v4  ;;  %5279 = vmatpush1.bf16.msra.mxu1 %v8616_v5  ;;  %v8681_v4 = vcombine.high %v414_v63, %v418_v0  ;;  %v421_v5 = vld [vmem:[%s13510_s1 + $0xb80] sm:$0xff]  ;;  %v470_v0 = vld [vmem:[%s13510_s1 + $0xd08] sm:$0xff] }
  0x9b   :  { %4993 = vmatprep.subr.bf16.mxu0 %v8623_v6  ;;  %5280 = vmatprep.subr.bf16.mxu1 %v8625_v7  ;;  %v425_v6 = vld [vmem:[%s13510_s1 + $0xba0] sm:$0xff]  ;;  %v422_v7 = vld [vmem:[%s13510_s1 + $0xb88] sm:$0xff] }
  0x9c   :  { %v8687_v11 = vcombine.high %v421_v5, %v425_v6  ;;  %v8686_v18 = vcombine.low %v421_v5, %v425_v6  ;;  %v8688_v19 = vcombine.low %v422_v7, %v426_v8  ;;  %v473_v63 = vld [vmem:[%s13510_s1 + $0xd20] sm:$0xff] }
  0x9d   :  { %v477_v6 = vld [vmem:[%s13510_s1 + $0xd40] sm:$0xff] }
  0x9e   :  { %4994 = vmatpush1.bf16.msra.mxu0 %v8622_v13  ;;  %5281 = vmatpush1.bf16.msra.mxu1 %v8624_v14  ;;  %v8689_v13 = vcombine.high %v422_v7, %v426_v8  ;;  %v429_v14 = vld [vmem:[%s13510_s1 + $0xbc0] sm:$0xff]  ;;  %v478_v8 = vld [vmem:[%s13510_s1 + $0xd48] sm:$0xff] }
  0x9f   :  { %4995 = vmatprep.subr.bf16.mxu0 %v8631_v15  ;;  %5282 = vmatprep.subr.bf16.mxu1 %v8633_v16  ;;  %v433_v15 = vld [vmem:[%s13510_s1 + $0xbe0] sm:$0xff]  ;;  %v430_v16 = vld [vmem:[%s13510_s1 + $0xbc8] sm:$0xff] }
  0xa0   :  { %v8695_v20 = vcombine.high %v429_v14, %v433_v15  ;;  %v8694_v28 = vcombine.low %v429_v14, %v433_v15  ;;  %v8696_v30 = vcombine.low %v430_v16, %v434_v17  ;;  %v481_v7 = vld [vmem:[%s13510_s1 + $0xd60] sm:$0xff] }
  0xa1   :  { %v485_v15 = vld [vmem:[%s13510_s1 + $0xd80] sm:$0xff] }
  0xa2   :  { %4996 = vmatpush1.bf16.msra.mxu0 %v8630_v23  ;;  %5283 = vmatpush1.bf16.msra.mxu1 %v8632_v24  ;;  %v8697_v23 = vcombine.high %v430_v16, %v434_v17  ;;  %v437_v24 = vld [vmem:[%s13510_s1 + $0xc00] sm:$0xff]  ;;  %v486_v17 = vld [vmem:[%s13510_s1 + $0xd88] sm:$0xff] }
  0xa3   :  { %4997 = vmatprep.subr.bf16.mxu0 %v8639_v25  ;;  %5284 = vmatprep.subr.bf16.mxu1 %v8641_v26  ;;  %v441_v25 = vld [vmem:[%s13510_s1 + $0xc20] sm:$0xff]  ;;  %v438_v26 = vld [vmem:[%s13510_s1 + $0xc08] sm:$0xff] }
  0xa4   :  { %v489_v16 = vld [vmem:[%s13510_s1 + $0xda0] sm:$0xff] }
  0xa5   :  { %v8750_v29 = vcombine.low %v485_v15, %v489_v16 }
  0xa6   :  { %4998 = vmatpush1.bf16.msra.mxu0 %v8638_v31  ;;  %5285 = vmatpush1.bf16.msra.mxu1 %v8640_v33  ;;  %v8703_v31 = vcombine.high %v437_v24, %v441_v25  ;;  %v8705_v33 = vcombine.high %v438_v26, %v442_v27 }
  0xa7   :  { %4999 = vmatprep.subr.bf16.mxu0 %v8647_v34  ;;  %5286 = vmatprep.subr.bf16.mxu1 %v8649_v35  ;;  %v445_v34 = vld [vmem:[%s13510_s1 + $0xc40] sm:$0xff] }
  0xa8   :  { %v449_v35 = vld [vmem:[%s13510_s1 + $0xc60] sm:$0xff] }
  0xaa   :  { %5000 = vmatpush1.bf16.msra.mxu0 %v8646_v40  ;;  %5287 = vmatpush1.bf16.msra.mxu1 %v8648_v41  ;;  %v8702_v40 = vcombine.low %v437_v24, %v441_v25  ;;  %v8704_v41 = vcombine.low %v438_v26, %v442_v27  ;;  %v493_v25 = vld [vmem:[%s13510_s1 + $0xdc0] sm:$0xff]  ;;  %v494_v27 = vld [vmem:[%s13510_s1 + $0xdc8] sm:$0xff] }
  0xab   :  { %5001 = vmatprep.subr.bf16.mxu0 %v8655_v42  ;;  %5288 = vmatprep.subr.bf16.mxu1 %v8657_v43  ;;  %v8711_v42 = vcombine.high %v445_v34, %v449_v35  ;;  %v8713_v43 = vcombine.high %v446_v37, %v450_v38  ;;  %v497_v26 = vld [vmem:[%s13510_s1 + $0xde0] sm:$0xff] }
  0xac   :  { %v8758_v39 = vcombine.low %v493_v25, %v497_v26 }
  0xae   :  { %5002 = vmatpush1.bf16.msra.mxu0 %v8654_v48  ;;  %5289 = vmatpush1.bf16.msra.mxu1 %v8656_v49  ;;  %v458_v48 = vld [vmem:[%s13510_s1 + $0xca8] sm:$0xff]  ;;  %v8710_v49 = vcombine.low %v445_v34, %v449_v35  ;;  %v501_v34 = vld [vmem:[%s13510_s1 + $0xe00] sm:$0xff] }
  0xaf   :  { %5003 = vmatprep.subr.bf16.mxu0 %v8663_v50  ;;  %5290 = vmatprep.subr.bf16.mxu1 %v8665_v51  ;;  %v8712_v50 = vcombine.low %v446_v37, %v450_v38  ;;  %v8719_v51 = vcombine.high %v453_v44, %v457_v45  ;;  %v8721_v52 = vcombine.high %v454_v47, %v458_v48  ;;  %v505_v35 = vld [vmem:[%s13510_s1 + $0xe20] sm:$0xff]  ;;  %v502_v37 = vld [vmem:[%s13510_s1 + $0xe08] sm:$0xff] }
  0xb0   :  { %v506_v38 = vld [vmem:[%s13510_s1 + $0xe28] sm:$0xff] }
  0xb2   :  { %5004 = vmatpush1.bf16.msra.mxu0 %v8662_v56  ;;  %5291 = vmatpush1.bf16.msra.mxu1 %v8664_v58  ;;  %v466_v56 = vld [vmem:[%s13510_s1 + $0xce8] sm:$0xff]  ;;  %v8718_v58 = vcombine.low %v453_v44, %v457_v45  ;;  %v513_v44 = vld [vmem:[%s13510_s1 + $0xe60] sm:$0xff] }
  0xb3   :  { %5005 = vmatprep.subr.bf16.mxu0 %v8671_v59  ;;  %5292 = vmatprep.subr.bf16.mxu1 %v8673_v60  ;;  %v8720_v59 = vcombine.low %v454_v47, %v458_v48  ;;  %v8727_v60 = vcombine.high %v461_v53, %v465_v54  ;;  %v8729_v61 = vcombine.high %v462_v55, %v466_v56  ;;  %v510_v45 = vld [vmem:[%s13510_s1 + $0xe48] sm:$0xff] }
  0xb4   :  { %v514_v47 = vld [vmem:[%s13510_s1 + $0xe68] sm:$0xff]  ;;  %v8766_v48 = vcombine.low %v501_v34, %v505_v35 }
  0xb6   :  { %5006 = vmatpush1.bf16.msra.mxu0 %v8670_v1  ;;  %5293 = vmatpush1.bf16.msra.mxu1 %v8672_v2  ;;  %v474_v1 = vld [vmem:[%s13510_s1 + $0xd28] sm:$0xff]  ;;  %v8726_v2 = vcombine.low %v461_v53, %v465_v54  ;;  %v521_v53 = vld [vmem:[%s13510_s1 + $0xea0] sm:$0xff] }
  0xb7   :  { %5007 = vmatprep.subr.bf16.mxu0 %v8679_v3  ;;  %5294 = vmatprep.subr.bf16.mxu1 %v8681_v4  ;;  %v8728_v3 = vcombine.low %v462_v55, %v466_v56  ;;  %v8735_v4 = vcombine.high %v469_v62, %v473_v63  ;;  %v8737_v5 = vcombine.high %v470_v0, %v474_v1  ;;  %v518_v54 = vld [vmem:[%s13510_s1 + $0xe88] sm:$0xff] }
  0xb8   :  { %v522_v55 = vld [vmem:[%s13510_s1 + $0xea8] sm:$0xff] }
  0xba   :  { %5008 = vmatpush1.bf16.msra.mxu0 %v8678_v9  ;;  %5295 = vmatpush1.bf16.msra.mxu1 %v8680_v10  ;;  %v482_v9 = vld [vmem:[%s13510_s1 + $0xd68] sm:$0xff]  ;;  %v8734_v10 = vcombine.low %v469_v62, %v473_v63  ;;  %v529_v62 = vld [vmem:[%s13510_s1 + $0xee0] sm:$0xff] }
  0xbb   :  { %5009 = vmatprep.subr.bf16.mxu0 %v8687_v11  ;;  %5296 = vmatprep.subr.bf16.mxu1 %v8689_v13  ;;  %v8736_v11 = vcombine.low %v470_v0, %v474_v1  ;;  %v8743_v13 = vcombine.high %v477_v6, %v481_v7  ;;  %v8745_v14 = vcombine.high %v478_v8, %v482_v9  ;;  %v526_v63 = vld [vmem:[%s13510_s1 + $0xec8] sm:$0xff] }
  0xbc   :  { %v530_v0 = vld [vmem:[%s13510_s1 + $0xee8] sm:$0xff] }
  0xbe   :  { %5010 = vmatpush1.bf16.msra.mxu0 %v8686_v18  ;;  %5297 = vmatpush1.bf16.msra.mxu1 %v8688_v19  ;;  %v490_v18 = vld [vmem:[%s13510_s1 + $0xda8] sm:$0xff]  ;;  %v8742_v19 = vcombine.low %v477_v6, %v481_v7  ;;  %v537_v6 = vld [vmem:[%s13510_s1 + $0xf20] sm:$0xff] }
  0xbf   :  { %5011 = vmatprep.subr.bf16.mxu0 %v8695_v20  ;;  %5298 = vmatprep.subr.bf16.mxu1 %v8697_v23  ;;  %v8744_v20 = vcombine.low %v478_v8, %v482_v9  ;;  %v8751_v23 = vcombine.high %v485_v15, %v489_v16  ;;  %v8753_v24 = vcombine.high %v486_v17, %v490_v18  ;;  %v534_v7 = vld [vmem:[%s13510_s1 + $0xf08] sm:$0xff]  ;;  %v545_v15 = vld [vmem:[%s13510_s1 + $0xf60] sm:$0xff] }
  0xc0   :  { %v538_v8 = vld [vmem:[%s13510_s1 + $0xf28] sm:$0xff] }
  0xc1   :  { %v542_v16 = vld [vmem:[%s13510_s1 + $0xf48] sm:$0xff] }
  0xc2   :  { %5012 = vmatpush1.bf16.msra.mxu0 %v8694_v28  ;;  %5299 = vmatpush1.bf16.msra.mxu1 %v8696_v30  ;;  %v498_v28 = vld [vmem:[%s13510_s1 + $0xde8] sm:$0xff]  ;;  %v8752_v30 = vcombine.low %v486_v17, %v490_v18 }
  0xc3   :  { %5022 = vmatprep.subr.bf16.mxu0 %v8703_v31  ;;  %5309 = vmatprep.subr.bf16.mxu1 %v8705_v33  ;;  %v8759_v31 = vcombine.high %v493_v25, %v497_v26  ;;  %v8761_v33 = vcombine.high %v494_v27, %v498_v28  ;;  %v546_v17 = vld [vmem:[%s13510_s1 + $0xf68] sm:$0xff]  ;;  %v553_v25 = vld [vmem:[%s13510_s1 + $0xfa0] sm:$0xff] }
  0xc4   :  { %v550_v26 = vld [vmem:[%s13510_s1 + $0xf88] sm:$0xff] }
  0xc5   :  { %5014 = vmatmul.mubr.bf16.vlgmr.msra.gmra.mrb[0].mxu0 %v10682_v36  ;;  %5301 = vmatmul.mubr.bf16.vlgmr.msra.gmra.mrb[0].mxu1 %v10682_v36 }
  0xc6   :  { %5023 = vmatpush1.bf16.msra.mxu0 %v8702_v40  ;;  %5310 = vmatpush1.bf16.msra.mxu1 %v8704_v41  ;;  %v8760_v40 = vcombine.low %v494_v27, %v498_v28  ;;  %v8767_v41 = vcombine.high %v501_v34, %v505_v35  ;;  %v554_v27 = vld [vmem:[%s13510_s1 + $0xfa8] sm:$0xff]  ;;  %v561_v34 = vld [vmem:[%s13510_s1 + $0xfe0] sm:$0xff] }
  0xc7   :  { %5024 = vmatprep.subr.bf16.mxu0 %v8711_v42  ;;  %5311 = vmatprep.subr.bf16.mxu1 %v8713_v43  ;;  %v8769_v42 = vcombine.high %v502_v37, %v506_v38  ;;  %v509_v43 = vld [vmem:[%s13510_s1 + $0xe40] sm:$0xff]  ;;  %v558_v35 = vld [vmem:[%s13510_s1 + $0xfc8] sm:$0xff] }
  0xc8   :  { %5054 = vmatprep.mubr.bf16.mxu0 %v10699_v46  ;;  %5341 = vmatprep.mubr.bf16.mxu1 %v10699_v46  ;;  %v8774_v56 = vcombine.low %v509_v43, %v513_v44 }
  0xca   :  { %5025 = vmatpush1.bf16.msra.mxu0 %v8710_v49  ;;  %5312 = vmatpush1.bf16.msra.mxu1 %v8712_v50  ;;  %v8768_v49 = vcombine.low %v502_v37, %v506_v38  ;;  %v8775_v50 = vcombine.high %v509_v43, %v513_v44  ;;  %v562_v37 = vld [vmem:[%s13510_s1 + $0xfe8] sm:$0xff]  ;;  %v569_v43 = vld [vmem:[%s13510_s1 + $0x1020] sm:$0xff] }
  0xcb   :  { %5026 = vmatprep.subr.bf16.mxu0 %v8719_v51  ;;  %5313 = vmatprep.subr.bf16.mxu1 %v8721_v52  ;;  %v8777_v51 = vcombine.high %v510_v45, %v514_v47  ;;  %v517_v52 = vld [vmem:[%s13510_s1 + $0xe80] sm:$0xff]  ;;  %v566_v44 = vld [vmem:[%s13510_s1 + $0x1008] sm:$0xff] }
  0xcc   :  { %v8782_v1 = vcombine.low %v517_v52, %v521_v53 }
  0xce   :  { %5027 = vmatpush1.bf16.msra.mxu0 %v8718_v58  ;;  %5314 = vmatpush1.bf16.msra.mxu1 %v8720_v59  ;;  %v8776_v58 = vcombine.low %v510_v45, %v514_v47  ;;  %v8783_v59 = vcombine.high %v517_v52, %v521_v53  ;;  %v570_v45 = vld [vmem:[%s13510_s1 + $0x1028] sm:$0xff]  ;;  %v573_v52 = vld [vmem:[%s13510_s1 + $0x1040] sm:$0xff] }
  0xcf   :  { %5028 = vmatprep.subr.bf16.mxu0 %v8727_v60  ;;  %5315 = vmatprep.subr.bf16.mxu1 %v8729_v61  ;;  %v8785_v60 = vcombine.high %v518_v54, %v522_v55  ;;  %v525_v61 = vld [vmem:[%s13510_s1 + $0xec0] sm:$0xff] }
  0xd0   :  { %v8790_v9 = vcombine.low %v525_v61, %v529_v62  ;;  %v577_v53 = vld [vmem:[%s13510_s1 + $0x1060] sm:$0xff] }
  0xd2   :  { %5029 = vmatpush1.bf16.msra.mxu0 %v8726_v2  ;;  %5316 = vmatpush1.bf16.msra.mxu1 %v8728_v3  ;;  %v8784_v2 = vcombine.low %v518_v54, %v522_v55  ;;  %v8791_v3 = vcombine.high %v525_v61, %v529_v62  ;;  %v574_v55 = vld [vmem:[%s13510_s1 + $0x1048] sm:$0xff]  ;;  %v8839_v61 = vcombine.high %v573_v52, %v577_v53 }
  0xd3   :  { %5030 = vmatprep.subr.bf16.mxu0 %v8735_v4  ;;  %5317 = vmatprep.subr.bf16.mxu1 %v8737_v5  ;;  %v8793_v4 = vcombine.high %v526_v63, %v530_v0  ;;  %v533_v5 = vld [vmem:[%s13510_s1 + $0xf00] sm:$0xff] }
  0xd4   :  { %v8798_v18 = vcombine.low %v533_v5, %v537_v6 }
  0xd6   :  { %5031 = vmatpush1.bf16.msra.mxu0 %v8734_v10  ;;  %5318 = vmatpush1.bf16.msra.mxu1 %v8736_v11  ;;  %v8792_v10 = vcombine.low %v526_v63, %v530_v0  ;;  %v8799_v11 = vcombine.high %v533_v5, %v537_v6  ;;  %v581_v63 = vld [vmem:[%s13510_s1 + $0x1080] sm:$0xff] }
  0xd7   :  { %5032 = vmatprep.subr.bf16.mxu0 %v8743_v13  ;;  %5319 = vmatprep.subr.bf16.mxu1 %v8745_v14  ;;  %v8801_v13 = vcombine.high %v534_v7, %v538_v8  ;;  %v541_v14 = vld [vmem:[%s13510_s1 + $0xf40] sm:$0xff] }
  0xd8   :  { %v8806_v28 = vcombine.low %v541_v14, %v545_v15  ;;  %v585_v0 = vld [vmem:[%s13510_s1 + $0x10a0] sm:$0xff] }
  0xd9   :  { %v8847_v6 = vcombine.high %v581_v63, %v585_v0 }
  0xda   :  { %5033 = vmatpush1.bf16.msra.mxu0 %v8742_v19  ;;  %5320 = vmatpush1.bf16.msra.mxu1 %v8744_v20  ;;  %v8800_v19 = vcombine.low %v534_v7, %v538_v8  ;;  %v8807_v20 = vcombine.high %v541_v14, %v545_v15  ;;  %v589_v8 = vld [vmem:[%s13510_s1 + $0x10c0] sm:$0xff] }
  0xdb   :  { %5034 = vmatprep.subr.bf16.mxu0 %v8751_v23  ;;  %5321 = vmatprep.subr.bf16.mxu1 %v8753_v24  ;;  %v8809_v23 = vcombine.high %v542_v16, %v546_v17  ;;  %v549_v24 = vld [vmem:[%s13510_s1 + $0xf80] sm:$0xff] }
  0xdc   :  { %v8814_v38 = vcombine.low %v549_v24, %v553_v25 }
  0xde   :  { %5035 = vmatpush1.bf16.msra.mxu0 %v8750_v29  ;;  %5322 = vmatpush1.bf16.msra.mxu1 %v8752_v30  ;;  %v8808_v29 = vcombine.low %v542_v16, %v546_v17  ;;  %v8815_v30 = vcombine.high %v549_v24, %v553_v25  ;;  %v597_v17 = vld [vmem:[%s13510_s1 + $0x1100] sm:$0xff] }
  0xdf   :  { %5036 = vmatprep.subr.bf16.mxu0 %v8759_v31  ;;  %5323 = vmatprep.subr.bf16.mxu1 %v8761_v33  ;;  %v8817_v31 = vcombine.high %v550_v26, %v554_v27  ;;  %v557_v33 = vld [vmem:[%s13510_s1 + $0xfc0] sm:$0xff] }
  0xe0   :  { %v8822_v47 = vcombine.low %v557_v33, %v561_v34 }
  0xe2   :  { %5037 = vmatpush1.bf16.msra.mxu0 %v8758_v39  ;;  %5324 = vmatpush1.bf16.msra.mxu1 %v8760_v40  ;;  %v8816_v39 = vcombine.low %v550_v26, %v554_v27  ;;  %v8823_v40 = vcombine.high %v557_v33, %v561_v34  ;;  %v605_v27 = vld [vmem:[%s13510_s1 + $0x1140] sm:$0xff] }
  0xe3   :  { %5038 = vmatprep.subr.bf16.mxu0 %v8767_v41  ;;  %5325 = vmatprep.subr.bf16.mxu1 %v8769_v42  ;;  %v8825_v41 = vcombine.high %v558_v35, %v562_v37  ;;  %v565_v42 = vld [vmem:[%s13510_s1 + $0x1000] sm:$0xff] }
  0xe6   :  { %5039 = vmatpush1.bf16.msra.mxu0 %v8766_v48  ;;  %5326 = vmatpush1.bf16.msra.mxu1 %v8768_v49  ;;  %v33_v48 = vld [vmem:[%s13511_s0 + $0x30] sm:$0xff]  ;;  %v8824_v49 = vcombine.low %v558_v35, %v562_v37  ;;  %v613_v37 = vld [vmem:[%s13510_s1 + $0x1180] sm:$0xff] }
  0xe7   :  { %5040 = vmatprep.subr.bf16.mxu0 %v8775_v50  ;;  %5327 = vmatprep.subr.bf16.mxu1 %v8777_v51  ;;  %v8831_v50 = vcombine.high %v565_v42, %v569_v43  ;;  %v8833_v51 = vcombine.high %v566_v44, %v570_v45  ;;  %v10888_v54 = vpack.c.bf16 %v33_v48, %v33_v48  ;;  %v622_v48 = vld [vmem:[%s13510_s1 + $0x11c8] sm:$0xff] }
  0xea   :  { %5041 = vmatpush1.bf16.msra.mxu0 %v8774_v56  ;;  %5328 = vmatpush1.bf16.msra.mxu1 %v8776_v58  ;;  %v578_v56 = vld [vmem:[%s13510_s1 + $0x1068] sm:$0xff] }
  0xeb   :  { %5042 = vmatprep.subr.bf16.mxu0 %v8783_v59  ;;  %5329 = vmatprep.subr.bf16.mxu1 %v8785_v60  ;;  %v36_v58 = vld [vmem:[%s13511_s0 + $0x48] sm:$0xff]  ;;  %v8830_v59 = vcombine.low %v565_v42, %v569_v43  ;;  %v8832_v60 = vcombine.low %v566_v44, %v570_v45  ;;  %v8841_v62 = vcombine.high %v574_v55, %v578_v56  ;;  %v621_v45 = vld [vmem:[%s13510_s1 + $0x11c0] sm:$0xff] }
  0xec   :  { %v8840_v5 = vcombine.low %v574_v55, %v578_v56  ;;  %v629_v55 = vld [vmem:[%s13510_s1 + $0x1200] sm:$0xff] }
  0xed   :  { %v633_v56 = vld [vmem:[%s13510_s1 + $0x1220] sm:$0xff] }
  0xee   :  { %5043 = vmatpush1.bf16.msra.mxu0 %v8782_v1  ;;  %5330 = vmatpush1.bf16.msra.mxu1 %v8784_v2  ;;  %v10905_v1 = vpack.c.bf16 %v36_v58, %v36_v58  ;;  %v582_v2 = vld [vmem:[%s13510_s1 + $0x1088] sm:$0xff] }
  0xef   :  { %5044 = vmatprep.subr.bf16.mxu0 %v8791_v3  ;;  %5331 = vmatprep.subr.bf16.mxu1 %v8793_v4  ;;  %v586_v3 = vld [vmem:[%s13510_s1 + $0x10a8] sm:$0xff]  ;;  %v8838_v4 = vcombine.low %v573_v52, %v577_v53 }
  0xf0   :  { %v8849_v7 = vcombine.high %v582_v2, %v586_v3  ;;  %v8848_v14 = vcombine.low %v582_v2, %v586_v3  ;;  %v630_v58 = vld [vmem:[%s13510_s1 + $0x1208] sm:$0xff]  ;;  %v641_v2 = vld [vmem:[%s13510_s1 + $0x1260] sm:$0xff] }
  0xf1   :  { %v638_v3 = vld [vmem:[%s13510_s1 + $0x1248] sm:$0xff] }
  0xf2   :  { %5045 = vmatpush1.bf16.msra.mxu0 %v8790_v9  ;;  %5332 = vmatpush1.bf16.msra.mxu1 %v8792_v10  ;;  %v593_v9 = vld [vmem:[%s13510_s1 + $0x10e0] sm:$0xff]  ;;  %v590_v10 = vld [vmem:[%s13510_s1 + $0x10c8] sm:$0xff] }
  0xf3   :  { %5046 = vmatprep.subr.bf16.mxu0 %v8799_v11  ;;  %5333 = vmatprep.subr.bf16.mxu1 %v8801_v13  ;;  %v594_v11 = vld [vmem:[%s13510_s1 + $0x10e8] sm:$0xff]  ;;  %v8846_v13 = vcombine.low %v581_v63, %v585_v0  ;;  %v8855_v15 = vcombine.high %v589_v8, %v593_v9  ;;  %v637_v0 = vld [vmem:[%s13510_s1 + $0x1240] sm:$0xff] }
  0xf4   :  { %v8857_v16 = vcombine.high %v590_v10, %v594_v11  ;;  %v8856_v24 = vcombine.low %v590_v10, %v594_v11  ;;  %v649_v10 = vld [vmem:[%s13510_s1 + $0x12a0] sm:$0xff]  ;;  %v646_v11 = vld [vmem:[%s13510_s1 + $0x1288] sm:$0xff] }
  0xf6   :  { %5047 = vmatpush1.bf16.msra.mxu0 %v8798_v18  ;;  %5334 = vmatpush1.bf16.msra.mxu1 %v8800_v19  ;;  %v601_v18 = vld [vmem:[%s13510_s1 + $0x1120] sm:$0xff]  ;;  %v598_v19 = vld [vmem:[%s13510_s1 + $0x1108] sm:$0xff] }
  0xf7   :  { %5048 = vmatprep.subr.bf16.mxu0 %v8807_v20  ;;  %5335 = vmatprep.subr.bf16.mxu1 %v8809_v23  ;;  %v602_v20 = vld [vmem:[%s13510_s1 + $0x1128] sm:$0xff]  ;;  %v8854_v23 = vcombine.low %v589_v8, %v593_v9  ;;  %v8863_v25 = vcombine.high %v597_v17, %v601_v18  ;;  %v645_v9 = vld [vmem:[%s13510_s1 + $0x1280] sm:$0xff] }
  0xf8   :  { %v8865_v26 = vcombine.high %v598_v19, %v602_v20  ;;  %v8864_v33 = vcombine.low %v598_v19, %v602_v20  ;;  %v657_v19 = vld [vmem:[%s13510_s1 + $0x12e0] sm:$0xff]  ;;  %v654_v20 = vld [vmem:[%s13510_s1 + $0x12c8] sm:$0xff] }
  0xfa   :  { %5049 = vmatpush1.bf16.msra.mxu0 %v8806_v28  ;;  %5336 = vmatpush1.bf16.msra.mxu1 %v8808_v29  ;;  %v609_v28 = vld [vmem:[%s13510_s1 + $0x1160] sm:$0xff]  ;;  %v606_v29 = vld [vmem:[%s13510_s1 + $0x1148] sm:$0xff] }
  0xfb   :  { %5050 = vmatprep.subr.bf16.mxu0 %v8815_v30  ;;  %5337 = vmatprep.subr.bf16.mxu1 %v8817_v31  ;;  %v610_v30 = vld [vmem:[%s13510_s1 + $0x1168] sm:$0xff]  ;;  %v8862_v31 = vcombine.low %v597_v17, %v601_v18  ;;  %v8871_v34 = vcombine.high %v605_v27, %v609_v28  ;;  %v653_v18 = vld [vmem:[%s13510_s1 + $0x12c0] sm:$0xff] }
  0xfc   :  { %v8873_v35 = vcombine.high %v606_v29, %v610_v30  ;;  %v8872_v42 = vcombine.low %v606_v29, %v610_v30  ;;  %v665_v29 = vld [vmem:[%s13510_s1 + $0x1320] sm:$0xff]  ;;  %v662_v30 = vld [vmem:[%s13510_s1 + $0x1308] sm:$0xff] }
  0xfe   :  { %5051 = vmatpush1.bf16.msra.mxu0 %v8814_v38  ;;  %5338 = vmatpush1.bf16.msra.mxu1 %v8816_v39  ;;  %v617_v38 = vld [vmem:[%s13510_s1 + $0x11a0] sm:$0xff]  ;;  %v614_v39 = vld [vmem:[%s13510_s1 + $0x1188] sm:$0xff] }
  0xff   :  { %5052 = vmatprep.subr.bf16.mxu0 %v8823_v40  ;;  %5339 = vmatprep.subr.bf16.mxu1 %v8825_v41  ;;  %v618_v40 = vld [vmem:[%s13510_s1 + $0x11a8] sm:$0xff]  ;;  %v8870_v41 = vcombine.low %v605_v27, %v609_v28  ;;  %v8879_v43 = vcombine.high %v613_v37, %v617_v38  ;;  %v661_v28 = vld [vmem:[%s13510_s1 + $0x1300] sm:$0xff] }
 0x100   :  { %v8881_v44 = vcombine.high %v614_v39, %v618_v40 }
 0x102   :  { %5053 = vmatpush1.bf16.msra.mxu0 %v8822_v47  ;;  %5340 = vmatpush1.bf16.msra.mxu1 %v8824_v49  ;;  %v625_v47 = vld [vmem:[%s13510_s1 + $0x11e0] sm:$0xff]  ;;  %v626_v49 = vld [vmem:[%s13510_s1 + $0x11e8] sm:$0xff] }
 0x103   :  { %5063 = vmatprep.subr.bf16.mxu0 %v8831_v50  ;;  %5350 = vmatprep.subr.bf16.mxu1 %v8833_v51  ;;  %v8878_v50 = vcombine.low %v613_v37, %v617_v38  ;;  %v8880_v51 = vcombine.low %v614_v39, %v618_v40  ;;  %v8887_v52 = vcombine.high %v621_v45, %v625_v47  ;;  %v669_v38 = vld [vmem:[%s13510_s1 + $0x1340] sm:$0xff]  ;;  %v670_v40 = vld [vmem:[%s13510_s1 + $0x1348] sm:$0xff] }
 0x104   :  { %v8889_v53 = vcombine.high %v622_v48, %v626_v49  ;;  %v673_v39 = vld [vmem:[%s13510_s1 + $0x1360] sm:$0xff] }
 0x105   :  { %5055 = vmatmul.mubr.bf16.vlgmr.msra.gmra.mrb[0].mxu0 %v10888_v54  ;;  %5342 = vmatmul.mubr.bf16.vlgmr.msra.gmra.mrb[0].mxu1 %v10888_v54 }
 0x106   :  { %5064 = vmatpush1.bf16.msra.mxu0 %v8830_v59  ;;  %5351 = vmatpush1.bf16.msra.mxu1 %v8832_v60  ;;  %v634_v59 = vld [vmem:[%s13510_s1 + $0x1228] sm:$0xff]  ;;  %v8886_v60 = vcombine.low %v621_v45, %v625_v47  ;;  %v677_v47 = vld [vmem:[%s13510_s1 + $0x1380] sm:$0xff] }
 0x107   :  { %5065 = vmatprep.subr.bf16.mxu0 %v8839_v61  ;;  %5352 = vmatprep.subr.bf16.mxu1 %v8841_v62  ;;  %v8888_v61 = vcombine.low %v622_v48, %v626_v49  ;;  %v8895_v62 = vcombine.high %v629_v55, %v633_v56  ;;  %v8897_v63 = vcombine.high %v630_v58, %v634_v59  ;;  %v681_v48 = vld [vmem:[%s13510_s1 + $0x13a0] sm:$0xff]  ;;  %v678_v49 = vld [vmem:[%s13510_s1 + $0x1388] sm:$0xff] }
 0x108   :  { %5095 = vmatprep.mubr.bf16.mxu0 %v10905_v1  ;;  %5382 = vmatprep.mubr.bf16.mxu1 %v10905_v1 }
 0x10a   :  { %5066 = vmatpush1.bf16.msra.mxu0 %v8838_v4  ;;  %5353 = vmatpush1.bf16.msra.mxu1 %v8840_v5  ;;  %v642_v4 = vld [vmem:[%s13510_s1 + $0x1268] sm:$0xff]  ;;  %v8894_v5 = vcombine.low %v629_v55, %v633_v56  ;;  %v685_v56 = vld [vmem:[%s13510_s1 + $0x13c0] sm:$0xff] }
 0x10b   :  { %5067 = vmatprep.subr.bf16.mxu0 %v8847_v6  ;;  %5354 = vmatprep.subr.bf16.mxu1 %v8849_v7  ;;  %v8896_v6 = vcombine.low %v630_v58, %v634_v59  ;;  %v8903_v7 = vcombine.high %v637_v0, %v641_v2  ;;  %v8905_v8 = vcombine.high %v638_v3, %v642_v4  ;;  %v689_v58 = vld [vmem:[%s13510_s1 + $0x13e0] sm:$0xff]  ;;  %v686_v59 = vld [vmem:[%s13510_s1 + $0x13c8] sm:$0xff] }
 0x10e   :  { %5068 = vmatpush1.bf16.msra.mxu0 %v8846_v13  ;;  %5355 = vmatpush1.bf16.msra.mxu1 %v8848_v14  ;;  %v650_v13 = vld [vmem:[%s13510_s1 + $0x12a8] sm:$0xff]  ;;  %v8902_v14 = vcombine.low %v637_v0, %v641_v2  ;;  %v693_v2 = vld [vmem:[%s13510_s1 + $0x1400] sm:$0xff] }
 0x10f   :  { %5069 = vmatprep.subr.bf16.mxu0 %v8855_v15  ;;  %5356 = vmatprep.subr.bf16.mxu1 %v8857_v16  ;;  %v8904_v15 = vcombine.low %v638_v3, %v642_v4  ;;  %v8911_v16 = vcombine.high %v645_v9, %v649_v10  ;;  %v8913_v17 = vcombine.high %v646_v11, %v650_v13  ;;  %v697_v3 = vld [vmem:[%s13510_s1 + $0x1420] sm:$0xff]  ;;  %v694_v4 = vld [vmem:[%s13510_s1 + $0x1408] sm:$0xff] }
 0x112   :  { %5070 = vmatpush1.bf16.msra.mxu0 %v8854_v23  ;;  %5357 = vmatpush1.bf16.msra.mxu1 %v8856_v24  ;;  %v658_v23 = vld [vmem:[%s13510_s1 + $0x12e8] sm:$0xff]  ;;  %v8910_v24 = vcombine.low %v645_v9, %v649_v10  ;;  %v8959_v9 = vcombine.high %v693_v2, %v697_v3 }
 0x113   :  { %5071 = vmatprep.subr.bf16.mxu0 %v8863_v25  ;;  %5358 = vmatprep.subr.bf16.mxu1 %v8865_v26  ;;  %v8912_v25 = vcombine.low %v646_v11, %v650_v13  ;;  %v8919_v26 = vcombine.high %v653_v18, %v657_v19  ;;  %v8921_v27 = vcombine.high %v654_v20, %v658_v23  ;;  %v701_v11 = vld [vmem:[%s13510_s1 + $0x1440] sm:$0xff] }
 0x114   :  { %v705_v13 = vld [vmem:[%s13510_s1 + $0x1460] sm:$0xff] }
 0x116   :  { %5072 = vmatpush1.bf16.msra.mxu0 %v8862_v31  ;;  %5359 = vmatpush1.bf16.msra.mxu1 %v8864_v33  ;;  %v666_v31 = vld [vmem:[%s13510_s1 + $0x1328] sm:$0xff]  ;;  %v8918_v33 = vcombine.low %v653_v18, %v657_v19  ;;  %v8958_v18 = vcombine.low %v693_v2, %v697_v3 }
 0x117   :  { %5073 = vmatprep.subr.bf16.mxu0 %v8871_v34  ;;  %5360 = vmatprep.subr.bf16.mxu1 %v8873_v35  ;;  %v8920_v34 = vcombine.low %v654_v20, %v658_v23  ;;  %v8927_v35 = vcombine.high %v661_v28, %v665_v29  ;;  %v8929_v37 = vcombine.high %v662_v30, %v666_v31  ;;  %v746_v2 = vld [vmem:[%s13510_s1 + $0x15a8] sm:$0xff] }
 0x118   :  { %v8967_v20 = vcombine.high %v701_v11, %v705_v13 }
 0x11a   :  { %5074 = vmatpush1.bf16.msra.mxu0 %v8870_v41  ;;  %5361 = vmatpush1.bf16.msra.mxu1 %v8872_v42  ;;  %v674_v41 = vld [vmem:[%s13510_s1 + $0x1368] sm:$0xff]  ;;  %v8926_v42 = vcombine.low %v661_v28, %v665_v29  ;;  %v8966_v29 = vcombine.low %v701_v11, %v705_v13 }
 0x11b   :  { %5075 = vmatprep.subr.bf16.mxu0 %v8879_v43  ;;  %5362 = vmatprep.subr.bf16.mxu1 %v8881_v44  ;;  %v8928_v43 = vcombine.low %v662_v30, %v666_v31  ;;  %v8935_v44 = vcombine.high %v669_v38, %v673_v39  ;;  %v8937_v45 = vcombine.high %v670_v40, %v674_v41  ;;  %v714_v28 = vld [vmem:[%s13510_s1 + $0x14a8] sm:$0xff] }
 0x11e   :  { %5076 = vmatpush1.bf16.msra.mxu0 %v8878_v50  ;;  %5363 = vmatpush1.bf16.msra.mxu1 %v8880_v51  ;;  %v682_v50 = vld [vmem:[%s13510_s1 + $0x13a8] sm:$0xff]  ;;  %v8934_v51 = vcombine.low %v669_v38, %v673_v39 }
 0x11f   :  { %5077 = vmatprep.subr.bf16.mxu0 %v8887_v52  ;;  %5364 = vmatprep.subr.bf16.mxu1 %v8889_v53  ;;  %v8936_v52 = vcombine.low %v670_v40, %v674_v41  ;;  %v8943_v53 = vcombine.high %v677_v47, %v681_v48  ;;  %v8945_v55 = vcombine.high %v678_v49, %v682_v50  ;;  %v722_v38 = vld [vmem:[%s13510_s1 + $0x14e8] sm:$0xff] }
 0x122   :  { %5078 = vmatpush1.bf16.msra.mxu0 %v8886_v60  ;;  %5365 = vmatpush1.bf16.msra.mxu1 %v8888_v61  ;;  %v690_v60 = vld [vmem:[%s13510_s1 + $0x13e8] sm:$0xff]  ;;  %v8942_v61 = vcombine.low %v677_v47, %v681_v48 }
 0x123   :  { %5079 = vmatprep.subr.bf16.mxu0 %v8895_v62  ;;  %5366 = vmatprep.subr.bf16.mxu1 %v8897_v63  ;;  %v8944_v62 = vcombine.low %v678_v49, %v682_v50  ;;  %v8951_v63 = vcombine.high %v685_v56, %v689_v58  ;;  %v8953_v0 = vcombine.high %v686_v59, %v690_v60  ;;  %v730_v47 = vld [vmem:[%s13510_s1 + $0x1528] sm:$0xff] }
 0x126   :  { %5080 = vmatpush1.bf16.msra.mxu0 %v8894_v5  ;;  %5367 = vmatpush1.bf16.msra.mxu1 %v8896_v6  ;;  %v698_v5 = vld [vmem:[%s13510_s1 + $0x1428] sm:$0xff]  ;;  %v8950_v6 = vcombine.low %v685_v56, %v689_v58 }
 0x127   :  { %5081 = vmatprep.subr.bf16.mxu0 %v8903_v7  ;;  %5368 = vmatprep.subr.bf16.mxu1 %v8905_v8  ;;  %v35_v7 = vld [vmem:[%s13511_s0 + $0x40] sm:$0xff]  ;;  %v8952_v8 = vcombine.low %v686_v59, %v690_v60  ;;  %v8961_v10 = vcombine.high %v694_v4, %v698_v5  ;;  %v8960_v19 = vcombine.low %v694_v4, %v698_v5  ;;  %v738_v56 = vld [vmem:[%s13510_s1 + $0x1568] sm:$0xff] }
 0x12a   :  { %5082 = vmatpush1.bf16.msra.mxu0 %v8902_v14  ;;  %5369 = vmatpush1.bf16.msra.mxu1 %v8904_v15  ;;  %v11094_v14 = vpack.c.bf16 %v35_v7, %v35_v7  ;;  %v702_v15 = vld [vmem:[%s13510_s1 + $0x1448] sm:$0xff]  ;;  %v749_v7 = vld [vmem:[%s13510_s1 + $0x15c0] sm:$0xff] }
 0x12b   :  { %5083 = vmatprep.subr.bf16.mxu0 %v8911_v16  ;;  %5370 = vmatprep.subr.bf16.mxu1 %v8913_v17  ;;  %v706_v16 = vld [vmem:[%s13510_s1 + $0x1468] sm:$0xff]  ;;  %v38_v17 = vld [vmem:[%s13511_s0 + $0x58] sm:$0xff] }
 0x12c   :  { %v8969_v23 = vcombine.high %v702_v15, %v706_v16  ;;  %v8968_v30 = vcombine.low %v702_v15, %v706_v16 }
 0x12e   :  { %5084 = vmatpush1.bf16.msra.mxu0 %v8910_v24  ;;  %5371 = vmatpush1.bf16.msra.mxu1 %v8912_v25  ;;  %v709_v24 = vld [vmem:[%s13510_s1 + $0x1480] sm:$0xff] }
 0x12f   :  { %5085 = vmatprep.subr.bf16.mxu0 %v8919_v26  ;;  %5372 = vmatprep.subr.bf16.mxu1 %v8921_v27  ;;  %v713_v25 = vld [vmem:[%s13510_s1 + $0x14a0] sm:$0xff]  ;;  %v11111_v26 = vpack.c.bf16 %v38_v17, %v38_v17  ;;  %v710_v27 = vld [vmem:[%s13510_s1 + $0x1488] sm:$0xff] }
 0x130   :  { %v8975_v31 = vcombine.high %v709_v24, %v713_v25  ;;  %v8974_v39 = vcombine.low %v709_v24, %v713_v25  ;;  %v8976_v40 = vcombine.low %v710_v27, %v714_v28  ;;  %v757_v17 = vld [vmem:[%s13510_s1 + $0x1600] sm:$0xff] }
 0x132   :  { %5086 = vmatpush1.bf16.msra.mxu0 %v8918_v33  ;;  %5373 = vmatpush1.bf16.msra.mxu1 %v8920_v34  ;;  %v8977_v33 = vcombine.high %v710_v27, %v714_v28  ;;  %v717_v34 = vld [vmem:[%s13510_s1 + $0x14c0] sm:$0xff] }
 0x133   :  { %5087 = vmatprep.subr.bf16.mxu0 %v8927_v35  ;;  %5374 = vmatprep.subr.bf16.mxu1 %v8929_v37  ;;  %v721_v35 = vld [vmem:[%s13510_s1 + $0x14e0] sm:$0xff]  ;;  %v718_v37 = vld [vmem:[%s13510_s1 + $0x14c8] sm:$0xff] }
 0x134   :  { %v8983_v41 = vcombine.high %v717_v34, %v721_v35  ;;  %v8982_v48 = vcombine.low %v717_v34, %v721_v35  ;;  %v8984_v49 = vcombine.low %v718_v37, %v722_v38  ;;  %v765_v28 = vld [vmem:[%s13510_s1 + $0x1640] sm:$0xff] }
 0x136   :  { %5088 = vmatpush1.bf16.msra.mxu0 %v8926_v42  ;;  %5375 = vmatpush1.bf16.msra.mxu1 %v8928_v43  ;;  %v8985_v42 = vcombine.high %v718_v37, %v722_v38  ;;  %v725_v43 = vld [vmem:[%s13510_s1 + $0x1500] sm:$0xff] }
 0x137   :  { %5089 = vmatprep.subr.bf16.mxu0 %v8935_v44  ;;  %5376 = vmatprep.subr.bf16.mxu1 %v8937_v45  ;;  %v729_v44 = vld [vmem:[%s13510_s1 + $0x1520] sm:$0xff]  ;;  %v726_v45 = vld [vmem:[%s13510_s1 + $0x1508] sm:$0xff] }
 0x138   :  { %v8991_v50 = vcombine.high %v725_v43, %v729_v44  ;;  %v8990_v58 = vcombine.low %v725_v43, %v729_v44  ;;  %v8992_v59 = vcombine.low %v726_v45, %v730_v47  ;;  %v773_v38 = vld [vmem:[%s13510_s1 + $0x1680] sm:$0xff] }
 0x13a   :  { %5090 = vmatpush1.bf16.msra.mxu0 %v8934_v51  ;;  %5377 = vmatpush1.bf16.msra.mxu1 %v8936_v52  ;;  %v8993_v51 = vcombine.high %v726_v45, %v730_v47  ;;  %v733_v52 = vld [vmem:[%s13510_s1 + $0x1540] sm:$0xff] }
 0x13b   :  { %5091 = vmatprep.subr.bf16.mxu0 %v8943_v53  ;;  %5378 = vmatprep.subr.bf16.mxu1 %v8945_v55  ;;  %v737_v53 = vld [vmem:[%s13510_s1 + $0x1560] sm:$0xff]  ;;  %v734_v55 = vld [vmem:[%s13510_s1 + $0x1548] sm:$0xff] }
 0x13c   :  { %v8999_v60 = vcombine.high %v733_v52, %v737_v53  ;;  %v8998_v3 = vcombine.low %v733_v52, %v737_v53  ;;  %v9000_v4 = vcombine.low %v734_v55, %v738_v56  ;;  %v781_v47 = vld [vmem:[%s13510_s1 + $0x16c0] sm:$0xff] }
 0x13e   :  { %5092 = vmatpush1.bf16.msra.mxu0 %v8942_v61  ;;  %5379 = vmatpush1.bf16.msra.mxu1 %v8944_v62  ;;  %v9001_v61 = vcombine.high %v734_v55, %v738_v56  ;;  %v741_v62 = vld [vmem:[%s13510_s1 + $0x1580] sm:$0xff] }
 0x13f   :  { %5093 = vmatprep.subr.bf16.mxu0 %v8951_v63  ;;  %5380 = vmatprep.subr.bf16.mxu1 %v8953_v0  ;;  %v745_v63 = vld [vmem:[%s13510_s1 + $0x15a0] sm:$0xff]  ;;  %v742_v0 = vld [vmem:[%s13510_s1 + $0x1588] sm:$0xff] }
 0x140   :  { %v9007_v5 = vcombine.high %v741_v62, %v745_v63  ;;  %v9006_v11 = vcombine.low %v741_v62, %v745_v63  ;;  %v9008_v13 = vcombine.low %v742_v0, %v746_v2  ;;  %v789_v56 = vld [vmem:[%s13510_s1 + $0x1700] sm:$0xff] }
 0x142   :  { %5094 = vmatpush1.bf16.msra.mxu0 %v8950_v6  ;;  %5381 = vmatpush1.bf16.msra.mxu1 %v8952_v8  ;;  %v9009_v6 = vcombine.high %v742_v0, %v746_v2  ;;  %v753_v8 = vld [vmem:[%s13510_s1 + $0x15e0] sm:$0xff] }
 0x143   :  { %5104 = vmatprep.subr.bf16.mxu0 %v8959_v9  ;;  %5391 = vmatprep.subr.bf16.mxu1 %v8961_v10  ;;  %v750_v9 = vld [vmem:[%s13510_s1 + $0x15c8] sm:$0xff]  ;;  %v9015_v15 = vcombine.high %v749_v7, %v753_v8  ;;  %v797_v2 = vld [vmem:[%s13510_s1 + $0x1740] sm:$0xff] }
 0x144   :  { %v754_v10 = vld [vmem:[%s13510_s1 + $0x15e8] sm:$0xff] }
 0x145   :  { %5096 = vmatmul.mubr.bf16.vlgmr.msra.gmra.mrb[0].mxu0 %v11094_v14  ;;  %5383 = vmatmul.mubr.bf16.vlgmr.msra.gmra.mrb[0].mxu1 %v11094_v14  ;;  %v9017_v16 = vcombine.high %v750_v9, %v754_v10  ;;  %v9016_v24 = vcombine.low %v750_v9, %v754_v10  ;;  %v805_v10 = vld [vmem:[%s13510_s1 + $0x1780] sm:$0xff] }
 0x146   :  { %5105 = vmatpush1.bf16.msra.mxu0 %v8958_v18  ;;  %5392 = vmatpush1.bf16.msra.mxu1 %v8960_v19  ;;  %v761_v18 = vld [vmem:[%s13510_s1 + $0x1620] sm:$0xff]  ;;  %v758_v19 = vld [vmem:[%s13510_s1 + $0x1608] sm:$0xff] }
 0x147   :  { %5106 = vmatprep.subr.bf16.mxu0 %v8967_v20  ;;  %5393 = vmatprep.subr.bf16.mxu1 %v8969_v23  ;;  %v762_v20 = vld [vmem:[%s13510_s1 + $0x1628] sm:$0xff]  ;;  %v9014_v23 = vcombine.low %v749_v7, %v753_v8  ;;  %v9023_v25 = vcombine.high %v757_v17, %v761_v18 }
 0x148   :  { %5136 = vmatprep.mubr.bf16.mxu0 %v11111_v26  ;;  %5423 = vmatprep.mubr.bf16.mxu1 %v11111_v26  ;;  %v9025_v27 = vcombine.high %v758_v19, %v762_v20  ;;  %v9024_v34 = vcombine.low %v758_v19, %v762_v20  ;;  %v813_v20 = vld [vmem:[%s13510_s1 + $0x17c0] sm:$0xff] }
 0x14a   :  { %5107 = vmatpush1.bf16.msra.mxu0 %v8966_v29  ;;  %5394 = vmatpush1.bf16.msra.mxu1 %v8968_v30  ;;  %v769_v29 = vld [vmem:[%s13510_s1 + $0x1660] sm:$0xff]  ;;  %v766_v30 = vld [vmem:[%s13510_s1 + $0x1648] sm:$0xff] }
 0x14b   :  { %5108 = vmatprep.subr.bf16.mxu0 %v8975_v31  ;;  %5395 = vmatprep.subr.bf16.mxu1 %v8977_v33  ;;  %v770_v31 = vld [vmem:[%s13510_s1 + $0x1668] sm:$0xff]  ;;  %v9022_v33 = vcombine.low %v757_v17, %v761_v18  ;;  %v9031_v35 = vcombine.high %v765_v28, %v769_v29 }
 0x14c   :  { %v9033_v37 = vcombine.high %v766_v30, %v770_v31  ;;  %v9032_v43 = vcombine.low %v766_v30, %v770_v31  ;;  %v821_v31 = vld [vmem:[%s13510_s1 + $0x1800] sm:$0xff] }
 0x14e   :  { %5109 = vmatpush1.bf16.msra.mxu0 %v8974_v39  ;;  %5396 = vmatpush1.bf16.msra.mxu1 %v8976_v40  ;;  %v777_v39 = vld [vmem:[%s13510_s1 + $0x16a0] sm:$0xff]  ;;  %v774_v40 = vld [vmem:[%s13510_s1 + $0x1688] sm:$0xff] }
 0x14f   :  { %5110 = vmatprep.subr.bf16.mxu0 %v8983_v41  ;;  %5397 = vmatprep.subr.bf16.mxu1 %v8985_v42  ;;  %v778_v41 = vld [vmem:[%s13510_s1 + $0x16a8] sm:$0xff]  ;;  %v9030_v42 = vcombine.low %v765_v28, %v769_v29  ;;  %v9039_v44 = vcombine.high %v773_v38, %v777_v39 }
 0x150   :  { %v9041_v45 = vcombine.high %v774_v40, %v778_v41  ;;  %v9040_v52 = vcombine.low %v774_v40, %v778_v41 }
 0x152   :  { %5111 = vmatpush1.bf16.msra.mxu0 %v8982_v48  ;;  %5398 = vmatpush1.bf16.msra.mxu1 %v8984_v49  ;;  %v785_v48 = vld [vmem:[%s13510_s1 + $0x16e0] sm:$0xff]  ;;  %v782_v49 = vld [vmem:[%s13510_s1 + $0x16c8] sm:$0xff] }
 0x153   :  { %5112 = vmatprep.subr.bf16.mxu0 %v8991_v50  ;;  %5399 = vmatprep.subr.bf16.mxu1 %v8993_v51  ;;  %v786_v50 = vld [vmem:[%s13510_s1 + $0x16e8] sm:$0xff]  ;;  %v9038_v51 = vcombine.low %v773_v38, %v777_v39  ;;  %v9047_v53 = vcombine.high %v781_v47, %v785_v48  ;;  %v37_v38 = vld [vmem:[%s13511_s0 + $0x50] sm:$0xff] }
 0x154   :  { %v9049_v55 = vcombine.high %v782_v49, %v786_v50  ;;  %v9048_v62 = vcombine.low %v782_v49, %v786_v50 }
 0x156   :  { %5113 = vmatpush1.bf16.msra.mxu0 %v8990_v58  ;;  %5400 = vmatpush1.bf16.msra.mxu1 %v8992_v59  ;;  %v793_v58 = vld [vmem:[%s13510_s1 + $0x1720] sm:$0xff]  ;;  %v790_v59 = vld [vmem:[%s13510_s1 + $0x1708] sm:$0xff] }
 0x157   :  { %5114 = vmatprep.subr.bf16.mxu0 %v8999_v60  ;;  %5401 = vmatprep.subr.bf16.mxu1 %v9001_v61  ;;  %v794_v60 = vld [vmem:[%s13510_s1 + $0x1728] sm:$0xff]  ;;  %v9046_v61 = vcombine.low %v781_v47, %v785_v48  ;;  %v9055_v63 = vcombine.high %v789_v56, %v793_v58 }
 0x158   :  { %v9057_v0 = vcombine.high %v790_v59, %v794_v60  ;;  %v9056_v7 = vcombine.low %v790_v59, %v794_v60  ;;  %v834_v47 = vld [vmem:[%s13510_s1 + $0x1868] sm:$0xff] }
 0x15a   :  { %5115 = vmatpush1.bf16.msra.mxu0 %v8998_v3  ;;  %5402 = vmatpush1.bf16.msra.mxu1 %v9000_v4  ;;  %v801_v3 = vld [vmem:[%s13510_s1 + $0x1760] sm:$0xff]  ;;  %v798_v4 = vld [vmem:[%s13510_s1 + $0x1748] sm:$0xff] }
 0x15b   :  { %5116 = vmatprep.subr.bf16.mxu0 %v9007_v5  ;;  %5403 = vmatprep.subr.bf16.mxu1 %v9009_v6  ;;  %v802_v5 = vld [vmem:[%s13510_s1 + $0x1768] sm:$0xff]  ;;  %v9054_v6 = vcombine.low %v789_v56, %v793_v58  ;;  %v9063_v8 = vcombine.high %v797_v2, %v801_v3 }
 0x15c   :  { %v9065_v9 = vcombine.high %v798_v4, %v802_v5  ;;  %v9064_v17 = vcombine.low %v798_v4, %v802_v5  ;;  %v842_v56 = vld [vmem:[%s13510_s1 + $0x18a8] sm:$0xff] }
 0x15e   :  { %5117 = vmatpush1.bf16.msra.mxu0 %v9006_v11  ;;  %5404 = vmatpush1.bf16.msra.mxu1 %v9008_v13  ;;  %v809_v11 = vld [vmem:[%s13510_s1 + $0x17a0] sm:$0xff]  ;;  %v806_v13 = vld [vmem:[%s13510_s1 + $0x1788] sm:$0xff] }
 0x15f   :  { %5118 = vmatprep.subr.bf16.mxu0 %v9015_v15  ;;  %5405 = vmatprep.subr.bf16.mxu1 %v9017_v16  ;;  %v810_v15 = vld [vmem:[%s13510_s1 + $0x17a8] sm:$0xff]  ;;  %v9062_v16 = vcombine.low %v797_v2, %v801_v3  ;;  %v9071_v18 = vcombine.high %v805_v10, %v809_v11 }
 0x160   :  { %v9073_v19 = vcombine.high %v806_v13, %v810_v15  ;;  %v9072_v28 = vcombine.low %v806_v13, %v810_v15  ;;  %v846_v2 = vld [vmem:[%s13510_s1 + $0x18c8] sm:$0xff]  ;;  %v39_v15 = vld [vmem:[%s13511_s0 + $0x60] sm:$0xff] }
 0x161   :  { %v850_v3 = vld [vmem:[%s13510_s1 + $0x18e8] sm:$0xff] }
 0x162   :  { %5119 = vmatpush1.bf16.msra.mxu0 %v9014_v23  ;;  %5406 = vmatpush1.bf16.msra.mxu1 %v9016_v24  ;;  %v817_v23 = vld [vmem:[%s13510_s1 + $0x17e0] sm:$0xff]  ;;  %v814_v24 = vld [vmem:[%s13510_s1 + $0x17c8] sm:$0xff] }
 0x163   :  { %5120 = vmatprep.subr.bf16.mxu0 %v9023_v25  ;;  %5407 = vmatprep.subr.bf16.mxu1 %v9025_v27  ;;  %v818_v25 = vld [vmem:[%s13510_s1 + $0x17e8] sm:$0xff]  ;;  %v9070_v27 = vcombine.low %v805_v10, %v809_v11  ;;  %v9079_v29 = vcombine.high %v813_v20, %v817_v23  ;;  %v56_v10 = vld [vmem:[%s13510_s1 + $0x18] sm:$0xff] }
 0x164   :  { %v9081_v30 = vcombine.high %v814_v24, %v818_v25  ;;  %v9080_v39 = vcombine.low %v814_v24, %v818_v25  ;;  %v60_v11 = vld [vmem:[%s13510_s1 + $0x38] sm:$0xff] }
 0x165   :  { %v64_v24 = vld [vmem:[%s13510_s1 + $0x58] sm:$0xff] }
 0x166   :  { %5121 = vmatpush1.bf16.msra.mxu0 %v9022_v33  ;;  %5408 = vmatpush1.bf16.msra.mxu1 %v9024_v34  ;;  %v825_v33 = vld [vmem:[%s13510_s1 + $0x1820] sm:$0xff]  ;;  %v822_v34 = vld [vmem:[%s13510_s1 + $0x1808] sm:$0xff]  ;;  %v68_v25 = vld [vmem:[%s13510_s1 + $0x78] sm:$0xff] }
 0x167   :  { %5122 = vmatprep.subr.bf16.mxu0 %v9031_v35  ;;  %5409 = vmatprep.subr.bf16.mxu1 %v9033_v37  ;;  %v826_v35 = vld [vmem:[%s13510_s1 + $0x1828] sm:$0xff]  ;;  %v9078_v37 = vcombine.low %v813_v20, %v817_v23  ;;  %v9087_v40 = vcombine.high %v821_v31, %v825_v33  ;;  %v9086_v48 = vcombine.low %v821_v31, %v825_v33  ;;  %v67_v20 = vld [vmem:[%s13510_s1 + $0x70] sm:$0xff] }
 0x168   :  { %v9089_v41 = vcombine.high %v822_v34, %v826_v35  ;;  %v9088_v49 = vcombine.low %v822_v34, %v826_v35  ;;  %v11357_v23 = vpack.c.bf16 %v39_v15, %v39_v15  ;;  %v71_v31 = vld [vmem:[%s13510_s1 + $0x90] sm:$0xff]  ;;  %v72_v34 = vld [vmem:[%s13510_s1 + $0x98] sm:$0xff] }
 0x169   :  { %v75_v33 = vld [vmem:[%s13510_s1 + $0xb0] sm:$0xff]  ;;  %v76_v35 = vld [vmem:[%s13510_s1 + $0xb8] sm:$0xff] }
 0x16a   :  { %5123 = vmatpush1.bf16.msra.mxu0 %v9030_v42  ;;  %5410 = vmatpush1.bf16.msra.mxu1 %v9032_v43  ;;  %v829_v42 = vld [vmem:[%s13510_s1 + $0x1840] sm:$0xff] }
 0x16b   :  { %5124 = vmatprep.subr.bf16.mxu0 %v9039_v44  ;;  %5411 = vmatprep.subr.bf16.mxu1 %v9041_v45  ;;  %v833_v43 = vld [vmem:[%s13510_s1 + $0x1860] sm:$0xff]  ;;  %v11300_v44 = vpack.c.bf16 %v37_v38, %v37_v38  ;;  %v830_v45 = vld [vmem:[%s13510_s1 + $0x1848] sm:$0xff]  ;;  %v8332_v38 = vcombine.low %v64_v24, %v68_v25 }
 0x16c   :  { %v9095_v50 = vcombine.high %v829_v42, %v833_v43  ;;  %v9094_v58 = vcombine.low %v829_v42, %v833_v43  ;;  %v9096_v59 = vcombine.low %v830_v45, %v834_v47  ;;  %v83_v42 = vld [vmem:[%s13510_s1 + $0xf0] sm:$0xff]  ;;  %v80_v43 = vld [vmem:[%s13510_s1 + $0xd8] sm:$0xff] }
 0x16e   :  { %5125 = vmatpush1.bf16.msra.mxu0 %v9038_v51  ;;  %5412 = vmatpush1.bf16.msra.mxu1 %v9040_v52  ;;  %v9097_v51 = vcombine.high %v830_v45, %v834_v47  ;;  %v837_v52 = vld [vmem:[%s13510_s1 + $0x1880] sm:$0xff]  ;;  %v84_v45 = vld [vmem:[%s13510_s1 + $0xf8] sm:$0xff]  ;;  %v8338_v47 = vcombine.low %v71_v31, %v75_v33 }
 0x16f   :  { %5126 = vmatprep.subr.bf16.mxu0 %v9047_v53  ;;  %5413 = vmatprep.subr.bf16.mxu1 %v9049_v55  ;;  %v841_v53 = vld [vmem:[%s13510_s1 + $0x18a0] sm:$0xff]  ;;  %v838_v55 = vld [vmem:[%s13510_s1 + $0x1888] sm:$0xff] }
 0x170   :  { %v9103_v60 = vcombine.high %v837_v52, %v841_v53  ;;  %v9102_v4 = vcombine.low %v837_v52, %v841_v53  ;;  %v9104_v5 = vcombine.low %v838_v55, %v842_v56  ;;  %v91_v52 = vld [vmem:[%s13510_s1 + $0x130] sm:$0xff]  ;;  %v92_v53 = vld [vmem:[%s13510_s1 + $0x138] sm:$0xff] }
 0x172   :  { %5127 = vmatpush1.bf16.msra.mxu0 %v9046_v61  ;;  %5414 = vmatpush1.bf16.msra.mxu1 %v9048_v62  ;;  %v9105_v61 = vcombine.high %v838_v55, %v842_v56  ;;  %v845_v62 = vld [vmem:[%s13510_s1 + $0x18c0] sm:$0xff]  ;;  %v8348_v56 = vcombine.low %v80_v43, %v84_v45 }
 0x173   :  { %5128 = vmatprep.subr.bf16.mxu0 %v9055_v63  ;;  %5415 = vmatprep.subr.bf16.mxu1 %v9057_v0  ;;  %v849_v63 = vld [vmem:[%s13510_s1 + $0x18e0] sm:$0xff]  ;;  %v10009_v0 = vmov 0  }
 0x174   :  { %v9110_v13 = vcombine.low %v845_v62, %v849_v63 }
 0x176   :  { %5129 = vmatpush1.bf16.msra.mxu0 %v9054_v6  ;;  %5416 = vmatpush1.bf16.msra.mxu1 %v9056_v7  ;;  %v9111_v6 = vcombine.high %v845_v62, %v849_v63  ;;  %v9113_v7 = vcombine.high %v846_v2, %v850_v3  ;;  %v96_v62 = vld [vmem:[%s13510_s1 + $0x158] sm:$0xff] }
 0x177   :  { %5130 = vmatprep.subr.bf16.mxu0 %v9063_v8  ;;  %5417 = vmatprep.subr.bf16.mxu1 %v9065_v9  ;;  %v55_v8 = vld [vmem:[%s13510_s1 + $0x10] sm:$0xff]  ;;  %v100_v63 = vld [vmem:[%s13510_s1 + $0x178] sm:$0xff] }
 0x178   :  { %v59_v9 = vld [vmem:[%s13510_s1 + $0x30] sm:$0xff] }
 0x17a   :  { %5131 = vmatpush1.bf16.msra.mxu0 %v9062_v16  ;;  %5418 = vmatpush1.bf16.msra.mxu1 %v9064_v17  ;;  %v9112_v16 = vcombine.low %v846_v2, %v850_v3  ;;  %v8323_v17 = vcombine.high %v55_v8, %v59_v9 }
 0x17b   :  { %5132 = vmatprep.subr.bf16.mxu0 %v9071_v18  ;;  %5419 = vmatprep.subr.bf16.mxu1 %v9073_v19  ;;  %v8325_v18 = vcombine.high %v56_v10, %v60_v11  ;;  %v63_v19 = vld [vmem:[%s13510_s1 + $0x50] sm:$0xff] }
 0x17e   :  { %5133 = vmatpush1.bf16.msra.mxu0 %v9070_v27  ;;  %5420 = vmatpush1.bf16.msra.mxu1 %v9072_v28  ;;  %v8322_v27 = vcombine.low %v55_v8, %v59_v9  ;;  %v8324_v28 = vcombine.low %v56_v10, %v60_v11  ;;  %v104_v8 = vld [vmem:[%s13510_s1 + $0x198] sm:$0xff]  ;;  %v8364_v11 = vcombine.low %v96_v62, %v100_v63 }
 0x17f   :  { %5134 = vmatprep.subr.bf16.mxu0 %v9079_v29  ;;  %5421 = vmatprep.subr.bf16.mxu1 %v9081_v30  ;;  %v8331_v29 = vcombine.high %v63_v19, %v67_v20  ;;  %v8333_v30 = vcombine.high %v64_v24, %v68_v25  ;;  %v108_v9 = vld [vmem:[%s13510_s1 + $0x1b8] sm:$0xff] }
 0x180   :  { %v8373_v15 = vcombine.high %v104_v8, %v108_v9  ;;  %v8372_v24 = vcombine.low %v104_v8, %v108_v9 }
 0x182   :  { %5135 = vmatpush1.bf16.msra.mxu0 %v9078_v37  ;;  %5422 = vmatpush1.bf16.msra.mxu1 %v9080_v39  ;;  %v8330_v37 = vcombine.low %v63_v19, %v67_v20  ;;  %v8339_v39 = vcombine.high %v71_v31, %v75_v33  ;;  %v116_v19 = vld [vmem:[%s13510_s1 + $0x1f8] sm:$0xff] }
 0x183   :  { %5145 = vmatprep.subr.bf16.mxu0 %v9087_v40  ;;  %5432 = vmatprep.subr.bf16.mxu1 %v9089_v41  ;;  %v8341_v40 = vcombine.high %v72_v34, %v76_v35  ;;  %v79_v41 = vld [vmem:[%s13510_s1 + $0xd0] sm:$0xff]  ;;  %v124_v31 = vld [vmem:[%s13510_s1 + $0x238] sm:$0xff] }
 0x184   :  { %v8346_v55 = vcombine.low %v79_v41, %v83_v42 }
 0x185   :  { %5137 = vmatmul.mubr.bf16.vlgmr.msra.gmra.mrb[0].mxu0 %v11300_v44  ;;  %5424 = vmatmul.mubr.bf16.vlgmr.msra.gmra.mrb[0].mxu1 %v11300_v44 }
 0x186   :  { %5146 = vmatpush1.bf16.msra.mxu0 %v9086_v48  ;;  %5433 = vmatpush1.bf16.msra.mxu1 %v9088_v49  ;;  %v8340_v48 = vcombine.low %v72_v34, %v76_v35  ;;  %v8347_v49 = vcombine.high %v79_v41, %v83_v42  ;;  %v132_v41 = vld [vmem:[%s13510_s1 + $0x278] sm:$0xff] }
 0x187   :  { %5147 = vmatprep.subr.bf16.mxu0 %v9095_v50  ;;  %5434 = vmatprep.subr.bf16.mxu1 %v9097_v51  ;;  %v8349_v50 = vcombine.high %v80_v43, %v84_v45  ;;  %v87_v51 = vld [vmem:[%s13510_s1 + $0x110] sm:$0xff] }
 0x188   :  { %5177 = vmatprep.mubr.bf16.mxu0 %v10009_v0  ;;  %5464 = vmatprep.mubr.bf16.mxu1 %v10009_v0  ;;  %v8354_v2 = vcombine.low %v87_v51, %v91_v52 }
 0x18a   :  { %5148 = vmatpush1.bf16.msra.mxu0 %v9094_v58  ;;  %5435 = vmatpush1.bf16.msra.mxu1 %v9096_v59  ;;  %v8355_v58 = vcombine.high %v87_v51, %v91_v52  ;;  %v140_v51 = vld [vmem:[%s13510_s1 + $0x2b8] sm:$0xff] }
 0x18b   :  { %5149 = vmatprep.subr.bf16.mxu0 %v9103_v60  ;;  %5436 = vmatprep.subr.bf16.mxu1 %v9105_v61  ;;  %v95_v60 = vld [vmem:[%s13510_s1 + $0x150] sm:$0xff] }
 0x18c   :  { %v99_v61 = vld [vmem:[%s13510_s1 + $0x170] sm:$0xff] }
 0x18d   :  { %v8362_v10 = vcombine.low %v95_v60, %v99_v61 }
 0x18e   :  { %5150 = vmatpush1.bf16.msra.mxu0 %v9102_v4  ;;  %5437 = vmatpush1.bf16.msra.mxu1 %v9104_v5  ;;  %v8363_v4 = vcombine.high %v95_v60, %v99_v61  ;;  %v8365_v5 = vcombine.high %v96_v62, %v100_v63  ;;  %v148_v60 = vld [vmem:[%s13510_s1 + $0x2f8] sm:$0xff] }
 0x18f   :  { %5151 = vmatprep.subr.bf16.mxu0 %v9111_v6  ;;  %5438 = vmatprep.subr.bf16.mxu1 %v9113_v7  ;;  %v103_v6 = vld [vmem:[%s13510_s1 + $0x190] sm:$0xff] }
 0x190   :  { %v107_v7 = vld [vmem:[%s13510_s1 + $0x1b0] sm:$0xff] }
 0x191   :  { %v8370_v20 = vcombine.low %v103_v6, %v107_v7 }
 0x192   :  { %5152 = vmatpush1.bf16.msra.mxu0 %v9110_v13  ;;  %5439 = vmatpush1.bf16.msra.mxu1 %v9112_v16  ;;  %v8371_v13 = vcombine.high %v103_v6, %v107_v7  ;;  %v111_v16 = vld [vmem:[%s13510_s1 + $0x1d0] sm:$0xff]  ;;  %v156_v6 = vld [vmem:[%s13510_s1 + $0x338] sm:$0xff] }
 0x193   :  { %5473 = vmatprep.subr.bf16.mxu0 %v8323_v17  ;;  %5760 = vmatprep.subr.bf16.mxu1 %v8325_v18  ;;  %v115_v17 = vld [vmem:[%s13510_s1 + $0x1f0] sm:$0xff]  ;;  %v112_v18 = vld [vmem:[%s13510_s1 + $0x1d8] sm:$0xff] }
 0x194   :  { %v8379_v25 = vcombine.high %v111_v16, %v115_v17  ;;  %v8378_v33 = vcombine.low %v111_v16, %v115_v17  ;;  %v8380_v34 = vcombine.low %v112_v18, %v116_v19  ;;  %v164_v16 = vld [vmem:[%s13510_s1 + $0x378] sm:$0xff] }
 0x195   :  { %9118 = vmatmul.mubr.msk.bf16.vlgmr.msra.gmra.mrb[0].mxu0 %vm4895_vm0, %v11357_v23  ;;  %9119 = vmatmul.mubr.msk.bf16.vlgmr.msra.gmra.mrb[0].mxu1 %vm4895_vm0, %v11357_v23 }
 0x196   :  { %5474 = vmatpush1.bf16.msra.mxu0 %v8322_v27  ;;  %5761 = vmatpush1.bf16.msra.mxu1 %v8324_v28  ;;  %v8381_v27 = vcombine.high %v112_v18, %v116_v19  ;;  %v119_v28 = vld [vmem:[%s13510_s1 + $0x210] sm:$0xff] }
 0x197   :  { %5475 = vmatprep.subr.bf16.mxu0 %v8331_v29  ;;  %5762 = vmatprep.subr.bf16.mxu1 %v8333_v30  ;;  %v123_v29 = vld [vmem:[%s13510_s1 + $0x230] sm:$0xff]  ;;  %v120_v30 = vld [vmem:[%s13510_s1 + $0x218] sm:$0xff] }
 0x198   :  { %5505 = vmatprep.mubr.bf16.mxu0 %v10143_v57  ;;  %5792 = vmatprep.mubr.bf16.mxu1 %v10143_v57  ;;  %v88_v57 = vld [vmem:[%s13510_s1 + $0x118] sm:$0xff]  ;;  %v8387_v35 = vcombine.high %v119_v28, %v123_v29  ;;  %v8386_v42 = vcombine.low %v119_v28, %v123_v29  ;;  %v8388_v43 = vcombine.low %v120_v30, %v124_v31 }
 0x199   :  { %v8357_v59 = vcombine.high %v88_v57, %v92_v53  ;;  %v8356_v3 = vcombine.low %v88_v57, %v92_v53  ;;  %v172_v28 = vld [vmem:[%s13510_s1 + $0x3b8] sm:$0xff] }
 0x19a   :  { %5476 = vmatpush1.bf16.msra.mxu0 %v8330_v37  ;;  %5763 = vmatpush1.bf16.msra.mxu1 %v8332_v38  ;;  %v8389_v37 = vcombine.high %v120_v30, %v124_v31  ;;  %v127_v38 = vld [vmem:[%s13510_s1 + $0x250] sm:$0xff] }
 0x19b   :  { %5477 = vmatprep.subr.bf16.mxu0 %v8339_v39  ;;  %5764 = vmatprep.subr.bf16.mxu1 %v8341_v40  ;;  %v131_v39 = vld [vmem:[%s13510_s1 + $0x270] sm:$0xff]  ;;  %v128_v40 = vld [vmem:[%s13510_s1 + $0x258] sm:$0xff] }
 0x19c   :  { %v8395_v45 = vcombine.high %v127_v38, %v131_v39  ;;  %v8394_v52 = vcombine.low %v127_v38, %v131_v39  ;;  %v8396_v57 = vcombine.low %v128_v40, %v132_v41  ;;  %v180_v38 = vld [vmem:[%s13510_s1 + $0x3f8] sm:$0xff] }
 0x19e   :  { %5478 = vmatpush1.bf16.msra.mxu0 %v8338_v47  ;;  %5765 = vmatpush1.bf16.msra.mxu1 %v8340_v48  ;;  %v8397_v47 = vcombine.high %v128_v40, %v132_v41  ;;  %v135_v48 = vld [vmem:[%s13510_s1 + $0x290] sm:$0xff] }
 0x19f   :  { %5479 = vmatprep.subr.bf16.mxu0 %v8347_v49  ;;  %5766 = vmatprep.subr.bf16.mxu1 %v8349_v50  ;;  %v139_v49 = vld [vmem:[%s13510_s1 + $0x2b0] sm:$0xff]  ;;  %v136_v50 = vld [vmem:[%s13510_s1 + $0x298] sm:$0xff] }
 0x1a0   :  { %v8403_v53 = vcombine.high %v135_v48, %v139_v49  ;;  %v8402_v61 = vcombine.low %v135_v48, %v139_v49  ;;  %v8404_v62 = vcombine.low %v136_v50, %v140_v51  ;;  %v188_v48 = vld [vmem:[%s13510_s1 + $0x438] sm:$0xff] }
 0x1a2   :  { %5480 = vmatpush1.bf16.msra.mxu0 %v8346_v55  ;;  %5767 = vmatpush1.bf16.msra.mxu1 %v8348_v56  ;;  %v8405_v55 = vcombine.high %v136_v50, %v140_v51  ;;  %v143_v56 = vld [vmem:[%s13510_s1 + $0x2d0] sm:$0xff] }
 0x1a3   :  { %5481 = vmatprep.subr.bf16.mxu0 %v8355_v58  ;;  %5768 = vmatprep.subr.bf16.mxu1 %v8357_v59  ;;  %v147_v58 = vld [vmem:[%s13510_s1 + $0x2f0] sm:$0xff]  ;;  %v144_v59 = vld [vmem:[%s13510_s1 + $0x2d8] sm:$0xff] }
 0x1a4   :  { %v8411_v63 = vcombine.high %v143_v56, %v147_v58  ;;  %v8410_v7 = vcombine.low %v143_v56, %v147_v58  ;;  %v8412_v8 = vcombine.low %v144_v59, %v148_v60  ;;  %v196_v56 = vld [vmem:[%s13510_s1 + $0x478] sm:$0xff] }
 0x1a6   :  { %5482 = vmatpush1.bf16.msra.mxu0 %v8354_v2  ;;  %5769 = vmatpush1.bf16.msra.mxu1 %v8356_v3  ;;  %v8413_v2 = vcombine.high %v144_v59, %v148_v60  ;;  %v151_v3 = vld [vmem:[%s13510_s1 + $0x310] sm:$0xff] }
 0x1a7   :  { %5483 = vmatprep.subr.bf16.mxu0 %v8363_v4  ;;  %5770 = vmatprep.subr.bf16.mxu1 %v8365_v5  ;;  %v155_v4 = vld [vmem:[%s13510_s1 + $0x330] sm:$0xff]  ;;  %v152_v5 = vld [vmem:[%s13510_s1 + $0x318] sm:$0xff] }
 0x1a8   :  { %v8419_v9 = vcombine.high %v151_v3, %v155_v4  ;;  %v8418_v17 = vcombine.low %v151_v3, %v155_v4  ;;  %v8420_v18 = vcombine.low %v152_v5, %v156_v6  ;;  %v204_v3 = vld [vmem:[%s13510_s1 + $0x4b8] sm:$0xff] }
 0x1aa   :  { %5484 = vmatpush1.bf16.msra.mxu0 %v8362_v10  ;;  %5771 = vmatpush1.bf16.msra.mxu1 %v8364_v11  ;;  %v8421_v10 = vcombine.high %v152_v5, %v156_v6  ;;  %v159_v11 = vld [vmem:[%s13510_s1 + $0x350] sm:$0xff] }
 0x1ab   :  { %5485 = vmatprep.subr.bf16.mxu0 %v8371_v13  ;;  %5772 = vmatprep.subr.bf16.mxu1 %v8373_v15  ;;  %v163_v13 = vld [vmem:[%s13510_s1 + $0x370] sm:$0xff]  ;;  %v160_v15 = vld [vmem:[%s13510_s1 + $0x358] sm:$0xff] }
 0x1ac   :  { %v8427_v19 = vcombine.high %v159_v11, %v163_v13  ;;  %v8426_v29 = vcombine.low %v159_v11, %v163_v13  ;;  %v8428_v30 = vcombine.low %v160_v15, %v164_v16 }
 0x1ae   :  { %5486 = vmatpush1.bf16.msra.mxu0 %v8370_v20  ;;  %5773 = vmatpush1.bf16.msra.mxu1 %v8372_v24  ;;  %v8429_v20 = vcombine.high %v160_v15, %v164_v16  ;;  %v167_v24 = vld [vmem:[%s13510_s1 + $0x390] sm:$0xff] }
 0x1af   :  { %5487 = vmatprep.subr.bf16.mxu0 %v8379_v25  ;;  %5774 = vmatprep.subr.bf16.mxu1 %v8381_v27  ;;  %v171_v25 = vld [vmem:[%s13510_s1 + $0x3b0] sm:$0xff]  ;;  %v168_v27 = vld [vmem:[%s13510_s1 + $0x398] sm:$0xff] }
 0x1b0   :  { %v8435_v31 = vcombine.high %v167_v24, %v171_v25  ;;  %v8434_v39 = vcombine.low %v167_v24, %v171_v25  ;;  %v8436_v40 = vcombine.low %v168_v27, %v172_v28 }
 0x1b2   :  { %5488 = vmatpush1.bf16.msra.mxu0 %v8378_v33  ;;  %5775 = vmatpush1.bf16.msra.mxu1 %v8380_v34  ;;  %v8437_v33 = vcombine.high %v168_v27, %v172_v28  ;;  %v175_v34 = vld [vmem:[%s13510_s1 + $0x3d0] sm:$0xff] }
 0x1b3   :  { %5489 = vmatprep.subr.bf16.mxu0 %v8387_v35  ;;  %5776 = vmatprep.subr.bf16.mxu1 %v8389_v37  ;;  %v179_v35 = vld [vmem:[%s13510_s1 + $0x3f0] sm:$0xff]  ;;  %v176_v37 = vld [vmem:[%s13510_s1 + $0x3d8] sm:$0xff] }
 0x1b4   :  { %v8443_v41 = vcombine.high %v175_v34, %v179_v35  ;;  %v8442_v49 = vcombine.low %v175_v34, %v179_v35  ;;  %v8444_v50 = vcombine.low %v176_v37, %v180_v38  ;;  %v223_v28 = vld [vmem:[%s13510_s1 + $0x550] sm:$0xff] }
 0x1b6   :  { %5490 = vmatpush1.bf16.msra.mxu0 %v8386_v42  ;;  %5777 = vmatpush1.bf16.msra.mxu1 %v8388_v43  ;;  %v8445_v42 = vcombine.high %v176_v37, %v180_v38  ;;  %v183_v43 = vld [vmem:[%s13510_s1 + $0x410] sm:$0xff] }
 0x1b7   :  { %5491 = vmatprep.subr.bf16.mxu0 %v8395_v45  ;;  %5778 = vmatprep.subr.bf16.mxu1 %v8397_v47  ;;  %v187_v45 = vld [vmem:[%s13510_s1 + $0x430] sm:$0xff]  ;;  %v184_v47 = vld [vmem:[%s13510_s1 + $0x418] sm:$0xff] }
 0x1b8   :  { %v8451_v51 = vcombine.high %v183_v43, %v187_v45  ;;  %v8450_v58 = vcombine.low %v183_v43, %v187_v45  ;;  %v8452_v59 = vcombine.low %v184_v47, %v188_v48  ;;  %v231_v38 = vld [vmem:[%s13510_s1 + $0x590] sm:$0xff] }
 0x1ba   :  { %5492 = vmatpush1.bf16.msra.mxu0 %v8394_v52  ;;  %5779 = vmatpush1.bf16.msra.mxu1 %v8396_v57  ;;  %v8453_v52 = vcombine.high %v184_v47, %v188_v48  ;;  %v191_v57 = vld [vmem:[%s13510_s1 + $0x450] sm:$0xff] }
 0x1bb   :  { %5493 = vmatprep.subr.bf16.mxu0 %v8403_v53  ;;  %5780 = vmatprep.subr.bf16.mxu1 %v8405_v55  ;;  %v195_v53 = vld [vmem:[%s13510_s1 + $0x470] sm:$0xff]  ;;  %v192_v55 = vld [vmem:[%s13510_s1 + $0x458] sm:$0xff] }
 0x1bc   :  { %v8459_v60 = vcombine.high %v191_v57, %v195_v53  ;;  %v8458_v4 = vcombine.low %v191_v57, %v195_v53  ;;  %v8460_v5 = vcombine.low %v192_v55, %v196_v56  ;;  %v239_v48 = vld [vmem:[%s13510_s1 + $0x5d0] sm:$0xff] }
 0x1be   :  { %5494 = vmatpush1.bf16.msra.mxu0 %v8402_v61  ;;  %5781 = vmatpush1.bf16.msra.mxu1 %v8404_v62  ;;  %v8461_v61 = vcombine.high %v192_v55, %v196_v56  ;;  %v199_v62 = vld [vmem:[%s13510_s1 + $0x490] sm:$0xff] }
 0x1bf   :  { %5495 = vmatprep.subr.bf16.mxu0 %v8411_v63  ;;  %5782 = vmatprep.subr.bf16.mxu1 %v8413_v2  ;;  %v203_v63 = vld [vmem:[%s13510_s1 + $0x4b0] sm:$0xff]  ;;  %v200_v2 = vld [vmem:[%s13510_s1 + $0x498] sm:$0xff] }
 0x1c0   :  { %v8467_v6 = vcombine.high %v199_v62, %v203_v63  ;;  %v8466_v11 = vcombine.low %v199_v62, %v203_v63  ;;  %v8468_v13 = vcombine.low %v200_v2, %v204_v3  ;;  %v247_v56 = vld [vmem:[%s13510_s1 + $0x610] sm:$0xff] }
 0x1c2   :  { %5496 = vmatpush1.bf16.msra.mxu0 %v8410_v7  ;;  %5783 = vmatpush1.bf16.msra.mxu1 %v8412_v8  ;;  %v8469_v7 = vcombine.high %v200_v2, %v204_v3  ;;  %v207_v8 = vld [vmem:[%s13510_s1 + $0x4d0] sm:$0xff] }
 0x1c3   :  { %5497 = vmatprep.subr.bf16.mxu0 %v8419_v9  ;;  %5784 = vmatprep.subr.bf16.mxu1 %v8421_v10  ;;  %v211_v9 = vld [vmem:[%s13510_s1 + $0x4f0] sm:$0xff]  ;;  %v212_v10 = vld [vmem:[%s13510_s1 + $0x4f8] sm:$0xff] }
 0x1c4   :  { %v8475_v15 = vcombine.high %v207_v8, %v211_v9  ;;  %v255_v3 = vld [vmem:[%s13510_s1 + $0x650] sm:$0xff] }
 0x1c6   :  { %5498 = vmatpush1.bf16.msra.mxu0 %v8418_v17  ;;  %5785 = vmatpush1.bf16.msra.mxu1 %v8420_v18  ;;  %v215_v17 = vld [vmem:[%s13510_s1 + $0x510] sm:$0xff] }
 0x1c7   :  { %5499 = vmatprep.subr.bf16.mxu0 %v8427_v19  ;;  %5786 = vmatprep.subr.bf16.mxu1 %v8429_v20  ;;  %v219_v18 = vld [vmem:[%s13510_s1 + $0x530] sm:$0xff]  ;;  %v220_v19 = vld [vmem:[%s13510_s1 + $0x538] sm:$0xff]  ;;  %v8474_v20 = vcombine.low %v207_v8, %v211_v9 }
 0x1c8   :  { %v8483_v25 = vcombine.high %v215_v17, %v219_v18 }
 0x1ca   :  { %5500 = vmatpush1.bf16.msra.mxu0 %v8426_v29  ;;  %5787 = vmatpush1.bf16.msra.mxu1 %v8428_v30  ;;  %v227_v29 = vld [vmem:[%s13510_s1 + $0x570] sm:$0xff]  ;;  %v224_v30 = vld [vmem:[%s13510_s1 + $0x558] sm:$0xff] }
 0x1cb   :  { %5501 = vmatprep.subr.bf16.mxu0 %v8435_v31  ;;  %5788 = vmatprep.subr.bf16.mxu1 %v8437_v33  ;;  %v228_v31 = vld [vmem:[%s13510_s1 + $0x578] sm:$0xff]  ;;  %v8482_v33 = vcombine.low %v215_v17, %v219_v18  ;;  %v8491_v35 = vcombine.high %v223_v28, %v227_v29 }
 0x1cc   :  { %v8493_v37 = vcombine.high %v224_v30, %v228_v31  ;;  %v8492_v43 = vcombine.low %v224_v30, %v228_v31  ;;  %v279_v31 = vld [vmem:[%s13510_s1 + $0x710] sm:$0xff] }
 0x1ce   :  { %5502 = vmatpush1.bf16.msra.mxu0 %v8434_v39  ;;  %5789 = vmatpush1.bf16.msra.mxu1 %v8436_v40  ;;  %v235_v39 = vld [vmem:[%s13510_s1 + $0x5b0] sm:$0xff]  ;;  %v232_v40 = vld [vmem:[%s13510_s1 + $0x598] sm:$0xff] }
 0x1cf   :  { %5503 = vmatprep.subr.bf16.mxu0 %v8443_v41  ;;  %5790 = vmatprep.subr.bf16.mxu1 %v8445_v42  ;;  %v236_v41 = vld [vmem:[%s13510_s1 + $0x5b8] sm:$0xff]  ;;  %v8490_v42 = vcombine.low %v223_v28, %v227_v29  ;;  %v8499_v45 = vcombine.high %v231_v38, %v235_v39 }
 0x1d0   :  { %v8501_v47 = vcombine.high %v232_v40, %v236_v41  ;;  %v8500_v57 = vcombine.low %v232_v40, %v236_v41  ;;  %v287_v41 = vld [vmem:[%s13510_s1 + $0x750] sm:$0xff] }
 0x1d2   :  { %5504 = vmatpush1.bf16.msra.mxu0 %v8442_v49  ;;  %5791 = vmatpush1.bf16.msra.mxu1 %v8444_v50  ;;  %v243_v49 = vld [vmem:[%s13510_s1 + $0x5f0] sm:$0xff]  ;;  %v240_v50 = vld [vmem:[%s13510_s1 + $0x5d8] sm:$0xff] }
 0x1d3   :  { %5514 = vmatprep.subr.bf16.mxu0 %v8451_v51  ;;  %5801 = vmatprep.subr.bf16.mxu1 %v8453_v52  ;;  %v244_v51 = vld [vmem:[%s13510_s1 + $0x5f8] sm:$0xff]  ;;  %v8498_v52 = vcombine.low %v231_v38, %v235_v39  ;;  %v8507_v53 = vcombine.high %v239_v48, %v243_v49 }
 0x1d4   :  { %v8509_v55 = vcombine.high %v240_v50, %v244_v51  ;;  %v8508_v62 = vcombine.low %v240_v50, %v244_v51  ;;  %v295_v51 = vld [vmem:[%s13510_s1 + $0x790] sm:$0xff] }
 0x1d5   :  { %5506 = vmatmul.mubr.bf16.vlgmr.msra.gmra.mrb[4].mxu0 %v10270_v12  ;;  %5793 = vmatmul.mubr.bf16.vlgmr.msra.gmra.mrb[4].mxu1 %v10270_v12  ;;  %v208_v12 = vld [vmem:[%s13510_s1 + $0x4d8] sm:$0xff] }
 0x1d6   :  { %5515 = vmatpush1.bf16.msra.mxu0 %v8450_v58  ;;  %5802 = vmatpush1.bf16.msra.mxu1 %v8452_v59  ;;  %v8477_v16 = vcombine.high %v208_v12, %v212_v10  ;;  %v8476_v24 = vcombine.low %v208_v12, %v212_v10  ;;  %v251_v58 = vld [vmem:[%s13510_s1 + $0x630] sm:$0xff]  ;;  %v248_v59 = vld [vmem:[%s13510_s1 + $0x618] sm:$0xff] }
 0x1d7   :  { %5516 = vmatprep.subr.bf16.mxu0 %v8459_v60  ;;  %5803 = vmatprep.subr.bf16.mxu1 %v8461_v61  ;;  %v252_v60 = vld [vmem:[%s13510_s1 + $0x638] sm:$0xff]  ;;  %v8506_v61 = vcombine.low %v239_v48, %v243_v49  ;;  %v8515_v63 = vcombine.high %v247_v56, %v251_v58  ;;  %v263_v10 = vld [vmem:[%s13510_s1 + $0x690] sm:$0xff] }
 0x1d8   :  { %5546 = vmatprep.mubr.bf16.mxu0 %v10287_v22  ;;  %5833 = vmatprep.mubr.bf16.mxu1 %v10287_v22  ;;  %v216_v22 = vld [vmem:[%s13510_s1 + $0x518] sm:$0xff]  ;;  %v8517_v2 = vcombine.high %v248_v59, %v252_v60  ;;  %v8516_v8 = vcombine.low %v248_v59, %v252_v60  ;;  %v303_v60 = vld [vmem:[%s13510_s1 + $0x7d0] sm:$0xff] }
 0x1d9   :  { %v8485_v27 = vcombine.high %v216_v22, %v220_v19  ;;  %v8484_v34 = vcombine.low %v216_v22, %v220_v19  ;;  %v271_v19 = vld [vmem:[%s13510_s1 + $0x6d0] sm:$0xff] }
 0x1da   :  { %5517 = vmatpush1.bf16.msra.mxu0 %v8458_v4  ;;  %5804 = vmatpush1.bf16.msra.mxu1 %v8460_v5  ;;  %v259_v4 = vld [vmem:[%s13510_s1 + $0x670] sm:$0xff]  ;;  %v256_v5 = vld [vmem:[%s13510_s1 + $0x658] sm:$0xff] }
 0x1db   :  { %5518 = vmatprep.subr.bf16.mxu0 %v8467_v6  ;;  %5805 = vmatprep.subr.bf16.mxu1 %v8469_v7  ;;  %v260_v6 = vld [vmem:[%s13510_s1 + $0x678] sm:$0xff]  ;;  %v8514_v7 = vcombine.low %v247_v56, %v251_v58  ;;  %v8523_v9 = vcombine.high %v255_v3, %v259_v4 }
 0x1dc   :  { %v8525_v12 = vcombine.high %v256_v5, %v260_v6  ;;  %v8524_v17 = vcombine.low %v256_v5, %v260_v6  ;;  %v311_v6 = vld [vmem:[%s13510_s1 + $0x810] sm:$0xff] }
 0x1de   :  { %5519 = vmatpush1.bf16.msra.mxu0 %v8466_v11  ;;  %5806 = vmatpush1.bf16.msra.mxu1 %v8468_v13  ;;  %v267_v11 = vld [vmem:[%s13510_s1 + $0x6b0] sm:$0xff]  ;;  %v264_v13 = vld [vmem:[%s13510_s1 + $0x698] sm:$0xff] }
 0x1df   :  { %5520 = vmatprep.subr.bf16.mxu0 %v8475_v15  ;;  %5807 = vmatprep.subr.bf16.mxu1 %v8477_v16  ;;  %v268_v15 = vld [vmem:[%s13510_s1 + $0x6b8] sm:$0xff]  ;;  %v8522_v16 = vcombine.low %v255_v3, %v259_v4  ;;  %v8531_v18 = vcombine.high %v263_v10, %v267_v11 }
 0x1e0   :  { %v8533_v22 = vcombine.high %v264_v13, %v268_v15  ;;  %v8532_v28 = vcombine.low %v264_v13, %v268_v15  ;;  %v319_v15 = vld [vmem:[%s13510_s1 + $0x850] sm:$0xff] }
 0x1e2   :  { %5521 = vmatpush1.bf16.msra.mxu0 %v8474_v20  ;;  %5808 = vmatpush1.bf16.msra.mxu1 %v8476_v24  ;;  %v275_v20 = vld [vmem:[%s13510_s1 + $0x6f0] sm:$0xff]  ;;  %v272_v24 = vld [vmem:[%s13510_s1 + $0x6d8] sm:$0xff] }
 0x1e3   :  { %5522 = vmatprep.subr.bf16.mxu0 %v8483_v25  ;;  %5809 = vmatprep.subr.bf16.mxu1 %v8485_v27  ;;  %v276_v25 = vld [vmem:[%s13510_s1 + $0x6f8] sm:$0xff]  ;;  %v8530_v27 = vcombine.low %v263_v10, %v267_v11  ;;  %v8539_v29 = vcombine.high %v271_v19, %v275_v20 }
 0x1e4   :  { %v8541_v30 = vcombine.high %v272_v24, %v276_v25  ;;  %v8540_v38 = vcombine.low %v272_v24, %v276_v25  ;;  %v327_v25 = vld [vmem:[%s13510_s1 + $0x890] sm:$0xff] }
 0x1e6   :  { %5523 = vmatpush1.bf16.msra.mxu0 %v8482_v33  ;;  %5810 = vmatpush1.bf16.msra.mxu1 %v8484_v34  ;;  %v283_v33 = vld [vmem:[%s13510_s1 + $0x730] sm:$0xff]  ;;  %v280_v34 = vld [vmem:[%s13510_s1 + $0x718] sm:$0xff] }
 0x1e7   :  { %5524 = vmatprep.subr.bf16.mxu0 %v8491_v35  ;;  %5811 = vmatprep.subr.bf16.mxu1 %v8493_v37  ;;  %v284_v35 = vld [vmem:[%s13510_s1 + $0x738] sm:$0xff]  ;;  %v8538_v37 = vcombine.low %v271_v19, %v275_v20  ;;  %v8547_v39 = vcombine.high %v279_v31, %v283_v33 }
 0x1e8   :  { %v8549_v40 = vcombine.high %v280_v34, %v284_v35  ;;  %v8548_v48 = vcombine.low %v280_v34, %v284_v35  ;;  %v335_v35 = vld [vmem:[%s13510_s1 + $0x8d0] sm:$0xff] }
 0x1ea   :  { %5525 = vmatpush1.bf16.msra.mxu0 %v8490_v42  ;;  %5812 = vmatpush1.bf16.msra.mxu1 %v8492_v43  ;;  %v291_v42 = vld [vmem:[%s13510_s1 + $0x770] sm:$0xff]  ;;  %v288_v43 = vld [vmem:[%s13510_s1 + $0x758] sm:$0xff] }
 0x1eb   :  { %5526 = vmatprep.subr.bf16.mxu0 %v8499_v45  ;;  %5813 = vmatprep.subr.bf16.mxu1 %v8501_v47  ;;  %v292_v45 = vld [vmem:[%s13510_s1 + $0x778] sm:$0xff]  ;;  %v8546_v47 = vcombine.low %v279_v31, %v283_v33  ;;  %v8555_v49 = vcombine.high %v287_v41, %v291_v42 }
 0x1ec   :  { %v8557_v50 = vcombine.high %v288_v43, %v292_v45  ;;  %v8556_v56 = vcombine.low %v288_v43, %v292_v45  ;;  %v343_v43 = vld [vmem:[%s13510_s1 + $0x910] sm:$0xff] }
 0x1ed   :  { %v347_v45 = vld [vmem:[%s13510_s1 + $0x930] sm:$0xff] }
 0x1ee   :  { %5527 = vmatpush1.bf16.msra.mxu0 %v8498_v52  ;;  %5814 = vmatpush1.bf16.msra.mxu1 %v8500_v57  ;;  %v299_v52 = vld [vmem:[%s13510_s1 + $0x7b0] sm:$0xff]  ;;  %v296_v57 = vld [vmem:[%s13510_s1 + $0x798] sm:$0xff] }
 0x1ef   :  { %5528 = vmatprep.subr.bf16.mxu0 %v8507_v53  ;;  %5815 = vmatprep.subr.bf16.mxu1 %v8509_v55  ;;  %v300_v53 = vld [vmem:[%s13510_s1 + $0x7b8] sm:$0xff]  ;;  %v8554_v55 = vcombine.low %v287_v41, %v291_v42  ;;  %v8563_v58 = vcombine.high %v295_v51, %v299_v52 }
 0x1f0   :  { %v8565_v59 = vcombine.high %v296_v57, %v300_v53  ;;  %v8564_v3 = vcombine.low %v296_v57, %v300_v53  ;;  %v355_v57 = vld [vmem:[%s13510_s1 + $0x970] sm:$0xff]  ;;  %v352_v53 = vld [vmem:[%s13510_s1 + $0x958] sm:$0xff] }
 0x1f2   :  { %5529 = vmatpush1.bf16.msra.mxu0 %v8506_v61  ;;  %5816 = vmatpush1.bf16.msra.mxu1 %v8508_v62  ;;  %v307_v61 = vld [vmem:[%s13510_s1 + $0x7f0] sm:$0xff]  ;;  %v304_v62 = vld [vmem:[%s13510_s1 + $0x7d8] sm:$0xff] }
 0x1f3   :  { %5530 = vmatprep.subr.bf16.mxu0 %v8515_v63  ;;  %5817 = vmatprep.subr.bf16.mxu1 %v8517_v2  ;;  %v308_v63 = vld [vmem:[%s13510_s1 + $0x7f8] sm:$0xff]  ;;  %v8562_v2 = vcombine.low %v295_v51, %v299_v52  ;;  %v8571_v4 = vcombine.high %v303_v60, %v307_v61  ;;  %v351_v52 = vld [vmem:[%s13510_s1 + $0x950] sm:$0xff] }
 0x1f4   :  { %v8573_v5 = vcombine.high %v304_v62, %v308_v63  ;;  %v8572_v10 = vcombine.low %v304_v62, %v308_v63  ;;  %v363_v62 = vld [vmem:[%s13510_s1 + $0x9b0] sm:$0xff]  ;;  %v360_v63 = vld [vmem:[%s13510_s1 + $0x998] sm:$0xff] }
 0x1f6   :  { %5531 = vmatpush1.bf16.msra.mxu0 %v8514_v7  ;;  %5818 = vmatpush1.bf16.msra.mxu1 %v8516_v8  ;;  %v315_v7 = vld [vmem:[%s13510_s1 + $0x830] sm:$0xff]  ;;  %v312_v8 = vld [vmem:[%s13510_s1 + $0x818] sm:$0xff] }
 0x1f7   :  { %5532 = vmatprep.subr.bf16.mxu0 %v8523_v9  ;;  %5819 = vmatprep.subr.bf16.mxu1 %v8525_v12  ;;  %v316_v9 = vld [vmem:[%s13510_s1 + $0x838] sm:$0xff]  ;;  %v8570_v12 = vcombine.low %v303_v60, %v307_v61  ;;  %v8579_v11 = vcombine.high %v311_v6, %v315_v7  ;;  %v359_v61 = vld [vmem:[%s13510_s1 + $0x990] sm:$0xff] }
 0x1f8   :  { %v8581_v13 = vcombine.high %v312_v8, %v316_v9  ;;  %v8580_v19 = vcombine.low %v312_v8, %v316_v9  ;;  %v371_v8 = vld [vmem:[%s13510_s1 + $0x9f0] sm:$0xff]  ;;  %v368_v9 = vld [vmem:[%s13510_s1 + $0x9d8] sm:$0xff] }
 0x1fa   :  { %5533 = vmatpush1.bf16.msra.mxu0 %v8522_v16  ;;  %5820 = vmatpush1.bf16.msra.mxu1 %v8524_v17  ;;  %v323_v16 = vld [vmem:[%s13510_s1 + $0x870] sm:$0xff]  ;;  %v320_v17 = vld [vmem:[%s13510_s1 + $0x858] sm:$0xff] }
 0x1fb   :  { %5534 = vmatprep.subr.bf16.mxu0 %v8531_v18  ;;  %5821 = vmatprep.subr.bf16.mxu1 %v8533_v22  ;;  %v324_v18 = vld [vmem:[%s13510_s1 + $0x878] sm:$0xff]  ;;  %v8578_v22 = vcombine.low %v311_v6, %v315_v7  ;;  %v8587_v20 = vcombine.high %v319_v15, %v323_v16  ;;  %v367_v7 = vld [vmem:[%s13510_s1 + $0x9d0] sm:$0xff] }
 0x1fc   :  { %v8589_v24 = vcombine.high %v320_v17, %v324_v18  ;;  %v8588_v31 = vcombine.low %v320_v17, %v324_v18  ;;  %v379_v17 = vld [vmem:[%s13510_s1 + $0xa30] sm:$0xff]  ;;  %v376_v18 = vld [vmem:[%s13510_s1 + $0xa18] sm:$0xff] }
 0x1fe   :  { %5535 = vmatpush1.bf16.msra.mxu0 %v8530_v27  ;;  %5822 = vmatpush1.bf16.msra.mxu1 %v8532_v28  ;;  %v331_v27 = vld [vmem:[%s13510_s1 + $0x8b0] sm:$0xff]  ;;  %v328_v28 = vld [vmem:[%s13510_s1 + $0x898] sm:$0xff] }
 0x1ff   :  { %5536 = vmatprep.subr.bf16.mxu0 %v8539_v29  ;;  %5823 = vmatprep.subr.bf16.mxu1 %v8541_v30  ;;  %v332_v29 = vld [vmem:[%s13510_s1 + $0x8b8] sm:$0xff]  ;;  %v8586_v30 = vcombine.low %v319_v15, %v323_v16  ;;  %v8595_v33 = vcombine.high %v327_v25, %v331_v27  ;;  %v375_v16 = vld [vmem:[%s13510_s1 + $0xa10] sm:$0xff] }
 0x200   :  { %v8597_v34 = vcombine.high %v328_v28, %v332_v29 }
 0x202   :  { %5537 = vmatpush1.bf16.msra.mxu0 %v8538_v37  ;;  %5824 = vmatpush1.bf16.msra.mxu1 %v8540_v38  ;;  %v339_v37 = vld [vmem:[%s13510_s1 + $0x8f0] sm:$0xff]  ;;  %v340_v38 = vld [vmem:[%s13510_s1 + $0x8f8] sm:$0xff] }
 0x203   :  { %5538 = vmatprep.subr.bf16.mxu0 %v8547_v39  ;;  %5825 = vmatprep.subr.bf16.mxu1 %v8549_v40  ;;  %v8594_v39 = vcombine.low %v327_v25, %v331_v27  ;;  %v8596_v40 = vcombine.low %v328_v28, %v332_v29  ;;  %v8603_v41 = vcombine.high %v335_v35, %v339_v37  ;;  %v383_v27 = vld [vmem:[%s13510_s1 + $0xa50] sm:$0xff]  ;;  %v384_v29 = vld [vmem:[%s13510_s1 + $0xa58] sm:$0xff] }
 0x204   :  { %v387_v28 = vld [vmem:[%s13510_s1 + $0xa70] sm:$0xff] }
 0x206   :  { %5539 = vmatpush1.bf16.msra.mxu0 %v8546_v47  ;;  %5826 = vmatpush1.bf16.msra.mxu1 %v8548_v48  ;;  %v348_v47 = vld [vmem:[%s13510_s1 + $0x938] sm:$0xff]  ;;  %v8602_v48 = vcombine.low %v335_v35, %v339_v37  ;;  %v391_v37 = vld [vmem:[%s13510_s1 + $0xa90] sm:$0xff] }
 0x207   :  { %5540 = vmatprep.subr.bf16.mxu0 %v8555_v49  ;;  %5827 = vmatprep.subr.bf16.mxu1 %v8557_v50  ;;  %v8611_v50 = vcombine.high %v343_v43, %v347_v45 }
 0x20a   :  { %5541 = vmatpush1.bf16.msra.mxu0 %v8554_v55  ;;  %5828 = vmatpush1.bf16.msra.mxu1 %v8556_v56  ;;  %v356_v55 = vld [vmem:[%s13510_s1 + $0x978] sm:$0xff]  ;;  %v8610_v56 = vcombine.low %v343_v43, %v347_v45  ;;  %v399_v45 = vld [vmem:[%s13510_s1 + $0xad0] sm:$0xff] }
 0x20b   :  { %5542 = vmatprep.subr.bf16.mxu0 %v8563_v58  ;;  %5829 = vmatprep.subr.bf16.mxu1 %v8565_v59  ;;  %v8619_v59 = vcombine.high %v351_v52, %v355_v57  ;;  %v8621_v60 = vcombine.high %v352_v53, %v356_v55 }
 0x20e   :  { %5543 = vmatpush1.bf16.msra.mxu0 %v8562_v2  ;;  %5830 = vmatpush1.bf16.msra.mxu1 %v8564_v3  ;;  %v364_v2 = vld [vmem:[%s13510_s1 + $0x9b8] sm:$0xff]  ;;  %v8618_v3 = vcombine.low %v351_v52, %v355_v57  ;;  %v407_v57 = vld [vmem:[%s13510_s1 + $0xb10] sm:$0xff] }
 0x20f   :  { %5544 = vmatprep.subr.bf16.mxu0 %v8571_v4  ;;  %5831 = vmatprep.subr.bf16.mxu1 %v8573_v5  ;;  %v8620_v4 = vcombine.low %v352_v53, %v356_v55  ;;  %v8627_v5 = vcombine.high %v359_v61, %v363_v62  ;;  %v8629_v6 = vcombine.high %v360_v63, %v364_v2  ;;  %v411_v53 = vld [vmem:[%s13510_s1 + $0xb30] sm:$0xff]  ;;  %v408_v55 = vld [vmem:[%s13510_s1 + $0xb18] sm:$0xff] }
 0x212   :  { %5545 = vmatpush1.bf16.msra.mxu0 %v8570_v12  ;;  %5832 = vmatpush1.bf16.msra.mxu1 %v8572_v10  ;;  %v372_v12 = vld [vmem:[%s13510_s1 + $0x9f8] sm:$0xff]  ;;  %v8626_v10 = vcombine.low %v359_v61, %v363_v62  ;;  %v415_v62 = vld [vmem:[%s13510_s1 + $0xb50] sm:$0xff] }
 0x213   :  { %5555 = vmatprep.subr.bf16.mxu0 %v8579_v11  ;;  %5842 = vmatprep.subr.bf16.mxu1 %v8581_v13  ;;  %v8628_v11 = vcombine.low %v360_v63, %v364_v2  ;;  %v8635_v13 = vcombine.high %v367_v7, %v371_v8  ;;  %v8637_v15 = vcombine.high %v368_v9, %v372_v12  ;;  %v419_v63 = vld [vmem:[%s13510_s1 + $0xb70] sm:$0xff]  ;;  %v416_v2 = vld [vmem:[%s13510_s1 + $0xb58] sm:$0xff] }
 0x215   :  { %5547 = vmatmul.mubr.bf16.vlgmr.msra.gmra.mrb[4].mxu0 %v10476_v21  ;;  %5834 = vmatmul.mubr.bf16.vlgmr.msra.gmra.mrb[4].mxu1 %v10476_v21  ;;  %v336_v21 = vld [vmem:[%s13510_s1 + $0x8d8] sm:$0xff] }
 0x216   :  { %5556 = vmatpush1.bf16.msra.mxu0 %v8578_v22  ;;  %5843 = vmatpush1.bf16.msra.mxu1 %v8580_v19  ;;  %v8605_v42 = vcombine.high %v336_v21, %v340_v38  ;;  %v8604_v49 = vcombine.low %v336_v21, %v340_v38  ;;  %v380_v22 = vld [vmem:[%s13510_s1 + $0xa38] sm:$0xff]  ;;  %v8634_v19 = vcombine.low %v367_v7, %v371_v8  ;;  %v395_v21 = vld [vmem:[%s13510_s1 + $0xab0] sm:$0xff] }
 0x217   :  { %5557 = vmatprep.subr.bf16.mxu0 %v8587_v20  ;;  %5844 = vmatprep.subr.bf16.mxu1 %v8589_v24  ;;  %v8636_v20 = vcombine.low %v368_v9, %v372_v12  ;;  %v8643_v24 = vcombine.high %v375_v16, %v379_v17  ;;  %v8645_v25 = vcombine.high %v376_v18, %v380_v22  ;;  %v392_v38 = vld [vmem:[%s13510_s1 + $0xa98] sm:$0xff]  ;;  %v423_v8 = vld [vmem:[%s13510_s1 + $0xb90] sm:$0xff] }
 0x218   :  { %5587 = vmatprep.mubr.bf16.mxu0 %v10493_v32  ;;  %5874 = vmatprep.mubr.bf16.mxu1 %v10493_v32  ;;  %v344_v32 = vld [vmem:[%s13510_s1 + $0x918] sm:$0xff]  ;;  %v427_v9 = vld [vmem:[%s13510_s1 + $0xbb0] sm:$0xff] }
 0x219   :  { %v8613_v51 = vcombine.high %v344_v32, %v348_v47  ;;  %v8612_v58 = vcombine.low %v344_v32, %v348_v47  ;;  %v403_v32 = vld [vmem:[%s13510_s1 + $0xaf0] sm:$0xff]  ;;  %v400_v47 = vld [vmem:[%s13510_s1 + $0xad8] sm:$0xff] }
 0x21a   :  { %5558 = vmatpush1.bf16.msra.mxu0 %v8586_v30  ;;  %5845 = vmatpush1.bf16.msra.mxu1 %v8588_v31  ;;  %v388_v30 = vld [vmem:[%s13510_s1 + $0xa78] sm:$0xff]  ;;  %v8642_v31 = vcombine.low %v375_v16, %v379_v17  ;;  %v431_v17 = vld [vmem:[%s13510_s1 + $0xbd0] sm:$0xff] }
 0x21b   :  { %5559 = vmatprep.subr.bf16.mxu0 %v8595_v33  ;;  %5846 = vmatprep.subr.bf16.mxu1 %v8597_v34  ;;  %v8644_v33 = vcombine.low %v376_v18, %v380_v22  ;;  %v8651_v34 = vcombine.high %v383_v27, %v387_v28  ;;  %v8653_v35 = vcombine.high %v384_v29, %v388_v30  ;;  %v424_v12 = vld [vmem:[%s13510_s1 + $0xb98] sm:$0xff]  ;;  %v435_v18 = vld [vmem:[%s13510_s1 + $0xbf0] sm:$0xff] }
 0x21c   :  { %v432_v22 = vld [vmem:[%s13510_s1 + $0xbd8] sm:$0xff] }
 0x21e   :  { %5560 = vmatpush1.bf16.msra.mxu0 %v8594_v39  ;;  %5847 = vmatpush1.bf16.msra.mxu1 %v8596_v40  ;;  %v396_v39 = vld [vmem:[%s13510_s1 + $0xab8] sm:$0xff]  ;;  %v8650_v40 = vcombine.low %v383_v27, %v387_v28  ;;  %v439_v28 = vld [vmem:[%s13510_s1 + $0xc10] sm:$0xff] }
 0x21f   :  { %5561 = vmatprep.subr.bf16.mxu0 %v8603_v41  ;;  %5848 = vmatprep.subr.bf16.mxu1 %v8605_v42  ;;  %v8652_v41 = vcombine.low %v384_v29, %v388_v30  ;;  %v8659_v42 = vcombine.high %v391_v37, %v395_v21  ;;  %v8661_v43 = vcombine.high %v392_v38, %v396_v39  ;;  %v443_v29 = vld [vmem:[%s13510_s1 + $0xc30] sm:$0xff]  ;;  %v440_v30 = vld [vmem:[%s13510_s1 + $0xc18] sm:$0xff] }
 0x222   :  { %5562 = vmatpush1.bf16.msra.mxu0 %v8602_v48  ;;  %5849 = vmatpush1.bf16.msra.mxu1 %v8604_v49  ;;  %v404_v48 = vld [vmem:[%s13510_s1 + $0xaf8] sm:$0xff]  ;;  %v8658_v49 = vcombine.low %v391_v37, %v395_v21  ;;  %v447_v21 = vld [vmem:[%s13510_s1 + $0xc50] sm:$0xff] }
 0x223   :  { %5563 = vmatprep.subr.bf16.mxu0 %v8611_v50  ;;  %5850 = vmatprep.subr.bf16.mxu1 %v8613_v51  ;;  %v8660_v50 = vcombine.low %v392_v38, %v396_v39  ;;  %v8667_v51 = vcombine.high %v399_v45, %v403_v32  ;;  %v8669_v52 = vcombine.high %v400_v47, %v404_v48  ;;  %v451_v38 = vld [vmem:[%s13510_s1 + $0xc70] sm:$0xff]  ;;  %v448_v39 = vld [vmem:[%s13510_s1 + $0xc58] sm:$0xff] }
 0x226   :  { %5564 = vmatpush1.bf16.msra.mxu0 %v8610_v56  ;;  %5851 = vmatpush1.bf16.msra.mxu1 %v8612_v58  ;;  %v412_v56 = vld [vmem:[%s13510_s1 + $0xb38] sm:$0xff]  ;;  %v8666_v58 = vcombine.low %v399_v45, %v403_v32  ;;  %v455_v32 = vld [vmem:[%s13510_s1 + $0xc90] sm:$0xff] }
 0x227   :  { %5565 = vmatprep.subr.bf16.mxu0 %v8619_v59  ;;  %5852 = vmatprep.subr.bf16.mxu1 %v8621_v60  ;;  %v8668_v59 = vcombine.low %v400_v47, %v404_v48  ;;  %v8675_v60 = vcombine.high %v407_v57, %v411_v53  ;;  %v8677_v61 = vcombine.high %v408_v55, %v412_v56  ;;  %v459_v47 = vld [vmem:[%s13510_s1 + $0xcb0] sm:$0xff]  ;;  %v456_v48 = vld [vmem:[%s13510_s1 + $0xc98] sm:$0xff] }
 0x22a   :  { %5566 = vmatpush1.bf16.msra.mxu0 %v8618_v3  ;;  %5853 = vmatpush1.bf16.msra.mxu1 %v8620_v4  ;;  %v420_v3 = vld [vmem:[%s13510_s1 + $0xb78] sm:$0xff]  ;;  %v8674_v4 = vcombine.low %v407_v57, %v411_v53  ;;  %v463_v53 = vld [vmem:[%s13510_s1 + $0xcd0] sm:$0xff] }
 0x22b   :  { %5567 = vmatprep.subr.bf16.mxu0 %v8627_v5  ;;  %5854 = vmatprep.subr.bf16.mxu1 %v8629_v6  ;;  %v8676_v5 = vcombine.low %v408_v55, %v412_v56  ;;  %v8683_v6 = vcombine.high %v415_v62, %v419_v63  ;;  %v8685_v7 = vcombine.high %v416_v2, %v420_v3  ;;  %v467_v55 = vld [vmem:[%s13510_s1 + $0xcf0] sm:$0xff]  ;;  %v468_v56 = vld [vmem:[%s13510_s1 + $0xcf8] sm:$0xff] }
 0x22e   :  { %5568 = vmatpush1.bf16.msra.mxu0 %v8626_v10  ;;  %5855 = vmatpush1.bf16.msra.mxu1 %v8628_v11  ;;  %v428_v10 = vld [vmem:[%s13510_s1 + $0xbb8] sm:$0xff]  ;;  %v8682_v11 = vcombine.low %v415_v62, %v419_v63  ;;  %v471_v62 = vld [vmem:[%s13510_s1 + $0xd10] sm:$0xff] }
 0x22f   :  { %5569 = vmatprep.subr.bf16.mxu0 %v8635_v13  ;;  %5856 = vmatprep.subr.bf16.mxu1 %v8637_v15  ;;  %v8684_v13 = vcombine.low %v416_v2, %v420_v3  ;;  %v8691_v15 = vcombine.high %v423_v8, %v427_v9  ;;  %v8693_v16 = vcombine.high %v424_v12, %v428_v10  ;;  %v475_v63 = vld [vmem:[%s13510_s1 + $0xd30] sm:$0xff]  ;;  %v476_v2 = vld [vmem:[%s13510_s1 + $0xd38] sm:$0xff] }
 0x230   :  { %v8730_v3 = vcombine.low %v463_v53, %v467_v55 }
 0x232   :  { %5570 = vmatpush1.bf16.msra.mxu0 %v8634_v19  ;;  %5857 = vmatpush1.bf16.msra.mxu1 %v8636_v20  ;;  %v436_v19 = vld [vmem:[%s13510_s1 + $0xbf8] sm:$0xff]  ;;  %v8690_v20 = vcombine.low %v423_v8, %v427_v9  ;;  %v483_v8 = vld [vmem:[%s13510_s1 + $0xd70] sm:$0xff] }
 0x233   :  { %5571 = vmatprep.subr.bf16.mxu0 %v8643_v24  ;;  %5858 = vmatprep.subr.bf16.mxu1 %v8645_v25  ;;  %v8692_v24 = vcombine.low %v424_v12, %v428_v10  ;;  %v8699_v25 = vcombine.high %v431_v17, %v435_v18  ;;  %v8701_v27 = vcombine.high %v432_v22, %v436_v19  ;;  %v480_v9 = vld [vmem:[%s13510_s1 + $0xd58] sm:$0xff] }
 0x234   :  { %v484_v12 = vld [vmem:[%s13510_s1 + $0xd78] sm:$0xff]  ;;  %v8738_v10 = vcombine.low %v471_v62, %v475_v63 }
 0x236   :  { %5572 = vmatpush1.bf16.msra.mxu0 %v8642_v31  ;;  %5859 = vmatpush1.bf16.msra.mxu1 %v8644_v33  ;;  %v444_v31 = vld [vmem:[%s13510_s1 + $0xc38] sm:$0xff]  ;;  %v8698_v33 = vcombine.low %v431_v17, %v435_v18  ;;  %v491_v17 = vld [vmem:[%s13510_s1 + $0xdb0] sm:$0xff] }
 0x237   :  { %5573 = vmatprep.subr.bf16.mxu0 %v8651_v34  ;;  %5860 = vmatprep.subr.bf16.mxu1 %v8653_v35  ;;  %v8700_v34 = vcombine.low %v432_v22, %v436_v19  ;;  %v8707_v35 = vcombine.high %v439_v28, %v443_v29  ;;  %v8709_v37 = vcombine.high %v440_v30, %v444_v31  ;;  %v488_v18 = vld [vmem:[%s13510_s1 + $0xd98] sm:$0xff] }
 0x238   :  { %v492_v22 = vld [vmem:[%s13510_s1 + $0xdb8] sm:$0xff] }
 0x23a   :  { %5574 = vmatpush1.bf16.msra.mxu0 %v8650_v40  ;;  %5861 = vmatpush1.bf16.msra.mxu1 %v8652_v41  ;;  %v452_v40 = vld [vmem:[%s13510_s1 + $0xc78] sm:$0xff]  ;;  %v8706_v41 = vcombine.low %v439_v28, %v443_v29  ;;  %v495_v28 = vld [vmem:[%s13510_s1 + $0xdd0] sm:$0xff] }
 0x23b   :  { %5575 = vmatprep.subr.bf16.mxu0 %v8659_v42  ;;  %5862 = vmatprep.subr.bf16.mxu1 %v8661_v43  ;;  %v8708_v42 = vcombine.low %v440_v30, %v444_v31  ;;  %v8715_v43 = vcombine.high %v447_v21, %v451_v38  ;;  %v8717_v45 = vcombine.high %v448_v39, %v452_v40  ;;  %v499_v29 = vld [vmem:[%s13510_s1 + $0xdf0] sm:$0xff] }
 0x23e   :  { %5576 = vmatpush1.bf16.msra.mxu0 %v8658_v49  ;;  %5863 = vmatpush1.bf16.msra.mxu1 %v8660_v50  ;;  %v460_v49 = vld [vmem:[%s13510_s1 + $0xcb8] sm:$0xff]  ;;  %v8714_v50 = vcombine.low %v447_v21, %v451_v38 }
 0x23f   :  { %5577 = vmatprep.subr.bf16.mxu0 %v8667_v51  ;;  %5864 = vmatprep.subr.bf16.mxu1 %v8669_v52  ;;  %v8716_v51 = vcombine.low %v448_v39, %v452_v40  ;;  %v8723_v52 = vcombine.high %v455_v32, %v459_v47  ;;  %v8725_v57 = vcombine.high %v456_v48, %v460_v49 }
 0x240   :  { %v8756_v40 = vcombine.low %v488_v18, %v492_v22 }
 0x242   :  { %5578 = vmatpush1.bf16.msra.mxu0 %v8666_v58  ;;  %5865 = vmatpush1.bf16.msra.mxu1 %v8668_v59  ;;  %v8722_v58 = vcombine.low %v455_v32, %v459_v47  ;;  %v8724_v59 = vcombine.low %v456_v48, %v460_v49  ;;  %v507_v32 = vld [vmem:[%s13510_s1 + $0xe30] sm:$0xff]  ;;  %v504_v47 = vld [vmem:[%s13510_s1 + $0xe18] sm:$0xff]  ;;  %v8762_v49 = vcombine.low %v495_v28, %v499_v29 }
 0x243   :  { %5579 = vmatprep.subr.bf16.mxu0 %v8675_v60  ;;  %5866 = vmatprep.subr.bf16.mxu1 %v8677_v61  ;;  %v8731_v60 = vcombine.high %v463_v53, %v467_v55  ;;  %v508_v48 = vld [vmem:[%s13510_s1 + $0xe38] sm:$0xff]  ;;  %v515_v53 = vld [vmem:[%s13510_s1 + $0xe70] sm:$0xff] }
 0x244   :  { %v512_v55 = vld [vmem:[%s13510_s1 + $0xe58] sm:$0xff] }
 0x246   :  { %5580 = vmatpush1.bf16.msra.mxu0 %v8674_v4  ;;  %5867 = vmatpush1.bf16.msra.mxu1 %v8676_v5  ;;  %v8739_v5 = vcombine.high %v471_v62, %v475_v63  ;;  %v523_v62 = vld [vmem:[%s13510_s1 + $0xeb0] sm:$0xff]  ;;  %v520_v63 = vld [vmem:[%s13510_s1 + $0xe98] sm:$0xff] }
 0x247   :  { %5581 = vmatprep.subr.bf16.mxu0 %v8683_v6  ;;  %5868 = vmatprep.subr.bf16.mxu1 %v8685_v7  ;;  %v479_v7 = vld [vmem:[%s13510_s1 + $0xd50] sm:$0xff] }
 0x248   :  { %v8746_v19 = vcombine.low %v479_v7, %v483_v8 }
 0x24a   :  { %5582 = vmatpush1.bf16.msra.mxu0 %v8682_v11  ;;  %5869 = vmatpush1.bf16.msra.mxu1 %v8684_v13  ;;  %v8747_v13 = vcombine.high %v479_v7, %v483_v8  ;;  %v531_v7 = vld [vmem:[%s13510_s1 + $0xef0] sm:$0xff]  ;;  %v528_v8 = vld [vmem:[%s13510_s1 + $0xed8] sm:$0xff] }
 0x24b   :  { %5583 = vmatprep.subr.bf16.mxu0 %v8691_v15  ;;  %5870 = vmatprep.subr.bf16.mxu1 %v8693_v16  ;;  %v8749_v15 = vcombine.high %v480_v9, %v484_v12  ;;  %v487_v16 = vld [vmem:[%s13510_s1 + $0xd90] sm:$0xff] }
 0x24c   :  { %v8754_v21 = vcombine.low %v487_v16, %v491_v17 }
 0x24e   :  { %5584 = vmatpush1.bf16.msra.mxu0 %v8690_v20  ;;  %5871 = vmatpush1.bf16.msra.mxu1 %v8692_v24  ;;  %v8748_v20 = vcombine.low %v480_v9, %v484_v12  ;;  %v8755_v24 = vcombine.high %v487_v16, %v491_v17  ;;  %v532_v9 = vld [vmem:[%s13510_s1 + $0xef8] sm:$0xff]  ;;  %v539_v16 = vld [vmem:[%s13510_s1 + $0xf30] sm:$0xff] }
 0x24f   :  { %5585 = vmatprep.subr.bf16.mxu0 %v8699_v25  ;;  %5872 = vmatprep.subr.bf16.mxu1 %v8701_v27  ;;  %v8757_v27 = vcombine.high %v488_v18, %v492_v22  ;;  %v536_v17 = vld [vmem:[%s13510_s1 + $0xf18] sm:$0xff] }
 0x250   :  { %v540_v18 = vld [vmem:[%s13510_s1 + $0xf38] sm:$0xff] }
 0x252   :  { %5586 = vmatpush1.bf16.msra.mxu0 %v8698_v33  ;;  %5873 = vmatpush1.bf16.msra.mxu1 %v8700_v34  ;;  %v496_v33 = vld [vmem:[%s13510_s1 + $0xdd8] sm:$0xff] }
 0x253   :  { %5596 = vmatprep.subr.bf16.mxu0 %v8707_v35  ;;  %5883 = vmatprep.subr.bf16.mxu1 %v8709_v37  ;;  %v500_v34 = vld [vmem:[%s13510_s1 + $0xdf8] sm:$0xff] }
 0x255   :  { %5588 = vmatmul.mubr.bf16.vlgmr.msra.gmra.mrb[4].mxu0 %v10682_v36  ;;  %5875 = vmatmul.mubr.bf16.vlgmr.msra.gmra.mrb[4].mxu1 %v10682_v36  ;;  %v464_v36 = vld [vmem:[%s13510_s1 + $0xcd8] sm:$0xff] }
 0x256   :  { %5597 = vmatpush1.bf16.msra.mxu0 %v8706_v41  ;;  %5884 = vmatpush1.bf16.msra.mxu1 %v8708_v42  ;;  %v8733_v61 = vcombine.high %v464_v36, %v468_v56  ;;  %v8732_v4 = vcombine.low %v464_v36, %v468_v56  ;;  %v8763_v41 = vcombine.high %v495_v28, %v499_v29  ;;  %v516_v36 = vld [vmem:[%s13510_s1 + $0xe78] sm:$0xff]  ;;  %v547_v28 = vld [vmem:[%s13510_s1 + $0xf70] sm:$0xff] }
 0x257   :  { %5598 = vmatprep.subr.bf16.mxu0 %v8715_v43  ;;  %5885 = vmatprep.subr.bf16.mxu1 %v8717_v45  ;;  %v8765_v43 = vcombine.high %v496_v33, %v500_v34  ;;  %v503_v45 = vld [vmem:[%s13510_s1 + $0xe10] sm:$0xff]  ;;  %v544_v29 = vld [vmem:[%s13510_s1 + $0xf58] sm:$0xff] }
 0x258   :  { %5628 = vmatprep.mubr.bf16.mxu0 %v10699_v46  ;;  %5915 = vmatprep.mubr.bf16.mxu1 %v10699_v46  ;;  %v472_v46 = vld [vmem:[%s13510_s1 + $0xd18] sm:$0xff]  ;;  %v8770_v56 = vcombine.low %v503_v45, %v507_v32 }
 0x259   :  { %v8741_v6 = vcombine.high %v472_v46, %v476_v2  ;;  %v8740_v11 = vcombine.low %v472_v46, %v476_v2  ;;  %v524_v46 = vld [vmem:[%s13510_s1 + $0xeb8] sm:$0xff] }
 0x25a   :  { %5599 = vmatpush1.bf16.msra.mxu0 %v8714_v50  ;;  %5886 = vmatpush1.bf16.msra.mxu1 %v8716_v51  ;;  %v8764_v50 = vcombine.low %v496_v33, %v500_v34  ;;  %v8771_v51 = vcombine.high %v503_v45, %v507_v32  ;;  %v548_v33 = vld [vmem:[%s13510_s1 + $0xf78] sm:$0xff] }
 0x25b   :  { %5600 = vmatprep.subr.bf16.mxu0 %v8723_v52  ;;  %5887 = vmatprep.subr.bf16.mxu1 %v8725_v57  ;;  %v8773_v52 = vcombine.high %v504_v47, %v508_v48  ;;  %v511_v57 = vld [vmem:[%s13510_s1 + $0xe50] sm:$0xff]  ;;  %v8812_v45 = vcombine.low %v544_v29, %v548_v33 }
 0x25c   :  { %v8778_v2 = vcombine.low %v511_v57, %v515_v53 }
 0x25e   :  { %5601 = vmatpush1.bf16.msra.mxu0 %v8722_v58  ;;  %5888 = vmatpush1.bf16.msra.mxu1 %v8724_v59  ;;  %v8772_v58 = vcombine.low %v504_v47, %v508_v48  ;;  %v8779_v59 = vcombine.high %v511_v57, %v515_v53  ;;  %v559_v48 = vld [vmem:[%s13510_s1 + $0xfd0] sm:$0xff] }
 0x25f   :  { %5602 = vmatprep.subr.bf16.mxu0 %v8731_v60  ;;  %5889 = vmatprep.subr.bf16.mxu1 %v8733_v61  ;;  %v8781_v60 = vcombine.high %v512_v55, %v516_v36  ;;  %v519_v61 = vld [vmem:[%s13510_s1 + $0xe90] sm:$0xff] }
 0x260   :  { %v8786_v12 = vcombine.low %v519_v61, %v523_v62 }
 0x262   :  { %5603 = vmatpush1.bf16.msra.mxu0 %v8730_v3  ;;  %5890 = vmatpush1.bf16.msra.mxu1 %v8732_v4  ;;  %v8780_v3 = vcombine.low %v512_v55, %v516_v36  ;;  %v8787_v4 = vcombine.high %v519_v61, %v523_v62  ;;  %v567_v36 = vld [vmem:[%s13510_s1 + $0x1010] sm:$0xff] }
 0x263   :  { %5604 = vmatprep.subr.bf16.mxu0 %v8739_v5  ;;  %5891 = vmatprep.subr.bf16.mxu1 %v8741_v6  ;;  %v8789_v5 = vcombine.high %v520_v63, %v524_v46  ;;  %v527_v6 = vld [vmem:[%s13510_s1 + $0xed0] sm:$0xff] }
 0x264   :  { %v8794_v22 = vcombine.low %v527_v6, %v531_v7 }
 0x266   :  { %5605 = vmatpush1.bf16.msra.mxu0 %v8738_v10  ;;  %5892 = vmatpush1.bf16.msra.mxu1 %v8740_v11  ;;  %v8788_v10 = vcombine.low %v520_v63, %v524_v46  ;;  %v8795_v11 = vcombine.high %v527_v6, %v531_v7  ;;  %v575_v46 = vld [vmem:[%s13510_s1 + $0x1050] sm:$0xff] }
 0x267   :  { %5606 = vmatprep.subr.bf16.mxu0 %v8747_v13  ;;  %5893 = vmatprep.subr.bf16.mxu1 %v8749_v15  ;;  %v8797_v13 = vcombine.high %v528_v8, %v532_v9  ;;  %v535_v15 = vld [vmem:[%s13510_s1 + $0xf10] sm:$0xff] }
 0x268   :  { %v12019_v25 = vpop.f32.mrb[0].mxu0  ;;  %v12027_v30 = vpop.f32.mrb[0].mxu1  ;;  %v8802_v34 = vcombine.low %v535_v15, %v539_v16 }
 0x269   :  { %v12029_v31 = vpop.f32.mrb[1].mxu0  ;;  %v12037_v35 = vpop.f32.mrb[1].mxu1 }
 0x26a   :  { %v5183_v37 = vpop.f32.mrb[2].mxu0  ;;  %5607 = vmatpush1.bf16.msra.mxu0 %v8746_v19  ;;  %v5470_v38 = vpop.f32.mrb[2].mxu1  ;;  %5894 = vmatpush1.bf16.msra.mxu1 %v8748_v20  ;;  %v8796_v19 = vcombine.low %v528_v8, %v532_v9  ;;  %v8803_v20 = vcombine.high %v535_v15, %v539_v16  ;;  %v583_v9 = vld [vmem:[%s13510_s1 + $0x1090] sm:$0xff] }
 0x26b   :  { %v5184_v39 = vpop.f32.mrb[3].mxu0  ;;  %5608 = vmatprep.subr.bf16.mxu0 %v8755_v24  ;;  %v5471_v42 = vpop.f32.mrb[3].mxu1  ;;  %5895 = vmatprep.subr.bf16.mxu1 %v8757_v27  ;;  %v8805_v24 = vcombine.high %v536_v17, %v540_v18  ;;  %v543_v27 = vld [vmem:[%s13510_s1 + $0xf50] sm:$0xff]  ;;  %v8804_v37 = vcombine.low %v536_v17, %v540_v18  ;;  %v8813_v38 = vcombine.high %v544_v29, %v548_v33 }
 0x26c   :  { %v551_v39 = vld [vmem:[%s13510_s1 + $0xf90] sm:$0xff]  ;;  %v556_v42 = vld [vmem:[%s13510_s1 + $0xfb8] sm:$0xff] }
 0x26d   :  { %v591_v18 = vld [vmem:[%s13510_s1 + $0x10d0] sm:$0xff] }
 0x26e   :  { %5609 = vmatpush1.bf16.msra.mxu0 %v8754_v21  ;;  %5896 = vmatpush1.bf16.msra.mxu1 %v8756_v40  ;;  %v8811_v21 = vcombine.high %v543_v27, %v547_v28  ;;  %v555_v40 = vld [vmem:[%s13510_s1 + $0xfb0] sm:$0xff] }
 0x26f   :  { %5610 = vmatprep.subr.bf16.mxu0 %v8763_v41  ;;  %5897 = vmatprep.subr.bf16.mxu1 %v8765_v43  ;;  %v552_v41 = vld [vmem:[%s13510_s1 + $0xf98] sm:$0xff]  ;;  %v8810_v43 = vcombine.low %v543_v27, %v547_v28  ;;  %v8819_v32 = vcombine.high %v551_v39, %v555_v40  ;;  %v599_v29 = vld [vmem:[%s13510_s1 + $0x1110] sm:$0xff] }
 0x270   :  { %v8821_v47 = vcombine.high %v552_v41, %v556_v42  ;;  %v8820_v57 = vcombine.low %v552_v41, %v556_v42  ;;  %v603_v33 = vld [vmem:[%s13510_s1 + $0x1130] sm:$0xff]  ;;  %v608_v42 = vld [vmem:[%s13510_s1 + $0x1158] sm:$0xff] }
 0x271   :  { %v611_v41 = vld [vmem:[%s13510_s1 + $0x1170] sm:$0xff] }
 0x272   :  { %5611 = vmatpush1.bf16.msra.mxu0 %v8762_v49  ;;  %5898 = vmatpush1.bf16.msra.mxu1 %v8764_v50  ;;  %v563_v49 = vld [vmem:[%s13510_s1 + $0xff0] sm:$0xff]  ;;  %v560_v50 = vld [vmem:[%s13510_s1 + $0xfd8] sm:$0xff] }
 0x273   :  { %5612 = vmatprep.subr.bf16.mxu0 %v8771_v51  ;;  %5899 = vmatprep.subr.bf16.mxu1 %v8773_v52  ;;  %v564_v51 = vld [vmem:[%s13510_s1 + $0xff8] sm:$0xff]  ;;  %v8818_v52 = vcombine.low %v551_v39, %v555_v40  ;;  %v8827_v53 = vcombine.high %v559_v48, %v563_v49  ;;  %v607_v40 = vld [vmem:[%s13510_s1 + $0x1150] sm:$0xff] }
 0x274   :  { %v8829_v55 = vcombine.high %v560_v50, %v564_v51  ;;  %v8828_v61 = vcombine.low %v560_v50, %v564_v51  ;;  %v616_v51 = vld [vmem:[%s13510_s1 + $0x1198] sm:$0xff] }
 0x276   :  { %5613 = vmatpush1.bf16.msra.mxu0 %v8770_v56  ;;  %5900 = vmatpush1.bf16.msra.mxu1 %v8772_v58  ;;  %v571_v56 = vld [vmem:[%s13510_s1 + $0x1030] sm:$0xff]  ;;  %v568_v58 = vld [vmem:[%s13510_s1 + $0x1018] sm:$0xff] }
 0x277   :  { %5614 = vmatprep.subr.bf16.mxu0 %v8779_v59  ;;  %5901 = vmatprep.subr.bf16.mxu1 %v8781_v60  ;;  %v572_v59 = vld [vmem:[%s13510_s1 + $0x1038] sm:$0xff]  ;;  %v8826_v60 = vcombine.low %v559_v48, %v563_v49  ;;  %v8835_v62 = vcombine.high %v567_v36, %v571_v56  ;;  %v615_v48 = vld [vmem:[%s13510_s1 + $0x1190] sm:$0xff] }
 0x278   :  { %v8837_v63 = vcombine.high %v568_v58, %v572_v59  ;;  %v8836_v6 = vcombine.low %v568_v58, %v572_v59  ;;  %v619_v49 = vld [vmem:[%s13510_s1 + $0x11b0] sm:$0xff]  ;;  %v624_v59 = vld [vmem:[%s13510_s1 + $0x11d8] sm:$0xff] }
 0x279   :  { %v627_v58 = vld [vmem:[%s13510_s1 + $0x11f0] sm:$0xff] }
 0x27a   :  { %5615 = vmatpush1.bf16.msra.mxu0 %v8778_v2  ;;  %5902 = vmatpush1.bf16.msra.mxu1 %v8780_v3  ;;  %v579_v2 = vld [vmem:[%s13510_s1 + $0x1070] sm:$0xff]  ;;  %v576_v3 = vld [vmem:[%s13510_s1 + $0x1058] sm:$0xff] }
 0x27b   :  { %5616 = vmatprep.subr.bf16.mxu0 %v8787_v4  ;;  %5903 = vmatprep.subr.bf16.mxu1 %v8789_v5  ;;  %v580_v4 = vld [vmem:[%s13510_s1 + $0x1078] sm:$0xff]  ;;  %v8834_v5 = vcombine.low %v567_v36, %v571_v56  ;;  %v8843_v7 = vcombine.high %v575_v46, %v579_v2  ;;  %v623_v56 = vld [vmem:[%s13510_s1 + $0x11d0] sm:$0xff] }
 0x27c   :  { %v8845_v8 = vcombine.high %v576_v3, %v580_v4  ;;  %v8844_v15 = vcombine.low %v576_v3, %v580_v4  ;;  %v632_v3 = vld [vmem:[%s13510_s1 + $0x1218] sm:$0xff] }
 0x27e   :  { %5617 = vmatpush1.bf16.msra.mxu0 %v8786_v12  ;;  %5904 = vmatpush1.bf16.msra.mxu1 %v8788_v10  ;;  %v587_v12 = vld [vmem:[%s13510_s1 + $0x10b0] sm:$0xff]  ;;  %v584_v10 = vld [vmem:[%s13510_s1 + $0x1098] sm:$0xff] }
 0x27f   :  { %5618 = vmatprep.subr.bf16.mxu0 %v8795_v11  ;;  %5905 = vmatprep.subr.bf16.mxu1 %v8797_v13  ;;  %v588_v11 = vld [vmem:[%s13510_s1 + $0x10b8] sm:$0xff]  ;;  %v8842_v13 = vcombine.low %v575_v46, %v579_v2  ;;  %v8851_v16 = vcombine.high %v583_v9, %v587_v12  ;;  %v631_v46 = vld [vmem:[%s13510_s1 + $0x1210] sm:$0xff] }
 0x280   :  { %v8853_v17 = vcombine.high %v584_v10, %v588_v11  ;;  %v635_v2 = vld [vmem:[%s13510_s1 + $0x1230] sm:$0xff] }
 0x282   :  { %5619 = vmatpush1.bf16.msra.mxu0 %v8794_v22  ;;  %5906 = vmatpush1.bf16.msra.mxu1 %v8796_v19  ;;  %v595_v22 = vld [vmem:[%s13510_s1 + $0x10f0] sm:$0xff]  ;;  %v596_v19 = vld [vmem:[%s13510_s1 + $0x10f8] sm:$0xff] }
 0x283   :  { %5620 = vmatprep.subr.bf16.mxu0 %v8803_v20  ;;  %5907 = vmatprep.subr.bf16.mxu1 %v8805_v24  ;;  %v8850_v20 = vcombine.low %v583_v9, %v587_v12  ;;  %v8852_v24 = vcombine.low %v584_v10, %v588_v11  ;;  %v8859_v27 = vcombine.high %v591_v18, %v595_v22  ;;  %v639_v9 = vld [vmem:[%s13510_s1 + $0x1250] sm:$0xff]  ;;  %v640_v10 = vld [vmem:[%s13510_s1 + $0x1258] sm:$0xff] }
 0x284   :  { %v643_v12 = vld [vmem:[%s13510_s1 + $0x1270] sm:$0xff] }
 0x286   :  { %5621 = vmatpush1.bf16.msra.mxu0 %v8802_v34  ;;  %5908 = vmatpush1.bf16.msra.mxu1 %v8804_v37  ;;  %v604_v34 = vld [vmem:[%s13510_s1 + $0x1138] sm:$0xff]  ;;  %v8858_v37 = vcombine.low %v591_v18, %v595_v22  ;;  %v647_v18 = vld [vmem:[%s13510_s1 + $0x1290] sm:$0xff] }
 0x287   :  { %5622 = vmatprep.subr.bf16.mxu0 %v8811_v21  ;;  %5909 = vmatprep.subr.bf16.mxu1 %v8813_v38  ;;  %v8867_v38 = vcombine.high %v599_v29, %v603_v33  ;;  %v651_v22 = vld [vmem:[%s13510_s1 + $0x12b0] sm:$0xff] }
 0x28a   :  { %5623 = vmatpush1.bf16.msra.mxu0 %v8810_v43  ;;  %5910 = vmatpush1.bf16.msra.mxu1 %v8812_v45  ;;  %v612_v43 = vld [vmem:[%s13510_s1 + $0x1178] sm:$0xff]  ;;  %v8866_v45 = vcombine.low %v599_v29, %v603_v33  ;;  %v655_v29 = vld [vmem:[%s13510_s1 + $0x12d0] sm:$0xff] }
 0x28b   :  { %5624 = vmatprep.subr.bf16.mxu0 %v8819_v32  ;;  %5911 = vmatprep.subr.bf16.mxu1 %v8821_v47  ;;  %v8875_v47 = vcombine.high %v607_v40, %v611_v41  ;;  %v8877_v50 = vcombine.high %v608_v42, %v612_v43  ;;  %v659_v33 = vld [vmem:[%s13510_s1 + $0x12f0] sm:$0xff] }
 0x28e   :  { %5625 = vmatpush1.bf16.msra.mxu0 %v8818_v52  ;;  %5912 = vmatpush1.bf16.msra.mxu1 %v8820_v57  ;;  %v620_v52 = vld [vmem:[%s13510_s1 + $0x11b8] sm:$0xff]  ;;  %v8874_v57 = vcombine.low %v607_v40, %v611_v41  ;;  %v663_v40 = vld [vmem:[%s13510_s1 + $0x1310] sm:$0xff] }
 0x28f   :  { %5626 = vmatprep.subr.bf16.mxu0 %v8827_v53  ;;  %5913 = vmatprep.subr.bf16.mxu1 %v8829_v55  ;;  %v8876_v53 = vcombine.low %v608_v42, %v612_v43  ;;  %v8883_v55 = vcombine.high %v615_v48, %v619_v49  ;;  %v8885_v36 = vcombine.high %v616_v51, %v620_v52  ;;  %v667_v41 = vld [vmem:[%s13510_s1 + $0x1330] sm:$0xff]  ;;  %v664_v42 = vld [vmem:[%s13510_s1 + $0x1318] sm:$0xff] }
 0x292   :  { %5627 = vmatpush1.bf16.msra.mxu0 %v8826_v60  ;;  %5914 = vmatpush1.bf16.msra.mxu1 %v8828_v61  ;;  %v628_v60 = vld [vmem:[%s13510_s1 + $0x11f8] sm:$0xff]  ;;  %v8882_v61 = vcombine.low %v615_v48, %v619_v49  ;;  %v8931_v48 = vcombine.high %v663_v40, %v667_v41  ;;  %v671_v49 = vld [vmem:[%s13510_s1 + $0x1350] sm:$0xff] }
 0x293   :  { %5637 = vmatprep.subr.bf16.mxu0 %v8835_v62  ;;  %5924 = vmatprep.subr.bf16.mxu1 %v8837_v63  ;;  %v8884_v62 = vcombine.low %v616_v51, %v620_v52  ;;  %v8891_v63 = vcombine.high %v623_v56, %v627_v58  ;;  %v8893_v4 = vcombine.high %v624_v59, %v628_v60  ;;  %v672_v51 = vld [vmem:[%s13510_s1 + $0x1358] sm:$0xff] }
 0x295   :  { %5629 = vmatmul.mubr.bf16.vlgmr.msra.gmra.mrb[4].mxu0 %v10888_v54  ;;  %5916 = vmatmul.mubr.bf16.vlgmr.msra.gmra.mrb[4].mxu1 %v10888_v54  ;;  %v592_v54 = vld [vmem:[%s13510_s1 + $0x10d8] sm:$0xff] }
 0x296   :  { %5638 = vmatpush1.bf16.msra.mxu0 %v8834_v5  ;;  %5925 = vmatpush1.bf16.msra.mxu1 %v8836_v6  ;;  %v8861_v28 = vcombine.high %v592_v54, %v596_v19  ;;  %v8860_v21 = vcombine.low %v592_v54, %v596_v19  ;;  %v636_v5 = vld [vmem:[%s13510_s1 + $0x1238] sm:$0xff]  ;;  %v8890_v6 = vcombine.low %v623_v56, %v627_v58  ;;  %v679_v56 = vld [vmem:[%s13510_s1 + $0x1390] sm:$0xff] }
 0x297   :  { %5639 = vmatprep.subr.bf16.mxu0 %v8843_v7  ;;  %5926 = vmatprep.subr.bf16.mxu1 %v8845_v8  ;;  %v8892_v7 = vcombine.low %v624_v59, %v628_v60  ;;  %v8899_v8 = vcombine.high %v631_v46, %v635_v2  ;;  %v8901_v11 = vcombine.high %v632_v3, %v636_v5  ;;  %v648_v54 = vld [vmem:[%s13510_s1 + $0x1298] sm:$0xff]  ;;  %v683_v58 = vld [vmem:[%s13510_s1 + $0x13b0] sm:$0xff] }
 0x298   :  { %5669 = vmatprep.mubr.bf16.mxu0 %v10905_v1  ;;  %5956 = vmatprep.mubr.bf16.mxu1 %v10905_v1  ;;  %v600_v1 = vld [vmem:[%s13510_s1 + $0x1118] sm:$0xff] }
 0x299   :  { %v8869_v39 = vcombine.high %v600_v1, %v604_v34  ;;  %v8868_v32 = vcombine.low %v600_v1, %v604_v34  ;;  %v656_v1 = vld [vmem:[%s13510_s1 + $0x12d8] sm:$0xff] }
 0x29a   :  { %5640 = vmatpush1.bf16.msra.mxu0 %v8842_v13  ;;  %5927 = vmatpush1.bf16.msra.mxu1 %v8844_v15  ;;  %v644_v13 = vld [vmem:[%s13510_s1 + $0x1278] sm:$0xff]  ;;  %v8898_v15 = vcombine.low %v631_v46, %v635_v2  ;;  %v8947_v46 = vcombine.high %v679_v56, %v683_v58  ;;  %v687_v2 = vld [vmem:[%s13510_s1 + $0x13d0] sm:$0xff] }
 0x29b   :  { %5641 = vmatprep.subr.bf16.mxu0 %v8851_v16  ;;  %5928 = vmatprep.subr.bf16.mxu1 %v8853_v17  ;;  %v8900_v16 = vcombine.low %v632_v3, %v636_v5  ;;  %v8907_v17 = vcombine.high %v639_v9, %v643_v12  ;;  %v8909_v19 = vcombine.high %v640_v10, %v644_v13  ;;  %v680_v59 = vld [vmem:[%s13510_s1 + $0x1398] sm:$0xff]  ;;  %v691_v3 = vld [vmem:[%s13510_s1 + $0x13f0] sm:$0xff] }
 0x29e   :  { %5642 = vmatpush1.bf16.msra.mxu0 %v8850_v20  ;;  %5929 = vmatpush1.bf16.msra.mxu1 %v8852_v24  ;;  %v652_v20 = vld [vmem:[%s13510_s1 + $0x12b8] sm:$0xff]  ;;  %v8906_v24 = vcombine.low %v639_v9, %v643_v12  ;;  %v8955_v9 = vcombine.high %v687_v2, %v691_v3  ;;  %v695_v12 = vld [vmem:[%s13510_s1 + $0x1410] sm:$0xff] }
 0x29f   :  { %5643 = vmatprep.subr.bf16.mxu0 %v8859_v27  ;;  %5930 = vmatprep.subr.bf16.mxu1 %v8861_v28  ;;  %v8908_v27 = vcombine.low %v640_v10, %v644_v13  ;;  %v8915_v28 = vcombine.high %v647_v18, %v651_v22  ;;  %v8917_v34 = vcombine.high %v648_v54, %v652_v20  ;;  %v699_v10 = vld [vmem:[%s13510_s1 + $0x1430] sm:$0xff] }
 0x2a2   :  { %5644 = vmatpush1.bf16.msra.mxu0 %v8858_v37  ;;  %5931 = vmatpush1.bf16.msra.mxu1 %v8860_v21  ;;  %v660_v37 = vld [vmem:[%s13510_s1 + $0x12f8] sm:$0xff]  ;;  %v8914_v21 = vcombine.low %v647_v18, %v651_v22  ;;  %v8963_v18 = vcombine.high %v695_v12, %v699_v10  ;;  %v703_v22 = vld [vmem:[%s13510_s1 + $0x1450] sm:$0xff] }
 0x2a3   :  { %5645 = vmatprep.subr.bf16.mxu0 %v8867_v38  ;;  %5932 = vmatprep.subr.bf16.mxu1 %v8869_v39  ;;  %v8916_v38 = vcombine.low %v648_v54, %v652_v20  ;;  %v8923_v39 = vcombine.high %v655_v29, %v659_v33  ;;  %v8925_v43 = vcombine.high %v656_v1, %v660_v37  ;;  %v707_v54 = vld [vmem:[%s13510_s1 + $0x1470] sm:$0xff] }
 0x2a6   :  { %5646 = vmatpush1.bf16.msra.mxu0 %v8866_v45  ;;  %5933 = vmatpush1.bf16.msra.mxu1 %v8868_v32  ;;  %v668_v45 = vld [vmem:[%s13510_s1 + $0x1338] sm:$0xff]  ;;  %v8922_v32 = vcombine.low %v655_v29, %v659_v33  ;;  %v8971_v29 = vcombine.high %v703_v22, %v707_v54  ;;  %v711_v33 = vld [vmem:[%s13510_s1 + $0x1490] sm:$0xff] }
 0x2a7   :  { %5647 = vmatprep.subr.bf16.mxu0 %v8875_v47  ;;  %5934 = vmatprep.subr.bf16.mxu1 %v8877_v50  ;;  %v8924_v47 = vcombine.low %v656_v1, %v660_v37  ;;  %v675_v50 = vld [vmem:[%s13510_s1 + $0x1370] sm:$0xff]  ;;  %v8933_v52 = vcombine.high %v664_v42, %v668_v45 }
 0x2a8   :  { %v715_v1 = vld [vmem:[%s13510_s1 + $0x14b0] sm:$0xff] }
 0x2aa   :  { %5648 = vmatpush1.bf16.msra.mxu0 %v8874_v57  ;;  %5935 = vmatpush1.bf16.msra.mxu1 %v8876_v53  ;;  %v676_v57 = vld [vmem:[%s13510_s1 + $0x1378] sm:$0xff]  ;;  %v8930_v53 = vcombine.low %v663_v40, %v667_v41  ;;  %v8979_v40 = vcombine.high %v711_v33, %v715_v1  ;;  %v719_v41 = vld [vmem:[%s13510_s1 + $0x14d0] sm:$0xff] }
 0x2ab   :  { %5649 = vmatprep.subr.bf16.mxu0 %v8883_v55  ;;  %5936 = vmatprep.subr.bf16.mxu1 %v8885_v36  ;;  %v8932_v55 = vcombine.low %v664_v42, %v668_v45  ;;  %v8939_v36 = vcombine.high %v671_v49, %v675_v50  ;;  %v8941_v60 = vcombine.high %v672_v51, %v676_v57  ;;  %v723_v42 = vld [vmem:[%s13510_s1 + $0x14f0] sm:$0xff] }
 0x2ae   :  { %5650 = vmatpush1.bf16.msra.mxu0 %v8882_v61  ;;  %5937 = vmatpush1.bf16.msra.mxu1 %v8884_v62  ;;  %v684_v61 = vld [vmem:[%s13510_s1 + $0x13b8] sm:$0xff]  ;;  %v8938_v62 = vcombine.low %v671_v49, %v675_v50  ;;  %v727_v49 = vld [vmem:[%s13510_s1 + $0x1510] sm:$0xff] }
 0x2af   :  { %5651 = vmatprep.subr.bf16.mxu0 %v8891_v63  ;;  %5938 = vmatprep.subr.bf16.mxu1 %v8893_v4  ;;  %v8940_v63 = vcombine.low %v672_v51, %v676_v57  ;;  %v688_v4 = vld [vmem:[%s13510_s1 + $0x13d8] sm:$0xff]  ;;  %v8949_v5 = vcombine.high %v680_v59, %v684_v61  ;;  %v731_v50 = vld [vmem:[%s13510_s1 + $0x1530] sm:$0xff]  ;;  %v8986_v57 = vcombine.low %v719_v41, %v723_v42 }
 0x2b0   :  { %v728_v51 = vld [vmem:[%s13510_s1 + $0x1518] sm:$0xff] }
 0x2b2   :  { %5652 = vmatpush1.bf16.msra.mxu0 %v8890_v6  ;;  %5939 = vmatpush1.bf16.msra.mxu1 %v8892_v7  ;;  %v692_v6 = vld [vmem:[%s13510_s1 + $0x13f8] sm:$0xff]  ;;  %v8946_v7 = vcombine.low %v679_v56, %v683_v58  ;;  %v739_v56 = vld [vmem:[%s13510_s1 + $0x1570] sm:$0xff] }
 0x2b3   :  { %5653 = vmatprep.subr.bf16.mxu0 %v8899_v8  ;;  %5940 = vmatprep.subr.bf16.mxu1 %v8901_v11  ;;  %v8948_v8 = vcombine.low %v680_v59, %v684_v61  ;;  %v696_v11 = vld [vmem:[%s13510_s1 + $0x1418] sm:$0xff]  ;;  %v8957_v13 = vcombine.high %v688_v4, %v692_v6  ;;  %v8994_v61 = vcombine.low %v727_v49, %v731_v50 }
 0x2b4   :  { %v736_v58 = vld [vmem:[%s13510_s1 + $0x1558] sm:$0xff] }
 0x2b6   :  { %5654 = vmatpush1.bf16.msra.mxu0 %v8898_v15  ;;  %5941 = vmatpush1.bf16.msra.mxu1 %v8900_v16  ;;  %v700_v15 = vld [vmem:[%s13510_s1 + $0x1438] sm:$0xff]  ;;  %v8954_v16 = vcombine.low %v687_v2, %v691_v3 }
 0x2b7   :  { %5655 = vmatprep.subr.bf16.mxu0 %v8907_v17  ;;  %5942 = vmatprep.subr.bf16.mxu1 %v8909_v19  ;;  %v8956_v17 = vcombine.low %v688_v4, %v692_v6  ;;  %v704_v19 = vld [vmem:[%s13510_s1 + $0x1458] sm:$0xff]  ;;  %v8965_v20 = vcombine.high %v696_v11, %v700_v15 }
 0x2b8   :  { %v744_v4 = vld [vmem:[%s13510_s1 + $0x1598] sm:$0xff] }
 0x2ba   :  { %5656 = vmatpush1.bf16.msra.mxu0 %v8906_v24  ;;  %5943 = vmatpush1.bf16.msra.mxu1 %v8908_v27  ;;  %v708_v24 = vld [vmem:[%s13510_s1 + $0x1478] sm:$0xff]  ;;  %v8962_v27 = vcombine.low %v695_v12, %v699_v10  ;;  %v751_v12 = vld [vmem:[%s13510_s1 + $0x15d0] sm:$0xff] }
 0x2bb   :  { %5657 = vmatprep.subr.bf16.mxu0 %v8915_v28  ;;  %5944 = vmatprep.subr.bf16.mxu1 %v8917_v34  ;;  %v8964_v28 = vcombine.low %v696_v11, %v700_v15  ;;  %v712_v34 = vld [vmem:[%s13510_s1 + $0x1498] sm:$0xff]  ;;  %v8973_v37 = vcombine.high %v704_v19, %v708_v24  ;;  %v755_v10 = vld [vmem:[%s13510_s1 + $0x15f0] sm:$0xff] }
 0x2bc   :  { %v752_v11 = vld [vmem:[%s13510_s1 + $0x15d8] sm:$0xff] }
 0x2be   :  { %5658 = vmatpush1.bf16.msra.mxu0 %v8914_v21  ;;  %5945 = vmatpush1.bf16.msra.mxu1 %v8916_v38  ;;  %v716_v21 = vld [vmem:[%s13510_s1 + $0x14b8] sm:$0xff]  ;;  %v8970_v38 = vcombine.low %v703_v22, %v707_v54  ;;  %v763_v22 = vld [vmem:[%s13510_s1 + $0x1630] sm:$0xff] }
 0x2bf   :  { %5659 = vmatprep.subr.bf16.mxu0 %v8923_v39  ;;  %5946 = vmatprep.subr.bf16.mxu1 %v8925_v43  ;;  %v8972_v39 = vcombine.low %v704_v19, %v708_v24  ;;  %v720_v43 = vld [vmem:[%s13510_s1 + $0x14d8] sm:$0xff]  ;;  %v8981_v45 = vcombine.high %v712_v34, %v716_v21  ;;  %v9018_v24 = vcombine.low %v751_v12, %v755_v10 }
 0x2c0   :  { %v760_v54 = vld [vmem:[%s13510_s1 + $0x1618] sm:$0xff] }
 0x2c2   :  { %5660 = vmatpush1.bf16.msra.mxu0 %v8922_v32  ;;  %5947 = vmatpush1.bf16.msra.mxu1 %v8924_v47  ;;  %v8978_v32 = vcombine.low %v711_v33, %v715_v1  ;;  %v8980_v47 = vcombine.low %v712_v34, %v716_v21  ;;  %v771_v33 = vld [vmem:[%s13510_s1 + $0x1670] sm:$0xff]  ;;  %v768_v1 = vld [vmem:[%s13510_s1 + $0x1658] sm:$0xff] }
 0x2c3   :  { %5661 = vmatprep.subr.bf16.mxu0 %v8931_v48  ;;  %5948 = vmatprep.subr.bf16.mxu1 %v8933_v52  ;;  %v8987_v48 = vcombine.high %v719_v41, %v723_v42  ;;  %v732_v52 = vld [vmem:[%s13510_s1 + $0x1538] sm:$0xff]  ;;  %v779_v41 = vld [vmem:[%s13510_s1 + $0x16b0] sm:$0xff] }
 0x2c4   :  { %v8997_v59 = vcombine.high %v728_v51, %v732_v52  ;;  %v776_v42 = vld [vmem:[%s13510_s1 + $0x1698] sm:$0xff] }
 0x2c6   :  { %5662 = vmatpush1.bf16.msra.mxu0 %v8930_v53  ;;  %5949 = vmatpush1.bf16.msra.mxu1 %v8932_v55  ;;  %v8995_v55 = vcombine.high %v727_v49, %v731_v50  ;;  %v787_v49 = vld [vmem:[%s13510_s1 + $0x16f0] sm:$0xff]  ;;  %v784_v50 = vld [vmem:[%s13510_s1 + $0x16d8] sm:$0xff] }
 0x2c7   :  { %5663 = vmatprep.subr.bf16.mxu0 %v8939_v36  ;;  %5950 = vmatprep.subr.bf16.mxu1 %v8941_v60  ;;  %v735_v36 = vld [vmem:[%s13510_s1 + $0x1550] sm:$0xff]  ;;  %v740_v60 = vld [vmem:[%s13510_s1 + $0x1578] sm:$0xff] }
 0x2c8   :  { %v9003_v2 = vcombine.high %v735_v36, %v739_v56  ;;  %v9005_v3 = vcombine.high %v736_v58, %v740_v60  ;;  %v9002_v6 = vcombine.low %v735_v36, %v739_v56  ;;  %v795_v36 = vld [vmem:[%s13510_s1 + $0x1730] sm:$0xff]  ;;  %v792_v56 = vld [vmem:[%s13510_s1 + $0x1718] sm:$0xff] }
 0x2ca   :  { %5664 = vmatpush1.bf16.msra.mxu0 %v8938_v62  ;;  %5951 = vmatpush1.bf16.msra.mxu1 %v8940_v63  ;;  %v743_v62 = vld [vmem:[%s13510_s1 + $0x1590] sm:$0xff] }
 0x2cb   :  { %5665 = vmatprep.subr.bf16.mxu0 %v8947_v46  ;;  %5952 = vmatprep.subr.bf16.mxu1 %v8949_v5  ;;  %v747_v63 = vld [vmem:[%s13510_s1 + $0x15b0] sm:$0xff]  ;;  %v8996_v46 = vcombine.low %v728_v51, %v732_v52  ;;  %v748_v5 = vld [vmem:[%s13510_s1 + $0x15b8] sm:$0xff] }
 0x2cc   :  { %v9010_v15 = vcombine.low %v743_v62, %v747_v63 }
 0x2ce   :  { %5666 = vmatpush1.bf16.msra.mxu0 %v8946_v7  ;;  %5953 = vmatpush1.bf16.msra.mxu1 %v8948_v8  ;;  %v9004_v7 = vcombine.low %v736_v58, %v740_v60  ;;  %v9011_v8 = vcombine.high %v743_v62, %v747_v63  ;;  %v799_v63 = vld [vmem:[%s13510_s1 + $0x1750] sm:$0xff] }
 0x2cf   :  { %5667 = vmatprep.subr.bf16.mxu0 %v8955_v9  ;;  %5954 = vmatprep.subr.bf16.mxu1 %v8957_v13  ;;  %v9013_v9 = vcombine.high %v744_v4, %v748_v5  ;;  %v756_v13 = vld [vmem:[%s13510_s1 + $0x15f8] sm:$0xff] }
 0x2d0   :  { %v9021_v19 = vcombine.high %v752_v11, %v756_v13 }
 0x2d2   :  { %5668 = vmatpush1.bf16.msra.mxu0 %v8954_v16  ;;  %5955 = vmatpush1.bf16.msra.mxu1 %v8956_v17  ;;  %v9012_v16 = vcombine.low %v744_v4, %v748_v5  ;;  %v9019_v17 = vcombine.high %v751_v12, %v755_v10  ;;  %v804_v4 = vld [vmem:[%s13510_s1 + $0x1778] sm:$0xff] }
 0x2d3   :  { %5678 = vmatprep.subr.bf16.mxu0 %v8963_v18  ;;  %5965 = vmatprep.subr.bf16.mxu1 %v8965_v20  ;;  %v759_v18 = vld [vmem:[%s13510_s1 + $0x1610] sm:$0xff]  ;;  %v764_v20 = vld [vmem:[%s13510_s1 + $0x1638] sm:$0xff] }
 0x2d4   :  { %v9029_v34 = vcombine.high %v760_v54, %v764_v20  ;;  %v9026_v21 = vcombine.low %v759_v18, %v763_v22  ;;  %v808_v12 = vld [vmem:[%s13510_s1 + $0x1798] sm:$0xff] }
 0x2d5   :  { %5670 = vmatmul.mubr.bf16.vlgmr.msra.gmra.mrb[4].mxu0 %v11094_v14  ;;  %5957 = vmatmul.mubr.bf16.vlgmr.msra.gmra.mrb[4].mxu1 %v11094_v14  ;;  %v724_v14 = vld [vmem:[%s13510_s1 + $0x14f8] sm:$0xff] }
 0x2d6   :  { %5679 = vmatpush1.bf16.msra.mxu0 %v8962_v27  ;;  %5966 = vmatpush1.bf16.msra.mxu1 %v8964_v28  ;;  %v8988_v53 = vcombine.low %v720_v43, %v724_v14  ;;  %v9020_v27 = vcombine.low %v752_v11, %v756_v13  ;;  %v9027_v28 = vcombine.high %v759_v18, %v763_v22  ;;  %v812_v11 = vld [vmem:[%s13510_s1 + $0x17b8] sm:$0xff]  ;;  %v819_v18 = vld [vmem:[%s13510_s1 + $0x17f0] sm:$0xff] }
 0x2d7   :  { %5680 = vmatprep.subr.bf16.mxu0 %v8971_v29  ;;  %5967 = vmatprep.subr.bf16.mxu1 %v8973_v37  ;;  %v767_v29 = vld [vmem:[%s13510_s1 + $0x1650] sm:$0xff]  ;;  %v772_v37 = vld [vmem:[%s13510_s1 + $0x1678] sm:$0xff] }
 0x2d8   :  { %5710 = vmatprep.mubr.bf16.mxu0 %v11111_v26  ;;  %5997 = vmatprep.mubr.bf16.mxu1 %v11111_v26  ;;  %v8989_v26 = vcombine.high %v720_v43, %v724_v14  ;;  %v9037_v43 = vcombine.high %v768_v1, %v772_v37  ;;  %v9034_v14 = vcombine.low %v767_v29, %v771_v33  ;;  %v816_v22 = vld [vmem:[%s13510_s1 + $0x17d8] sm:$0xff] }
 0x2da   :  { %5681 = vmatpush1.bf16.msra.mxu0 %v8970_v38  ;;  %5968 = vmatpush1.bf16.msra.mxu1 %v8972_v39  ;;  %v9028_v38 = vcombine.low %v760_v54, %v764_v20  ;;  %v9035_v39 = vcombine.high %v767_v29, %v771_v33  ;;  %v9077_v54 = vcombine.high %v808_v12, %v812_v11  ;;  %v827_v29 = vld [vmem:[%s13510_s1 + $0x1830] sm:$0xff]  ;;  %v824_v33 = vld [vmem:[%s13510_s1 + $0x1818] sm:$0xff] }
 0x2db   :  { %5682 = vmatprep.subr.bf16.mxu0 %v8979_v40  ;;  %5969 = vmatprep.subr.bf16.mxu1 %v8981_v45  ;;  %v775_v40 = vld [vmem:[%s13510_s1 + $0x1690] sm:$0xff]  ;;  %v780_v45 = vld [vmem:[%s13510_s1 + $0x16b8] sm:$0xff] }
 0x2dc   :  { %v9045_v51 = vcombine.high %v776_v42, %v780_v45  ;;  %v9042_v52 = vcombine.low %v775_v40, %v779_v41 }
 0x2de   :  { %5683 = vmatpush1.bf16.msra.mxu0 %v8978_v32  ;;  %5970 = vmatpush1.bf16.msra.mxu1 %v8980_v47  ;;  %v9036_v32 = vcombine.low %v768_v1, %v772_v37  ;;  %v9043_v47 = vcombine.high %v775_v40, %v779_v41  ;;  %v855_v37 = vlaneseq  ;;  %v831_v40 = vld [vmem:[%s13510_s1 + $0x1850] sm:$0xff] }
 0x2df   :  { %5684 = vmatprep.subr.bf16.mxu0 %v8987_v48  ;;  %5971 = vmatprep.subr.bf16.mxu1 %v8989_v26  ;;  %v783_v48 = vld [vmem:[%s13510_s1 + $0x16d0] sm:$0xff]  ;;  %v788_v26 = vld [vmem:[%s13510_s1 + $0x16f8] sm:$0xff] }
 0x2e0   :  { %v9053_v58 = vcombine.high %v784_v50, %v788_v26  ;;  %v9050_v60 = vcombine.low %v783_v48, %v787_v49  ;;  %v835_v41 = vld [vmem:[%s13510_s1 + $0x1870] sm:$0xff] }
 0x2e2   :  { %5685 = vmatpush1.bf16.msra.mxu0 %v8986_v57  ;;  %5972 = vmatpush1.bf16.msra.mxu1 %v8988_v53  ;;  %v9044_v57 = vcombine.low %v776_v42, %v780_v45  ;;  %v9051_v53 = vcombine.high %v783_v48, %v787_v49  ;;  %v832_v42 = vld [vmem:[%s13510_s1 + $0x1858] sm:$0xff]  ;;  %v9099_v48 = vcombine.high %v831_v40, %v835_v41  ;;  %v839_v49 = vld [vmem:[%s13510_s1 + $0x1890] sm:$0xff] }
 0x2e3   :  { %5686 = vmatprep.subr.bf16.mxu0 %v8995_v55  ;;  %5973 = vmatprep.subr.bf16.mxu1 %v8997_v59  ;;  %v791_v55 = vld [vmem:[%s13510_s1 + $0x1710] sm:$0xff]  ;;  %v796_v59 = vld [vmem:[%s13510_s1 + $0x1738] sm:$0xff] }
 0x2e4   :  { %v9059_v62 = vcombine.high %v791_v55, %v795_v36  ;;  %v9058_v5 = vcombine.low %v791_v55, %v795_v36  ;;  %v836_v45 = vld [vmem:[%s13510_s1 + $0x1878] sm:$0xff]  ;;  %v9098_v55 = vcombine.low %v831_v40, %v835_v41  ;;  %v9632_v41 = vld [vmem:[%s13512_s3 + $0xe4] ss:$16 sps:$4 sm:$0xff]  }
 0x2e5   :  { %v9100_v36 = vcombine.low %v832_v42, %v836_v45  ;;  %v9627_v40 = vld [vmem:[%s13512_s3 + $0xc8] ss:$16 sps:$4 sm:$0xff]  }
 0x2e6   :  { %5687 = vmatpush1.bf16.msra.mxu0 %v8994_v61  ;;  %5974 = vmatpush1.bf16.msra.mxu1 %v8996_v46  ;;  %v9052_v61 = vcombine.low %v784_v50, %v788_v26  ;;  %v803_v46 = vld [vmem:[%s13510_s1 + $0x1770] sm:$0xff]  ;;  %v12565_v26 = vld [vmem:[%s13513_s2] sm:$0xff] }
 0x2e7   :  { %5688 = vmatprep.subr.bf16.mxu0 %v9003_v2  ;;  %5975 = vmatprep.subr.bf16.mxu1 %v9005_v3  ;;  %v800_v2 = vld [vmem:[%s13510_s1 + $0x1758] sm:$0xff]  ;;  %v9061_v3 = vcombine.high %v792_v56, %v796_v59  ;;  %v9066_v13 = vcombine.low %v799_v63, %v803_v46  ;;  %v843_v50 = vld [vmem:[%s13510_s1 + $0x18b0] sm:$0xff] }
 0x2e8   :  { %v9069_v10 = vcombine.high %v800_v2, %v804_v4 }
 0x2ea   :  { %5689 = vmatpush1.bf16.msra.mxu0 %v9002_v6  ;;  %5976 = vmatpush1.bf16.msra.mxu1 %v9004_v7  ;;  %v9060_v6 = vcombine.low %v792_v56, %v796_v59  ;;  %v9067_v7 = vcombine.high %v799_v63, %v803_v46  ;;  %v9107_v56 = vcombine.high %v839_v49, %v843_v50  ;;  %v851_v59 = vld [vmem:[%s13510_s1 + $0x18f0] sm:$0xff] }
 0x2eb   :  { %5690 = vmatprep.subr.bf16.mxu0 %v9011_v8  ;;  %5977 = vmatprep.subr.bf16.mxu1 %v9013_v9  ;;  %v807_v8 = vld [vmem:[%s13510_s1 + $0x1790] sm:$0xff]  ;;  %v9106_v63 = vcombine.low %v839_v49, %v843_v50  ;;  %v9639_v49 = vld [vmem:[%s13512_s3 + $0x108] ss:$16 sps:$4 sm:$0xff]  }
 0x2ec   :  { %v811_v9 = vld [vmem:[%s13510_s1 + $0x17b0] sm:$0xff] }
 0x2ed   :  { %v9074_v20 = vcombine.low %v807_v8, %v811_v9  ;;  %v9644_v50 = vld [vmem:[%s13512_s3 + $0x124] ss:$16 sps:$4 sm:$0xff]  }
 0x2ee   :  { %5691 = vmatpush1.bf16.msra.mxu0 %v9010_v15  ;;  %5978 = vmatpush1.bf16.msra.mxu1 %v9012_v16  ;;  %v9068_v15 = vcombine.low %v800_v2, %v804_v4  ;;  %v9075_v16 = vcombine.high %v807_v8, %v811_v9  ;;  %v9593_v8 = vld [vmem:[%s13512_s3 + $0xc] ss:$16 sps:$4 sm:$0xff]  }
 0x2ef   :  { %5692 = vmatprep.subr.bf16.mxu0 %v9019_v17  ;;  %5979 = vmatprep.subr.bf16.mxu1 %v9021_v19  ;;  %v815_v17 = vld [vmem:[%s13510_s1 + $0x17d0] sm:$0xff]  ;;  %v820_v19 = vld [vmem:[%s13510_s1 + $0x17f8] sm:$0xff] }
 0x2f0   :  { %v9085_v1 = vcombine.high %v816_v22, %v820_v19 }
 0x2f2   :  { %5693 = vmatpush1.bf16.msra.mxu0 %v9018_v24  ;;  %5980 = vmatpush1.bf16.msra.mxu1 %v9020_v27  ;;  %v9076_v24 = vcombine.low %v808_v12, %v812_v11  ;;  %v9083_v27 = vcombine.high %v815_v17, %v819_v18  ;;  %v9596_v12 = vld [vmem:[%s13512_s3 + $0x24] ss:$16 sps:$4 sm:$0xff]   ;;  %v9599_v11 = vld [vmem:[%s13512_s3 + $0x2c] ss:$16 sps:$4 sm:$0xff]  }
 0x2f3   :  { %5694 = vmatprep.subr.bf16.mxu0 %v9027_v28  ;;  %5981 = vmatprep.subr.bf16.mxu1 %v9029_v34  ;;  %v823_v28 = vld [vmem:[%s13510_s1 + $0x1810] sm:$0xff]  ;;  %v828_v34 = vld [vmem:[%s13510_s1 + $0x1838] sm:$0xff] }
 0x2f6   :  { %5695 = vmatpush1.bf16.msra.mxu0 %v9026_v21  ;;  %5982 = vmatpush1.bf16.msra.mxu1 %v9028_v38  ;;  %v9082_v21 = vcombine.low %v815_v17, %v819_v18  ;;  %v9084_v38 = vcombine.low %v816_v22, %v820_v19  ;;  %v9600_v17 = vld [vmem:[%s13512_s3 + $0x40] ss:$16 sps:$4 sm:$0xff]   ;;  %v9603_v18 = vld [vmem:[%s13512_s3 + $0x48] ss:$16 sps:$4 sm:$0xff]   ;;  %v9608_v22 = vld [vmem:[%s13512_s3 + $0x64] ss:$16 sps:$4 sm:$0xff]  }
 0x2f7   :  { %5696 = vmatprep.subr.bf16.mxu0 %v9035_v39  ;;  %5983 = vmatprep.subr.bf16.mxu1 %v9037_v43  ;;  %v9091_v39 = vcombine.high %v823_v28, %v827_v29  ;;  %v9093_v43 = vcombine.high %v824_v33, %v828_v34  ;;  %v9606_v19 = vld [vmem:[%s13512_s3 + $0x60] ss:$16 sps:$4 sm:$0xff]  }
 0x2fa   :  { %5697 = vmatpush1.bf16.msra.mxu0 %v9034_v14  ;;  %5984 = vmatpush1.bf16.msra.mxu1 %v9036_v32  ;;  %v12551_v14 = vshrl.u32 %v855_v37, 7  ;;  %v9090_v32 = vcombine.low %v823_v28, %v827_v29  ;;  %v9612_v28 = vld [vmem:[%s13512_s3 + $0x80] ss:$16 sps:$4 sm:$0xff]   ;;  %v9615_v29 = vld [vmem:[%s13512_s3 + $0x88] ss:$16 sps:$4 sm:$0xff]  }
 0x2fb   :  { %5698 = vmatprep.subr.bf16.mxu0 %v9043_v47  ;;  %5985 = vmatprep.subr.bf16.mxu1 %v9045_v51  ;;  %v9092_v47 = vcombine.low %v824_v33, %v828_v34  ;;  %v840_v51 = vld [vmem:[%s13510_s1 + $0x1898] sm:$0xff]  ;;  %v9620_v33 = vld [vmem:[%s13512_s3 + $0xa4] ss:$16 sps:$4 sm:$0xff]   ;;  %v9618_v34 = vld [vmem:[%s13512_s3 + $0xa0] ss:$16 sps:$4 sm:$0xff]  }
 0x2fc   :  { %v9621_v37 = vld [vmem:[%s13512_s3 + $0xa8] ss:$16 sps:$4 sm:$0xff]  }
 0x2fe   :  { %5699 = vmatpush1.bf16.msra.mxu0 %v9042_v52  ;;  %5986 = vmatpush1.bf16.msra.mxu1 %v9044_v57  ;;  %v9101_v52 = vcombine.high %v832_v42, %v836_v45  ;;  %v844_v57 = vld [vmem:[%s13510_s1 + $0x18b8] sm:$0xff] }
 0x2ff   :  { %5700 = vmatprep.subr.bf16.mxu0 %v9051_v53  ;;  %5987 = vmatprep.subr.bf16.mxu1 %v9053_v58  ;;  %v861_v53 = vsub.s32 1, %v12551_v14  ;;  %v847_v58 = vld [vmem:[%s13510_s1 + $0x18d0] sm:$0xff]  ;;  %v9108_v46 = vcombine.low %v840_v51, %v844_v57  ;;  %v9635_v42 = vld [vmem:[%s13512_s3 + $0xec] ss:$16 sps:$4 sm:$0xff]   ;;  %v9633_v45 = vld [vmem:[%s13512_s3 + $0xe8] ss:$16 sps:$4 sm:$0xff]  }
 0x300   :  { %v9115_v2 = vcombine.high %v847_v58, %v851_v59 }
 0x302   :  { %5701 = vmatpush1.bf16.msra.mxu0 %v9050_v60  ;;  %5988 = vmatpush1.bf16.msra.mxu1 %v9052_v61  ;;  %v848_v60 = vld [vmem:[%s13510_s1 + $0x18d8] sm:$0xff]  ;;  %v9109_v61 = vcombine.high %v840_v51, %v844_v57 }
 0x303   :  { %5702 = vmatprep.subr.bf16.mxu0 %v9059_v62  ;;  %5989 = vmatprep.subr.bf16.mxu1 %v9061_v3  ;;  %v862_v62 = vrot.slane %v12565_v26, %v861_v53  ;;  %v9647_v51 = vld [vmem:[%s13512_s3 + $0x12c] ss:$16 sps:$4 sm:$0xff]   ;;  %v9645_v57 = vld [vmem:[%s13512_s3 + $0x128] ss:$16 sps:$4 sm:$0xff]  }
 0x305   :  { %v9456_v4 = vadd.f32 %v12029_v31, %v862_v62  ;;  %v9591_v31 = vld [vmem:[%s13512_s3 + $0x8] ss:$16 sps:$4 sm:$0xff]   ;;  %v9662_v62 = vld [vmem:[%s13512_s3 + $0x184] ss:$16 sps:$4 sm:$0xff]  }
 0x306   :  { %5703 = vmatpush1.bf16.msra.mxu0 %v9058_v5  ;;  %5990 = vmatpush1.bf16.msra.mxu1 %v9060_v6  ;;  %v9114_v5 = vcombine.low %v847_v58, %v851_v59  ;;  %v9651_v58 = vld [vmem:[%s13512_s3 + $0x148] ss:$16 sps:$4 sm:$0xff]   ;;  %v9656_v59 = vld [vmem:[%s13512_s3 + $0x164] ss:$16 sps:$4 sm:$0xff]  }
 0x307   :  { %5704 = vmatprep.subr.bf16.mxu0 %v9067_v7  ;;  %5991 = vmatprep.subr.bf16.mxu1 %v9069_v10  ;;  %v9590_v7 = vld [vmem:[%s13512_s3 + $0x4] ss:$16 sps:$4 sm:$0xff]   ;;  %v6048_v9 = vmax.f32 %v9456_v4, 0.0 }
 0x308   :  { %v9668_v4 = vld [vmem:[%s13512_s3 + $0x1a4] ss:$16 sps:$4 sm:$0xff]  }
 0x309   :  { %v6056_v10 = vpack.c.bf16 %v6048_v9, %v6048_v9  ;;  %v9674_v9 = vld [vmem:[%s13512_s3 + $0x1c4] ss:$16 sps:$4 sm:$0xff]  }
 0x30a   :  { %5705 = vmatpush1.bf16.msra.mxu0 %v9066_v13  ;;  %5992 = vmatpush1.bf16.msra.mxu1 %v9068_v15  ;;  %v9594_v13 = vld [vmem:[%s13512_s3 + $0x20] ss:$16 sps:$4 sm:$0xff]   ;;  %v9597_v15 = vld [vmem:[%s13512_s3 + $0x28] ss:$16 sps:$4 sm:$0xff]  }
 0x30b   :  { %5706 = vmatprep.subr.bf16.mxu0 %v9075_v16  ;;  %5993 = vmatprep.subr.bf16.mxu1 %v9077_v54  ;;  %v9602_v16 = vld [vmem:[%s13512_s3 + $0x44] ss:$16 sps:$4 sm:$0xff]   ;;  %v9611_v54 = vld [vmem:[%s13512_s3 + $0x6c] ss:$16 sps:$4 sm:$0xff]  }
 0x30e   :  { %5707 = vmatpush1.bf16.msra.mxu0 %v9074_v20  ;;  %5994 = vmatpush1.bf16.msra.mxu1 %v9076_v24  ;;  %v9609_v20 = vld [vmem:[%s13512_s3 + $0x68] ss:$16 sps:$4 sm:$0xff]   ;;  %v9614_v24 = vld [vmem:[%s13512_s3 + $0x84] ss:$16 sps:$4 sm:$0xff]  }
 0x30f   :  { %5708 = vmatprep.subr.bf16.mxu0 %v9083_v27  ;;  %5995 = vmatprep.subr.bf16.mxu1 %v9085_v1  ;;  %v9617_v27 = vld [vmem:[%s13512_s3 + $0x8c] ss:$16 sps:$4 sm:$0xff]  }
 0x310   :  { %v9623_v1 = vld [vmem:[%s13512_s3 + $0xac] ss:$16 sps:$4 sm:$0xff]  }
 0x312   :  { %5709 = vmatpush1.bf16.msra.mxu0 %v9082_v21  ;;  %5996 = vmatpush1.bf16.msra.mxu1 %v9084_v38  ;;  %v9626_v21 = vld [vmem:[%s13512_s3 + $0xc4] ss:$16 sps:$4 sm:$0xff]   ;;  %v9629_v38 = vld [vmem:[%s13512_s3 + $0xcc] ss:$16 sps:$4 sm:$0xff]  }
 0x313   :  { %5719 = vmatprep.subr.bf16.mxu0 %v9091_v39  ;;  %6006 = vmatprep.subr.bf16.mxu1 %v9093_v43  ;;  %v9624_v39 = vld [vmem:[%s13512_s3 + $0xc0] ss:$16 sps:$4 sm:$0xff]  }
 0x314   :  { %v9630_v43 = vld [vmem:[%s13512_s3 + $0xe0] ss:$16 sps:$4 sm:$0xff]  }
 0x315   :  { %5711 = vmatmul.mubr.bf16.vlgmr.msra.gmra.mrb[4].mxu0 %v11300_v44  ;;  %5998 = vmatmul.mubr.bf16.vlgmr.msra.gmra.mrb[4].mxu1 %v11300_v44  ;;  %v852_v44 = vld [vmem:[%s13510_s1 + $0x18f8] sm:$0xff] }
 0x316   :  { %5720 = vmatpush1.bf16.msra.mxu0 %v9090_v32  ;;  %6007 = vmatpush1.bf16.msra.mxu1 %v9092_v47  ;;  %v9117_v3 = vcombine.high %v848_v60, %v852_v44  ;;  %v9116_v6 = vcombine.low %v848_v60, %v852_v44  ;;  %v9638_v32 = vld [vmem:[%s13512_s3 + $0x104] ss:$16 sps:$4 sm:$0xff]   ;;  %v9641_v47 = vld [vmem:[%s13512_s3 + $0x10c] ss:$16 sps:$4 sm:$0xff]   ;;  %v9657_v44 = vld [vmem:[%s13512_s3 + $0x168] ss:$16 sps:$4 sm:$0xff]  }
 0x317   :  { %5721 = vmatprep.subr.bf16.mxu0 %v9099_v48  ;;  %6008 = vmatprep.subr.bf16.mxu1 %v9101_v52  ;;  %v9636_v48 = vld [vmem:[%s13512_s3 + $0x100] ss:$16 sps:$4 sm:$0xff]   ;;  %v9659_v60 = vld [vmem:[%s13512_s3 + $0x16c] ss:$16 sps:$4 sm:$0xff]  }
 0x318   :  { %5751 = vmatprep.mubr.bf16.mxu0 %v10009_v0  ;;  %6038 = vmatprep.mubr.bf16.mxu1 %v10009_v0  ;;  %v9588_v0 = vld [vmem:[%s13512_s3] ss:$16 sps:$4 sm:$0xff]  }
 0x319   :  { %v9642_v52 = vld [vmem:[%s13512_s3 + $0x120] ss:$16 sps:$4 sm:$0xff]  }
 0x31a   :  { %5722 = vmatpush1.bf16.msra.mxu0 %v9098_v55  ;;  %6009 = vmatpush1.bf16.msra.mxu1 %v9100_v36  ;;  %v9650_v55 = vld [vmem:[%s13512_s3 + $0x144] ss:$16 sps:$4 sm:$0xff]   ;;  %v9653_v36 = vld [vmem:[%s13512_s3 + $0x14c] ss:$16 sps:$4 sm:$0xff]  }
 0x31b   :  { %5723 = vmatprep.subr.bf16.mxu0 %v9107_v56  ;;  %6010 = vmatprep.subr.bf16.mxu1 %v9109_v61  ;;  %v9648_v56 = vld [vmem:[%s13512_s3 + $0x140] ss:$16 sps:$4 sm:$0xff]  }
 0x31c   :  { %v9654_v61 = vld [vmem:[%s13512_s3 + $0x160] ss:$16 sps:$4 sm:$0xff]  }
 0x31e   :  { %5724 = vmatpush1.bf16.msra.mxu0 %v9106_v63  ;;  %6011 = vmatpush1.bf16.msra.mxu1 %v9108_v46  ;;  %v9665_v63 = vld [vmem:[%s13512_s3 + $0x18c] ss:$16 sps:$4 sm:$0xff]   ;;  %v9660_v46 = vld [vmem:[%s13512_s3 + $0x180] ss:$16 sps:$4 sm:$0xff]  }
 0x31f   :  { %5725 = vmatprep.subr.bf16.mxu0 %v9115_v2  ;;  %6012 = vmatprep.subr.bf16.mxu1 %v9117_v3  ;;  %v857_v2 = vsub.s32 0, %v12551_v14  ;;  %v9663_v3 = vld [vmem:[%s13512_s3 + $0x188] ss:$16 sps:$4 sm:$0xff]  }
 0x322   :  { %5726 = vmatpush1.bf16.msra.mxu0 %v9114_v5  ;;  %6013 = vmatpush1.bf16.msra.mxu1 %v9116_v6  ;;  %v9671_v5 = vld [vmem:[%s13512_s3 + $0x1ac] ss:$16 sps:$4 sm:$0xff]   ;;  %v869_v6 = vsub.s32 3, %v12551_v14 }
 0x323   :  { %7621 = vmatprep.subr.bf16.mxu0 %v9590_v7  ;;  %7785 = vmatprep.subr.bf16.mxu1 %v9593_v8  ;;  %v9666_v7 = vld [vmem:[%s13512_s3 + $0x1a0] ss:$16 sps:$4 sm:$0xff]   ;;  %v9669_v8 = vld [vmem:[%s13512_s3 + $0x1a8] ss:$16 sps:$4 sm:$0xff]  }
 0x325   :  { %9120 = vmatmul.mubr.msk.bf16.vlgmr.msra.gmra.mrb[4].mxu0 %vm4895_vm0, %v11357_v23  ;;  %9121 = vmatmul.mubr.msk.bf16.vlgmr.msra.gmra.mrb[4].mxu1 %vm4895_vm0, %v11357_v23  ;;  %v9605_v23 = vld [vmem:[%s13512_s3 + $0x4c] ss:$16 sps:$4 sm:$0xff]  }
 0x326   :  { %7622 = vmatpush1.bf16.msra.mxu0 %v9588_v0  ;;  %7653 = vmatprep.mubr.bf16.mxu0 %v6056_v10  ;;  %v858_v0 = vrot.slane %v12565_v26, %v857_v2 }
 0x327   :  { %7786 = vmatpush1.bf16.msra.mxu1 %v9591_v31  ;;  %7817 = vmatprep.mubr.bf16.mxu1 %v6056_v10  ;;  %v9677_v31 = vld [vmem:[%s13512_s3 + $0x1cc] ss:$16 sps:$4 sm:$0xff]   ;;  %v9672_v10 = vld [vmem:[%s13512_s3 + $0x1c0] ss:$16 sps:$4 sm:$0xff]  }
 0x328   :  { %7623 = vmatprep.subr.bf16.mxu0 %v9596_v12  ;;  %7787 = vmatprep.subr.bf16.mxu1 %v9599_v11  ;;  %v870_v12 = vrot.slane %v12565_v26, %v869_v6  ;;  %v9455_v11 = vadd.f32 %v12019_v25, %v858_v0  ;;  %v9678_v25 = vld [vmem:[%s13512_s3 + $0x1e0] ss:$16 sps:$4 sm:$0xff]   ;;  %v9749_v0 = vld [vmem:[%s13512_s3 + $0x34c] ss:$16 sps:$4 sm:$0xff]  }
 0x32a   :  { %7624 = vmatpush1.bf16.msra.mxu0 %v9594_v13  ;;  %v9675_v13 = vld [vmem:[%s13512_s3 + $0x1c8] ss:$16 sps:$4 sm:$0xff]  }
 0x32b   :  { %7788 = vmatpush1.bf16.msra.mxu1 %v9597_v15  ;;  %7625 = vmatprep.subr.bf16.mxu0 %v9602_v16  ;;  %v9680_v15 = vld [vmem:[%s13512_s3 + $0x1e4] ss:$16 sps:$4 sm:$0xff]   ;;  %v9683_v16 = vld [vmem:[%s13512_s3 + $0x1ec] ss:$16 sps:$4 sm:$0xff]  }
 0x32c   :  { %7789 = vmatprep.subr.bf16.mxu1 %v9605_v23  ;;  %v9458_v23 = vadd.f32 %v12037_v35, %v870_v12  ;;  %v9689_v35 = vld [vmem:[%s13512_s3 + $0x20c] ss:$16 sps:$4 sm:$0xff]  }
 0x32d   :  { %v9755_v12 = vld [vmem:[%s13512_s3 + $0x36c] ss:$16 sps:$4 sm:$0xff]  }
 0x32e   :  { %7626 = vmatpush1.bf16.msra.mxu0 %v9600_v17  ;;  %v6047_v17 = vmax.f32 %v9455_v11, 0.0  ;;  %v9753_v11 = vld [vmem:[%s13512_s3 + $0x368] ss:$16 sps:$4 sm:$0xff]  }
 0x32f   :  { %7790 = vmatpush1.bf16.msra.mxu1 %v9603_v18  ;;  %7627 = vmatprep.subr.bf16.mxu0 %v9608_v22  ;;  %v9681_v18 = vld [vmem:[%s13512_s3 + $0x1e8] ss:$16 sps:$4 sm:$0xff]   ;;  %v9686_v22 = vld [vmem:[%s13512_s3 + $0x204] ss:$16 sps:$4 sm:$0xff]  }
 0x330   :  { %7791 = vmatprep.subr.bf16.mxu1 %v9611_v54  ;;  %v6050_v54 = vmax.f32 %v9458_v23, 0.0  ;;  %v865_v23 = vsub.s32 2, %v12551_v14 }
 0x332   :  { %7628 = vmatpush1.bf16.msra.mxu0 %v9606_v19  ;;  %v9684_v19 = vld [vmem:[%s13512_s3 + $0x200] ss:$16 sps:$4 sm:$0xff]  }
 0x333   :  { %7792 = vmatpush1.bf16.msra.mxu1 %v9609_v20  ;;  %7629 = vmatprep.subr.bf16.mxu0 %v9614_v24  ;;  %v6055_v20 = vpack.c.bf16 %v6047_v17, %v6047_v17  ;;  %v9687_v24 = vld [vmem:[%s13512_s3 + $0x208] ss:$16 sps:$4 sm:$0xff]   ;;  %v9764_v17 = vld [vmem:[%s13512_s3 + $0x3a4] ss:$16 sps:$4 sm:$0xff]  }
 0x334   :  { %7793 = vmatprep.subr.bf16.mxu1 %v9617_v27  ;;  %v9692_v27 = vld [vmem:[%s13512_s3 + $0x224] ss:$16 sps:$4 sm:$0xff]  }
 0x336   :  { %7630 = vmatpush1.bf16.msra.mxu0 %v9612_v28  ;;  %v6058_v28 = vpack.c.bf16 %v6050_v54, %v6050_v54  ;;  %v9765_v54 = vld [vmem:[%s13512_s3 + $0x3a8] ss:$16 sps:$4 sm:$0xff]  }
 0x337   :  { %7794 = vmatpush1.bf16.msra.mxu1 %v9615_v29  ;;  %7631 = vmatprep.subr.bf16.mxu0 %v9620_v33  ;;  %v9695_v29 = vld [vmem:[%s13512_s3 + $0x22c] ss:$16 sps:$4 sm:$0xff]   ;;  %v9690_v33 = vld [vmem:[%s13512_s3 + $0x220] ss:$16 sps:$4 sm:$0xff]  }
 0x338   :  { %7795 = vmatprep.subr.bf16.mxu1 %v9623_v1  ;;  %v9693_v1 = vld [vmem:[%s13512_s3 + $0x228] ss:$16 sps:$4 sm:$0xff]  }
 0x33a   :  { %7632 = vmatpush1.bf16.msra.mxu0 %v9618_v34  ;;  %v9698_v34 = vld [vmem:[%s13512_s3 + $0x244] ss:$16 sps:$4 sm:$0xff]  }
 0x33b   :  { %7796 = vmatpush1.bf16.msra.mxu1 %v9621_v37  ;;  %7633 = vmatprep.subr.bf16.mxu0 %v9626_v21  ;;  %v9701_v37 = vld [vmem:[%s13512_s3 + $0x24c] ss:$16 sps:$4 sm:$0xff]   ;;  %v9696_v21 = vld [vmem:[%s13512_s3 + $0x240] ss:$16 sps:$4 sm:$0xff]  }
 0x33c   :  { %7797 = vmatprep.subr.bf16.mxu1 %v9629_v38  ;;  %v9699_v38 = vld [vmem:[%s13512_s3 + $0x248] ss:$16 sps:$4 sm:$0xff]  }
 0x33e   :  { %7634 = vmatpush1.bf16.msra.mxu0 %v9624_v39  ;;  %v9704_v39 = vld [vmem:[%s13512_s3 + $0x264] ss:$16 sps:$4 sm:$0xff]  }
 0x33f   :  { %7798 = vmatpush1.bf16.msra.mxu1 %v9627_v40  ;;  %7635 = vmatprep.subr.bf16.mxu0 %v9632_v41  ;;  %v9707_v40 = vld [vmem:[%s13512_s3 + $0x26c] ss:$16 sps:$4 sm:$0xff]   ;;  %v9702_v41 = vld [vmem:[%s13512_s3 + $0x260] ss:$16 sps:$4 sm:$0xff]  }
 0x340   :  { %7799 = vmatprep.subr.bf16.mxu1 %v9635_v42  ;;  %v9705_v42 = vld [vmem:[%s13512_s3 + $0x268] ss:$16 sps:$4 sm:$0xff]  }
 0x342   :  { %7636 = vmatpush1.bf16.msra.mxu0 %v9630_v43  ;;  %v9710_v43 = vld [vmem:[%s13512_s3 + $0x284] ss:$16 sps:$4 sm:$0xff]  }
 0x343   :  { %7800 = vmatpush1.bf16.msra.mxu1 %v9633_v45  ;;  %7637 = vmatprep.subr.bf16.mxu0 %v9638_v32  ;;  %v9713_v45 = vld [vmem:[%s13512_s3 + $0x28c] ss:$16 sps:$4 sm:$0xff]   ;;  %v9708_v32 = vld [vmem:[%s13512_s3 + $0x280] ss:$16 sps:$4 sm:$0xff]  }
 0x344   :  { %7801 = vmatprep.subr.bf16.mxu1 %v9641_v47  ;;  %v9711_v47 = vld [vmem:[%s13512_s3 + $0x288] ss:$16 sps:$4 sm:$0xff]  }
 0x346   :  { %7638 = vmatpush1.bf16.msra.mxu0 %v9636_v48  ;;  %v9716_v48 = vld [vmem:[%s13512_s3 + $0x2a4] ss:$16 sps:$4 sm:$0xff]  }
 0x347   :  { %7802 = vmatpush1.bf16.msra.mxu1 %v9639_v49  ;;  %7639 = vmatprep.subr.bf16.mxu0 %v9644_v50  ;;  %v9719_v49 = vld [vmem:[%s13512_s3 + $0x2ac] ss:$16 sps:$4 sm:$0xff]   ;;  %v9714_v50 = vld [vmem:[%s13512_s3 + $0x2a0] ss:$16 sps:$4 sm:$0xff]  }
 0x348   :  { %7803 = vmatprep.subr.bf16.mxu1 %v9647_v51  ;;  %v9717_v51 = vld [vmem:[%s13512_s3 + $0x2a8] ss:$16 sps:$4 sm:$0xff]  }
 0x34a   :  { %7640 = vmatpush1.bf16.msra.mxu0 %v9642_v52  ;;  %v9722_v52 = vld [vmem:[%s13512_s3 + $0x2c4] ss:$16 sps:$4 sm:$0xff]  }
 0x34b   :  { %7804 = vmatpush1.bf16.msra.mxu1 %v9645_v57  ;;  %7641 = vmatprep.subr.bf16.mxu0 %v9650_v55  ;;  %v9725_v57 = vld [vmem:[%s13512_s3 + $0x2cc] ss:$16 sps:$4 sm:$0xff]   ;;  %v9720_v55 = vld [vmem:[%s13512_s3 + $0x2c0] ss:$16 sps:$4 sm:$0xff]  }
 0x34c   :  { %7805 = vmatprep.subr.bf16.mxu1 %v9653_v36  ;;  %v9723_v36 = vld [vmem:[%s13512_s3 + $0x2c8] ss:$16 sps:$4 sm:$0xff]  }
 0x34e   :  { %7642 = vmatpush1.bf16.msra.mxu0 %v9648_v56  ;;  %v9728_v56 = vld [vmem:[%s13512_s3 + $0x2e4] ss:$16 sps:$4 sm:$0xff]  }
 0x34f   :  { %7806 = vmatpush1.bf16.msra.mxu1 %v9651_v58  ;;  %7643 = vmatprep.subr.bf16.mxu0 %v9656_v59  ;;  %v9731_v58 = vld [vmem:[%s13512_s3 + $0x2ec] ss:$16 sps:$4 sm:$0xff]   ;;  %v9726_v59 = vld [vmem:[%s13512_s3 + $0x2e0] ss:$16 sps:$4 sm:$0xff]  }
 0x350   :  { %7807 = vmatprep.subr.bf16.mxu1 %v9659_v60  ;;  %v9729_v60 = vld [vmem:[%s13512_s3 + $0x2e8] ss:$16 sps:$4 sm:$0xff]  }
 0x352   :  { %7644 = vmatpush1.bf16.msra.mxu0 %v9654_v61  ;;  %v9734_v61 = vld [vmem:[%s13512_s3 + $0x304] ss:$16 sps:$4 sm:$0xff]  }
 0x353   :  { %7808 = vmatpush1.bf16.msra.mxu1 %v9657_v44  ;;  %7645 = vmatprep.subr.bf16.mxu0 %v9662_v62  ;;  %v9737_v44 = vld [vmem:[%s13512_s3 + $0x30c] ss:$16 sps:$4 sm:$0xff]   ;;  %v9732_v62 = vld [vmem:[%s13512_s3 + $0x300] ss:$16 sps:$4 sm:$0xff]  }
 0x354   :  { %7809 = vmatprep.subr.bf16.mxu1 %v9665_v63  ;;  %v9735_v63 = vld [vmem:[%s13512_s3 + $0x308] ss:$16 sps:$4 sm:$0xff]  }
 0x356   :  { %7646 = vmatpush1.bf16.msra.mxu0 %v9660_v46  ;;  %v9740_v46 = vld [vmem:[%s13512_s3 + $0x324] ss:$16 sps:$4 sm:$0xff]  }
 0x357   :  { %7810 = vmatpush1.bf16.msra.mxu1 %v9663_v3  ;;  %7647 = vmatprep.subr.bf16.mxu0 %v9668_v4  ;;  %v9743_v3 = vld [vmem:[%s13512_s3 + $0x32c] ss:$16 sps:$4 sm:$0xff]   ;;  %v9738_v4 = vld [vmem:[%s13512_s3 + $0x320] ss:$16 sps:$4 sm:$0xff]  }
 0x358   :  { %7811 = vmatprep.subr.bf16.mxu1 %v9671_v5  ;;  %v9741_v5 = vld [vmem:[%s13512_s3 + $0x328] ss:$16 sps:$4 sm:$0xff]  }
 0x35a   :  { %7648 = vmatpush1.bf16.msra.mxu0 %v9666_v7  ;;  %v9746_v7 = vld [vmem:[%s13512_s3 + $0x344] ss:$16 sps:$4 sm:$0xff]  }
 0x35b   :  { %7812 = vmatpush1.bf16.msra.mxu1 %v9669_v8  ;;  %7649 = vmatprep.subr.bf16.mxu0 %v9674_v9  ;;  %v9744_v8 = vld [vmem:[%s13512_s3 + $0x340] ss:$16 sps:$4 sm:$0xff]   ;;  %v9747_v9 = vld [vmem:[%s13512_s3 + $0x348] ss:$16 sps:$4 sm:$0xff]  }
 0x35c   :  { %7813 = vmatprep.subr.bf16.mxu1 %v9677_v31  ;;  %v9752_v31 = vld [vmem:[%s13512_s3 + $0x364] ss:$16 sps:$4 sm:$0xff]  }
 0x35e   :  { %7650 = vmatpush1.bf16.msra.mxu0 %v9672_v10  ;;  %v9750_v10 = vld [vmem:[%s13512_s3 + $0x360] ss:$16 sps:$4 sm:$0xff]  }
 0x35f   :  { %7814 = vmatpush1.bf16.msra.mxu1 %v9675_v13  ;;  %7651 = vmatprep.subr.bf16.mxu0 %v9680_v15  ;;  %v9758_v13 = vld [vmem:[%s13512_s3 + $0x384] ss:$16 sps:$4 sm:$0xff]   ;;  %v9761_v15 = vld [vmem:[%s13512_s3 + $0x38c] ss:$16 sps:$4 sm:$0xff]  }
 0x360   :  { %7815 = vmatprep.subr.bf16.mxu1 %v9683_v16  ;;  %v9756_v16 = vld [vmem:[%s13512_s3 + $0x380] ss:$16 sps:$4 sm:$0xff]  }
 0x362   :  { %7652 = vmatpush1.bf16.msra.mxu0 %v9678_v25  ;;  %v9759_v25 = vld [vmem:[%s13512_s3 + $0x388] ss:$16 sps:$4 sm:$0xff]  }
 0x363   :  { %7816 = vmatpush1.bf16.msra.mxu1 %v9681_v18  ;;  %7662 = vmatprep.subr.bf16.mxu0 %v9686_v22  ;;  %v9767_v18 = vld [vmem:[%s13512_s3 + $0x3ac] ss:$16 sps:$4 sm:$0xff]   ;;  %v9762_v22 = vld [vmem:[%s13512_s3 + $0x3a0] ss:$16 sps:$4 sm:$0xff]  }
 0x364   :  { %7826 = vmatprep.subr.bf16.mxu1 %v9689_v35  ;;  %v866_v35 = vrot.slane %v12565_v26, %v865_v23  ;;  %v9768_v26 = vld [vmem:[%s13512_s3 + $0x3c0] ss:$16 sps:$4 sm:$0xff]  }
 0x365   :  { %7654 = vmatmul.mubr.bf16.vlgmr.msra.gmra.mrb[8].mxu0 %v6055_v20 }
 0x366   :  { %7818 = vmatmul.mubr.bf16.vlgmr.msra.gmra.mrb[8].mxu1 %v6055_v20  ;;  %7663 = vmatpush1.bf16.msra.mxu0 %v9684_v19  ;;  %v9770_v19 = vld [vmem:[%s13512_s3 + $0x3c4] ss:$16 sps:$4 sm:$0xff]   ;;  %v9773_v20 = vld [vmem:[%s13512_s3 + $0x3cc] ss:$16 sps:$4 sm:$0xff]  }
 0x367   :  { %7694 = vmatprep.mubr.bf16.mxu0 %v6058_v28  ;;  %7827 = vmatpush1.bf16.msra.mxu1 %v9687_v24  ;;  %v9457_v24 = vadd.f32 %v12027_v30, %v866_v35  ;;  %v9774_v30 = vld [vmem:[%s13512_s3 + $0x3e0] ss:$16 sps:$4 sm:$0xff]  }
 0x368   :  { %7858 = vmatprep.mubr.bf16.mxu1 %v6058_v28  ;;  %7664 = vmatprep.subr.bf16.mxu0 %v9692_v27  ;;  %v9771_v27 = vld [vmem:[%s13512_s3 + $0x3c8] ss:$16 sps:$4 sm:$0xff]   ;;  %v9776_v28 = vld [vmem:[%s13512_s3 + $0x3e4] ss:$16 sps:$4 sm:$0xff]   ;;  %v9846_v35 = vld [vmem:[%s13512_s3 + $0x560] ss:$16 sps:$4 sm:$0xff]  }
 0x369   :  { %7828 = vmatprep.subr.bf16.mxu1 %v9695_v29  ;;  %v9779_v29 = vld [vmem:[%s13512_s3 + $0x3ec] ss:$16 sps:$4 sm:$0xff]  }
 0x36a   :  { %7665 = vmatpush1.bf16.msra.mxu0 %v9690_v33  ;;  %v6049_v33 = vmax.f32 %v9457_v24, 0.0  ;;  %v9855_v24 = vld [vmem:[%s13512_s3 + $0x588] ss:$16 sps:$4 sm:$0xff]  }
 0x36b   :  { %7829 = vmatpush1.bf16.msra.mxu1 %v9693_v1  ;;  %7666 = vmatprep.subr.bf16.mxu0 %v9698_v34  ;;  %v9777_v1 = vld [vmem:[%s13512_s3 + $0x3e8] ss:$16 sps:$4 sm:$0xff]   ;;  %v9782_v34 = vld [vmem:[%s13512_s3 + $0x404] ss:$16 sps:$4 sm:$0xff]  }
 0x36c   :  { %7830 = vmatprep.subr.bf16.mxu1 %v9701_v37  ;;  %v9785_v37 = vld [vmem:[%s13512_s3 + $0x40c] ss:$16 sps:$4 sm:$0xff]  }
 0x36e   :  { %7667 = vmatpush1.bf16.msra.mxu0 %v9696_v21  ;;  %v9780_v21 = vld [vmem:[%s13512_s3 + $0x400] ss:$16 sps:$4 sm:$0xff]  }
 0x36f   :  { %7831 = vmatpush1.bf16.msra.mxu1 %v9699_v38  ;;  %7668 = vmatprep.subr.bf16.mxu0 %v9704_v39  ;;  %v6057_v38 = vpack.c.bf16 %v6049_v33, %v6049_v33  ;;  %v9783_v39 = vld [vmem:[%s13512_s3 + $0x408] ss:$16 sps:$4 sm:$0xff]   ;;  %v9866_v33 = vld [vmem:[%s13512_s3 + $0x5c4] ss:$16 sps:$4 sm:$0xff]  }
 0x370   :  { %7832 = vmatprep.subr.bf16.mxu1 %v9707_v40  ;;  %v9788_v40 = vld [vmem:[%s13512_s3 + $0x424] ss:$16 sps:$4 sm:$0xff]  }
 0x372   :  { %7669 = vmatpush1.bf16.msra.mxu0 %v9702_v41  ;;  %v9791_v41 = vld [vmem:[%s13512_s3 + $0x42c] ss:$16 sps:$4 sm:$0xff]  }
 0x373   :  { %7833 = vmatpush1.bf16.msra.mxu1 %v9705_v42  ;;  %7670 = vmatprep.subr.bf16.mxu0 %v9710_v43  ;;  %v9786_v42 = vld [vmem:[%s13512_s3 + $0x420] ss:$16 sps:$4 sm:$0xff]   ;;  %v9789_v43 = vld [vmem:[%s13512_s3 + $0x428] ss:$16 sps:$4 sm:$0xff]  }
 0x374   :  { %7834 = vmatprep.subr.bf16.mxu1 %v9713_v45  ;;  %v9794_v45 = vld [vmem:[%s13512_s3 + $0x444] ss:$16 sps:$4 sm:$0xff]  }
 0x376   :  { %7671 = vmatpush1.bf16.msra.mxu0 %v9708_v32  ;;  %v9797_v32 = vld [vmem:[%s13512_s3 + $0x44c] ss:$16 sps:$4 sm:$0xff]  }
 0x377   :  { %7835 = vmatpush1.bf16.msra.mxu1 %v9711_v47  ;;  %7672 = vmatprep.subr.bf16.mxu0 %v9716_v48  ;;  %v9792_v47 = vld [vmem:[%s13512_s3 + $0x440] ss:$16 sps:$4 sm:$0xff]   ;;  %v9795_v48 = vld [vmem:[%s13512_s3 + $0x448] ss:$16 sps:$4 sm:$0xff]  }
 0x378   :  { %7836 = vmatprep.subr.bf16.mxu1 %v9719_v49  ;;  %v9800_v49 = vld [vmem:[%s13512_s3 + $0x464] ss:$16 sps:$4 sm:$0xff]  }
 0x37a   :  { %7673 = vmatpush1.bf16.msra.mxu0 %v9714_v50  ;;  %v9803_v50 = vld [vmem:[%s13512_s3 + $0x46c] ss:$16 sps:$4 sm:$0xff]  }
 0x37b   :  { %7837 = vmatpush1.bf16.msra.mxu1 %v9717_v51  ;;  %7674 = vmatprep.subr.bf16.mxu0 %v9722_v52  ;;  %v9798_v51 = vld [vmem:[%s13512_s3 + $0x460] ss:$16 sps:$4 sm:$0xff]   ;;  %v9801_v52 = vld [vmem:[%s13512_s3 + $0x468] ss:$16 sps:$4 sm:$0xff]  }
 0x37c   :  { %7838 = vmatprep.subr.bf16.mxu1 %v9725_v57  ;;  %v9806_v57 = vld [vmem:[%s13512_s3 + $0x484] ss:$16 sps:$4 sm:$0xff]  }
 0x37e   :  { %7675 = vmatpush1.bf16.msra.mxu0 %v9720_v55  ;;  %v9809_v55 = vld [vmem:[%s13512_s3 + $0x48c] ss:$16 sps:$4 sm:$0xff]  }
 0x37f   :  { %7839 = vmatpush1.bf16.msra.mxu1 %v9723_v36  ;;  %7676 = vmatprep.subr.bf16.mxu0 %v9728_v56  ;;  %v9804_v36 = vld [vmem:[%s13512_s3 + $0x480] ss:$16 sps:$4 sm:$0xff]   ;;  %v9807_v56 = vld [vmem:[%s13512_s3 + $0x488] ss:$16 sps:$4 sm:$0xff]  }
 0x380   :  { %7840 = vmatprep.subr.bf16.mxu1 %v9731_v58  ;;  %v9812_v58 = vld [vmem:[%s13512_s3 + $0x4a4] ss:$16 sps:$4 sm:$0xff]  }
 0x382   :  { %7677 = vmatpush1.bf16.msra.mxu0 %v9726_v59  ;;  %v9815_v59 = vld [vmem:[%s13512_s3 + $0x4ac] ss:$16 sps:$4 sm:$0xff]  }
 0x383   :  { %7841 = vmatpush1.bf16.msra.mxu1 %v9729_v60  ;;  %7678 = vmatprep.subr.bf16.mxu0 %v9734_v61  ;;  %v9810_v60 = vld [vmem:[%s13512_s3 + $0x4a0] ss:$16 sps:$4 sm:$0xff]   ;;  %v9813_v61 = vld [vmem:[%s13512_s3 + $0x4a8] ss:$16 sps:$4 sm:$0xff]  }
 0x384   :  { %7842 = vmatprep.subr.bf16.mxu1 %v9737_v44  ;;  %v9818_v44 = vld [vmem:[%s13512_s3 + $0x4c4] ss:$16 sps:$4 sm:$0xff]  }
 0x386   :  { %7679 = vmatpush1.bf16.msra.mxu0 %v9732_v62  ;;  %v9821_v62 = vld [vmem:[%s13512_s3 + $0x4cc] ss:$16 sps:$4 sm:$0xff]  }
 0x387   :  { %7843 = vmatpush1.bf16.msra.mxu1 %v9735_v63  ;;  %7680 = vmatprep.subr.bf16.mxu0 %v9740_v46  ;;  %v9816_v63 = vld [vmem:[%s13512_s3 + $0x4c0] ss:$16 sps:$4 sm:$0xff]   ;;  %v9819_v46 = vld [vmem:[%s13512_s3 + $0x4c8] ss:$16 sps:$4 sm:$0xff]  }
 0x388   :  { %7844 = vmatprep.subr.bf16.mxu1 %v9743_v3  ;;  %v9824_v3 = vld [vmem:[%s13512_s3 + $0x4e4] ss:$16 sps:$4 sm:$0xff]  }
 0x38a   :  { %7681 = vmatpush1.bf16.msra.mxu0 %v9738_v4  ;;  %v9827_v4 = vld [vmem:[%s13512_s3 + $0x4ec] ss:$16 sps:$4 sm:$0xff]  }
 0x38b   :  { %7845 = vmatpush1.bf16.msra.mxu1 %v9741_v5  ;;  %7682 = vmatprep.subr.bf16.mxu0 %v9746_v7  ;;  %v9822_v5 = vld [vmem:[%s13512_s3 + $0x4e0] ss:$16 sps:$4 sm:$0xff]   ;;  %v9825_v7 = vld [vmem:[%s13512_s3 + $0x4e8] ss:$16 sps:$4 sm:$0xff]  }
 0x38c   :  { %7846 = vmatprep.subr.bf16.mxu1 %v9749_v0  ;;  %v9830_v0 = vld [vmem:[%s13512_s3 + $0x504] ss:$16 sps:$4 sm:$0xff]  }
 0x38e   :  { %7683 = vmatpush1.bf16.msra.mxu0 %v9744_v8  ;;  %v9833_v8 = vld [vmem:[%s13512_s3 + $0x50c] ss:$16 sps:$4 sm:$0xff]  }
 0x38f   :  { %7847 = vmatpush1.bf16.msra.mxu1 %v9747_v9  ;;  %7684 = vmatprep.subr.bf16.mxu0 %v9752_v31  ;;  %v9828_v9 = vld [vmem:[%s13512_s3 + $0x500] ss:$16 sps:$4 sm:$0xff]   ;;  %v9831_v31 = vld [vmem:[%s13512_s3 + $0x508] ss:$16 sps:$4 sm:$0xff]  }
 0x390   :  { %7848 = vmatprep.subr.bf16.mxu1 %v9755_v12  ;;  %v9836_v12 = vld [vmem:[%s13512_s3 + $0x524] ss:$16 sps:$4 sm:$0xff]  }
 0x392   :  { %7685 = vmatpush1.bf16.msra.mxu0 %v9750_v10  ;;  %v9839_v10 = vld [vmem:[%s13512_s3 + $0x52c] ss:$16 sps:$4 sm:$0xff]  }
 0x393   :  { %7849 = vmatpush1.bf16.msra.mxu1 %v9753_v11  ;;  %7686 = vmatprep.subr.bf16.mxu0 %v9758_v13  ;;  %v9834_v11 = vld [vmem:[%s13512_s3 + $0x520] ss:$16 sps:$4 sm:$0xff]   ;;  %v9837_v13 = vld [vmem:[%s13512_s3 + $0x528] ss:$16 sps:$4 sm:$0xff]  }
 0x394   :  { %7850 = vmatprep.subr.bf16.mxu1 %v9761_v15  ;;  %v9842_v15 = vld [vmem:[%s13512_s3 + $0x544] ss:$16 sps:$4 sm:$0xff]  }
 0x396   :  { %7687 = vmatpush1.bf16.msra.mxu0 %v9756_v16  ;;  %v9845_v16 = vld [vmem:[%s13512_s3 + $0x54c] ss:$16 sps:$4 sm:$0xff]  }
 0x397   :  { %7851 = vmatpush1.bf16.msra.mxu1 %v9759_v25  ;;  %7688 = vmatprep.subr.bf16.mxu0 %v9764_v17  ;;  %v9840_v25 = vld [vmem:[%s13512_s3 + $0x540] ss:$16 sps:$4 sm:$0xff]   ;;  %v9843_v17 = vld [vmem:[%s13512_s3 + $0x548] ss:$16 sps:$4 sm:$0xff]  }
 0x398   :  { %7852 = vmatprep.subr.bf16.mxu1 %v9767_v18  ;;  %v9848_v18 = vld [vmem:[%s13512_s3 + $0x564] ss:$16 sps:$4 sm:$0xff]  }
 0x39a   :  { %7689 = vmatpush1.bf16.msra.mxu0 %v9762_v22  ;;  %v9851_v22 = vld [vmem:[%s13512_s3 + $0x56c] ss:$16 sps:$4 sm:$0xff]  }
 0x39b   :  { %7853 = vmatpush1.bf16.msra.mxu1 %v9765_v54  ;;  %7690 = vmatprep.subr.bf16.mxu0 %v9770_v19  ;;  %v9849_v54 = vld [vmem:[%s13512_s3 + $0x568] ss:$16 sps:$4 sm:$0xff]   ;;  %v9854_v19 = vld [vmem:[%s13512_s3 + $0x584] ss:$16 sps:$4 sm:$0xff]  }
 0x39c   :  { %7854 = vmatprep.subr.bf16.mxu1 %v9773_v20  ;;  %v9857_v20 = vld [vmem:[%s13512_s3 + $0x58c] ss:$16 sps:$4 sm:$0xff]  }
 0x39e   :  { %7691 = vmatpush1.bf16.msra.mxu0 %v9768_v26  ;;  %v9852_v26 = vld [vmem:[%s13512_s3 + $0x580] ss:$16 sps:$4 sm:$0xff]  }
 0x39f   :  { %7855 = vmatpush1.bf16.msra.mxu1 %v9771_v27  ;;  %7692 = vmatprep.subr.bf16.mxu0 %v9776_v28  ;;  %v9860_v27 = vld [vmem:[%s13512_s3 + $0x5a4] ss:$16 sps:$4 sm:$0xff]   ;;  %v9858_v28 = vld [vmem:[%s13512_s3 + $0x5a0] ss:$16 sps:$4 sm:$0xff]  }
 0x3a0   :  { %7856 = vmatprep.subr.bf16.mxu1 %v9779_v29  ;;  %v9863_v29 = vld [vmem:[%s13512_s3 + $0x5ac] ss:$16 sps:$4 sm:$0xff]  }
 0x3a2   :  { %7693 = vmatpush1.bf16.msra.mxu0 %v9774_v30  ;;  %v9861_v30 = vld [vmem:[%s13512_s3 + $0x5a8] ss:$16 sps:$4 sm:$0xff]  }
 0x3a3   :  { %7857 = vmatpush1.bf16.msra.mxu1 %v9777_v1  ;;  %7703 = vmatprep.subr.bf16.mxu0 %v9782_v34  ;;  %v9869_v1 = vld [vmem:[%s13512_s3 + $0x5cc] ss:$16 sps:$4 sm:$0xff]   ;;  %v9864_v34 = vld [vmem:[%s13512_s3 + $0x5c0] ss:$16 sps:$4 sm:$0xff]  }
 0x3a4   :  { %7867 = vmatprep.subr.bf16.mxu1 %v9785_v37  ;;  %v9867_v37 = vld [vmem:[%s13512_s3 + $0x5c8] ss:$16 sps:$4 sm:$0xff]  }
 0x3a5   :  { %7695 = vmatmul.mubr.bf16.vlgmr.msra.gmra.mrb[8].mxu0 %v6057_v38 }
 0x3a6   :  { %7859 = vmatmul.mubr.bf16.vlgmr.msra.gmra.mrb[8].mxu1 %v6057_v38  ;;  %7704 = vmatpush1.bf16.msra.mxu0 %v9780_v21  ;;  %v9872_v21 = vld [vmem:[%s13512_s3 + $0x5e4] ss:$16 sps:$4 sm:$0xff]   ;;  %v9875_v38 = vld [vmem:[%s13512_s3 + $0x5ec] ss:$16 sps:$4 sm:$0xff]  }
 0x3a7   :  { %7868 = vmatpush1.bf16.msra.mxu1 %v9783_v39  ;;  %7705 = vmatprep.subr.bf16.mxu0 %v9788_v40  ;;  %v9870_v39 = vld [vmem:[%s13512_s3 + $0x5e0] ss:$16 sps:$4 sm:$0xff]   ;;  %v9873_v40 = vld [vmem:[%s13512_s3 + $0x5e8] ss:$16 sps:$4 sm:$0xff]  }
 0x3a8   :  { %7869 = vmatprep.subr.bf16.mxu1 %v9791_v41  ;;  %v9878_v41 = vld [vmem:[%s13512_s3 + $0x604] ss:$16 sps:$4 sm:$0xff]  }
 0x3aa   :  { %7706 = vmatpush1.bf16.msra.mxu0 %v9786_v42  ;;  %v9881_v42 = vld [vmem:[%s13512_s3 + $0x60c] ss:$16 sps:$4 sm:$0xff]  }
 0x3ab   :  { %7870 = vmatpush1.bf16.msra.mxu1 %v9789_v43  ;;  %7707 = vmatprep.subr.bf16.mxu0 %v9794_v45  ;;  %v873_v43 = vsub.s32 4, %v12551_v14  ;;  %v877_v45 = vsub.s32 5, %v12551_v14 }
 0x3ac   :  { %7871 = vmatprep.subr.bf16.mxu1 %v9797_v32  ;;  %v885_v32 = vsub.s32 7, %v12551_v14 }
 0x3ae   :  { %7708 = vmatpush1.bf16.msra.mxu0 %v9792_v47  ;;  %v13198_v47 = vld [vmem:[%s13513_s2] sm:$0xff] }
 0x3af   :  { %7872 = vmatpush1.bf16.msra.mxu1 %v9795_v48  ;;  %7709 = vmatprep.subr.bf16.mxu0 %v9800_v49  ;;  %v874_v48 = vrot.slane %v13198_v47, %v873_v43  ;;  %v878_v49 = vrot.slane %v13198_v47, %v877_v45  ;;  %v9935_v43 = vld [vmem:[%s13512_s3 + $0x72c] ss:$16 sps:$4 sm:$0xff]   ;;  %v9930_v45 = vld [vmem:[%s13512_s3 + $0x720] ss:$16 sps:$4 sm:$0xff]  }
 0x3b0   :  { %7873 = vmatprep.subr.bf16.mxu1 %v9803_v50  ;;  %v886_v50 = vrot.slane %v13198_v47, %v885_v32  ;;  %v9933_v32 = vld [vmem:[%s13512_s3 + $0x728] ss:$16 sps:$4 sm:$0xff]  }
 0x3b2   :  { %7710 = vmatpush1.bf16.msra.mxu0 %v9798_v51 }
 0x3b3   :  { %7874 = vmatpush1.bf16.msra.mxu1 %v9801_v52  ;;  %7711 = vmatprep.subr.bf16.mxu0 %v9806_v57 }
 0x3b4   :  { %7875 = vmatprep.subr.bf16.mxu1 %v9809_v55 }
 0x3b6   :  { %7712 = vmatpush1.bf16.msra.mxu0 %v9804_v36 }
 0x3b7   :  { %7876 = vmatpush1.bf16.msra.mxu1 %v9807_v56  ;;  %7713 = vmatprep.subr.bf16.mxu0 %v9812_v58 }
 0x3b8   :  { %7877 = vmatprep.subr.bf16.mxu1 %v9815_v59 }
 0x3ba   :  { %7714 = vmatpush1.bf16.msra.mxu0 %v9810_v60 }
 0x3bb   :  { %7878 = vmatpush1.bf16.msra.mxu1 %v9813_v61  ;;  %7715 = vmatprep.subr.bf16.mxu0 %v9818_v44 }
 0x3bc   :  { %7879 = vmatprep.subr.bf16.mxu1 %v9821_v62 }
 0x3be   :  { %7716 = vmatpush1.bf16.msra.mxu0 %v9816_v63 }
 0x3bf   :  { %7880 = vmatpush1.bf16.msra.mxu1 %v9819_v46  ;;  %7717 = vmatprep.subr.bf16.mxu0 %v9824_v3 }
 0x3c0   :  { %7881 = vmatprep.subr.bf16.mxu1 %v9827_v4  ;;  %v9876_v4 = vld [vmem:[%s13512_s3 + $0x600] ss:$16 sps:$4 sm:$0xff]  }
 0x3c2   :  { %7718 = vmatpush1.bf16.msra.mxu0 %v9822_v5  ;;  %v9879_v5 = vld [vmem:[%s13512_s3 + $0x608] ss:$16 sps:$4 sm:$0xff]  }
 0x3c3   :  { %7882 = vmatpush1.bf16.msra.mxu1 %v9825_v7  ;;  %7719 = vmatprep.subr.bf16.mxu0 %v9830_v0  ;;  %v9884_v0 = vld [vmem:[%s13512_s3 + $0x624] ss:$16 sps:$4 sm:$0xff]  }
 0x3c4   :  { %7883 = vmatprep.subr.bf16.mxu1 %v9833_v8  ;;  %v9887_v8 = vld [vmem:[%s13512_s3 + $0x62c] ss:$16 sps:$4 sm:$0xff]  }
 0x3c6   :  { %7720 = vmatpush1.bf16.msra.mxu0 %v9828_v9 }
 0x3c7   :  { %7884 = vmatpush1.bf16.msra.mxu1 %v9831_v31  ;;  %7721 = vmatprep.subr.bf16.mxu0 %v9836_v12  ;;  %v9882_v31 = vld [vmem:[%s13512_s3 + $0x620] ss:$16 sps:$4 sm:$0xff]   ;;  %v9885_v12 = vld [vmem:[%s13512_s3 + $0x628] ss:$16 sps:$4 sm:$0xff]  }
 0x3c8   :  { %7885 = vmatprep.subr.bf16.mxu1 %v9839_v10  ;;  %v9890_v10 = vld [vmem:[%s13512_s3 + $0x644] ss:$16 sps:$4 sm:$0xff]  }
 0x3ca   :  { %7722 = vmatpush1.bf16.msra.mxu0 %v9834_v11  ;;  %v9893_v11 = vld [vmem:[%s13512_s3 + $0x64c] ss:$16 sps:$4 sm:$0xff]  }
 0x3cb   :  { %7886 = vmatpush1.bf16.msra.mxu1 %v9837_v13  ;;  %7723 = vmatprep.subr.bf16.mxu0 %v9842_v15  ;;  %v9888_v13 = vld [vmem:[%s13512_s3 + $0x640] ss:$16 sps:$4 sm:$0xff]   ;;  %v9891_v15 = vld [vmem:[%s13512_s3 + $0x648] ss:$16 sps:$4 sm:$0xff]  }
 0x3cc   :  { %7887 = vmatprep.subr.bf16.mxu1 %v9845_v16  ;;  %v9896_v16 = vld [vmem:[%s13512_s3 + $0x664] ss:$16 sps:$4 sm:$0xff]  }
 0x3ce   :  { %7724 = vmatpush1.bf16.msra.mxu0 %v9840_v25  ;;  %v9899_v25 = vld [vmem:[%s13512_s3 + $0x66c] ss:$16 sps:$4 sm:$0xff]  }
 0x3cf   :  { %7888 = vmatpush1.bf16.msra.mxu1 %v9843_v17  ;;  %7725 = vmatprep.subr.bf16.mxu0 %v9848_v18  ;;  %v9894_v17 = vld [vmem:[%s13512_s3 + $0x660] ss:$16 sps:$4 sm:$0xff]   ;;  %v9897_v18 = vld [vmem:[%s13512_s3 + $0x668] ss:$16 sps:$4 sm:$0xff]  }
 0x3d0   :  { %7889 = vmatprep.subr.bf16.mxu1 %v9851_v22  ;;  %v9902_v22 = vld [vmem:[%s13512_s3 + $0x684] ss:$16 sps:$4 sm:$0xff]  }
 0x3d2   :  { %7726 = vmatpush1.bf16.msra.mxu0 %v9846_v35  ;;  %v9905_v35 = vld [vmem:[%s13512_s3 + $0x68c] ss:$16 sps:$4 sm:$0xff]  }
 0x3d3   :  { %7890 = vmatpush1.bf16.msra.mxu1 %v9849_v54  ;;  %7727 = vmatprep.subr.bf16.mxu0 %v9854_v19  ;;  %v9900_v54 = vld [vmem:[%s13512_s3 + $0x680] ss:$16 sps:$4 sm:$0xff]   ;;  %v9903_v19 = vld [vmem:[%s13512_s3 + $0x688] ss:$16 sps:$4 sm:$0xff]  }
 0x3d4   :  { %7891 = vmatprep.subr.bf16.mxu1 %v9857_v20  ;;  %v9908_v20 = vld [vmem:[%s13512_s3 + $0x6a4] ss:$16 sps:$4 sm:$0xff]  }
 0x3d6   :  { %7728 = vmatpush1.bf16.msra.mxu0 %v9852_v26  ;;  %v9911_v26 = vld [vmem:[%s13512_s3 + $0x6ac] ss:$16 sps:$4 sm:$0xff]  }
 0x3d7   :  { %7892 = vmatpush1.bf16.msra.mxu1 %v9855_v24  ;;  %7729 = vmatprep.subr.bf16.mxu0 %v9860_v27  ;;  %v9906_v24 = vld [vmem:[%s13512_s3 + $0x6a0] ss:$16 sps:$4 sm:$0xff]   ;;  %v9909_v27 = vld [vmem:[%s13512_s3 + $0x6a8] ss:$16 sps:$4 sm:$0xff]  }
 0x3d8   :  { %7893 = vmatprep.subr.bf16.mxu1 %v9863_v29  ;;  %v9917_v29 = vld [vmem:[%s13512_s3 + $0x6cc] ss:$16 sps:$4 sm:$0xff]  }
 0x3da   :  { %7730 = vmatpush1.bf16.msra.mxu0 %v9858_v28  ;;  %v9914_v28 = vld [vmem:[%s13512_s3 + $0x6c4] ss:$16 sps:$4 sm:$0xff]  }
 0x3db   :  { %7894 = vmatpush1.bf16.msra.mxu1 %v9861_v30  ;;  %7731 = vmatprep.subr.bf16.mxu0 %v9866_v33  ;;  %v9912_v30 = vld [vmem:[%s13512_s3 + $0x6c0] ss:$16 sps:$4 sm:$0xff]   ;;  %v9915_v33 = vld [vmem:[%s13512_s3 + $0x6c8] ss:$16 sps:$4 sm:$0xff]  }
 0x3dc   :  { %7895 = vmatprep.subr.bf16.mxu1 %v9869_v1  ;;  %v9920_v1 = vld [vmem:[%s13512_s3 + $0x6e4] ss:$16 sps:$4 sm:$0xff]  }
 0x3de   :  { %7732 = vmatpush1.bf16.msra.mxu0 %v9864_v34  ;;  %v9923_v34 = vld [vmem:[%s13512_s3 + $0x6ec] ss:$16 sps:$4 sm:$0xff]  }
 0x3df   :  { %7896 = vmatpush1.bf16.msra.mxu1 %v9867_v37  ;;  %7733 = vmatprep.subr.bf16.mxu0 %v9872_v21  ;;  %v9918_v37 = vld [vmem:[%s13512_s3 + $0x6e0] ss:$16 sps:$4 sm:$0xff]   ;;  %v9921_v21 = vld [vmem:[%s13512_s3 + $0x6e8] ss:$16 sps:$4 sm:$0xff]  }
 0x3e0   :  { %7897 = vmatprep.subr.bf16.mxu1 %v9875_v38  ;;  %v9926_v38 = vld [vmem:[%s13512_s3 + $0x704] ss:$16 sps:$4 sm:$0xff]  }
 0x3e2   :  { %7734 = vmatpush1.bf16.msra.mxu0 %v9870_v39  ;;  %v9929_v39 = vld [vmem:[%s13512_s3 + $0x70c] ss:$16 sps:$4 sm:$0xff]  }
 0x3e3   :  { %7898 = vmatpush1.bf16.msra.mxu1 %v9873_v40  ;;  %7744 = vmatprep.subr.bf16.mxu0 %v9878_v41  ;;  %v9924_v40 = vld [vmem:[%s13512_s3 + $0x700] ss:$16 sps:$4 sm:$0xff]   ;;  %v9927_v41 = vld [vmem:[%s13512_s3 + $0x708] ss:$16 sps:$4 sm:$0xff]  }
 0x3e4   :  { %7908 = vmatprep.subr.bf16.mxu1 %v9881_v42  ;;  %v9932_v42 = vld [vmem:[%s13512_s3 + $0x724] ss:$16 sps:$4 sm:$0xff]  }
 0x3f8   :  { %v5753_v51 = vpop.f32.mrb[4].mxu0  ;;  %v13203_v57 = vpop.f32.mrb[4].mxu1 }
 0x3f9   :  { %v9459_v52 = vadd.f32 %v5753_v51, %v874_v48  ;;  %v5755_v55 = vpop.f32.mrb[5].mxu0  ;;  %v6042_v56 = vpop.f32.mrb[5].mxu1  ;;  %v9938_v48 = vld [vmem:[%s13512_s3 + $0x744] ss:$16 sps:$4 sm:$0xff]   ;;  %v9939_v51 = vld [vmem:[%s13512_s3 + $0x748] ss:$16 sps:$4 sm:$0xff]  }
 0x3fa   :  { %v9460_v36 = vadd.f32 %v5755_v55, %v878_v49  ;;  %v5757_v58 = vpop.f32.mrb[6].mxu0  ;;  %v9462_v60 = vadd.f32 %v6042_v56, %v886_v50  ;;  %v6044_v61 = vpop.f32.mrb[6].mxu1  ;;  %v9941_v49 = vld [vmem:[%s13512_s3 + $0x74c] ss:$16 sps:$4 sm:$0xff]   ;;  %v9936_v50 = vld [vmem:[%s13512_s3 + $0x740] ss:$16 sps:$4 sm:$0xff]  }
 0x3fb   :  { %v6051_v59 = vmax.f32 %v9459_v52, 0.0  ;;  %v5758_v44 = vpop.f32.mrb[7].mxu0  ;;  %v6045_v63 = vpop.f32.mrb[7].mxu1  ;;  %v9944_v52 = vld [vmem:[%s13512_s3 + $0x764] ss:$16 sps:$4 sm:$0xff]  }
 0x3fc   :  { %v6052_v62 = vmax.f32 %v9460_v36, 0.0  ;;  %v6054_v46 = vmax.f32 %v9462_v60, 0.0  ;;  %v9947_v55 = vld [vmem:[%s13512_s3 + $0x76c] ss:$16 sps:$4 sm:$0xff]   ;;  %v9942_v36 = vld [vmem:[%s13512_s3 + $0x760] ss:$16 sps:$4 sm:$0xff]  }
 0x3fd   :  { %v6059_v7 = vpack.c.bf16 %v6051_v59, %v6051_v59  ;;  %v9945_v56 = vld [vmem:[%s13512_s3 + $0x768] ss:$16 sps:$4 sm:$0xff]   ;;  %v9950_v58 = vld [vmem:[%s13512_s3 + $0x784] ss:$16 sps:$4 sm:$0xff]   ;;  %v9953_v59 = vld [vmem:[%s13512_s3 + $0x78c] ss:$16 sps:$4 sm:$0xff]  }
 0x3fe   :  { %v6060_v3 = vpack.c.bf16 %v6052_v62, %v6052_v62  ;;  %v6062_v9 = vpack.c.bf16 %v6054_v46, %v6054_v46  ;;  %v9948_v60 = vld [vmem:[%s13512_s3 + $0x780] ss:$16 sps:$4 sm:$0xff]   ;;  %v9951_v61 = vld [vmem:[%s13512_s3 + $0x788] ss:$16 sps:$4 sm:$0xff]   ;;  %v881_v44 = vsub.s32 6, %v12551_v14 }
 0x3ff   :  { %v9956_v62 = vld [vmem:[%s13512_s3 + $0x7a4] ss:$16 sps:$4 sm:$0xff]   ;;  %v9959_v63 = vld [vmem:[%s13512_s3 + $0x7ac] ss:$16 sps:$4 sm:$0xff]   ;;  %v9954_v46 = vld [vmem:[%s13512_s3 + $0x7a0] ss:$16 sps:$4 sm:$0xff]  }
 0x400   :  { %7735 = vmatprep.mubr.bf16.mxu0 %v6060_v3  ;;  %7899 = vmatprep.mubr.bf16.mxu1 %v6060_v3  ;;  %v9957_v3 = vld [vmem:[%s13512_s3 + $0x7a8] ss:$16 sps:$4 sm:$0xff]  }
 0x401   :  { %7736 = vmatmul.mubr.bf16.vlgmr.msra.gmra.mrb[8].mxu0 %v6059_v7  ;;  %7900 = vmatmul.mubr.bf16.vlgmr.msra.gmra.mrb[8].mxu1 %v6059_v7  ;;  %v9965_v7 = vld [vmem:[%s13512_s3 + $0x7cc] ss:$16 sps:$4 sm:$0xff]  }
 0x402   :  { %7745 = vmatpush1.bf16.msra.mxu0 %v9876_v4  ;;  %7909 = vmatpush1.bf16.msra.mxu1 %v9879_v5  ;;  %v882_v4 = vrot.slane %v13198_v47, %v881_v44  ;;  %v9962_v5 = vld [vmem:[%s13512_s3 + $0x7c4] ss:$16 sps:$4 sm:$0xff]   ;;  %v9963_v47 = vld [vmem:[%s13512_s3 + $0x7c8] ss:$16 sps:$4 sm:$0xff]  }
 0x403   :  { %7776 = vmatprep.mubr.bf16.mxu0 %v6062_v9  ;;  %7940 = vmatprep.mubr.bf16.mxu1 %v6062_v9  ;;  %v9968_v9 = vld [vmem:[%s13512_s3 + $0x7e4] ss:$16 sps:$4 sm:$0xff]  }
 0x404   :  { %7746 = vmatprep.subr.bf16.mxu0 %v9884_v0  ;;  %7910 = vmatprep.subr.bf16.mxu1 %v9887_v8  ;;  %v9960_v0 = vld [vmem:[%s13512_s3 + $0x7c0] ss:$16 sps:$4 sm:$0xff]   ;;  %v9461_v8 = vadd.f32 %v13203_v57, %v882_v4  ;;  %v9969_v57 = vld [vmem:[%s13512_s3 + $0x7e8] ss:$16 sps:$4 sm:$0xff]  }
 0x406   :  { %7747 = vmatpush1.bf16.msra.mxu0 %v9882_v31  ;;  %7911 = vmatpush1.bf16.msra.mxu1 %v9885_v12  ;;  %v9971_v31 = vld [vmem:[%s13512_s3 + $0x7ec] ss:$16 sps:$4 sm:$0xff]   ;;  %v9966_v12 = vld [vmem:[%s13512_s3 + $0x7e0] ss:$16 sps:$4 sm:$0xff]  }
 0x407   :  { %7748 = vmatprep.subr.bf16.mxu0 %v9890_v10  ;;  %7912 = vmatprep.subr.bf16.mxu1 %v9893_v11  ;;  %v6053_v10 = vmax.f32 %v9461_v8, 0.0  ;;  %v9972_v11 = vld [vmem:[%s13514_s5 + $0x40] sm:$0xff]  }
 0x40a   :  { %7749 = vmatpush1.bf16.msra.mxu0 %v9888_v13  ;;  %7913 = vmatpush1.bf16.msra.mxu1 %v9891_v15  ;;  %v9973_v13 = vld [vmem:[%s13514_s5 + $0xc0] sm:$0xff]  }
 0x40b   :  { %7750 = vmatprep.subr.bf16.mxu0 %v9896_v16  ;;  %7914 = vmatprep.subr.bf16.mxu1 %v9899_v25  ;;  %v9974_v15 = vld [vmem:[%s13514_s5] sm:$0xff]   ;;  %v6061_v25 = vpack.c.bf16 %v6053_v10, %v6053_v10 }
 0x40c   :  { %v9975_v16 = vld [vmem:[%s13514_s5 + $0x80] sm:$0xff]  }
 0x40e   :  { %7751 = vmatpush1.bf16.msra.mxu0 %v9894_v17  ;;  %7915 = vmatpush1.bf16.msra.mxu1 %v9897_v18  ;;  %v9976_v17 = vld [vmem:[%s13514_s5 + $0x48] sm:$0xff]  }
 0x40f   :  { %7752 = vmatprep.subr.bf16.mxu0 %v9902_v22  ;;  %7916 = vmatprep.subr.bf16.mxu1 %v9905_v35  ;;  %v9977_v18 = vld [vmem:[%s13514_s5 + $0xc8] sm:$0xff]  }
 0x410   :  { %v9978_v22 = vld [vmem:[%s13514_s5 + $0x8] sm:$0xff]  }
 0x411   :  { %v9979_v35 = vld [vmem:[%s13514_s5 + $0x88] sm:$0xff]  }
 0x412   :  { %7753 = vmatpush1.bf16.msra.mxu0 %v9900_v54  ;;  %7917 = vmatpush1.bf16.msra.mxu1 %v9903_v19  ;;  %v9980_v54 = vld [vmem:[%s13514_s5 + $0x50] sm:$0xff]  }
 0x413   :  { %7754 = vmatprep.subr.bf16.mxu0 %v9908_v20  ;;  %7918 = vmatprep.subr.bf16.mxu1 %v9911_v26  ;;  %v9981_v19 = vld [vmem:[%s13514_s5 + $0xd0] sm:$0xff]  }
 0x414   :  { %v9982_v20 = vld [vmem:[%s13514_s5 + $0x10] sm:$0xff]  }
 0x415   :  { %v9983_v26 = vld [vmem:[%s13514_s5 + $0x90] sm:$0xff]  }
 0x416   :  { %7755 = vmatpush1.bf16.msra.mxu0 %v9906_v24  ;;  %7919 = vmatpush1.bf16.msra.mxu1 %v9909_v27  ;;  %v9984_v24 = vld [vmem:[%s13514_s5 + $0x58] sm:$0xff]  }
 0x417   :  { %7756 = vmatprep.subr.bf16.mxu0 %v9914_v28  ;;  %7920 = vmatprep.subr.bf16.mxu1 %v9917_v29  ;;  %v9985_v27 = vld [vmem:[%s13514_s5 + $0xd8] sm:$0xff]  }
 0x418   :  { %v9986_v28 = vld [vmem:[%s13514_s5 + $0x18] sm:$0xff]  }
 0x419   :  { %v9987_v29 = vld [vmem:[%s13514_s5 + $0x98] sm:$0xff]  }
 0x41a   :  { %7757 = vmatpush1.bf16.msra.mxu0 %v9912_v30  ;;  %7921 = vmatpush1.bf16.msra.mxu1 %v9915_v33  ;;  %v9988_v30 = vld [vmem:[%s13514_s5 + $0x60] sm:$0xff]  }
 0x41b   :  { %7758 = vmatprep.subr.bf16.mxu0 %v9920_v1  ;;  %7922 = vmatprep.subr.bf16.mxu1 %v9923_v34  ;;  %v9989_v33 = vld [vmem:[%s13514_s5 + $0xe0] sm:$0xff]  }
 0x41c   :  { %v9990_v1 = vld [vmem:[%s13514_s5 + $0x20] sm:$0xff]  }
 0x41d   :  { %v9991_v34 = vld [vmem:[%s13514_s5 + $0xa0] sm:$0xff]  }
 0x41e   :  { %7759 = vmatpush1.bf16.msra.mxu0 %v9918_v37  ;;  %7923 = vmatpush1.bf16.msra.mxu1 %v9921_v21  ;;  %v9992_v37 = vld [vmem:[%s13514_s5 + $0x68] sm:$0xff]  }
 0x41f   :  { %7760 = vmatprep.subr.bf16.mxu0 %v9926_v38  ;;  %7924 = vmatprep.subr.bf16.mxu1 %v9929_v39  ;;  %v9993_v21 = vld [vmem:[%s13514_s5 + $0xe8] sm:$0xff]  }
 0x420   :  { %v9994_v38 = vld [vmem:[%s13514_s5 + $0x28] sm:$0xff]  }
 0x421   :  { %v9995_v39 = vld [vmem:[%s13514_s5 + $0xa8] sm:$0xff]  }
 0x422   :  { %7761 = vmatpush1.bf16.msra.mxu0 %v9924_v40  ;;  %7925 = vmatpush1.bf16.msra.mxu1 %v9927_v41  ;;  %v9996_v40 = vld [vmem:[%s13514_s5 + $0x70] sm:$0xff]  }
 0x423   :  { %7762 = vmatprep.subr.bf16.mxu0 %v9932_v42  ;;  %7926 = vmatprep.subr.bf16.mxu1 %v9935_v43  ;;  %v9997_v41 = vld [vmem:[%s13514_s5 + $0xf0] sm:$0xff]  }
 0x424   :  { %v9998_v42 = vld [vmem:[%s13514_s5 + $0x30] sm:$0xff]  }
 0x425   :  { %v9999_v43 = vld [vmem:[%s13514_s5 + $0xb0] sm:$0xff]  }
 0x426   :  { %7763 = vmatpush1.bf16.msra.mxu0 %v9930_v45  ;;  %7927 = vmatpush1.bf16.msra.mxu1 %v9933_v32  ;;  %v10000_v45 = vld [vmem:[%s13514_s5 + $0x78] sm:$0xff]  }
 0x427   :  { %7764 = vmatprep.subr.bf16.mxu0 %v9938_v48  ;;  %7928 = vmatprep.subr.bf16.mxu1 %v9941_v49  ;;  %v10001_v32 = vld [vmem:[%s13514_s5 + $0xf8] sm:$0xff]  }
 0x428   :  { %v10002_v48 = vld [vmem:[%s13514_s5 + $0x38] sm:$0xff]  }
 0x429   :  { %v10003_v49 = vld [vmem:[%s13514_s5 + $0xb8] sm:$0xff]  }
 0x42a   :  { %7765 = vmatpush1.bf16.msra.mxu0 %v9936_v50  ;;  %7929 = vmatpush1.bf16.msra.mxu1 %v9939_v51  ;;  %v6319_v50 = vld [vmem:[%s13515_s4] sm:$0xf] }
 0x42b   :  { %7766 = vmatprep.subr.bf16.mxu0 %v9944_v52  ;;  %7930 = vmatprep.subr.bf16.mxu1 %v9947_v55  ;;  %v6324_v51 = vrot.slane %v6319_v50, %v857_v2  ;;  %v6332_v52 = vrot.slane %v6319_v50, %v865_v23  ;;  %v6328_v55 = vrot.slane %v6319_v50, %v861_v53 }
 0x42e   :  { %7767 = vmatpush1.bf16.msra.mxu0 %v9942_v36  ;;  %7931 = vmatpush1.bf16.msra.mxu1 %v9945_v56  ;;  %v6336_v36 = vrot.slane %v6319_v50, %v869_v6 }
 0x42f   :  { %7768 = vmatprep.subr.bf16.mxu0 %v9950_v58  ;;  %7932 = vmatprep.subr.bf16.mxu1 %v9953_v59 }
 0x432   :  { %7769 = vmatpush1.bf16.msra.mxu0 %v9948_v60  ;;  %7933 = vmatpush1.bf16.msra.mxu1 %v9951_v61 }
 0x433   :  { %7770 = vmatprep.subr.bf16.mxu0 %v9956_v62  ;;  %7934 = vmatprep.subr.bf16.mxu1 %v9959_v63 }
 0x436   :  { %7771 = vmatpush1.bf16.msra.mxu0 %v9954_v46  ;;  %7935 = vmatpush1.bf16.msra.mxu1 %v9957_v3 }
 0x437   :  { %7772 = vmatprep.subr.bf16.mxu0 %v9962_v5  ;;  %7936 = vmatprep.subr.bf16.mxu1 %v9965_v7 }
 0x43a   :  { %7773 = vmatpush1.bf16.msra.mxu0 %v9960_v0  ;;  %7937 = vmatpush1.bf16.msra.mxu1 %v9963_v47 }
 0x43b   :  { %7774 = vmatprep.subr.bf16.mxu0 %v9968_v9  ;;  %7938 = vmatprep.subr.bf16.mxu1 %v9971_v31  ;;  %v9378_v31 = vld [vmem:[%s13516_s6] ss:$0 sm:$0xff] }
 0x43e   :  { %7775 = vmatpush1.bf16.msra.mxu0 %v9966_v12  ;;  %7939 = vmatpush1.bf16.msra.mxu1 %v9969_v57 }
 0x43f   :  { %9411 = vmatprep.subr.bf16.mxu0 %v9972_v11  ;;  %9433 = vmatprep.subr.bf16.mxu1 %v9973_v13 }
 0x441   :  { %7777 = vmatmul.mubr.bf16.vlgmr.msra.gmra.mrb[8].mxu0 %v6061_v25  ;;  %7941 = vmatmul.mubr.bf16.vlgmr.msra.gmra.mrb[8].mxu1 %v6061_v25 }
 0x442   :  { %9412 = vmatpush3.bf16.msra.mxu0 %v9974_v15  ;;  %9434 = vmatpush3.bf16.msra.mxu1 %v9975_v16 }
 0x443   :  { %9413 = vmatprep.subr.bf16.mxu0 %v9976_v17  ;;  %9435 = vmatprep.subr.bf16.mxu1 %v9977_v18 }
 0x446   :  { %9414 = vmatpush3.bf16.msra.mxu0 %v9978_v22  ;;  %9436 = vmatpush3.bf16.msra.mxu1 %v9979_v35 }
 0x447   :  { %9415 = vmatprep.subr.bf16.mxu0 %v9980_v54  ;;  %9437 = vmatprep.subr.bf16.mxu1 %v9981_v19 }
 0x44a   :  { %9416 = vmatpush3.bf16.msra.mxu0 %v9982_v20  ;;  %9438 = vmatpush3.bf16.msra.mxu1 %v9983_v26 }
 0x44b   :  { %9417 = vmatprep.subr.bf16.mxu0 %v9984_v24  ;;  %9439 = vmatprep.subr.bf16.mxu1 %v9985_v27 }
 0x44e   :  { %9418 = vmatpush3.bf16.msra.mxu0 %v9986_v28  ;;  %9440 = vmatpush3.bf16.msra.mxu1 %v9987_v29 }
 0x44f   :  { %9419 = vmatprep.subr.bf16.mxu0 %v9988_v30  ;;  %9441 = vmatprep.subr.bf16.mxu1 %v9989_v33 }
 0x452   :  { %9420 = vmatpush3.bf16.msra.mxu0 %v9990_v1  ;;  %9442 = vmatpush3.bf16.msra.mxu1 %v9991_v34 }
 0x453   :  { %9421 = vmatprep.subr.bf16.mxu0 %v9992_v37  ;;  %9443 = vmatprep.subr.bf16.mxu1 %v9993_v21 }
 0x456   :  { %9422 = vmatpush3.bf16.msra.mxu0 %v9994_v38  ;;  %9444 = vmatpush3.bf16.msra.mxu1 %v9995_v39 }
 0x457   :  { %9423 = vmatprep.subr.bf16.mxu0 %v9996_v40  ;;  %9445 = vmatprep.subr.bf16.mxu1 %v9997_v41 }
 0x45a   :  { %9424 = vmatpush3.bf16.msra.mxu0 %v9998_v42  ;;  %9446 = vmatpush3.bf16.msra.mxu1 %v9999_v43 }
 0x45b   :  { %9425 = vmatprep.subr.bf16.mxu0 %v10000_v45  ;;  %9447 = vmatprep.subr.bf16.mxu1 %v10001_v32 }
 0x45e   :  { %9426 = vmatpush3.bf16.msra.mxu0 %v10002_v48  ;;  %9448 = vmatpush3.bf16.msra.mxu1 %v10003_v49 }
 0x514   :  { %v7778_v56 = vpop.f32.mrb[8].mxu0  ;;  %v7942_v58 = vpop.f32.mrb[8].mxu1 }
 0x515   :  { %v9463_v59 = vadd.f32 %v7778_v56, %v6324_v51  ;;  %v9465_v60 = vadd.f32 %v7942_v58, %v6332_v52  ;;  %v7780_v61 = vpop.f32.mrb[9].mxu0  ;;  %v7944_v44 = vpop.f32.mrb[9].mxu1 }
 0x516   :  { %v9464_v62 = vadd.f32 %v7780_v61, %v6328_v55  ;;  %v9466_v63 = vadd.f32 %v7944_v44, %v6336_v36  ;;  %v7782_v46 = vpop.f32.mrb[10].mxu0  ;;  %v7946_v3 = vpop.f32.mrb[10].mxu1 }
 0x517   :  { %v7949_v2 = vmax.f32 %v9463_v59, 0.0  ;;  %v7951_v4 = vmax.f32 %v9465_v60, 0.0  ;;  %v7783_v5 = vpop.f32.mrb[11].mxu0  ;;  %v7947_v23 = vpop.f32.mrb[11].mxu1 }
 0x518   :  { %v7950_v7 = vmax.f32 %v9464_v62, 0.0  ;;  %v7952_v0 = vmax.f32 %v9466_v63, 0.0 }
 0x519   :  { %v7953_v14 = vpack.c.bf16 %v7949_v2, %v7949_v2  ;;  %v7955_v6 = vpack.c.bf16 %v7951_v4, %v7951_v4 }
 0x51a   :  { %v7954_v53 = vpack.c.bf16 %v7950_v7, %v7950_v7  ;;  %v7956_v47 = vpack.c.bf16 %v7952_v0, %v7952_v0 }
 0x51c   :  { %8252 = vmatprep.mubr.bf16.mxu0 %v7954_v53  ;;  %8292 = vmatprep.mubr.bf16.mxu1 %v7956_v47 }
 0x51d   :  { %8253 = vmatmul.mubr.bf16.vlgmr.msra.gmra.mrb[12].mxu0 %v7953_v14  ;;  %8293 = vmatmul.mubr.bf16.vlgmr.msra.gmra.mrb[12].mxu1 %v7955_v6 }
 0x5f0   :  { %v9427_v8 = vpop.f32.mrb[12].mxu0  ;;  %v9449_v9 = vpop.f32.mrb[12].mxu1 }
 0x5f1   :  { %v9428_v12 = vpop.f32.mrb[13].mxu0  ;;  %v9450_v57 = vpop.f32.mrb[13].mxu1 }
 0x5f2   :  { %v9429_v10 = vadd.f32 %v9428_v12, %v9427_v8  ;;  %v9451_v11 = vadd.f32 %v9450_v57, %v9449_v9  ;;  %v9430_v13 = vpop.f32.mrb[14].mxu0  ;;  %v9452_v15 = vpop.f32.mrb[14].mxu1 }
 0x5f3   :  { %v9431_v16 = vpop.f32.mrb[15].mxu0  ;;  %v9453_v25 = vpop.f32.mrb[15].mxu1 }
 0x5f4   :  { %v8255_v17 = vadd.f32 %v9429_v10, %v9378_v31 }
 0x5f6   :  { %v8295_v18 = vadd.f32 %v9451_v11, %v8255_v17 }
 0x5f8   :  { %v8301_v22 = vsel %vm8300_vm1, %v8295_v18, -inf }
 0x5f9   :  { %8302 = vmax.xlane.f32.xlu0 %v8301_v22 }
 0x686   :  { %v8303_v35 = vpop.xlane.xlu0 %8302 }
 0x687   :  { %v8304_v54 = vsub.f32 %v8295_v18, %v8303_v35 }
 0x689   :  { %v8305_v19 = vmul.f32 1.442695, %v8304_v54 }
 0x68b   :  { %10004 = vpow2.f32 %v8305_v19 }
 0x695   :  { %v10005_v20 = vpop.eup %10004 }
 0x696   :  { %v8307_v26 = vsel %vm8300_vm1, %v10005_v20, 0.0 }
 0x697   :  { %8308 = vadd.xlane.f32.xlu0 %v8307_v26 }
 0x724   :  { %v8309_v24 = vpop.xlane.xlu0 %8308 }
 0x725   :  { %10006 = vlog2.f32 %v8309_v24 }
 0x72f   :  { %v10007_v27 = vpop.eup %10006 }
 0x730   :  { %v8311_v28 = vmul.f32 0.6931472, %v10007_v27 }
 0x732   :  { %v8312_v29 = vsub.f32 %v8304_v54, %v8311_v28 }
 0x734   :  { %8313 = vst.msk [vmem:[%s13517_s7] sm:$0xff] %vm8300_vm1, %v8312_v29 }

</bundles_post_ra>
